<compile_context>
chip_gen: v7x
topology: tpu7x:2x2x1
jax: 0.10.0
libtpu: 0.0.40
codegen_flags: <defaults>
</compile_context>

<pallas_src>
import jax
import jax.numpy as jnp
from jax.experimental import pallas as pl
from jax.experimental.pallas import tpu as pltpu

_EPS = 1e-5          # PyTorch BatchNorm2d default eps
_LANE = 128          # TPU lane width
_ROW_STRIP = 32      # conv output rows per im2col strip (bounds patch VMEM)


def _round_up(x, m):
    return (x + m - 1) // m * m


def _vmem_physical_bytes():
    """Physical VMEM per TensorCore; conservative (v7x) fallback if unknown."""
    try:
        return int(pltpu.get_tpu_info().vmem_capacity_bytes)
    except Exception:
        return 64 * 1024 * 1024


# ----------------------------- kernel helpers -------------------------------
def _conv3x3_im2col_relu(x, w, shift, row_strip=_ROW_STRIP):
    """Valid 3x3 conv (BN scale pre-folded into w) + shift + ReLU.

    x:     (B, H, W, Ci)  bf16 value
    w:     (9*Ci, Co)     bf16 value, rows ordered (ky, kx, ci)
    shift: (1, Co)        f32  value  (= (conv_bias - mean) * scale + beta)
    returns (B, H-2, W-2, Co) f32

    The im2col patch matrix is built per row strip so its VMEM footprint is
    bounded by row_strip*Wo*9*Ci instead of Ho*Wo*9*Ci.
    """
    B, H, W, Ci = x.shape
    Co = w.shape[-1]
    Ho, Wo = H - 2, W - 2
    strips = []
    for r0 in range(0, Ho, row_strip):
        rs = min(row_strip, Ho - r0)
        taps = [x[:, r0 + dy:r0 + dy + rs, dx:dx + Wo, :]
                for dy in range(3) for dx in range(3)]
        patches = jnp.concatenate(taps, axis=-1).reshape(B * rs * Wo, 9 * Ci)
        acc = jnp.dot(patches, w, preferred_element_type=jnp.float32)
        y = jnp.maximum(acc + shift, 0.0)
        strips.append(y.reshape(B, rs, Wo, Co))
    return strips[0] if len(strips) == 1 else jnp.concatenate(strips, axis=1)


def _rep_pad1(x):
    """ReplicationPad2d(1) on a (B, H, W, C) value."""
    x = jnp.concatenate([x[:, :, :1, :], x, x[:, :, -1:, :]], axis=2)
    x = jnp.concatenate([x[:, :1], x, x[:, -1:]], axis=1)
    return x


def _unet_down_kernel(x_ref, w1_ref, sh1_ref, w2_ref, sh2_ref,
                      pool_ref, p2_ref):
    # TODO(synk): BatchNorm2d is inference-mode only (running stats folded into
    # the weights/shift); training-mode batch statistics are not computed.
    Bt, H, W, _ = x_ref.shape
    Cp = w1_ref.shape[1]                 # lane-padded channel count (mult. of 128)
    Cout = p2_ref.shape[2] // W          # real (unpadded) out channels
    Hh, Wh = H // 2, W // 2

    x = x_ref[...]                                               # (Bt,H,W,Cin) bf16
    c1 = _conv3x3_im2col_relu(x, w1_ref[...], sh1_ref[...])      # (Bt,H-2,W-2,Cp) f32
    p1 = _rep_pad1(c1).astype(jnp.bfloat16)                      # (Bt,H,  W,  Cp) bf16
    c2 = _conv3x3_im2col_relu(p1, w2_ref[...], sh2_ref[...])     # (Bt,H-2,W-2,Cp) f32
    p2 = _rep_pad1(c2)                                           # (Bt,H,  W,  Cp) f32

    # MaxPool2d(2) on the in-register f32 value. With Cp a multiple of 128 the
    # reshape + lane slices are fully 128-aligned (no masked selects).
    ph = p2.reshape(Bt, Hh, 2, W, Cp)
    he = jnp.maximum(ph[:, :, 0], ph[:, :, 1])                   # (Bt,Hh,W,Cp)
    hw = he.reshape(Bt, Hh, Wh, 2 * Cp)
    pool = jnp.maximum(hw[..., :Cp], hw[..., Cp:])               # (Bt,Hh,Wh,Cp)

    # Lane-dense bf16 slab stores.
    pool_ref[...] = pool.reshape(Bt, Hh, Wh * Cp).astype(pool_ref.dtype)
    p2_ref[...] = p2[..., :Cout].reshape(Bt, H, W * Cout).astype(p2_ref.dtype)


# ------------------------------ JAX wrapper ----------------------------------
def _fold_bn(w_oihw, b, g, beta, m, v, ci_pad, co_pad):
    """Fold BN scale into conv weights (f32), pad channels, cast to bf16."""
    co, ci = w_oihw.shape[0], w_oihw.shape[1]
    s = (g / jnp.sqrt(v + _EPS)).astype(jnp.float32)                   # (co,)
    w_hwio = jnp.transpose(w_oihw, (2, 3, 1, 0)).astype(jnp.float32)   # (3,3,ci,co)
    w_hwio = w_hwio * s[None, None, None, :]
    w_hwio = jnp.pad(w_hwio, ((0, 0), (0, 0), (0, ci_pad - ci), (0, co_pad - co)))
    w_folded = w_hwio.reshape(9 * ci_pad, co_pad).astype(jnp.bfloat16)
    shift = ((b - m) * s + beta).astype(jnp.float32)
    shift = jnp.pad(shift, (0, co_pad - co)).reshape(1, co_pad)
    return w_folded, shift


def unet_down_forward(x_nchw, params):
    N, Cin, H, W = x_nchw.shape
    Cout = params["w1"].shape[0]
    assert H % 2 == 0 and W % 2 == 0
    Hh, Wh = H // 2, W // 2
    Cp = _round_up(Cout, _LANE)

    w1, sh1 = _fold_bn(params["w1"], params["b1"], params["g1"], params["beta1"],
                       params["m1"], params["v1"], Cin, Cp)
    w2, sh2 = _fold_bn(params["w2"], params["b2"], params["g2"], params["beta2"],
                       params["m2"], params["v2"], Cp, Cp)

    x = jnp.transpose(x_nchw, (0, 2, 3, 1)).astype(jnp.bfloat16)    # NCHW -> NHWC

    # ---- per-generation VMEM budgeting (no hard-coded 64 MiB) --------------
    phys_vmem = _vmem_physical_bytes()
    budget = phys_vmem * 3 // 4

    # Rough per-image VMEM footprint: bf16 I/O (double-buffered by BlockSpec),
    # f32/bf16 intermediates c1/p1/c2/p2, one row strip of im2col patches.
    in_b = H * W * Cin * 2
    out_b = (Hh * Wh * Cp + H * W * Cout) * 2
    inter = 4 * H * W * Cp * 4
    patch = min(_ROW_STRIP, H) * W * 9 * Cp * 2
    per_img = 2 * (in_b + out_b) + inter + patch
    w_bytes = int(w1.size) * 2 + int(w2.size) * 2 + (int(sh1.size) + int(sh2.size)) * 4

    # Images per grid step: as large as the budget allows, but keep >= 2 grid
    # steps when N >= 2 so both v7x TensorCores get work on the parallel axis.
    bt = max(1, (budget - w_bytes) // max(per_img, 1))
    if N >= 2:
        bt = min(bt, max(1, N // 2))
    bt = int(min(bt, N))

    n_pad = _round_up(N, bt)
    if n_pad != N:
        x = jnp.pad(x, ((0, n_pad - N), (0, 0), (0, 0), (0, 0)))

    est_step = bt * per_img + w_bytes
    vmem_limit = int(min(budget, max(2 * est_step, 32 * 1024 * 1024)))

    grid_spec = pltpu.PrefetchScalarGridSpec(
        num_scalar_prefetch=0,
        grid=(n_pad // bt,),
        in_specs=[
            pl.BlockSpec((bt, H, W, Cin), lambda n: (n, 0, 0, 0)),
            pl.BlockSpec((9 * Cin, Cp), lambda n: (0, 0)),
            pl.BlockSpec((1, Cp), lambda n: (0, 0)),
            pl.BlockSpec((9 * Cp, Cp), lambda n: (0, 0)),
            pl.BlockSpec((1, Cp), lambda n: (0, 0)),
        ],
        out_specs=[
            pl.BlockSpec((bt, Hh, Wh * Cp), lambda n: (n, 0, 0)),
            pl.BlockSpec((bt, H, W * Cout), lambda n: (n, 0, 0)),
        ],
    )

    pool_slab, p2_slab = pl.pallas_call(
        _unet_down_kernel,
        out_shape=(
            jax.ShapeDtypeStruct((n_pad, Hh, Wh * Cp), jnp.bfloat16),
            jax.ShapeDtypeStruct((n_pad, H, W * Cout), jnp.bfloat16),
        ),
        grid_spec=grid_spec,
        compiler_params=pltpu.CompilerParams(
            dimension_semantics=("parallel",),
            vmem_limit_bytes=vmem_limit,
        ),
    )(x, w1, sh1, w2, sh2)

    # Slabs -> NCHW (drop channel/batch padding).
    pool = pool_slab.reshape(n_pad, Hh, Wh, Cp)[:N, :, :, :Cout]
    pool = jnp.transpose(pool, (0, 3, 1, 2)).astype(jnp.float32)
    p2 = p2_slab.reshape(n_pad, H, W, Cout)[:N]
    p2 = jnp.transpose(p2, (0, 3, 1, 2)).astype(jnp.float32)
    return pool, p2


# --------------------- deterministic params & reference ----------------------
def init_params(key, cin, cout):
    ks = jax.random.split(key, 12)

    def conv_w(k, ci, co):
        return 0.1 * jax.random.normal(k, (co, ci, 3, 3), jnp.float32)

    return {
        "w1": conv_w(ks[0], cin, cout),
        "b1": 0.05 * jax.random.normal(ks[1], (cout,), jnp.float32),
        "g1": 1.0 + 0.1 * jax.random.normal(ks[2], (cout,), jnp.float32),
        "beta1": 0.05 * jax.random.normal(ks[3], (cout,), jnp.float32),
        "m1": 0.05 * jax.random.normal(ks[4], (cout,), jnp.float32),
        "v1": 0.5 + jax.random.uniform(ks[5], (cout,), jnp.float32),
        "w2": conv_w(ks[6], cout, cout),
        "b2": 0.05 * jax.random.normal(ks[7], (cout,), jnp.float32),
        "g2": 1.0 + 0.1 * jax.random.normal(ks[8], (cout,), jnp.float32),
        "beta2": 0.05 * jax.random.normal(ks[9], (cout,), jnp.float32),
        "m2": 0.05 * jax.random.normal(ks[10], (cout,), jnp.float32),
        "v2": 0.5 + jax.random.uniform(ks[11], (cout,), jnp.float32),
    }


def reference(x, p):
    def conv_bn_relu(x, w, b, g, beta, m, v):
        y = jax.lax.conv_general_dilated(
            x, w, window_strides=(1, 1), padding="VALID",
            dimension_numbers=("NCHW", "OIHW", "NCHW"),
            precision=jax.lax.Precision.HIGHEST)
        y = y + b[None, :, None, None]
        y = (y - m[None, :, None, None]) / jnp.sqrt(v[None, :, None, None] + _EPS)
        y = y * g[None, :, None, None] + beta[None, :, None, None]
        return jnp.maximum(y, 0.0)

    def rpad(x):
        return jnp.pad(x, ((0, 0), (0, 0), (1, 1), (1, 1)), mode="edge")

    c1 = conv_bn_relu(x, p["w1"], p["b1"], p["g1"], p["beta1"], p["m1"], p["v1"])
    p1 = rpad(c1)
    c2 = conv_bn_relu(p1, p["w2"], p["b2"], p["g2"], p["beta2"], p["m2"], p["v2"])
    p2 = rpad(c2)
    pool = jax.lax.reduce_window(p2, -jnp.inf, jax.lax.max,
                                 (1, 1, 2, 2), (1, 1, 2, 2), "VALID")
    return pool, p2


if __name__ == "__main__":
    key = jax.random.PRNGKey(0)
    kx, kp = jax.random.split(key)
    N, Cin, Cout, H, W = 2, 4, 8, 16, 16
    x = jax.random.normal(kx, (N, Cin, H, W), jnp.float32)
    params = init_params(kp, Cin, Cout)

    pool, p2 = jax.block_until_ready(unet_down_forward(x, params))

    assert pool.shape == (N, Cout, H // 2, W // 2)
    assert p2.shape == (N, Cout, H, W)

    pool_r, p2_r = reference(x, params)
    # bf16 MXU inputs + bf16 output stores with f32 accumulation.
    assert jnp.allclose(pool, pool_r, atol=4e-2, rtol=4e-2)
    assert jnp.allclose(p2, p2_r, atol=4e-2, rtol=4e-2)

    print("KERNEL_OK")
</pallas_src>

<mosaic_0001>
module attributes {stable_mosaic.version = 11 : i64} {
  func.func @_unet_down_kernel(%arg0: i32, %arg1: memref<1x16x16x4xbf16, #tpu.memory_space<vmem>>, %arg2: memref<36x128xbf16, #tpu.memory_space<vmem>>, %arg3: memref<1x128xf32, #tpu.memory_space<vmem>>, %arg4: memref<1152x128xbf16, #tpu.memory_space<vmem>>, %arg5: memref<1x128xf32, #tpu.memory_space<vmem>>, %arg6: memref<1x8x1024xbf16, #tpu.memory_space<vmem>>, %arg7: memref<1x16x128xbf16, #tpu.memory_space<vmem>>) attributes {dimension_semantics = [#tpu.dimension_semantics<parallel>], iteration_bounds = array<i64: 2>, scalar_prefetch = 0 : i64, scratch_operands = 0 : i64, tpu.core_type = #tpu.core_type<tc>, window_params = [{transform_indices = @transform_0, window_bounds = array<i64: 1, 16, 16, 4>}, {pipeline_mode = #tpu.pipeline_mode<synchronous>, transform_indices = @transform_1, window_bounds = array<i64: 36, 128>}, {pipeline_mode = #tpu.pipeline_mode<synchronous>, transform_indices = @transform_2, window_bounds = array<i64: 1, 128>}, {pipeline_mode = #tpu.pipeline_mode<synchronous>, transform_indices = @transform_3, window_bounds = array<i64: 1152, 128>}, {pipeline_mode = #tpu.pipeline_mode<synchronous>, transform_indices = @transform_4, window_bounds = array<i64: 1, 128>}, {transform_indices = @transform_5, window_bounds = array<i64: 1, 8, 1024>}, {transform_indices = @transform_6, window_bounds = array<i64: 1, 16, 128>}]} {
    %c0 = arith.constant 0 : index
    %c0_0 = arith.constant 0 : index
    %c0_1 = arith.constant 0 : index
    %c0_2 = arith.constant 0 : index
    %0 = vector.load %arg1[%c0, %c0_0, %c0_1, %c0_2] : memref<1x16x16x4xbf16, #tpu.memory_space<vmem>>, vector<1x16x16x4xbf16>
    %c0_3 = arith.constant 0 : index
    %c0_4 = arith.constant 0 : index
    %1 = vector.load %arg2[%c0_3, %c0_4] : memref<36x128xbf16, #tpu.memory_space<vmem>>, vector<36x128xbf16>
    %c0_5 = arith.constant 0 : index
    %c0_6 = arith.constant 0 : index
    %2 = vector.load %arg3[%c0_5, %c0_6] : memref<1x128xf32, #tpu.memory_space<vmem>>, vector<1x128xf32>
    %3 = vector.extract_strided_slice %0 {offsets = [0, 0, 0, 0], sizes = [1, 14, 14, 4], strides = [1, 1, 1, 1]} : vector<1x16x16x4xbf16> to vector<1x14x14x4xbf16>
    %4 = vector.extract_strided_slice %0 {offsets = [0, 0, 1, 0], sizes = [1, 14, 14, 4], strides = [1, 1, 1, 1]} : vector<1x16x16x4xbf16> to vector<1x14x14x4xbf16>
    %5 = vector.extract_strided_slice %0 {offsets = [0, 0, 2, 0], sizes = [1, 14, 14, 4], strides = [1, 1, 1, 1]} : vector<1x16x16x4xbf16> to vector<1x14x14x4xbf16>
    %6 = vector.extract_strided_slice %0 {offsets = [0, 1, 0, 0], sizes = [1, 14, 14, 4], strides = [1, 1, 1, 1]} : vector<1x16x16x4xbf16> to vector<1x14x14x4xbf16>
    %7 = vector.extract_strided_slice %0 {offsets = [0, 1, 1, 0], sizes = [1, 14, 14, 4], strides = [1, 1, 1, 1]} : vector<1x16x16x4xbf16> to vector<1x14x14x4xbf16>
    %8 = vector.extract_strided_slice %0 {offsets = [0, 1, 2, 0], sizes = [1, 14, 14, 4], strides = [1, 1, 1, 1]} : vector<1x16x16x4xbf16> to vector<1x14x14x4xbf16>
    %9 = vector.extract_strided_slice %0 {offsets = [0, 2, 0, 0], sizes = [1, 14, 14, 4], strides = [1, 1, 1, 1]} : vector<1x16x16x4xbf16> to vector<1x14x14x4xbf16>
    %10 = vector.extract_strided_slice %0 {offsets = [0, 2, 1, 0], sizes = [1, 14, 14, 4], strides = [1, 1, 1, 1]} : vector<1x16x16x4xbf16> to vector<1x14x14x4xbf16>
    %11 = vector.extract_strided_slice %0 {offsets = [0, 2, 2, 0], sizes = [1, 14, 14, 4], strides = [1, 1, 1, 1]} : vector<1x16x16x4xbf16> to vector<1x14x14x4xbf16>
    %12 = tpu.concatenate %3, %4, %5, %6, %7, %8, %9, %10, %11 in 3 : vector<1x14x14x4xbf16>, vector<1x14x14x4xbf16>, vector<1x14x14x4xbf16>, vector<1x14x14x4xbf16>, vector<1x14x14x4xbf16>, vector<1x14x14x4xbf16>, vector<1x14x14x4xbf16>, vector<1x14x14x4xbf16>, vector<1x14x14x4xbf16> -> vector<1x14x14x36xbf16>
    %13 = vector.shape_cast %12 : vector<1x14x14x36xbf16> to vector<196x36xbf16>
    %cst = arith.constant dense<0.000000e+00> : vector<196x128xf32>
    %14 = tpu.matmul %13, %1, %cst {dimension_numbers = #tpu.dot_dimension_numbers<[1], [0], [0], [1], [0, 0, 1, 1], [], []>} : vector<196x36xbf16>, vector<36x128xbf16>, vector<196x128xf32> -> vector<196x128xf32>
    %15 = vector.broadcast %2 : vector<1x128xf32> to vector<196x128xf32>
    %16 = arith.addf %14, %15 : vector<196x128xf32>
    %cst_7 = arith.constant 0.000000e+00 : f32
    %17 = vector.broadcast %cst_7 : f32 to vector<196x128xf32>
    %18 = arith.maximumf %16, %17 : vector<196x128xf32>
    %19 = vector.shape_cast %18 : vector<196x128xf32> to vector<1x14x14x128xf32>
    %20 = vector.extract_strided_slice %19 {offsets = [0, 0, 0, 0], sizes = [1, 14, 1, 128], strides = [1, 1, 1, 1]} : vector<1x14x14x128xf32> to vector<1x14x1x128xf32>
    %21 = vector.extract_strided_slice %19 {offsets = [0, 0, 13, 0], sizes = [1, 14, 1, 128], strides = [1, 1, 1, 1]} : vector<1x14x14x128xf32> to vector<1x14x1x128xf32>
    %22 = tpu.concatenate %20, %19, %21 in 2 : vector<1x14x1x128xf32>, vector<1x14x14x128xf32>, vector<1x14x1x128xf32> -> vector<1x14x16x128xf32>
    %23 = vector.extract_strided_slice %22 {offsets = [0, 0, 0, 0], sizes = [1, 1, 16, 128], strides = [1, 1, 1, 1]} : vector<1x14x16x128xf32> to vector<1x1x16x128xf32>
    %24 = vector.extract_strided_slice %22 {offsets = [0, 13, 0, 0], sizes = [1, 1, 16, 128], strides = [1, 1, 1, 1]} : vector<1x14x16x128xf32> to vector<1x1x16x128xf32>
    %25 = tpu.concatenate %23, %22, %24 in 1 : vector<1x1x16x128xf32>, vector<1x14x16x128xf32>, vector<1x1x16x128xf32> -> vector<1x16x16x128xf32>
    %26 = arith.truncf %25 : vector<1x16x16x128xf32> to vector<1x16x16x128xbf16>
    %c0_8 = arith.constant 0 : index
    %c0_9 = arith.constant 0 : index
    %27 = vector.load %arg4[%c0_8, %c0_9] : memref<1152x128xbf16, #tpu.memory_space<vmem>>, vector<1152x128xbf16>
    %c0_10 = arith.constant 0 : index
    %c0_11 = arith.constant 0 : index
    %28 = vector.load %arg5[%c0_10, %c0_11] : memref<1x128xf32, #tpu.memory_space<vmem>>, vector<1x128xf32>
    %29 = vector.extract_strided_slice %26 {offsets = [0, 0, 0, 0], sizes = [1, 14, 14, 128], strides = [1, 1, 1, 1]} : vector<1x16x16x128xbf16> to vector<1x14x14x128xbf16>
    %30 = vector.extract_strided_slice %26 {offsets = [0, 0, 1, 0], sizes = [1, 14, 14, 128], strides = [1, 1, 1, 1]} : vector<1x16x16x128xbf16> to vector<1x14x14x128xbf16>
    %31 = vector.extract_strided_slice %26 {offsets = [0, 0, 2, 0], sizes = [1, 14, 14, 128], strides = [1, 1, 1, 1]} : vector<1x16x16x128xbf16> to vector<1x14x14x128xbf16>
    %32 = vector.extract_strided_slice %26 {offsets = [0, 1, 0, 0], sizes = [1, 14, 14, 128], strides = [1, 1, 1, 1]} : vector<1x16x16x128xbf16> to vector<1x14x14x128xbf16>
    %33 = vector.extract_strided_slice %26 {offsets = [0, 1, 1, 0], sizes = [1, 14, 14, 128], strides = [1, 1, 1, 1]} : vector<1x16x16x128xbf16> to vector<1x14x14x128xbf16>
    %34 = vector.extract_strided_slice %26 {offsets = [0, 1, 2, 0], sizes = [1, 14, 14, 128], strides = [1, 1, 1, 1]} : vector<1x16x16x128xbf16> to vector<1x14x14x128xbf16>
    %35 = vector.extract_strided_slice %26 {offsets = [0, 2, 0, 0], sizes = [1, 14, 14, 128], strides = [1, 1, 1, 1]} : vector<1x16x16x128xbf16> to vector<1x14x14x128xbf16>
    %36 = vector.extract_strided_slice %26 {offsets = [0, 2, 1, 0], sizes = [1, 14, 14, 128], strides = [1, 1, 1, 1]} : vector<1x16x16x128xbf16> to vector<1x14x14x128xbf16>
    %37 = vector.extract_strided_slice %26 {offsets = [0, 2, 2, 0], sizes = [1, 14, 14, 128], strides = [1, 1, 1, 1]} : vector<1x16x16x128xbf16> to vector<1x14x14x128xbf16>
    %38 = tpu.concatenate %29, %30, %31, %32, %33, %34, %35, %36, %37 in 3 : vector<1x14x14x128xbf16>, vector<1x14x14x128xbf16>, vector<1x14x14x128xbf16>, vector<1x14x14x128xbf16>, vector<1x14x14x128xbf16>, vector<1x14x14x128xbf16>, vector<1x14x14x128xbf16>, vector<1x14x14x128xbf16>, vector<1x14x14x128xbf16> -> vector<1x14x14x1152xbf16>
    %39 = vector.shape_cast %38 : vector<1x14x14x1152xbf16> to vector<196x1152xbf16>
    %cst_12 = arith.constant dense<0.000000e+00> : vector<196x128xf32>
    %40 = tpu.matmul %39, %27, %cst_12 {dimension_numbers = #tpu.dot_dimension_numbers<[1], [0], [0], [1], [0, 0, 1, 1], [], []>} : vector<196x1152xbf16>, vector<1152x128xbf16>, vector<196x128xf32> -> vector<196x128xf32>
    %41 = vector.broadcast %28 : vector<1x128xf32> to vector<196x128xf32>
    %42 = arith.addf %40, %41 : vector<196x128xf32>
    %cst_13 = arith.constant 0.000000e+00 : f32
    %43 = vector.broadcast %cst_13 : f32 to vector<196x128xf32>
    %44 = arith.maximumf %42, %43 : vector<196x128xf32>
    %45 = vector.shape_cast %44 : vector<196x128xf32> to vector<1x14x14x128xf32>
    %46 = vector.extract_strided_slice %45 {offsets = [0, 0, 0, 0], sizes = [1, 14, 1, 128], strides = [1, 1, 1, 1]} : vector<1x14x14x128xf32> to vector<1x14x1x128xf32>
    %47 = vector.extract_strided_slice %45 {offsets = [0, 0, 13, 0], sizes = [1, 14, 1, 128], strides = [1, 1, 1, 1]} : vector<1x14x14x128xf32> to vector<1x14x1x128xf32>
    %48 = tpu.concatenate %46, %45, %47 in 2 : vector<1x14x1x128xf32>, vector<1x14x14x128xf32>, vector<1x14x1x128xf32> -> vector<1x14x16x128xf32>
    %49 = vector.extract_strided_slice %48 {offsets = [0, 0, 0, 0], sizes = [1, 1, 16, 128], strides = [1, 1, 1, 1]} : vector<1x14x16x128xf32> to vector<1x1x16x128xf32>
    %50 = vector.extract_strided_slice %48 {offsets = [0, 13, 0, 0], sizes = [1, 1, 16, 128], strides = [1, 1, 1, 1]} : vector<1x14x16x128xf32> to vector<1x1x16x128xf32>
    %51 = tpu.concatenate %49, %48, %50 in 1 : vector<1x1x16x128xf32>, vector<1x14x16x128xf32>, vector<1x1x16x128xf32> -> vector<1x16x16x128xf32>
    %52 = vector.shape_cast %51 : vector<1x16x16x128xf32> to vector<1x8x2x16x128xf32>
    %53 = vector.extract_strided_slice %52 {offsets = [0, 0, 0, 0, 0], sizes = [1, 8, 1, 16, 128], strides = [1, 1, 1, 1, 1]} : vector<1x8x2x16x128xf32> to vector<1x8x1x16x128xf32>
    %54 = vector.shape_cast %53 : vector<1x8x1x16x128xf32> to vector<1x8x16x128xf32>
    %55 = vector.extract_strided_slice %52 {offsets = [0, 0, 1, 0, 0], sizes = [1, 8, 1, 16, 128], strides = [1, 1, 1, 1, 1]} : vector<1x8x2x16x128xf32> to vector<1x8x1x16x128xf32>
    %56 = vector.shape_cast %55 : vector<1x8x1x16x128xf32> to vector<1x8x16x128xf32>
    %57 = arith.maximumf %54, %56 : vector<1x8x16x128xf32>
    %58 = vector.shape_cast %57 : vector<1x8x16x128xf32> to vector<1x8x8x256xf32>
    %59 = vector.extract_strided_slice %58 {offsets = [0, 0, 0, 0], sizes = [1, 8, 8, 128], strides = [1, 1, 1, 1]} : vector<1x8x8x256xf32> to vector<1x8x8x128xf32>
    %60 = vector.extract_strided_slice %58 {offsets = [0, 0, 0, 128], sizes = [1, 8, 8, 128], strides = [1, 1, 1, 1]} : vector<1x8x8x256xf32> to vector<1x8x8x128xf32>
    %61 = arith.maximumf %59, %60 : vector<1x8x8x128xf32>
    %62 = vector.shape_cast %61 : vector<1x8x8x128xf32> to vector<1x8x1024xf32>
    %63 = arith.truncf %62 : vector<1x8x1024xf32> to vector<1x8x1024xbf16>
    %c0_14 = arith.constant 0 : index
    %c0_15 = arith.constant 0 : index
    %c0_16 = arith.constant 0 : index
    %64 = vector.load %arg6[%c0_14, %c0_15, %c0_16] : memref<1x8x1024xbf16, #tpu.memory_space<vmem>>, vector<1x8x1024xbf16>
    tpu.vector_store %arg6[%c0_14, %c0_15, %c0_16], %63 {strides = array<i32>} : memref<1x8x1024xbf16, #tpu.memory_space<vmem>>, vector<1x8x1024xbf16>,
    %65 = vector.extract_strided_slice %51 {offsets = [0, 0, 0, 0], sizes = [1, 16, 16, 8], strides = [1, 1, 1, 1]} : vector<1x16x16x128xf32> to vector<1x16x16x8xf32>
    %66 = vector.shape_cast %65 : vector<1x16x16x8xf32> to vector<1x16x128xf32>
    %67 = arith.truncf %66 : vector<1x16x128xf32> to vector<1x16x128xbf16>
    %c0_17 = arith.constant 0 : index
    %c0_18 = arith.constant 0 : index
    %c0_19 = arith.constant 0 : index
    %68 = vector.load %arg7[%c0_17, %c0_18, %c0_19] : memref<1x16x128xbf16, #tpu.memory_space<vmem>>, vector<1x16x128xbf16>
    tpu.vector_store %arg7[%c0_17, %c0_18, %c0_19], %67 {strides = array<i32>} : memref<1x16x128xbf16, #tpu.memory_space<vmem>>, vector<1x16x128xbf16>,
    return
  }
  func.func @transform_0(%arg0: i32) -> (i32, i32, i32, i32) {
    %c0_i32 = arith.constant 0 : i32
    %c0_i32_0 = arith.constant 0 : i32
    %c0_i32_1 = arith.constant 0 : i32
    %c0_i32_2 = arith.constant 0 : i32
    return %arg0, %c0_i32, %c0_i32_0, %c0_i32_1 : i32, i32, i32, i32
  }
  func.func @transform_1(%arg0: i32) -> (i32, i32) {
    %c0_i32 = arith.constant 0 : i32
    %c0_i32_0 = arith.constant 0 : i32
    %c0_i32_1 = arith.constant 0 : i32
    return %c0_i32, %c0_i32_0 : i32, i32
  }
  func.func @transform_2(%arg0: i32) -> (i32, i32) {
    %c0_i32 = arith.constant 0 : i32
    %c0_i32_0 = arith.constant 0 : i32
    %c0_i32_1 = arith.constant 0 : i32
    return %c0_i32, %c0_i32_0 : i32, i32
  }
  func.func @transform_3(%arg0: i32) -> (i32, i32) {
    %c0_i32 = arith.constant 0 : i32
    %c0_i32_0 = arith.constant 0 : i32
    %c0_i32_1 = arith.constant 0 : i32
    return %c0_i32, %c0_i32_0 : i32, i32
  }
  func.func @transform_4(%arg0: i32) -> (i32, i32) {
    %c0_i32 = arith.constant 0 : i32
    %c0_i32_0 = arith.constant 0 : i32
    %c0_i32_1 = arith.constant 0 : i32
    return %c0_i32, %c0_i32_0 : i32, i32
  }
  func.func @transform_5(%arg0: i32) -> (i32, i32, i32) {
    %c0_i32 = arith.constant 0 : i32
    %c0_i32_0 = arith.constant 0 : i32
    %c0_i32_1 = arith.constant 0 : i32
    return %arg0, %c0_i32, %c0_i32_0 : i32, i32, i32
  }
  func.func @transform_6(%arg0: i32) -> (i32, i32, i32) {
    %c0_i32 = arith.constant 0 : i32
    %c0_i32_0 = arith.constant 0 : i32
    %c0_i32_1 = arith.constant 0 : i32
    return %arg0, %c0_i32, %c0_i32_0 : i32, i32, i32
  }
}

</mosaic_0001>

<bundles_post_ra>
// kernel: tpu_custom_call.1
= control target key start
LH: loop header
LB: loop body
LE: loop exit
PB: predicated region body
PF: predicated region fallthrough
CT: control target
= control target key end

     0   :  { %12 = vsyncpa [#allocation3], 0  ;;  %s16867_s0 = inlined_call_operand.vmem [shape: bf16[2,16,16,4], index: 0, kind: input, shape index: {}]   ;;  %s16868_s1 = inlined_call_operand.vmem [shape: bf16[36,128], index: 1, kind: input, shape index: {}]   ;;  %s16869_s2 = inlined_call_operand.vmem [shape: f32[1,128], index: 2, kind: input, shape index: {}]   ;;  %s16870_s3 = inlined_call_operand.hbm [shape: bf16[1152,128], index: 3, kind: input, shape index: {}]   ;;  %s16871_s4 = inlined_call_operand.vmem [shape: f32[1,128], index: 4, kind: input, shape index: {}]   ;;  %s16872_s5 = inlined_call_operand.hbm [shape: bf16[2,8,1024], index: 5, kind: output, shape index: {0}]   ;;  %s16873_s6 = inlined_call_operand.hbm [shape: bf16[2,16,128], index: 6, kind: output, shape index: {1}]  }
   0x1   :  { %13 = vsyncpa [#allocation4], 0 }
   0x2   :  { %15 = vsyncpa [#allocation4 + $0x1], 0 }
   0x3   :  { %16 = vsyncpa [#allocation7], 0 }
   0x4   :  { %18 = vsyncpa [#allocation7 + $0x1], 0  ;;  %s13289_s21 = smov 0   ;;  %s13291_s22 = smov 0  }
   0x5   :  { %s13293_s23 = smov 0   ;;  %s13295_s24 = smov 0  }
   0x6 LB: > { %s13310_s25 = sadd.s32 4294967295, %s13223_s24   ;;  %s12032_s26 = sadd.s32 4294967294, %s13223_s24   ;;  %s13223_s24 = sphi %s13295_s24, %s17209_s24   ;;  %s13219_s23 = sphi %s13293_s23, %s17208_s23   ;;  %s13215_s22 = sphi %s13291_s22, %s17207_s22   ;;  %s13211_s21 = sphi %s13289_s21, %s17206_s21  }
   0x7   : > { %s13314_s27 = sadd.s32 1, %s13223_s24   ;;  %s141_s28 = sadd.s32 1, %s13219_s23 }
   0x8   : > { %s138_s29 = ssub.s32 %s13223_s24, %s13314_s27  ;;  %p151_p0 = scmp.ne.s32.totalorder %s13219_s23, %s13215_s22 }
   0x9   : > { %p139_p1 = scmp.eq.s32.totalorder %s138_s29, 0  ;;  %p152_p2 = scmp.eq.s32.totalorder %s13310_s25, 1 }
   0xa   : > { %p157_p3 = scmp.ne.s32.totalorder %s13215_s22, %s13211_s21  ;;  %p158_p4 = scmp.eq.s32.totalorder %s12032_s26, 1 }
   0xb   : > { %s13325_s30 = scalar_select %p139_p1, %s13219_s23, %s141_s28  }
   0xc   : > { %p13327_p5 = por %p152_p2, %p151_p0  ;;  %p13331_p6 = por %p158_p4, %p157_p3 }
   0xd   : > { %p12033_p7 = scmp.ge.s32.totalorder %s13223_s24, 1  ;;  %p191_p8 = scmp.lt.s32.totalorder %s13223_s24, 3 }
   0xe   : > { %s16995_s7 = scalar_select %p13327_p5, 1, 0 }
   0xf   : > { %s16996_s8 = scalar_select %p13331_p6, 1, 0 }
  0x10   : > { %p16874_p9 = scmp.eq.s32.totalorder %s13310_s25, 0  ;;  %p13338_p10 = pnand %p12033_p7, %p191_p8 }
  0x11   : > { %s13225_s10 = smov [#allocation2]   ;;  %s13097_s15 = scalar_lea.hbm %s16870_s3, 9216 }
  0x12   : > { %s16997_s9 = scalar_select %p13338_p10, 1, 0 }
  0x13   : > { %s209_s11 = sshll.u32 %s13225_s10, 4  ;;  %p12855_p11 = pneg %p13338_p10  ;;  %s210_s11 = int_to_ptr.vmem [resolvable:$true] %s209_s11 }
  0x14   : > { %p13098_p13 = scmp.ne.s32.totalorder %s16870_s3, %s13097_s15  ;;  %p13104_p3 = scmp.lt.u32.totalorder %s13097_s15, %s16870_s3 }
  0x15   : > { %p13346_p12 = pnand %p16874_p9, %p12855_p11 }
  0x17   : > { %p13099_p0 = pneg %p13346_p12 }
  0x19   : > { %p13100_p1 = pnand %p13099_p0, %p13098_p13 }
  0x1b   : > { %p13101_p2 = pneg %p13100_p1 }
  0x1d   : > { %p13106_p4 = pnand %p13104_p3, %p13101_p2 }
  0x1f   : > { %13109 = shalt.err (!%p13106_p4)
}
  0x20   : > { %s13110_s20 = scalar_lea.vmem %s210_s11, 9216  ;;  %p13118_p9 = scmp.lt.s32.totalorder %s210_s11, %s210_s11 }
  0x21   : > { %p13111_p7 = scmp.ne.s32.totalorder %s210_s11, %s13110_s20  ;;  %p13119_p6 = scmp.lt.s32.totalorder %s13110_s20, %s13110_s20 }
  0x23   : > { %p13113_p8 = pnand %p13111_p7, %p13099_p0  ;;  %p13120_p5 = por %p13119_p6, %p13118_p9 }
  0x25   : > { %p13114_p11 = pneg %p13113_p8 }
  0x27   : > { %p13121_p10 = pnand %p13120_p5, %p13114_p11 }
  0x29   : > { %13124 = shalt.err (!%p13121_p10)
}
  0x2a   : > { %s13226_s26 = smov 64   ;;  %s13227_s28 = smov 4  }
  0x2b   : > { %12858 = dma.hbm_to_vmem [thread:$0]  (!%p13346_p12), %s16870_s3, 9216, %s210_s11, [#allocation3], %s13226_s26, %s13226_s26, %s13227_s28  }
  0x2c   : > { %p16999_p13 = scmp.ne.s32.totalorder %s16997_s9, 0 }
  0x2e   : > { %236 = sbr.rel (%p16999_p13) target bundleno = 1373 (0x55d), region = 40 }
  0x35   : > { %p17000_p1 = scmp.eq.s32.totalorder %s13310_s25, 0 }
  0x37   : > { %13198 = dma.done.wait (%p17000_p1), [#allocation3], 9216   ;;  %p17001_p0 = pmov %p17000_p1 }
  0x38   : > { %p271_p5 = scmp.lt.s32.totalorder %s13310_s25, 1  ;;  %s13228_s9 = smov 12   ;;  %v13014_v22 = vld [vmem:[%s16868_s1] sm:$0xff]   ;;  %v16877_v23 = vmov 0.0   ;;  %v13016_v27 = vld [vmem:[%s16868_s1 + $0x8] sm:$0xff]   ;;  %vm2329_vm0 = vcmask 1041408  }
  0x39   : > { %13200 = vsyncadd (%p17001_p0), [#allocation3], 4294958080  ;;  %s13229_s11 = smov 8   ;;  %s13230_s17 = smov 24   ;;  %12705 = vmatprep.subr.bf16.mxu0 %v16877_v23  ;;  %vm13237_vm1 = vmmov 0   ;;  %vm747_vm2 = vcmask 31744  }
  0x3a   : > { %s272_s13 = scalar_select %p271_p5, %s13310_s25, 1  ;;  %12706 = vmatpush3.bf16.msra.mxu0 %v13014_v22  ;;  %v13017_v28 = vld [vmem:[%s16868_s1 + $0x10] ss:$0 sps:$4 sm:$0x33]   ;;  %12711 = vmatprep.mubr.msk.bf16.mxu0 %vm13237_vm1, %v16877_v23  ;;  %vm776_vm3 = vcmask 64512   ;;  %vm805_vm4 = vcmask 97280  }
  0x3b   : > { %s13231_s18 = smov 20   ;;  %s13232_s19 = smov 4   ;;  %12707 = vmatprep.subr.bf16.mxu0 %v16877_v23  ;;  %v2331_v30 = vsel %vm2329_vm0, %v13017_v28, 0  ;;  %vm834_vm5 = vcmask 130048   ;;  %vm863_vm6 = vcmask 162816   ;;  %vm892_vm7 = vcmask 195584  }
  0x3c   : > { %s12278_s14 = sshll.u32 %s272_s13, 7  ;;  %s13233_s20 = smov 16   ;;  %vm921_vm8 = vcmask 228352   ;;  %vm950_vm9 = vcmask 261120   ;;  %vm2289_vm10 = vcmask 293888   ;;  %vm3411_vm11 = vcmask 1040384  }
  0x3d   : > { %s13377_s16 = scalar_lea.vmem %s16867_s0, %s12278_s14  ;;  %s13234_s26 = smov 28   ;;  %vm3566_vm12 = vcmask 1046528  }
  0x3e   : > { %v13380_v0 = vld [vmem:[%s13377_s16 + $0x10] sm:$0xff]   ;;  %v13383_v1 = vld [vmem:[%s13377_s16 + $0x8] sm:$0xff]   ;;  %v13388_v2 = vld [vmem:[%s13377_s16] sm:$0xff]   ;;  %s13235_s28 = smov 32   ;;  %12708 = vmatpush3.bf16.msra.mxu0 %v13016_v27  ;;  %s13245_s15 = smov 72  }
  0x3f   : > { %560 = vrot.lane.b32.xlu0 %v13380_v0, %s13228_s9  ;;  %558 = vrot.lane.b32.xlu1 %v13383_v1, %s13228_s9  ;;  %v395_v3 = vshll.u32 %v13383_v1, 16  ;;  %v511_v4 = vrot.slane %v13388_v2, 1  ;;  %v388_v5 = vshll.u32 %v13388_v2, 16  ;;  %v512_v6 = vrot.slane %v13383_v1, 1  ;;  %v13407_v16 = vld [vmem:[%s13377_s16 + $0x18] sm:$0xff]   ;;  %v13425_v25 = vld [vmem:[%s13377_s16 + $0x20] sm:$0xff]  }
  0x40   : > { %v393_v7 = vshrl.u32 %v13383_v1, 16  ;;  %v386_v8 = vshrl.u32 %v13388_v2, 16  ;;  %v402_v11 = vshll.u32 %v13380_v0, 16  ;;  %v400_v14 = vshrl.u32 %v13380_v0, 16  ;;  %12709 = vmatprep.subr.bf16.mxu0 %v16877_v23  ;;  %v13442_v31 = vld [vmem:[%s13377_s16 + $0x28] sm:$0xff]   ;;  %v13460_v39 = vld [vmem:[%s13377_s16 + $0x30] sm:$0xff]  }
  0x41   : > { %v390_v9 = vrot.slane %v388_v5, 1  ;;  %v397_v10 = vrot.slane %v395_v3, 1  ;;  %v409_v18 = vshll.u32 %v13407_v16, 16  ;;  %v513_v19 = vrot.slane %v13380_v0, 1  ;;  %v13483_v46 = vld [vmem:[%s13377_s16 + $0x38] sm:$0xff]   ;;  %v13501_v53 = vld [vmem:[%s13377_s16 + $0x40] sm:$0xff]  }
  0x42   : > { %v404_v15 = vrot.slane %v402_v11, 1  ;;  %v407_v20 = vshrl.u32 %v13407_v16, 16  ;;  %v514_v26 = vrot.slane %v13407_v16, 1  ;;  %v416_v29 = vshll.u32 %v13425_v25, 16  ;;  %12710 = vmatpush3.bf16.msra.mxu0 %v2331_v30  ;;  %v13517_v59 = vld [vmem:[%s13377_s16 + $0x48] sm:$0xff]   ;;  %s13246_s12 = smov 80  }
  0x43   : > { %525 = vrot.lane.b32.xlu0 %v511_v4, %s13229_s11  ;;  %655 = vrot.lane.b32.xlu1 %v13380_v0, %s13230_s17  ;;  %v391_v12 = vor.u32 %v390_v9, %v386_v8  ;;  %v398_v13 = vor.u32 %v397_v10, %v393_v7  ;;  %v411_v21 = vrot.slane %v409_v18, 1  ;;  %v414_v32 = vshrl.u32 %v13425_v25, 16  ;;  %s13249_s29 = smov 104   ;;  %s12285_s10 = sshll.u32 %s13310_s25, 9 }
  0x44   : > { %v405_v17 = vor.u32 %v404_v15, %v400_v14  ;;  %v418_v33 = vrot.slane %v416_v29, 1  ;;  %v423_v34 = vshll.u32 %v13442_v31, 16  ;;  %v515_v35 = vrot.slane %v13425_v25, 1  ;;  %p17204_p9 = scmp.ne.s32.totalorder %s16995_s7, 0 }
  0x45   : > { %v412_v24 = vor.u32 %v411_v21, %v407_v20  ;;  %v421_v37 = vshrl.u32 %v13442_v31, 16  ;;  %v430_v40 = vshll.u32 %v13460_v39, 16  ;;  %v516_v41 = vrot.slane %v13442_v31, 1  ;;  %v13542_v21 = vld [vmem:[%s13377_s16 + $0x50] sm:$0xff]  }
  0x46   : > { %v419_v36 = vor.u32 %v418_v33, %v414_v32  ;;  %v425_v38 = vrot.slane %v423_v34, 1  ;;  %v428_v43 = vshrl.u32 %v13460_v39, 16  ;;  %v517_v47 = vrot.slane %v13460_v39, 1 }
  0x47   : > { %527 = vrot.lane.b32.xlu0 %v512_v6, %s13229_s11  ;;  %622 = vrot.lane.b32.xlu1 %v512_v6, %s13231_s18  ;;  %v432_v44 = vrot.slane %v430_v40, 1  ;;  %v437_v48 = vshll.u32 %v13483_v46, 16  ;;  %v435_v49 = vshrl.u32 %v13483_v46, 16  ;;  %v518_v52 = vrot.slane %v13483_v46, 1 }
  0x48   : > { %v426_v42 = vor.u32 %v425_v38, %v421_v37  ;;  %v444_v54 = vshll.u32 %v13501_v53, 16  ;;  %v442_v55 = vshrl.u32 %v13501_v53, 16  ;;  %v519_v58 = vrot.slane %v13501_v53, 1 }
  0x49   : > { %v433_v45 = vor.u32 %v432_v44, %v428_v43  ;;  %v439_v50 = vrot.slane %v437_v48, 1  ;;  %v451_v60 = vshll.u32 %v13517_v59, 16  ;;  %v449_v63 = vshrl.u32 %v13517_v59, 16  ;;  %v13569_v48 = vld [vmem:[%s13377_s16 + $0x58] sm:$0xff]  }
  0x4a   : > { %v446_v56 = vrot.slane %v444_v54, 1  ;;  %v520_v7 = vrot.slane %v13517_v59, 1  ;;  %v13238_v10 = vmov 1966171168   ;;  %v458_v32 = vshll.u32 %v13542_v21, 16 }
  0x4b   : > { %483 = vrot.lane.b32.xlu0 %v391_v12, %s13232_s19  ;;  %593 = vrot.lane.b32.xlu1 %v398_v13, %s13233_s20  ;;  %v440_v51 = vor.u32 %v439_v50, %v435_v49  ;;  %v453_v3 = vrot.slane %v451_v60, 1  ;;  %v995_v11 = vunpack.c.l.s4 %v13238_v10  ;;  %v997_v12 = vlaneseq }
  0x4c   : > { %v447_v57 = vor.u32 %v446_v56, %v442_v55  ;;  %v460_v40 = vrot.slane %v458_v32, 1  ;;  %v463_v10 = vshrl.u32 %v13569_v48, 16 }
  0x4d   : > { %v454_v6 = vor.u32 %v453_v3, %v449_v63  ;;  %v13539_v20 = vshrl.u32 %v997_v12, 7 }
  0x4f   : > { %485 = vrot.lane.b32.xlu0 %v398_v13, %s13232_s19  ;;  %690 = vrot.lane.b32.xlu1 %v405_v17, %s13234_s26  ;;  %17002 = vst [vmem:[#allocation11_spill] sm:$0xff] %v13539_v20 }
  0x53   : > { %595 = vrot.lane.b32.xlu0 %v405_v17, %s13233_s20  ;;  %719 = vrot.lane.b32.xlu1 %v513_v19, %s13235_s28 }
  0x57   : > { %624 = vrot.lane.b32.xlu0 %v513_v19, %s13231_s18  ;;  %657 = vrot.lane.b32.xlu1 %v13407_v16, %s13230_s17 }
  0x5b   : > { %487 = vrot.lane.b32.xlu0 %v405_v17, %s13232_s19  ;;  %692 = vrot.lane.b32.xlu1 %v412_v24, %s13234_s26 }
  0x5f   : > { %529 = vrot.lane.b32.xlu0 %v513_v19, %s13229_s11  ;;  %721 = vrot.lane.b32.xlu1 %v514_v26, %s13235_s28  ;;  %v996_v19 = vunpack.c.0.s8 %v995_v11 }
  0x61   : > { %v13554_v30 = vsub.s32 %v996_v19, %v13539_v20 }
  0x63   : > { %562 = vrot.lane.b32.xlu0 %v13407_v16, %s13228_s9  ;;  %597 = vrot.lane.b32.xlu1 %v412_v24, %s13233_s20 }
  0x67   : > { %626 = vrot.lane.b32.xlu0 %v514_v26, %s13231_s18  ;;  %659 = vrot.lane.b32.xlu1 %v13425_v25, %s13230_s17 }
  0x6b   : > { %694 = vrot.lane.b32.xlu0 %v419_v36, %s13234_s26  ;;  %723 = vrot.lane.b32.xlu1 %v515_v35, %s13235_s28 }
  0x6f   : > { %489 = vrot.lane.b32.xlu0 %v412_v24, %s13232_s19  ;;  %531 = vrot.lane.b32.xlu1 %v514_v26, %s13229_s11 }
  0x73   : > { %564 = vrot.lane.b32.xlu0 %v13425_v25, %s13228_s9  ;;  %599 = vrot.lane.b32.xlu1 %v419_v36, %s13233_s20 }
  0x77   : > { %628 = vrot.lane.b32.xlu0 %v515_v35, %s13231_s18  ;;  %661 = vrot.lane.b32.xlu1 %v13442_v31, %s13230_s17 }
  0x7b   : > { %696 = vrot.lane.b32.xlu0 %v426_v42, %s13234_s26  ;;  %725 = vrot.lane.b32.xlu1 %v516_v41, %s13235_s28 }
  0x7f   : > { %491 = vrot.lane.b32.xlu0 %v419_v36, %s13232_s19  ;;  %533 = vrot.lane.b32.xlu1 %v515_v35, %s13229_s11 }
  0x83   : > { %566 = vrot.lane.b32.xlu0 %v13442_v31, %s13228_s9  ;;  %601 = vrot.lane.b32.xlu1 %v426_v42, %s13233_s20 }
  0x87   : > { %630 = vrot.lane.b32.xlu0 %v516_v41, %s13231_s18  ;;  %663 = vrot.lane.b32.xlu1 %v13460_v39, %s13230_s17 }
  0x8b   : > { %493 = vrot.lane.b32.xlu0 %v426_v42, %s13232_s19  ;;  %698 = vrot.lane.b32.xlu1 %v433_v45, %s13234_s26 }
  0x8f   : > { %535 = vrot.lane.b32.xlu0 %v516_v41, %s13229_s11  ;;  %727 = vrot.lane.b32.xlu1 %v517_v47, %s13235_s28 }
  0x93   : > { %568 = vrot.lane.b32.xlu0 %v13460_v39, %s13228_s9  ;;  %603 = vrot.lane.b32.xlu1 %v433_v45, %s13233_s20 }
  0x97   : > { %632 = vrot.lane.b32.xlu0 %v517_v47, %s13231_s18  ;;  %665 = vrot.lane.b32.xlu1 %v13483_v46, %s13230_s17 }
  0x9b   : > { %700 = vrot.lane.b32.xlu0 %v440_v51, %s13234_s26  ;;  %729 = vrot.lane.b32.xlu1 %v518_v52, %s13235_s28 }
  0x9f   : > { %495 = vrot.lane.b32.xlu0 %v433_v45, %s13232_s19  ;;  %537 = vrot.lane.b32.xlu1 %v517_v47, %s13229_s11 }
  0xa3   : > { %570 = vrot.lane.b32.xlu0 %v13483_v46, %s13228_s9  ;;  %605 = vrot.lane.b32.xlu1 %v440_v51, %s13233_s20 }
  0xa7   : > { %634 = vrot.lane.b32.xlu0 %v518_v52, %s13231_s18  ;;  %667 = vrot.lane.b32.xlu1 %v13501_v53, %s13230_s17 }
  0xab   : > { %702 = vrot.lane.b32.xlu0 %v447_v57, %s13234_s26  ;;  %731 = vrot.lane.b32.xlu1 %v519_v58, %s13235_s28 }
  0xaf   : > { %497 = vrot.lane.b32.xlu0 %v440_v51, %s13232_s19  ;;  %539 = vrot.lane.b32.xlu1 %v518_v52, %s13229_s11 }
  0xb1   : > { %v561_v61 = vpop.permute.xlu0 %560  ;;  %v559_v62 = vpop.permute.xlu1 %558 }
  0xb3   : > { %572 = vrot.lane.b32.xlu0 %v13501_v53, %s13228_s9  ;;  %607 = vrot.lane.b32.xlu1 %v447_v57, %s13233_s20 }
  0xb5   : > { %v526_v4 = vpop.permute.xlu0 %525  ;;  %v656_v5 = vpop.permute.xlu1 %655 }
  0xb7   : > { %636 = vrot.lane.b32.xlu0 %v519_v58, %s13231_s18  ;;  %669 = vrot.lane.b32.xlu1 %v13517_v59, %s13230_s17 }
  0xb9   : > { %v528_v8 = vpop.permute.xlu0 %527  ;;  %v623_v9 = vpop.permute.xlu1 %622 }
  0xbb   : > { %704 = vrot.lane.b32.xlu0 %v454_v6, %s13234_s26  ;;  %733 = vrot.lane.b32.xlu1 %v520_v7, %s13235_s28 }
  0xbd   : > { %v484_v13 = vpop.permute.xlu0 %483  ;;  %v594_v14 = vpop.permute.xlu1 %593 }
  0xbe   : > { %v749_v15 = vsel %vm747_vm2, %v13388_v2, %v484_v13 }
  0xbf   : > { %v778_v17 = vsel %vm776_vm3, %v749_v15, %v526_v4  ;;  %499 = vrot.lane.b32.xlu0 %v447_v57, %s13232_s19  ;;  %541 = vrot.lane.b32.xlu1 %v519_v58, %s13229_s11  ;;  %v521_v57 = vrot.slane %v13542_v21, 1  ;;  %v465_v58 = vshll.u32 %v13569_v48, 16 }
  0xc0   : > { %v807_v18 = vsel %vm805_vm4, %v778_v17, %v559_v62 }
  0xc1   : > { %v836_v22 = vsel %vm834_vm5, %v807_v18, %v594_v14  ;;  %v486_v2 = vpop.permute.xlu0 %485  ;;  %v691_v24 = vpop.permute.xlu1 %690  ;;  %v467_v11 = vrot.slane %v465_v58, 1 }
  0xc2   : > { %v865_v26 = vsel %vm863_vm6, %v836_v22, %v623_v9  ;;  %v751_v29 = vsel %vm747_vm2, %v13383_v1, %v486_v2  ;;  %v456_v1 = vshrl.u32 %v13542_v21, 16 }
  0xc3   : > { %v894_v27 = vsel %vm892_vm7, %v865_v26, %v656_v5  ;;  %574 = vrot.lane.b32.xlu0 %v13517_v59, %s13228_s9  ;;  %609 = vrot.lane.b32.xlu1 %v454_v6, %s13233_s20  ;;  %v780_v35 = vsel %vm776_vm3, %v751_v29, %v528_v8 }
  0xc4   : > { %v923_v28 = vsel %vm921_vm8, %v894_v27, %v691_v24  ;;  %v809_v44 = vsel %vm805_vm4, %v780_v35, %v561_v61  ;;  %v461_v47 = vor.u32 %v460_v40, %v456_v1 }
  0xc5   : > { %v596_v33 = vpop.permute.xlu0 %595  ;;  %v720_v34 = vpop.permute.xlu1 %719 }
  0xc6   : > { %v952_v36 = vsel %vm950_vm9, %v923_v28, %v720_v34  ;;  %v838_v51 = vsel %vm834_vm5, %v809_v44, %v596_v33  ;;  %v13604_v33 = vld [vmem:[%s13377_s16 + $0x60] sm:$0xff]  }
  0xc7   : > { %501 = vrot.lane.b32.xlu0 %v454_v6, %s13232_s19  ;;  %v993_v37 = vcombine.high %v952_v36, %v952_v36  ;;  %v1000_v38 = vrot.slane %v952_v36, %v13554_v30  ;;  %638 = vrot.lane.b32.xlu1 %v520_v7, %s13231_s18 }
  0xc9   : > { %v625_v41 = vpop.permute.xlu0 %624  ;;  %v1007_v42 = vrot.slane %v993_v37, %v13554_v30  ;;  %v1008_v43 = vcombine.high %v1000_v38, %v1000_v38  ;;  %v658_v45 = vpop.permute.xlu1 %657  ;;  %v1016_v56 = vrot.slane %v1000_v38, %v13554_v30 }
  0xca   : > { %v867_v54 = vsel %vm863_vm6, %v838_v51, %v625_v41 }
  0xcb   : > { %543 = vrot.lane.b32.xlu0 %v520_v7, %s13229_s11  ;;  %671 = vrot.lane.b32.xlu1 %v13542_v21, %s13230_s17  ;;  %v1009_v49 = vcombine.high %v1007_v42, %v1007_v42  ;;  %v1030_v50 = vrot.slane %v1008_v43, %v13554_v30  ;;  %v896_v63 = vsel %vm892_vm7, %v867_v54, %v658_v45  ;;  %v13615_v43 = vrot.slane %v13569_v48, 1 }
  0xcc   : > { %v1023_v6 = vrot.slane %v1007_v42, %v13554_v30 }
  0xcd   : > { %v488_v52 = vpop.permute.xlu0 %487  ;;  %v693_v55 = vpop.permute.xlu1 %692  ;;  %v1037_v60 = vrot.slane %v1009_v49, %v13554_v30  ;;  %v1671_v61 = vcombine.low %v1016_v56, %v1030_v50  ;;  %v12059_v62 = vcombine.high %v1016_v56, %v1030_v50  ;;  %v472_v50 = vshll.u32 %v13604_v33, 16 }
  0xce   : > { %v925_v4 = vsel %vm921_vm8, %v896_v63, %v693_v55  ;;  %v753_v15 = vsel %vm747_vm2, %v13380_v0, %v488_v52  ;;  %v1039_v26 = vcombine.high %v1023_v6, %v1023_v6  ;;  %v13601_v0 = vor.u32 %v467_v11, %v463_v10 }
  0xcf   : > { %576 = vrot.lane.b32.xlu0 %v13542_v21, %s13228_s9  ;;  %706 = vrot.lane.b32.xlu1 %v461_v47, %s13234_s26  ;;  %v1673_v12 = vcombine.low %v1023_v6, %v1037_v60  ;;  %v1681_v13 = vrot.slane %v1671_v61, %v13554_v30  ;;  %v1688_v14 = vrot.slane %v12059_v62, %v13554_v30  ;;  %v470_v10 = vshrl.u32 %v13604_v33, 16 }
  0xd0   : > { %v474_v11 = vrot.slane %v472_v50, 1 }
  0xd1   : > { %v530_v3 = vpop.permute.xlu0 %529  ;;  %v722_v5 = vpop.permute.xlu1 %721  ;;  %v1695_v34 = vrot.slane %v1673_v12, %v13554_v30  ;;  %v1703_v35 = vcombine.low %v1681_v13, %v1688_v14 }
  0xd2   : > { %v954_v7 = vsel %vm950_vm9, %v925_v4, %v722_v5  ;;  %v782_v2 = vsel %vm776_vm3, %v753_v15, %v530_v3 }
  0xd3   : > { %611 = vrot.lane.b32.xlu0 %v461_v47, %s13233_s20  ;;  %v1041_v8 = vcombine.high %v954_v7, %v954_v7  ;;  %v1048_v9 = vrot.slane %v954_v7, %v13554_v30  ;;  %735 = vrot.lane.b32.xlu1 %v521_v57, %s13235_s28 }
  0xd5   : > { %v563_v17 = vpop.permute.xlu0 %562  ;;  %v1055_v18 = vrot.slane %v1041_v8, %v13554_v30  ;;  %v1056_v19 = vcombine.high %v1048_v9, %v1048_v9  ;;  %v1064_v22 = vrot.slane %v1048_v9, %v13554_v30  ;;  %v598_v24 = vpop.permute.xlu1 %597 }
  0xd6   : > { %v811_v27 = vsel %vm805_vm4, %v782_v2, %v563_v17  ;;  %v13648_v2 = vrot.slane %v13604_v33, 1 }
  0xd7   : > { %640 = vrot.lane.b32.xlu0 %v521_v57, %s13231_s18  ;;  %v1078_v28 = vrot.slane %v1056_v19, %v13554_v30  ;;  %673 = vrot.lane.b32.xlu1 %v13569_v48, %s13230_s17  ;;  %v1674_v29 = vcombine.low %v1039_v26, %v1064_v22  ;;  %v1057_v36 = vcombine.high %v1055_v18, %v1055_v18 }
  0xd8   : > { %v840_v38 = vsel %vm834_vm5, %v811_v27, %v598_v24  ;;  %v1071_v1 = vrot.slane %v1055_v18, %v13554_v30  ;;  %v1086_v52 = vcombine.high %v1064_v22, %v1064_v22  ;;  %v13650_v24 = vor.u32 %v474_v11, %v470_v10 }
  0xd9   : > { %v627_v32 = vpop.permute.xlu0 %626  ;;  %v660_v37 = vpop.permute.xlu1 %659  ;;  %v1088_v40 = vcombine.high %v1078_v28, %v1078_v28  ;;  %v1702_v41 = vrot.slane %v1674_v29, %v13554_v30  ;;  %v1085_v51 = vrot.slane %v1057_v36, %v13554_v30 }
  0xda   : > { %v869_v42 = vsel %vm863_vm6, %v840_v38, %v627_v32  ;;  %v1087_v56 = vcombine.high %v1071_v1, %v1071_v1  ;;  %v1720_v5 = vcombine.low %v1078_v28, %v1086_v52  ;;  %v13661_v38 = vld [vmem:[%s13377_s16 + $0x68] sm:$0xff]  }
  0xdb   : > { %503 = vrot.lane.b32.xlu0 %v461_v47, %s13232_s19  ;;  %708 = vrot.lane.b32.xlu1 %v13601_v0, %s13234_s26  ;;  %v1704_v44 = vcombine.low %v1695_v34, %v1702_v41  ;;  %v898_v45 = vsel %vm892_vm7, %v869_v42, %v660_v37  ;;  %v1711_v47 = vrot.slane %v1703_v35, %v13554_v30 }
  0xdc   : > { %v1721_v58 = vcombine.low %v1088_v40, %v1071_v1  ;;  %v1722_v9 = vcombine.low %v1085_v51, %v1087_v56  ;;  %v1730_v17 = vrot.slane %v1720_v5, %v13554_v30 }
  0xdd   : > { %v695_v49 = vpop.permute.xlu0 %694  ;;  %v724_v54 = vpop.permute.xlu1 %723  ;;  %v1718_v61 = vrot.slane %v1704_v44, %v13554_v30 }
  0xde   : > { %v927_v55 = vsel %vm921_vm8, %v898_v45, %v695_v49  ;;  %v1744_v26 = vrot.slane %v1722_v9, %v13554_v30 }
  0xdf   : > { %v956_v60 = vsel %vm950_vm9, %v927_v55, %v724_v54  ;;  %545 = vrot.lane.b32.xlu0 %v521_v57, %s13229_s11  ;;  %737 = vrot.lane.b32.xlu1 %v13615_v43, %s13235_s28  ;;  %v1719_v3 = vcombine.low %v1711_v47, %v1718_v61  ;;  %v1737_v57 = vrot.slane %v1721_v58, %v13554_v30  ;;  %v479_v54 = vshll.u32 %v13661_v38, 16 }
  0xe0   : > { %v1089_v62 = vcombine.high %v956_v60, %v956_v60  ;;  %v1096_v63 = vrot.slane %v956_v60, %v13554_v30 }
  0xe1   : > { %v490_v4 = vpop.permute.xlu0 %489  ;;  %v532_v7 = vpop.permute.xlu1 %531  ;;  %12712 = vmatmul.mubr.msk.bf16.vlgmr.msra.gmra.mrb[0].mxu0 %vm2289_vm10, %v1719_v3  ;;  %v1752_v29 = vcombine.low %v1730_v17, %v1737_v57  ;;  %v481_v3 = vrot.slane %v479_v54, 1 }
  0xe2   : > { %v1104_v6 = vcombine.high %v1096_v63, %v1096_v63  ;;  %v755_v8 = vsel %vm747_vm2, %v13407_v16, %v490_v4  ;;  %v1103_v12 = vrot.slane %v1089_v62, %v13554_v30  ;;  %v1112_v13 = vrot.slane %v1096_v63, %v13554_v30  ;;  %12715 = vmatprep.mubr.msk.bf16.mxu0 %vm13237_vm1, %v16877_v23 }
  0xe3   : > { %578 = vrot.lane.b32.xlu0 %v13569_v48, %s13228_s9  ;;  %613 = vrot.lane.b32.xlu1 %v13601_v0, %s13233_s20  ;;  %v784_v16 = vsel %vm776_vm3, %v755_v8, %v532_v7  ;;  %v1760_v40 = vrot.slane %v1752_v29, %v13554_v30  ;;  %v477_v63 = vshrl.u32 %v13661_v38, 16 }
  0xe4   : > { %v1126_v14 = vrot.slane %v1104_v6, %v13554_v30  ;;  %v1105_v27 = vcombine.high %v1103_v12, %v1103_v12  ;;  %v1119_v45 = vrot.slane %v1103_v12, %v13554_v30 }
  0xe5   : > { %v565_v15 = vpop.permute.xlu0 %564  ;;  %v600_v19 = vpop.permute.xlu1 %599  ;;  %v13694_v11 = vor.u32 %v481_v3, %v477_v63 }
  0xe6   : > { %v1723_v18 = vcombine.low %v1112_v13, %v1126_v14  ;;  %v813_v22 = vsel %vm805_vm4, %v784_v16, %v565_v15  ;;  %v1133_v1 = vrot.slane %v1105_v27, %v13554_v30  ;;  %v12060_v58 = vcombine.high %v1112_v13, %v1126_v14 }
  0xe7   : > { %642 = vrot.lane.b32.xlu0 %v13615_v43, %s13231_s18  ;;  %675 = vrot.lane.b32.xlu1 %v13604_v33, %s13230_s17  ;;  %v842_v32 = vsel %vm834_vm5, %v813_v22, %v600_v19  ;;  %v13701_v14 = vrot.slane %v13661_v38, 1 }
  0xe8   : > { %v1751_v28 = vrot.slane %v1723_v18, %v13554_v30  ;;  %v1770_v55 = vcombine.low %v1119_v45, %v1133_v1  ;;  %v1779_v9 = vrot.slane %v12060_v58, %v13554_v30 }
  0xe9   : > { %v629_v34 = vpop.permute.xlu0 %628  ;;  %v662_v35 = vpop.permute.xlu1 %661 }
  0xea   : > { %v871_v36 = vsel %vm863_vm6, %v842_v32, %v629_v34  ;;  %v1753_v37 = vcombine.low %v1744_v26, %v1751_v28  ;;  %v13713_v28 = vld [vmem:[%s13377_s16 + $0x70] sm:$0xff]  }
  0xeb   : > { %710 = vrot.lane.b32.xlu0 %v13650_v24, %s13234_s26  ;;  %739 = vrot.lane.b32.xlu1 %v13648_v2, %s13235_s28  ;;  %v900_v42 = vsel %vm892_vm7, %v871_v36, %v662_v35  ;;  %v587_v54 = vshrl.u32 %v13713_v28, 16 }
  0xec   : > { %v1767_v41 = vrot.slane %v1753_v37, %v13554_v30 }
  0xed   : > { %v697_v44 = vpop.permute.xlu0 %696  ;;  %v726_v49 = vpop.permute.xlu1 %725 }
  0xee   : > { %v929_v50 = vsel %vm921_vm8, %v900_v42, %v697_v44  ;;  %v1768_v51 = vcombine.low %v1760_v40, %v1767_v41  ;;  %v589_v40 = vshll.u32 %v13713_v28, 16 }
  0xef   : > { %v958_v52 = vsel %vm950_vm9, %v929_v50, %v726_v49  ;;  %505 = vrot.lane.b32.xlu0 %v13601_v0, %s13232_s19  ;;  %547 = vrot.lane.b32.xlu1 %v13615_v43, %s13229_s11  ;;  %v1135_v0 = vcombine.high %v1119_v45, %v1119_v45  ;;  %v1786_v43 = vrot.slane %v1770_v55, %v13554_v30 }
  0xf0   : > { %v1144_v47 = vrot.slane %v958_v52, %v13554_v30  ;;  %12716 = vmatmul.mubr.msk.bf16.gmra.mrb[4].mxu0 %vm2289_vm10, %v1768_v51  ;;  %v1137_v6 = vcombine.high %v958_v52, %v958_v52  ;;  %v591_v55 = vrot.slane %v589_v40, 1 }
  0xf1   : > { %v492_v56 = vpop.permute.xlu0 %491  ;;  %12719 = vmatprep.mubr.msk.bf16.mxu0 %vm13237_vm1, %v16877_v23  ;;  %v534_v62 = vpop.permute.xlu1 %533  ;;  %v1801_v16 = vcombine.low %v1779_v9, %v1786_v43 }
  0xf2   : > { %v1152_v60 = vcombine.high %v1144_v47, %v1144_v47  ;;  %v1160_v61 = vrot.slane %v1144_v47, %v13554_v30 }
  0xf3   : > { %580 = vrot.lane.b32.xlu0 %v13604_v33, %s13228_s9  ;;  %615 = vrot.lane.b32.xlu1 %v13650_v24, %s13233_s20  ;;  %v757_v33 = vsel %vm747_vm2, %v13425_v25, %v492_v56  ;;  %v1151_v25 = vrot.slane %v1137_v6, %v13554_v30  ;;  %v1809_v26 = vrot.slane %v1801_v16, %v13554_v30 }
  0xf4   : > { %v1174_v4 = vrot.slane %v1152_v60, %v13554_v30  ;;  %v1182_v5 = vcombine.high %v1160_v61, %v1160_v61  ;;  %v1771_v7 = vcombine.low %v1135_v0, %v1160_v61  ;;  %v786_v15 = vsel %vm776_vm3, %v757_v33, %v534_v62 }
  0xf5   : > { %v567_v8 = vpop.permute.xlu0 %566  ;;  %v602_v10 = vpop.permute.xlu1 %601  ;;  %v1153_v29 = vcombine.high %v1151_v25, %v1151_v25  ;;  %v1167_v32 = vrot.slane %v1151_v25, %v13554_v30 }
  0xf6   : > { %v1772_v57 = vcombine.low %v1174_v4, %v1182_v5  ;;  %v1793_v12 = vrot.slane %v1771_v7, %v13554_v30  ;;  %v815_v18 = vsel %vm805_vm4, %v786_v15, %v567_v8  ;;  %v1184_v44 = vcombine.high %v1174_v4, %v1174_v4 }
  0xf7   : > { %644 = vrot.lane.b32.xlu0 %v13648_v2, %s13231_s18  ;;  %677 = vrot.lane.b32.xlu1 %v13661_v38, %s13230_s17  ;;  %v844_v34 = vsel %vm834_vm5, %v815_v18, %v602_v10  ;;  %v1181_v41 = vrot.slane %v1153_v29, %v13554_v30  ;;  %v1183_v42 = vcombine.high %v1167_v32, %v1167_v32  ;;  %v621_v15 = vrot.slane %v13713_v28, 1 }
  0xf8   : > { %v1800_v13 = vrot.slane %v1772_v57, %v13554_v30  ;;  %v1818_v47 = vcombine.low %v1184_v44, %v1167_v32 }
  0xf9   : > { %v631_v17 = vpop.permute.xlu0 %630  ;;  %v664_v19 = vpop.permute.xlu1 %663  ;;  %v1819_v56 = vcombine.low %v1181_v41, %v1183_v42 }
  0xfa   : > { %v1802_v22 = vcombine.low %v1793_v12, %v1800_v13  ;;  %v873_v36 = vsel %vm863_vm6, %v844_v34, %v631_v17  ;;  %v1828_v5 = vrot.slane %v1818_v47, %v13554_v30  ;;  %v13754_v12 = vld [vmem:[%s13377_s16 + $0x78] sm:$0xff]  }
  0xfb   : > { %712 = vrot.lane.b32.xlu0 %v13694_v11, %s13234_s26  ;;  %741 = vrot.lane.b32.xlu1 %v13701_v14, %s13235_s28  ;;  %v902_v45 = vsel %vm892_vm7, %v873_v36, %v664_v19  ;;  %v1835_v7 = vrot.slane %v1819_v56, %v13554_v30  ;;  %v686_v32 = vshll.u32 %v13754_v12, 16 }
  0xfc   : > { %v1816_v27 = vrot.slane %v1802_v22, %v13554_v30 }
  0xfd   : > { %v494_v35 = vpop.permute.xlu0 %493  ;;  %v699_v37 = vpop.permute.xlu1 %698  ;;  %v1850_v19 = vcombine.low %v1828_v5, %v1835_v7 }
  0xfe   : > { %v1817_v1 = vcombine.low %v1809_v26, %v1816_v27  ;;  %v931_v50 = vsel %vm921_vm8, %v902_v45, %v699_v37  ;;  %v759_v58 = vsel %vm747_vm2, %v13442_v31, %v494_v35  ;;  %v592_v31 = vor.u32 %v591_v55, %v587_v54 }
  0xff   : > { %507 = vrot.lane.b32.xlu0 %v13650_v24, %s13232_s19  ;;  %549 = vrot.lane.b32.xlu1 %v13648_v2, %s13229_s11  ;;  %v1858_v40 = vrot.slane %v1850_v19, %v13554_v30  ;;  %v684_v45 = vshrl.u32 %v13754_v12, 16 }
 0x100   : > { %12720 = vmatmul.mubr.msk.bf16.gmra.mrb[8].mxu0 %vm2289_vm10, %v1817_v1 }
 0x101   : > { %v536_v49 = vpop.permute.xlu0 %535  ;;  %12723 = vmatprep.mubr.msk.bf16.mxu0 %vm13237_vm1, %v16877_v23  ;;  %v728_v24 = vpop.permute.xlu1 %727 }
 0x102   : > { %v960_v51 = vsel %vm950_vm9, %v931_v50, %v728_v24  ;;  %v788_v62 = vsel %vm776_vm3, %v759_v58, %v536_v49 }
 0x103   : > { %582 = vrot.lane.b32.xlu0 %v13661_v38, %s13228_s9  ;;  %v1185_v2 = vcombine.high %v960_v51, %v960_v51  ;;  %v1192_v52 = vrot.slane %v960_v51, %v13554_v30  ;;  %617 = vrot.lane.b32.xlu1 %v13694_v11, %s13233_s20  ;;  %v688_v51 = vrot.slane %v686_v32, 1 }
 0x105   : > { %v569_v60 = vpop.permute.xlu0 %568  ;;  %v1200_v61 = vcombine.high %v1192_v52, %v1192_v52  ;;  %v604_v0 = vpop.permute.xlu1 %603  ;;  %v1199_v3 = vrot.slane %v1185_v2, %v13554_v30  ;;  %v1208_v43 = vrot.slane %v1192_v52, %v13554_v30 }
 0x106   : > { %v817_v63 = vsel %vm805_vm4, %v788_v62, %v569_v60 }
 0x107   : > { %646 = vrot.lane.b32.xlu0 %v13701_v14, %s13231_s18  ;;  %v1222_v4 = vrot.slane %v1200_v61, %v13554_v30  ;;  %679 = vrot.lane.b32.xlu1 %v13713_v28, %s13230_s17  ;;  %v846_v33 = vsel %vm834_vm5, %v817_v63, %v604_v0  ;;  %v1201_v13 = vcombine.high %v1199_v3, %v1199_v3 }
 0x108   : > { %v689_v0 = vor.u32 %v688_v51, %v684_v45 }
 0x109   : > { %v633_v6 = vpop.permute.xlu0 %632  ;;  %v1820_v8 = vcombine.low %v1208_v43, %v1222_v4  ;;  %v12061_v9 = vcombine.high %v1208_v43, %v1222_v4  ;;  %v666_v57 = vpop.permute.xlu1 %665  ;;  %v1229_v34 = vrot.slane %v1201_v13, %v13554_v30  ;;  %v718_v43 = vrot.slane %v13754_v12, 1 }
 0x10a   : > { %v875_v10 = vsel %vm863_vm6, %v846_v33, %v633_v6 }
 0x10b   : > { %509 = vrot.lane.b32.xlu0 %v13694_v11, %s13232_s19  ;;  %v1842_v16 = vrot.slane %v1820_v8, %v13554_v30  ;;  %v1849_v25 = vrot.slane %v12061_v9, %v13554_v30  ;;  %714 = vrot.lane.b32.xlu1 %v592_v31, %s13234_s26  ;;  %v904_v17 = vsel %vm892_vm7, %v875_v10, %v666_v57 }
 0x10c   : > { %v1215_v11 = vrot.slane %v1199_v3, %v13554_v30 }
 0x10d   : > { %v701_v18 = vpop.permute.xlu0 %700  ;;  %v1851_v22 = vcombine.low %v1842_v16, %v1849_v25  ;;  %v730_v26 = vpop.permute.xlu1 %729 }
 0x10e   : > { %v933_v27 = vsel %vm921_vm8, %v904_v17, %v701_v18  ;;  %v1231_v49 = vcombine.high %v1215_v11, %v1215_v11  ;;  %v1867_v2 = vcombine.low %v1215_v11, %v1229_v34 }
 0x10f   : > { %v962_v29 = vsel %vm950_vm9, %v933_v27, %v730_v26  ;;  %551 = vrot.lane.b32.xlu0 %v13701_v14, %s13229_s11  ;;  %743 = vrot.lane.b32.xlu1 %v621_v15, %s13235_s28  ;;  %v1865_v37 = vrot.slane %v1851_v22, %v13554_v30 }
 0x110   : > { %v1233_v35 = vcombine.high %v962_v29, %v962_v29  ;;  %v1240_v36 = vrot.slane %v962_v29, %v13554_v30  ;;  %v1877_v63 = vrot.slane %v1867_v2, %v13554_v30 }
 0x111   : > { %v496_v1 = vpop.permute.xlu0 %495  ;;  %v538_v14 = vpop.permute.xlu1 %537  ;;  %v1866_v24 = vcombine.low %v1858_v40, %v1865_v37 }
 0x112   : > { %v1247_v41 = vrot.slane %v1233_v35, %v13554_v30  ;;  %v1248_v42 = vcombine.high %v1240_v36, %v1240_v36  ;;  %v1256_v44 = vrot.slane %v1240_v36, %v13554_v30  ;;  %v761_v50 = vsel %vm747_vm2, %v13460_v39, %v496_v1 }
 0x113   : > { %584 = vrot.lane.b32.xlu0 %v13713_v28, %s13228_s9  ;;  %619 = vrot.lane.b32.xlu1 %v592_v31, %s13233_s20  ;;  %v790_v61 = vsel %vm776_vm3, %v761_v50, %v538_v14  ;;  %s16741_s9 = sand.u32 1, %s13215_s22  }
 0x114   : > { %v1270_v52 = vrot.slane %v1248_v42, %v13554_v30  ;;  %v1278_v54 = vcombine.high %v1256_v44, %v1256_v44  ;;  %v1868_v55 = vcombine.low %v1231_v49, %v1256_v44  ;;  %12724 = vmatmul.mubr.msk.bf16.gmra.mrb[12].mxu0 %vm2289_vm10, %v1866_v24  ;;  %v1263_v56 = vrot.slane %v1247_v41, %v13554_v30 }
 0x115   : > { %v571_v47 = vpop.permute.xlu0 %570  ;;  %v606_v39 = vpop.permute.xlu1 %605  ;;  %12727 = vmatprep.mubr.msk.bf16.mxu0 %vm13237_vm1, %v16877_v23  ;;  %v1249_v57 = vcombine.high %v1247_v41, %v1247_v41 }
 0x116   : > { %v1280_v58 = vcombine.high %v1270_v52, %v1270_v52  ;;  %v1869_v60 = vcombine.low %v1270_v52, %v1278_v54  ;;  %v1884_v28 = vrot.slane %v1868_v55, %v13554_v30  ;;  %v819_v62 = vsel %vm805_vm4, %v790_v61, %v571_v47 }
 0x117   : > { %648 = vrot.lane.b32.xlu0 %v621_v15, %s13231_s18  ;;  %681 = vrot.lane.b32.xlu1 %v13754_v12, %s13230_s17  ;;  %v848_v4 = vsel %vm834_vm5, %v819_v62, %v606_v39  ;;  %v1277_v17 = vrot.slane %v1249_v57, %v13554_v30  ;;  %v1279_v19 = vcombine.high %v1263_v56, %v1263_v56  ;;  %s12038_s18 = sshll.u32 %s16741_s9, 5 }
 0x118   : > { %v1870_v3 = vcombine.low %v1280_v58, %v1263_v56  ;;  %v1891_v5 = vrot.slane %v1869_v60, %v13554_v30  ;;  %v1899_v9 = vcombine.low %v1877_v63, %v1884_v28  ;;  %s263_s13 = scalar_lea.vmem [#allocation5], %s12038_s18 }
 0x119   : > { %v635_v31 = vpop.permute.xlu0 %634  ;;  %v668_v7 = vpop.permute.xlu1 %667  ;;  %v1916_v36 = vcombine.low %v1277_v17, %v1279_v19  ;;  %s11913_s14 = sshll.u32 %s263_s13, 4  ;;  %s16776_s14 = int_to_ptr.vmem [resolvable:$true] %s11913_s14 }
 0x11a   : > { %v1898_v6 = vrot.slane %v1870_v3, %v13554_v30  ;;  %v877_v8 = vsel %vm863_vm6, %v848_v4, %v635_v31  ;;  %v1907_v25 = vrot.slane %v1899_v9, %v13554_v30  ;;  %s13125_s18 = scalar_lea.vmem %s16776_s14, 512 }
 0x11b   : > { %716 = vrot.lane.b32.xlu0 %v689_v0, %s13234_s26  ;;  %745 = vrot.lane.b32.xlu1 %v718_v43, %s13235_s28  ;;  %v906_v10 = vsel %vm892_vm7, %v877_v8, %v668_v7  ;;  %v1926_v2 = vrot.slane %v1916_v36, %v13554_v30  ;;  %s13248_s26 = smov 96   ;;  %p13126_p6 = scmp.ne.s32.totalorder %s16776_s14, %s13125_s18 }
 0x11c   : > { %v1900_v33 = vcombine.low %v1891_v5, %v1898_v6 }
 0x11d   : > { %v703_v12 = vpop.permute.xlu0 %702  ;;  %v732_v13 = vpop.permute.xlu1 %731  ;;  %p13127_p10 = pnand %p13126_p6, %p17204_p9 }
 0x11e   : > { %v935_v16 = vsel %vm921_vm8, %v906_v10, %v703_v12  ;;  %v1914_v15 = vrot.slane %v1900_v33, %v13554_v30 }
 0x11f   : > { %v964_v18 = vsel %vm950_vm9, %v935_v16, %v732_v13  ;;  %p13128_p12 = pneg %p13127_p10 }
 0x120   : > { %v1281_v22 = vcombine.high %v964_v18, %v964_v18  ;;  %v1288_v26 = vrot.slane %v964_v18, %v13554_v30  ;;  %v1915_v27 = vcombine.low %v1907_v25, %v1914_v15 }
 0x121   : > { %v498_v11 = vpop.permute.xlu0 %497  ;;  %v540_v34 = vpop.permute.xlu1 %539 }
 0x122   : > { %v1295_v29 = vrot.slane %v1281_v22, %v13554_v30  ;;  %v1296_v32 = vcombine.high %v1288_v26, %v1288_v26  ;;  %v763_v35 = vsel %vm747_vm2, %v13483_v46, %v498_v11  ;;  %12728 = vmatmul.mubr.msk.bf16.gmra.mrb[16].mxu0 %vm2289_vm10, %v1915_v27  ;;  %v1304_v1 = vrot.slane %v1288_v26, %v13554_v30 }
 0x123   : > { %12731 = vmatprep.mubr.msk.bf16.mxu0 %vm13237_vm1, %v16877_v23  ;;  %v792_v42 = vsel %vm776_vm3, %v763_v35, %v540_v34 }
 0x124   : > { %v1297_v37 = vcombine.high %v1295_v29, %v1295_v29  ;;  %v1318_v40 = vrot.slane %v1296_v32, %v13554_v30  ;;  %v1311_v41 = vrot.slane %v1295_v29, %v13554_v30 }
 0x125   : > { %v573_v44 = vpop.permute.xlu0 %572  ;;  %v608_v49 = vpop.permute.xlu1 %607 }
 0x126   : > { %v1325_v14 = vrot.slane %v1297_v37, %v13554_v30  ;;  %v1917_v45 = vcombine.low %v1304_v1, %v1318_v40  ;;  %v12062_v46 = vcombine.high %v1304_v1, %v1318_v40  ;;  %v821_v50 = vsel %vm805_vm4, %v792_v42, %v573_v44 }
 0x127   : > { %v850_v52 = vsel %vm834_vm5, %v821_v50, %v608_v49  ;;  %v1327_v33 = vcombine.high %v1311_v41, %v1311_v41 }
 0x128   : > { %v1919_v24 = vcombine.low %v1311_v41, %v1325_v14  ;;  %v1933_v51 = vrot.slane %v1917_v45, %v13554_v30  ;;  %v1940_v55 = vrot.slane %v12062_v46, %v13554_v30 }
 0x129   : > { %v637_v54 = vpop.permute.xlu0 %636  ;;  %v670_v56 = vpop.permute.xlu1 %669 }
 0x12a   : > { %v1947_v47 = vrot.slane %v1919_v24, %v13554_v30  ;;  %v879_v58 = vsel %vm863_vm6, %v850_v52, %v637_v54  ;;  %v1948_v60 = vcombine.low %v1926_v2, %v1933_v51 }
 0x12b   : > { %v908_v61 = vsel %vm892_vm7, %v879_v58, %v670_v56 }
 0x12c   : > { %v1949_v39 = vcombine.low %v1940_v55, %v1947_v47  ;;  %v1956_v63 = vrot.slane %v1948_v60, %v13554_v30 }
 0x12d   : > { %v705_v28 = vpop.permute.xlu0 %704  ;;  %v734_v62 = vpop.permute.xlu1 %733 }
 0x12e   : > { %v937_v0 = vsel %vm921_vm8, %v908_v61, %v705_v28  ;;  %v1963_v3 = vrot.slane %v1949_v39, %v13554_v30 }
 0x12f   : > { %v966_v43 = vsel %vm950_vm9, %v937_v0, %v734_v62 }
 0x130   : > { %v1329_v4 = vcombine.high %v966_v43, %v966_v43  ;;  %v1336_v31 = vrot.slane %v966_v43, %v13554_v30  ;;  %v1964_v5 = vcombine.low %v1956_v63, %v1963_v3 }
 0x131   : > { %v500_v6 = vpop.permute.xlu0 %499  ;;  %v542_v57 = vpop.permute.xlu1 %541 }
 0x132   : > { %v1343_v7 = vrot.slane %v1329_v4, %v13554_v30  ;;  %v1344_v8 = vcombine.high %v1336_v31, %v1336_v31  ;;  %v1352_v9 = vrot.slane %v1336_v31, %v13554_v30  ;;  %12732 = vmatmul.mubr.msk.bf16.gmra.mrb[20].mxu0 %vm2289_vm10, %v1964_v5  ;;  %v765_v40 = vsel %vm747_vm2, %v13501_v53, %v500_v6 }
 0x133   : > { %12735 = vmatprep.mubr.msk.bf16.mxu0 %vm13237_vm1, %v16877_v23  ;;  %v794_v46 = vsel %vm776_vm3, %v765_v40, %v542_v57 }
 0x134   : > { %v1345_v10 = vcombine.high %v1343_v7, %v1343_v7  ;;  %v1359_v12 = vrot.slane %v1343_v7, %v13554_v30  ;;  %v1366_v13 = vrot.slane %v1344_v8, %v13554_v30  ;;  %v1374_v16 = vcombine.high %v1352_v9, %v1352_v9 }
 0x135   : > { %v1965_v25 = vcombine.low %v1327_v33, %v1352_v9  ;;  %v575_v15 = vpop.permute.xlu0 %574  ;;  %v610_v26 = vpop.permute.xlu1 %609 }
 0x136   : > { %v1373_v17 = vrot.slane %v1345_v10, %v13554_v30  ;;  %v1375_v18 = vcombine.high %v1359_v12, %v1359_v12  ;;  %v1376_v19 = vcombine.high %v1366_v13, %v1366_v13  ;;  %v1966_v22 = vcombine.low %v1366_v13, %v1374_v16 }
 0x137   : > { %v1975_v29 = vrot.slane %v1965_v25, %v13554_v30  ;;  %v823_v49 = vsel %vm805_vm4, %v794_v46, %v575_v15 }
 0x138   : > { %v1967_v27 = vcombine.low %v1376_v19, %v1359_v12  ;;  %v1968_v11 = vcombine.low %v1373_v17, %v1375_v18  ;;  %v1982_v32 = vrot.slane %v1966_v22, %v13554_v30  ;;  %v852_v2 = vsel %vm834_vm5, %v823_v49, %v610_v26 }
 0x139   : > { %v502_v34 = vpop.permute.xlu0 %501  ;;  %v639_v36 = vpop.permute.xlu1 %638 }
 0x13a   : > { %v1989_v35 = vrot.slane %v1967_v27, %v13554_v30  ;;  %v1996_v37 = vrot.slane %v1968_v11, %v13554_v30  ;;  %v1997_v1 = vcombine.low %v1975_v29, %v1982_v32  ;;  %v881_v53 = vsel %vm863_vm6, %v852_v2, %v639_v36  ;;  %v13022_v36 = vld [vmem:[#allocation2 + $0x40] sm:$0xff]   ;;  %v13027_v2 = vld [vmem:[#allocation2 + $0xc8] sm:$0xff]  }
 0x13b   : > { %v767_v61 = vsel %vm747_vm2, %v13517_v59, %v502_v34  ;;  %12308 = vmatprep.subr.bf16.mxu1 %v13022_v36 }
 0x13c   : > { %v1998_v41 = vcombine.low %v1989_v35, %v1996_v37  ;;  %v2005_v14 = vrot.slane %v1997_v1, %v13554_v30  ;;  %v13023_v37 = vld [vmem:[#allocation2 + $0xc0] sm:$0xff]  }
 0x13d   : > { %v544_v42 = vpop.permute.xlu0 %543  ;;  %v672_v44 = vpop.permute.xlu1 %671  ;;  %12402 = vmatprep.subr.bf16.mxu0 %v13023_v37  ;;  %v13038_v37 = vld [vmem:[#allocation2 + $0x60] sm:$0xff]  }
 0x13e   : > { %v2012_v45 = vrot.slane %v1998_v41, %v13554_v30  ;;  %v910_v52 = vsel %vm892_vm7, %v881_v53, %v672_v44  ;;  %v796_v63 = vsel %vm776_vm3, %v767_v61, %v544_v42  ;;  %v13024_v41 = vld [vmem:[#allocation2] sm:$0xff]  }
 0x13f   : > { %v13025_v42 = vld [vmem:[#allocation2 + $0x80] sm:$0xff]   ;;  %12309 = vmatpush3.bf16.msra.mxu1 %v13024_v41 }
 0x140   : > { %v2013_v50 = vcombine.low %v2005_v14, %v2012_v45  ;;  %12403 = vmatpush3.bf16.msra.mxu0 %v13025_v42  ;;  %v13040_v41 = vld [vmem:[#allocation2 + $0x20] sm:$0xff]  }
 0x141   : > { %v577_v24 = vpop.permute.xlu0 %576  ;;  %v707_v51 = vpop.permute.xlu1 %706  ;;  %12404 = vmatprep.subr.bf16.mxu0 %v13027_v2  ;;  %v13041_v42 = vld [vmem:[#allocation2 + $0xa0] sm:$0xff]   ;;  %v13043_v2 = vld [vmem:[#allocation2 + $0xe8] sm:$0xff]  }
 0x142   : > { %12736 = vmatmul.mubr.msk.bf16.gmra.mrb[24].mxu0 %vm2289_vm10, %v2013_v50  ;;  %v939_v55 = vsel %vm921_vm8, %v910_v52, %v707_v51  ;;  %v825_v3 = vsel %vm805_vm4, %v796_v63, %v577_v24  ;;  %v13026_v51 = vld [vmem:[#allocation2 + $0x48] sm:$0xff]  }
 0x143   : > { %12739 = vmatprep.mubr.msk.bf16.mxu0 %vm13237_vm1, %v16877_v23  ;;  %12310 = vmatprep.subr.bf16.mxu1 %v13026_v51  ;;  %v13042_v51 = vld [vmem:[#allocation2 + $0x68] sm:$0xff]  }
 0x145   : > { %v612_v54 = vpop.permute.xlu0 %611  ;;  %v736_v47 = vpop.permute.xlu1 %735 }
 0x146   : > { %v968_v56 = vsel %vm950_vm9, %v939_v55, %v736_v47  ;;  %v854_v31 = vsel %vm834_vm5, %v825_v3, %v612_v54  ;;  %v13028_v47 = vld [vmem:[#allocation2 + $0x8] sm:$0xff]   ;;  %v13030_v3 = vld [vmem:[#allocation2 + $0x50] sm:$0xff]  }
 0x147   : > { %v1377_v58 = vcombine.high %v968_v56, %v968_v56  ;;  %v1384_v60 = vrot.slane %v968_v56, %v13554_v30  ;;  %v13029_v56 = vld [vmem:[#allocation2 + $0x88] sm:$0xff]   ;;  %12311 = vmatpush3.bf16.msra.mxu1 %v13028_v47 }
 0x148   : > { %12405 = vmatpush3.bf16.msra.mxu0 %v13029_v56  ;;  %12312 = vmatprep.subr.bf16.mxu1 %v13030_v3  ;;  %v13048_v3 = vld [vmem:[#allocation2 + $0x30] sm:$0xff]  }
 0x149   : > { %v641_v39 = vpop.permute.xlu0 %640  ;;  %v1391_v28 = vrot.slane %v1377_v58, %v13554_v30  ;;  %v1392_v62 = vcombine.high %v1384_v60, %v1384_v60  ;;  %v674_v0 = vpop.permute.xlu1 %673  ;;  %v1400_v8 = vrot.slane %v1384_v60, %v13554_v30 }
 0x14a   : > { %v883_v6 = vsel %vm863_vm6, %v854_v31, %v641_v39 }
 0x14b   : > { %v1393_v43 = vcombine.high %v1391_v28, %v1391_v28  ;;  %v1414_v4 = vrot.slane %v1392_v62, %v13554_v30  ;;  %v912_v33 = vsel %vm892_vm7, %v883_v6, %v674_v0  ;;  %v1407_v16 = vrot.slane %v1391_v28, %v13554_v30 }
 0x14d   : > { %v504_v5 = vpop.permute.xlu0 %503  ;;  %v709_v7 = vpop.permute.xlu1 %708  ;;  %v1421_v59 = vrot.slane %v1393_v43, %v13554_v30  ;;  %v2014_v9 = vcombine.low %v1400_v8, %v1414_v4  ;;  %v12063_v57 = vcombine.high %v1400_v8, %v1414_v4  ;;  %v1423_v1 = vcombine.high %v1407_v16, %v1407_v16  ;;  %v13031_v43 = vld [vmem:[#allocation2 + $0xd0] sm:$0xff]  }
 0x14e   : > { %v941_v12 = vsel %vm921_vm8, %v912_v33, %v709_v7  ;;  %v769_v26 = vsel %vm747_vm2, %v13542_v21, %v504_v5  ;;  %v13032_v7 = vld [vmem:[#allocation2 + $0x10] sm:$0xff]   ;;  %12406 = vmatprep.subr.bf16.mxu0 %v13031_v43 }
 0x14f   : > { %v2016_v18 = vcombine.low %v1407_v16, %v1421_v59  ;;  %v2024_v19 = vrot.slane %v2014_v9, %v13554_v30  ;;  %v2031_v22 = vrot.slane %v12063_v57, %v13554_v30  ;;  %v13033_v8 = vld [vmem:[#allocation2 + $0x90] sm:$0xff]   ;;  %12313 = vmatpush3.bf16.msra.mxu1 %v13032_v7 }
 0x150   : > { %12407 = vmatpush3.bf16.msra.mxu0 %v13033_v8  ;;  %v13049_v43 = vld [vmem:[#allocation2 + $0xb0] sm:$0xff]  }
 0x151   : > { %v546_v10 = vpop.permute.xlu0 %545  ;;  %v738_v13 = vpop.permute.xlu1 %737  ;;  %v2038_v45 = vrot.slane %v2016_v18, %v13554_v30  ;;  %v2046_v46 = vcombine.low %v2024_v19, %v2031_v22  ;;  %v13036_v19 = vld [vmem:[#allocation2 + $0x18] sm:$0xff]  }
 0x152   : > { %v970_v25 = vsel %vm950_vm9, %v941_v12, %v738_v13  ;;  %v798_v34 = vsel %vm776_vm3, %v769_v26, %v546_v10  ;;  %v13037_v22 = vld [vmem:[#allocation2 + $0x98] sm:$0xff]  }
 0x153   : > { %v1425_v15 = vcombine.high %v970_v25, %v970_v25  ;;  %v1432_v17 = vrot.slane %v970_v25, %v13554_v30  ;;  %v2054_v63 = vrot.slane %v2046_v46, %v13554_v30  ;;  %v13034_v25 = vld [vmem:[#allocation2 + $0x58] sm:$0xff]  }
 0x154   : > { %12314 = vmatprep.subr.bf16.mxu1 %v13034_v25 }
 0x155   : > { %v579_v27 = vpop.permute.xlu0 %578  ;;  %v1439_v11 = vrot.slane %v1425_v15, %v13554_v30  ;;  %v1440_v29 = vcombine.high %v1432_v17, %v1432_v17  ;;  %v1448_v32 = vrot.slane %v1432_v17, %v13554_v30  ;;  %v614_v35 = vpop.permute.xlu1 %613  ;;  %v13035_v15 = vld [vmem:[#allocation2 + $0xd8] sm:$0xff]   ;;  %12315 = vmatpush3.bf16.msra.mxu1 %v13036_v19 }
 0x156   : > { %v827_v40 = vsel %vm805_vm4, %v798_v34, %v579_v27  ;;  %12408 = vmatprep.subr.bf16.mxu0 %v13035_v15  ;;  %12316 = vmatprep.subr.bf16.mxu1 %v13038_v37 }
 0x157   : > { %v1462_v44 = vrot.slane %v1440_v29, %v13554_v30  ;;  %v2017_v21 = vcombine.low %v1423_v1, %v1448_v32  ;;  %v1441_v49 = vcombine.high %v1439_v11, %v1439_v11  ;;  %v856_v24 = vsel %vm834_vm5, %v827_v40, %v614_v35  ;;  %12409 = vmatpush3.bf16.msra.mxu0 %v13037_v22  ;;  %v13039_v1 = vld [vmem:[#allocation2 + $0xe0] sm:$0xff]  }
 0x158   : > { %v1455_v53 = vrot.slane %v1439_v11, %v13554_v30  ;;  %v1470_v28 = vcombine.high %v1448_v32, %v1448_v32  ;;  %12410 = vmatprep.subr.bf16.mxu0 %v13039_v1 }
 0x159   : > { %v643_v14 = vpop.permute.xlu0 %642  ;;  %v676_v50 = vpop.permute.xlu1 %675  ;;  %v1472_v52 = vcombine.high %v1462_v44, %v1462_v44  ;;  %v2045_v54 = vrot.slane %v2017_v21, %v13554_v30  ;;  %v1469_v61 = vrot.slane %v1441_v49, %v13554_v30  ;;  %12317 = vmatpush3.bf16.msra.mxu1 %v13040_v41 }
 0x15a   : > { %v885_v55 = vsel %vm863_vm6, %v856_v24, %v643_v14  ;;  %v1471_v4 = vcombine.high %v1455_v53, %v1455_v53  ;;  %v2063_v10 = vcombine.low %v1462_v44, %v1470_v28  ;;  %12318 = vmatprep.subr.bf16.mxu1 %v13042_v51 }
 0x15b   : > { %v2047_v58 = vcombine.low %v2038_v45, %v2045_v54  ;;  %v914_v60 = vsel %vm892_vm7, %v885_v55, %v676_v50  ;;  %v2064_v31 = vcombine.low %v1472_v52, %v1455_v53  ;;  %12411 = vmatpush3.bf16.msra.mxu0 %v13041_v42  ;;  %v13044_v53 = vld [vmem:[#allocation2 + $0x28] sm:$0xff]  }
 0x15c   : > { %v2065_v17 = vcombine.low %v1469_v61, %v1471_v4  ;;  %v2073_v32 = vrot.slane %v2063_v10, %v13554_v30  ;;  %v13045_v52 = vld [vmem:[#allocation2 + $0xa8] sm:$0xff]   ;;  %12412 = vmatprep.subr.bf16.mxu0 %v13043_v2 }
 0x15d   : > { %v711_v39 = vpop.permute.xlu0 %710  ;;  %v740_v62 = vpop.permute.xlu1 %739  ;;  %v2061_v6 = vrot.slane %v2047_v58, %v13554_v30  ;;  %v2080_v18 = vrot.slane %v2064_v31, %v13554_v30  ;;  %12319 = vmatpush3.bf16.msra.mxu1 %v13044_v53 }
 0x15e   : > { %v943_v0 = vsel %vm921_vm8, %v914_v60, %v711_v39  ;;  %v2087_v40 = vrot.slane %v2065_v17, %v13554_v30 }
 0x15f   : > { %v972_v5 = vsel %vm950_vm9, %v943_v0, %v740_v62  ;;  %v2062_v57 = vcombine.low %v2054_v63, %v2061_v6  ;;  %v2095_v14 = vcombine.low %v2073_v32, %v2080_v18  ;;  %12413 = vmatpush3.bf16.msra.mxu0 %v13045_v52  ;;  %v13046_v62 = vld [vmem:[#allocation2 + $0x70] sm:$0xff]  }
 0x160   : > { %v1473_v59 = vcombine.high %v972_v5, %v972_v5  ;;  %v1480_v9 = vrot.slane %v972_v5, %v13554_v30  ;;  %v13047_v0 = vld [vmem:[#allocation2 + $0xf0] sm:$0xff]   ;;  %12320 = vmatprep.subr.bf16.mxu1 %v13046_v62 }
 0x161   : > { %v506_v33 = vpop.permute.xlu0 %505  ;;  %v548_v13 = vpop.permute.xlu1 %547  ;;  %12740 = vmatmul.mubr.msk.bf16.gmra.mrb[28].mxu0 %vm2289_vm10, %v2062_v57  ;;  %v2103_v55 = vrot.slane %v2095_v14, %v13554_v30  ;;  %12414 = vmatprep.subr.bf16.mxu0 %v13047_v0  ;;  %v13051_v57 = vld [vmem:[#allocation2 + $0xf8] sm:$0xff]  }
 0x162   : > { %v1488_v12 = vcombine.high %v1480_v9, %v1480_v9  ;;  %v771_v16 = vsel %vm747_vm2, %v13569_v48, %v506_v33  ;;  %v1487_v26 = vrot.slane %v1473_v59, %v13554_v30  ;;  %v13899_v27 = vrot.slane %v1480_v9, %v13554_v30  ;;  %12743 = vmatprep.mubr.msk.bf16.mxu0 %vm13237_vm1, %v16877_v23  ;;  %v13050_v9 = vld [vmem:[#allocation2 + $0x78] sm:$0xff]  }
 0x163   : > { %v800_v48 = vsel %vm776_vm3, %v771_v16, %v548_v13  ;;  %12321 = vmatpush3.bf16.msra.mxu1 %v13048_v3  ;;  %12415 = vmatpush3.bf16.msra.mxu0 %v13049_v43  ;;  %v13053_v13 = vld [vmem:[#allocation2 + $0xb8] sm:$0xff]  }
 0x164   : > { %v13902_v11 = vrot.slane %v1488_v12, %v13554_v30  ;;  %v1489_v44 = vcombine.high %v1487_v26, %v1487_v26  ;;  %v1503_v60 = vrot.slane %v1487_v26, %v13554_v30  ;;  %v13052_v12 = vld [vmem:[#allocation2 + $0x38] sm:$0xff]   ;;  %12322 = vmatprep.subr.bf16.mxu1 %v13050_v9  ;;  %12416 = vmatprep.subr.bf16.mxu0 %v13051_v57  ;;  %v13094_v26 = vld [vmem:[%s13377_s16 + $0x60] sm:$0xff]   ;;  %s13247_s16 = smov 88  }
 0x165   : > { %v581_v29 = vpop.permute.xlu0 %580  ;;  %v616_v35 = vpop.permute.xlu1 %615 }
 0x166   : > { %v2066_v34 = vcombine.low %v13899_v27, %v13902_v11  ;;  %v829_v36 = vsel %vm805_vm4, %v800_v48, %v581_v29  ;;  %v1517_v54 = vrot.slane %v1489_v44, %v13554_v30  ;;  %v12064_v6 = vcombine.high %v13899_v27, %v13902_v11 }
 0x167   : > { %v858_v45 = vsel %vm834_vm5, %v829_v36, %v616_v35  ;;  %v1519_v33 = vcombine.high %v1503_v60, %v1503_v60  ;;  %12323 = vmatpush3.bf16.msra.mxu1 %v13052_v12  ;;  %12417 = vmatpush3.bf16.msra.mxu0 %v13053_v13 }
 0x168   : > { %v2094_v21 = vrot.slane %v2066_v34, %v13554_v30  ;;  %v2113_v4 = vcombine.low %v1503_v60, %v1517_v54  ;;  %v2122_v19 = vrot.slane %v12064_v6, %v13554_v30 }
 0x169   : > { %v645_v46 = vpop.permute.xlu0 %644  ;;  %v678_v49 = vpop.permute.xlu1 %677 }
 0x16a   : > { %v887_v50 = vsel %vm863_vm6, %v858_v45, %v645_v46  ;;  %v2096_v24 = vcombine.low %v2087_v40, %v2094_v21  ;;  %v2129_v16 = vrot.slane %v2113_v4, %v13554_v30 }
 0x16b   : > { %v916_v56 = vsel %vm892_vm7, %v887_v50, %v678_v49 }
 0x16c   : > { %v2110_v47 = vrot.slane %v2096_v24, %v13554_v30  ;;  %v2144_v34 = vcombine.low %v2122_v19, %v2129_v16 }
 0x16d   : > { %v713_v58 = vpop.permute.xlu0 %712  ;;  %v742_v39 = vpop.permute.xlu1 %741 }
 0x16e   : > { %v945_v61 = vsel %vm921_vm8, %v916_v56, %v713_v58  ;;  %v2111_v28 = vcombine.low %v2103_v55, %v2110_v47  ;;  %v2152_v44 = vrot.slane %v2144_v34, %v13554_v30 }
 0x16f   : > { %v974_v63 = vsel %vm950_vm9, %v945_v61, %v742_v39 }
 0x170   : > { %v1528_v31 = vrot.slane %v974_v63, %v13554_v30  ;;  %12744 = vmatmul.mubr.msk.bf16.gmra.mrb[32].mxu0 %vm2289_vm10, %v2111_v28  ;;  %v1521_v10 = vcombine.high %v974_v63, %v974_v63 }
 0x171   : > { %v508_v5 = vpop.permute.xlu0 %507  ;;  %12747 = vmatprep.mubr.msk.bf16.mxu0 %vm13237_vm1, %v16877_v23  ;;  %v550_v59 = vpop.permute.xlu1 %549 }
 0x172   : > { %v1536_v7 = vcombine.high %v1528_v31, %v1528_v31  ;;  %v1544_v8 = vrot.slane %v1528_v31, %v13554_v30  ;;  %v773_v27 = vsel %vm747_vm2, %v13094_v26, %v508_v5  ;;  %v1535_v48 = vrot.slane %v1521_v10, %v13554_v30 }
 0x173   : > { %v802_v35 = vsel %vm776_vm3, %v773_v27, %v550_v59 }
 0x174   : > { %v1558_v25 = vrot.slane %v1536_v7, %v13554_v30  ;;  %v1566_v15 = vcombine.high %v1544_v8, %v1544_v8  ;;  %v2114_v17 = vcombine.low %v1519_v33, %v1544_v8  ;;  %v1537_v41 = vcombine.high %v1535_v48, %v1535_v48 }
 0x175   : > { %v583_v18 = vpop.permute.xlu0 %582  ;;  %v618_v11 = vpop.permute.xlu1 %617  ;;  %v1551_v42 = vrot.slane %v1535_v48, %v13554_v30 }
 0x176   : > { %v2115_v22 = vcombine.low %v1558_v25, %v1566_v15  ;;  %v2136_v29 = vrot.slane %v2114_v17, %v13554_v30  ;;  %v831_v37 = vsel %vm805_vm4, %v802_v35, %v583_v18  ;;  %v1565_v24 = vrot.slane %v1537_v41, %v13554_v30 }
 0x177   : > { %v860_v14 = vsel %vm834_vm5, %v831_v37, %v618_v11  ;;  %v1567_v51 = vcombine.high %v1551_v42, %v1551_v42  ;;  %v1568_v2 = vcombine.high %v1558_v25, %v1558_v25 }
 0x178   : > { %v2143_v32 = vrot.slane %v2115_v22, %v13554_v30 }
 0x179   : > { %v647_v36 = vpop.permute.xlu0 %646  ;;  %v680_v1 = vpop.permute.xlu1 %679  ;;  %v2161_v47 = vcombine.low %v1568_v2, %v1551_v42  ;;  %v2162_v56 = vcombine.low %v1565_v24, %v1567_v51 }
 0x17a   : > { %v2145_v40 = vcombine.low %v2136_v29, %v2143_v32  ;;  %v889_v46 = vsel %vm863_vm6, %v860_v14, %v647_v36 }
 0x17b   : > { %v918_v53 = vsel %vm892_vm7, %v889_v46, %v680_v1  ;;  %v2171_v43 = vrot.slane %v2161_v47, %v13554_v30  ;;  %v2178_v4 = vrot.slane %v2162_v56, %v13554_v30 }
 0x17c   : > { %v2159_v21 = vrot.slane %v2145_v40, %v13554_v30 }
 0x17d   : > { %v510_v45 = vpop.permute.xlu0 %509  ;;  %v715_v49 = vpop.permute.xlu1 %714  ;;  %v2193_v33 = vcombine.low %v2171_v43, %v2178_v4 }
 0x17e   : > { %v2160_v50 = vcombine.low %v2152_v44, %v2159_v21  ;;  %v947_v54 = vsel %vm921_vm8, %v918_v53, %v715_v49  ;;  %v775_v60 = vsel %vm747_vm2, %v13661_v38, %v510_v45 }
 0x17f   : > { %v2201_v26 = vrot.slane %v2193_v33, %v13554_v30 }
 0x180   : > { %12748 = vmatmul.mubr.msk.bf16.gmra.mrb[36].mxu0 %vm2289_vm10, %v2160_v50 }
 0x181   : > { %v552_v52 = vpop.permute.xlu0 %551  ;;  %12751 = vmatprep.mubr.msk.bf16.mxu0 %vm13237_vm1, %v16877_v23  ;;  %v744_v55 = vpop.permute.xlu1 %743 }
 0x182   : > { %v976_v58 = vsel %vm950_vm9, %v947_v54, %v744_v55  ;;  %v804_v28 = vsel %vm776_vm3, %v775_v60, %v552_v52 }
 0x183   : > { %v1569_v39 = vcombine.high %v976_v58, %v976_v58  ;;  %v1576_v61 = vrot.slane %v976_v58, %v13554_v30 }
 0x185   : > { %v585_v62 = vpop.permute.xlu0 %584  ;;  %v1584_v0 = vcombine.high %v1576_v61, %v1576_v61  ;;  %v620_v3 = vpop.permute.xlu1 %619  ;;  %v1583_v31 = vrot.slane %v1569_v39, %v13554_v30  ;;  %v1592_v5 = vrot.slane %v1576_v61, %v13554_v30  ;;  %v13239_v61 = vmov 1983009808  }
 0x186   : > { %v833_v63 = vsel %vm805_vm4, %v804_v28, %v585_v62  ;;  %v2521_v28 = vunpack.c.l.s4 %v13239_v61 }
 0x187   : > { %v1606_v38 = vrot.slane %v1584_v0, %v13554_v30  ;;  %v862_v6 = vsel %vm834_vm5, %v833_v63, %v620_v3  ;;  %v1585_v10 = vcombine.high %v1583_v31, %v1583_v31  ;;  %v1599_v19 = vrot.slane %v1583_v31, %v13554_v30  ;;  %v13996_v0 = vld [vmem:[%s16869_s2] ss:$0 sm:$0xff] }
 0x188   : > { %v2522_v62 = vunpack.c.0.s8 %v2521_v28 }
 0x189   : > { %v649_v7 = vpop.permute.xlu0 %648  ;;  %v2163_v8 = vcombine.low %v1592_v5, %v1606_v38  ;;  %v12065_v59 = vcombine.high %v1592_v5, %v1606_v38  ;;  %v682_v57 = vpop.permute.xlu1 %681  ;;  %v1613_v27 = vrot.slane %v1585_v10, %v13554_v30  ;;  %v1615_v37 = vcombine.high %v1599_v19, %v1599_v19 }
 0x18a   : > { %v891_v9 = vsel %vm863_vm6, %v862_v6, %v649_v7  ;;  %v14000_v43 = vsub.s32 %v2522_v62, %v13539_v20 }
 0x18b   : > { %v2185_v12 = vrot.slane %v2163_v8, %v13554_v30  ;;  %v2192_v13 = vrot.slane %v12065_v59, %v13554_v30  ;;  %v920_v16 = vsel %vm892_vm7, %v891_v9, %v682_v57  ;;  %v2210_v1 = vcombine.low %v1599_v19, %v1613_v27 }
 0x18c   : > { %17003 = vst [vmem:[#allocation12_spill] sm:$0xff] %v14000_v43 }
 0x18d   : > { %v717_v25 = vpop.permute.xlu0 %716  ;;  %v2194_v15 = vcombine.low %v2185_v12, %v2192_v13  ;;  %v746_v18 = vpop.permute.xlu1 %745  ;;  %v2220_v46 = vrot.slane %v2210_v1, %v13554_v30 }
 0x18e   : > { %v949_v17 = vsel %vm921_vm8, %v920_v16, %v717_v25 }
 0x18f   : > { %v978_v22 = vsel %vm950_vm9, %v949_v17, %v746_v18  ;;  %v2208_v29 = vrot.slane %v2194_v15, %v13554_v30  ;;  %v14008_v18 = vsub.s32 1, %v13539_v20 }
 0x190   : > { %v1617_v11 = vcombine.high %v978_v22, %v978_v22  ;;  %v1624_v48 = vrot.slane %v978_v22, %v13554_v30 }
 0x191   : > { %v2209_v36 = vcombine.low %v2201_v26, %v2208_v29  ;;  %17004 = vst [vmem:[#allocation13_spill] sm:$0xff] %v14008_v18 }
 0x192   : > { %v1631_v32 = vrot.slane %v1617_v11, %v13554_v30  ;;  %v1632_v34 = vcombine.high %v1624_v48, %v1624_v48  ;;  %v1640_v35 = vrot.slane %v1624_v48, %v13554_v30 }
 0x193   : > { %12752 = vmatmul.mubr.msk.bf16.gmra.mrb[40].mxu0 %vm2289_vm10, %v2209_v36 }
 0x194   : > { %v1654_v40 = vrot.slane %v1632_v34, %v13554_v30  ;;  %v1662_v41 = vcombine.high %v1640_v35, %v1640_v35  ;;  %v2211_v42 = vcombine.low %v1615_v37, %v1640_v35  ;;  %12755 = vmatprep.mubr.msk.bf16.mxu0 %vm13237_vm1, %v16877_v23  ;;  %v1647_v44 = vrot.slane %v1631_v32, %v13554_v30 }
 0x195   : > { %v1633_v49 = vcombine.high %v1631_v32, %v1631_v32 }
 0x196   : > { %v1664_v21 = vcombine.high %v1654_v40, %v1654_v40  ;;  %v2212_v14 = vcombine.low %v1654_v40, %v1662_v41  ;;  %v2227_v45 = vrot.slane %v2211_v42, %v13554_v30  ;;  %v1663_v52 = vcombine.high %v1647_v44, %v1647_v44 }
 0x197   : > { %v1661_v53 = vrot.slane %v1633_v49, %v13554_v30 }
 0x198   : > { %v2213_v50 = vcombine.low %v1664_v21, %v1647_v44  ;;  %v2234_v24 = vrot.slane %v2212_v14, %v13554_v30  ;;  %v2242_v2 = vcombine.low %v2220_v46, %v2227_v45 }
 0x199   : > { %v2259_v56 = vcombine.low %v1661_v53, %v1663_v52 }
 0x19a   : > { %v2241_v51 = vrot.slane %v2213_v50, %v13554_v30  ;;  %v2250_v55 = vrot.slane %v2242_v2, %v13554_v30 }
 0x19b   : > { %v2266_v60 = vrot.slane %v2259_v56, %v13554_v30 }
 0x19c   : > { %v2243_v54 = vcombine.low %v2234_v24, %v2241_v51 }
 0x19d   : > { %v2273_v39 = vrot.slane %v2266_v60, %v13554_v30 }
 0x19e   : > { %v2257_v47 = vrot.slane %v2243_v54, %v13554_v30 }
 0x1a0   : > { %v2258_v58 = vcombine.low %v2250_v55, %v2257_v47 }
 0x1a2   : > { %12756 = vmatmul.mubr.msk.bf16.gmra.mrb[44].mxu0 %vm2289_vm10, %v2258_v58 }
 0x1a3   : > { %12759 = vmatprep.mubr.msk.bf16.mxu0 %vm13237_vm1, %v16877_v23 }
 0x1aa   : > { %12760 = vmatmul.mubr.msk.bf16.gmra.mrb[48].mxu0 %vm2289_vm10, %v2273_v39 }
 0x1b4   : > { %v2367_v63 = vpop.f32.mrb[0].mxu0 }
 0x1b5   : > { %v2368_v3 = vadd.f32 %v13996_v0, %v2367_v63  ;;  %v12713_v4 = vpop.f32.mrb[1].mxu0 }
 0x1b6   : > { %v2370_v31 = vpop.f32.mrb[2].mxu0 }
 0x1b7   : > { %v2469_v5 = vmax.f32 %v2368_v3, 0.0  ;;  %v2371_v38 = vadd.f32 %v13996_v0, %v2370_v31  ;;  %v12714_v6 = vpop.f32.mrb[3].mxu0 }
 0x1b9   : > { %v2519_v7 = vcombine.high %v2469_v5, %v2469_v5  ;;  %v2526_v8 = vrot.slane %v2469_v5, %v14000_v43  ;;  %v2470_v59 = vmax.f32 %v2371_v38, 0.0 }
 0x1bb   : > { %v2533_v9 = vrot.slane %v2519_v7, %v14000_v43  ;;  %v2534_v57 = vcombine.high %v2526_v8, %v2526_v8  ;;  %v2536_v33 = vcombine.high %v2470_v59, %v2470_v59  ;;  %v2543_v10 = vrot.slane %v2470_v59, %v14000_v43 }
 0x1bd   : > { %v2535_v12 = vcombine.high %v2533_v9, %v2533_v9  ;;  %v2949_v13 = vcombine.low %v2526_v8, %v2534_v57  ;;  %v2550_v16 = vrot.slane %v2536_v33, %v14000_v43  ;;  %v2551_v25 = vcombine.high %v2543_v10, %v2543_v10 }
 0x1bf   : > { %v2950_v15 = vcombine.low %v2533_v9, %v2535_v12  ;;  %v2966_v17 = vcombine.low %v2543_v10, %v2551_v25  ;;  %v2957_v19 = vrot.slane %v2949_v13, %v14000_v43  ;;  %v2980_v27 = vrot.slane %v2550_v16, %v14000_v43 }
 0x1c0   : > { %v3485_v42 = vrot.slane %v2550_v16, %v14008_v18  ;;  %v2552_v44 = vcombine.high %v2550_v16, %v2550_v16 }
 0x1c1   : > { %v2964_v22 = vrot.slane %v2950_v15, %v14000_v43  ;;  %v2973_v26 = vrot.slane %v2966_v17, %v14000_v43 }
 0x1c3   : > { %v2375_v11 = vpop.f32.mrb[4].mxu0  ;;  %v2965_v32 = vcombine.low %v2957_v19, %v2964_v22  ;;  %v2981_v34 = vcombine.low %v2973_v26, %v2980_v27 }
 0x1c4   : > { %v2376_v48 = vadd.f32 %v13996_v0, %v2375_v11  ;;  %v12717_v29 = vpop.f32.mrb[5].mxu0 }
 0x1c5   : > { %v2378_v35 = vpop.f32.mrb[6].mxu0  ;;  %v3412_v40 = vrot.slane %v2965_v32, 7  ;;  %v3413_v41 = vrot.slane %v2981_v34, 7 }
 0x1c6   : > { %v2471_v36 = vmax.f32 %v2376_v48, 0.0  ;;  %v2379_v37 = vadd.f32 %v13996_v0, %v2378_v35  ;;  %v12718_v1 = vpop.f32.mrb[7].mxu0 }
 0x1c7   : > { %v3552_v46 = vsel %vm3411_vm11, %v2526_v8, %v3412_v40  ;;  %v3414_v49 = vsel %vm3411_vm11, %v3412_v40, %v3413_v41 }
 0x1c8   : > { %v2553_v21 = vcombine.high %v2471_v36, %v2471_v36  ;;  %v2560_v14 = vrot.slane %v2471_v36, %v14000_v43  ;;  %v2472_v45 = vmax.f32 %v2379_v37, 0.0  ;;  %v3567_v50 = vsel %vm3566_vm12, %v3414_v49, %v3485_v42 }
 0x1c9   : > { %v3581_v53 = vpack.c.bf16 %v3567_v50, %v3552_v46 }
 0x1ca   : > { %v2567_v24 = vrot.slane %v2553_v21, %v14000_v43  ;;  %v2568_v51 = vcombine.high %v2560_v14, %v2560_v14  ;;  %v2982_v2 = vcombine.low %v2552_v44, %v2560_v14  ;;  %v2570_v52 = vcombine.high %v2472_v45, %v2472_v45 }
 0x1cb   : > { %v2577_v54 = vrot.slane %v2472_v45, %v14000_v43  ;;  %v3743_v60 = vshll.u32 %v3581_v53, 16  ;;  %v14028_v62 = vrot.slane %v3581_v53, 1  ;;  %v3741_v3 = vshrl.u32 %v3581_v53, 16 }
 0x1cc   : > { %v2983_v55 = vcombine.low %v2568_v51, %v2567_v24  ;;  %v2569_v47 = vcombine.high %v2567_v24, %v2567_v24  ;;  %v14024_v56 = vrot.slane %v2570_v52, %v14000_v43  ;;  %v2990_v39 = vrot.slane %v2982_v2, %v14000_v43 }
 0x1cd   : > { %v2585_v58 = vcombine.high %v2577_v54, %v2577_v54  ;;  %v3745_v4 = vrot.slane %v3743_v60, 1  ;;  %v3868_v7 = vcombine.low %v14028_v62, %v3581_v53  ;;  %v3869_v13 = vcombine.high %v14028_v62, %v3581_v53 }
 0x1ce   : > { %v2997_v61 = vrot.slane %v2983_v55, %v14000_v43  ;;  %v2999_v28 = vcombine.low %v2569_v47, %v2577_v54  ;;  %v2586_v63 = vcombine.high %v14024_v56, %v14024_v56 }
 0x1cf   : > { %v3013_v38 = vrot.slane %v2585_v58, %v14000_v43  ;;  %v3746_v6 = vor.u32 %v3745_v4, %v3741_v3  ;;  %v3489_v9 = vrot.slane %v2585_v58, %v14008_v18  ;;  %v3894_v48 = vrot.slane %v3868_v7, %v13554_v30 }
 0x1d0   : > { %v2998_v31 = vcombine.low %v2990_v39, %v2997_v61  ;;  %v3006_v5 = vrot.slane %v2999_v28, %v14000_v43  ;;  %v3015_v57 = vcombine.low %v14024_v56, %v2586_v63  ;;  %v3901_v37 = vrot.slane %v3869_v13, %v13554_v30 }
 0x1d1   : > { %v3866_v10 = vcombine.low %v3581_v53, %v3746_v6  ;;  %v3867_v12 = vcombine.high %v3581_v53, %v3746_v6  ;;  %v3870_v19 = vcombine.low %v3746_v6, %v14028_v62  ;;  %v3871_v26 = vcombine.high %v3746_v6, %v14028_v62 }
 0x1d2   : > { %v3415_v8 = vrot.slane %v2998_v31, 7  ;;  %v3014_v59 = vcombine.low %v3006_v5, %v3013_v38  ;;  %v3023_v14 = vrot.slane %v3015_v57, %v14000_v43 }
 0x1d3   : > { %v2383_v33 = vpop.f32.mrb[8].mxu0  ;;  %v14043_v27 = vrot.slane %v3866_v10, %v13554_v30  ;;  %v14046_v11 = vrot.slane %v3867_v12, %v13554_v30  ;;  %v14058_v45 = vrot.slane %v3871_v26, %v13554_v30  ;;  %v14062_v49 = vrot.slane %v3870_v19, %v13554_v30 }
 0x1d4   : > { %v3553_v16 = vsel %vm3411_vm11, %v2552_v44, %v3415_v8  ;;  %v3416_v25 = vrot.slane %v3014_v59, 7  ;;  %v2384_v15 = vadd.f32 %v13996_v0, %v2383_v33  ;;  %v12721_v17 = vpop.f32.mrb[9].mxu0 }
 0x1d5   : > { %v2386_v22 = vpop.f32.mrb[10].mxu0  ;;  %v3930_v1 = vcombine.low %v14043_v27, %v3894_v48  ;;  %v3931_v40 = vcombine.high %v14043_v27, %v3894_v48  ;;  %v3932_v46 = vcombine.low %v14046_v11, %v3901_v37  ;;  %v3933_v2 = vcombine.high %v14046_v11, %v3901_v37 }
 0x1d6   : > { %v3417_v29 = vsel %vm3411_vm11, %v3415_v8, %v3416_v25  ;;  %v2473_v32 = vmax.f32 %v2384_v15, 0.0  ;;  %v2387_v34 = vadd.f32 %v13996_v0, %v2386_v22  ;;  %v12722_v35 = vpop.f32.mrb[11].mxu0 }
 0x1d7   : > { %v3568_v36 = vsel %vm3566_vm12, %v3417_v29, %v3489_v9  ;;  %v3944_v54 = vrot.slane %v3930_v1, %v13554_v30  ;;  %v3958_v55 = vrot.slane %v3931_v40, %v13554_v30  ;;  %v3951_v3 = vrot.slane %v3932_v46, %v13554_v30 }
 0x1d8   : > { %v3582_v41 = vpack.c.bf16 %v3568_v36, %v3553_v16  ;;  %v2587_v42 = vcombine.high %v2473_v32, %v2473_v32  ;;  %v2594_v44 = vrot.slane %v2473_v32, %v14000_v43  ;;  %v2474_v21 = vmax.f32 %v2387_v34, 0.0 }
 0x1d9   : > { %v3965_v5 = vrot.slane %v3933_v2, %v13554_v30  ;;  %v12083_v8 = vcombine.low %v3944_v54, %v3958_v55  ;;  %v12085_v59 = vcombine.high %v3944_v54, %v3958_v55 }
 0x1da   : > { %v2601_v50 = vrot.slane %v2587_v42, %v14000_v43  ;;  %v2602_v24 = vcombine.high %v2594_v44, %v2594_v44  ;;  %v2604_v51 = vcombine.high %v2474_v21, %v2474_v21  ;;  %v2611_v53 = vrot.slane %v2474_v21, %v14000_v43 }
 0x1db   : > { %v3750_v52 = vshll.u32 %v3582_v41, 16  ;;  %v4049_v39 = vcombine.low %v14028_v62, %v3582_v41  ;;  %v3748_v28 = vshrl.u32 %v3582_v41, 16  ;;  %v14084_v12 = vrot.slane %v3582_v41, 1 }
 0x1dc   : > { %v2603_v47 = vcombine.high %v2601_v50, %v2601_v50  ;;  %v3016_v58 = vcombine.low %v2594_v44, %v2602_v24  ;;  %v14070_v60 = vrot.slane %v2604_v51, %v14000_v43  ;;  %v14073_v61 = vcombine.high %v2611_v53, %v2611_v53 }
 0x1dd   : > { %v3752_v63 = vrot.slane %v3750_v52, 1  ;;  %v4061_v38 = vrot.slane %v4049_v39, %v13554_v30  ;;  %v3046_v33 = vrot.slane %v2611_v53, %v14000_v43  ;;  %17005 = vst [vmem:[#allocation14_spill] sm:$0xff] %v14084_v12  ;;  %v6176_v16 = vrot.slane %v12083_v8, %v13554_v30 }
 0x1de   : > { %v3030_v4 = vrot.slane %v3016_v58, %v14000_v43  ;;  %v3032_v31 = vcombine.low %v2601_v50, %v2603_v47  ;;  %v3048_v6 = vcombine.low %v14073_v61, %v14070_v60  ;;  %v6190_v25 = vrot.slane %v12085_v59, %v13554_v30 }
 0x1df   : > { %v3753_v7 = vor.u32 %v3752_v63, %v3748_v28  ;;  %v4097_v10 = vcombine.low %v14043_v27, %v4061_v38  ;;  %v3493_v19 = vrot.slane %v2611_v53, %v14008_v18  ;;  %v2620_v22 = vcombine.high %v14070_v60, %v14070_v60 }
 0x1e0   : > { %v3031_v9 = vcombine.low %v3023_v14, %v3030_v4  ;;  %v3039_v57 = vrot.slane %v3032_v31, %v14000_v43  ;;  %v14092_v26 = vrot.slane %v3048_v6, %v14000_v43  ;;  %v12087_v29 = vcombine.low %v3951_v3, %v3965_v5 }
 0x1e1   : > { %v3873_v13 = vcombine.high %v3582_v41, %v3753_v7  ;;  %v3872_v32 = vcombine.low %v3582_v41, %v3753_v7  ;;  %v14100_v36 = vrot.slane %v4097_v10, %v13554_v30  ;;  %v4050_v37 = vcombine.high %v14028_v62, %v3582_v41 }
 0x1e2   : > { %v3418_v15 = vrot.slane %v3031_v9, 7  ;;  %v3047_v17 = vcombine.low %v3039_v57, %v3046_v33  ;;  %v6227_v40 = vcombine.high %v6176_v16, %v6190_v25  ;;  %v6226_v42 = vcombine.low %v6176_v16, %v6190_v25 }
 0x1e3   : > { %v14095_v48 = vrot.slane %v3873_v13, %v13554_v30  ;;  %v14106_v44 = vrot.slane %v3872_v32, %v13554_v30  ;;  %v4051_v14 = vcombine.low %v3753_v7, %v14084_v12  ;;  %v4052_v46 = vcombine.high %v3753_v7, %v14084_v12 }
 0x1e4   : > { %v3419_v34 = vrot.slane %v3047_v17, 7  ;;  %v3554_v35 = vsel %vm3411_vm11, %v14024_v56, %v3418_v15  ;;  %v14112_v56 = vrot.slane %v4050_v37, %v13554_v30  ;;  %v4098_v41 = vcombine.high %v14043_v27, %v4061_v38 }
 0x1e5   : > { %v3936_v1 = vcombine.low %v14058_v45, %v14095_v48  ;;  %v3934_v24 = vcombine.low %v14062_v49, %v14106_v44  ;;  %v6204_v53 = vrot.slane %v12087_v29, %v13554_v30  ;;  %v6254_v27 = vrot.slane %v6227_v40, %v13554_v30 }
 0x1e6   : > { %v3420_v21 = vsel %vm3411_vm11, %v3418_v15, %v3419_v34  ;;  %v4099_v52 = vcombine.low %v14046_v11, %v14112_v56  ;;  %v4100_v54 = vcombine.high %v14046_v11, %v14112_v56  ;;  %v6240_v63 = vrot.slane %v6226_v42, %v13554_v30 }
 0x1e7   : > { %v3569_v50 = vsel %vm3566_vm12, %v3420_v21, %v3493_v19  ;;  %v14116_v62 = vrot.slane %v3936_v1, %v13554_v30  ;;  %v2391_v2 = vpop.f32.mrb[12].mxu0  ;;  %v14136_v4 = vrot.slane %v4051_v14, %v13554_v30  ;;  %v14139_v31 = vrot.slane %v4052_v46, %v13554_v30 }
 0x1e8   : > { %v14121_v51 = vpack.c.bf16 %v3569_v50, %v3554_v35  ;;  %v2392_v55 = vadd.f32 %v13996_v0, %v2391_v2  ;;  %v12725_v47 = vpop.f32.mrb[13].mxu0  ;;  %v14144_v7 = vrot.slane %v4098_v41, %v13554_v30  ;;  %v14156_v15 = vrot.slane %v4099_v52, %v13554_v30 }
 0x1e9   : > { %v3997_v58 = vcombine.high %v3951_v3, %v14116_v62  ;;  %v2394_v28 = vpop.f32.mrb[14].mxu0  ;;  %v14240_v56 = vrot.slane %v3934_v24, %v13554_v30 }
 0x1ea   : > { %v3757_v39 = vshll.u32 %v14121_v51, 16  ;;  %v2475_v5 = vmax.f32 %v2392_v55, 0.0  ;;  %v2395_v38 = vadd.f32 %v13996_v0, %v2394_v28  ;;  %v12726_v3 = vpop.f32.mrb[15].mxu0  ;;  %v3755_v8 = vshrl.u32 %v14121_v51, 16 }
 0x1eb   : > { %v12089_v6 = vcombine.low %v3997_v58, %v14100_v36  ;;  %v4216_v9 = vcombine.low %v14084_v12, %v14121_v51  ;;  %v4217_v19 = vcombine.high %v14084_v12, %v14121_v51 }
 0x1ec   : > { %v3759_v59 = vrot.slane %v3757_v39, 1  ;;  %v2621_v33 = vcombine.high %v2475_v5, %v2475_v5  ;;  %v2628_v10 = vrot.slane %v2475_v5, %v14000_v43  ;;  %v2476_v13 = vmax.f32 %v2395_v38, 0.0 }
 0x1ed   : > { %v6218_v16 = vrot.slane %v12089_v6, %v13554_v30  ;;  %v14159_v17 = vrot.slane %v4216_v9, %v13554_v30  ;;  %v13055_v6 = vld [vmem:[#allocation2 + $0x100] sm:$0xff]  }
 0x1ee   : > { %v14153_v25 = vor.u32 %v3759_v59, %v3755_v8  ;;  %v2635_v29 = vrot.slane %v2621_v33, %v14000_v43  ;;  %v2636_v32 = vcombine.high %v2628_v10, %v2628_v10  ;;  %v3049_v34 = vcombine.low %v2620_v22, %v2628_v10 }
 0x1ef   : > { %v2638_v35 = vcombine.high %v2476_v13, %v2476_v13  ;;  %v14165_v37 = vrot.slane %v2476_v13, %v14000_v43  ;;  %v6231_v1 = vcombine.high %v6204_v53, %v6218_v16  ;;  %v6230_v40 = vcombine.low %v6204_v53, %v6218_v16  ;;  %v13054_v53 = vld [vmem:[#allocation2 + $0x140] sm:$0xff]  }
 0x1f0   : > { %v4053_v42 = vcombine.low %v14121_v51, %v14153_v25  ;;  %v2637_v21 = vcombine.high %v2635_v29, %v2635_v29  ;;  %v3063_v14 = vrot.slane %v3049_v34, %v14000_v43  ;;  %v3065_v46 = vcombine.low %v2636_v32, %v2635_v29  ;;  %12496 = vmatprep.subr.bf16.mxu1 %v13054_v53 }
 0x1f1   : > { %v2652_v50 = vrot.slane %v2638_v35, %v14000_v43  ;;  %v2653_v41 = vcombine.high %v14165_v37, %v14165_v37  ;;  %v6282_v22 = vrot.slane %v6231_v1, %v13554_v30  ;;  %v6268_v2 = vrot.slane %v6230_v40, %v13554_v30 }
 0x1f2   : > { %v4054_v52 = vcombine.high %v14121_v51, %v14153_v25  ;;  %v3064_v55 = vcombine.low %v14092_v26, %v3063_v14  ;;  %v3072_v47 = vrot.slane %v3065_v46, %v14000_v43  ;;  %v3079_v58 = vrot.slane %v2637_v21, %v14000_v43 }
 0x1f3   : > { %v3497_v39 = vrot.slane %v2637_v21, %v14008_v18  ;;  %v2654_v28 = vcombine.high %v2652_v50, %v2652_v50  ;;  %v3081_v5 = vcombine.low %v14165_v37, %v2653_v41  ;;  %v6294_v38 = vcombine.low %v6254_v27, %v6282_v22 }
 0x1f4   : > { %v6295_v3 = vcombine.high %v6254_v27, %v6282_v22  ;;  %v3080_v8 = vcombine.low %v3072_v47, %v3079_v58  ;;  %v3421_v59 = vrot.slane %v3064_v55, 7  ;;  %v6290_v33 = vcombine.low %v6240_v63, %v6268_v2 }
 0x1f5   : > { %v2399_v9 = vpop.f32.mrb[16].mxu0  ;;  %v6291_v10 = vcombine.high %v6240_v63, %v6268_v2  ;;  %v14183_v26 = vrot.slane %v14121_v51, 1  ;;  %v3082_v13 = vcombine.low %v2652_v50, %v2654_v28  ;;  %v3089_v16 = vrot.slane %v3081_v5, %v14000_v43  ;;  %9028 = vmatprep.mubr.bf16.mxu1 %v6294_v38 }
 0x1f6   : > { %9164 = vmatprep.mubr.bf16.mxu0 %v6295_v3  ;;  %v2400_v29 = vadd.f32 %v13996_v0, %v2399_v9  ;;  %v12729_v32 = vpop.f32.mrb[17].mxu0  ;;  %v3422_v34 = vrot.slane %v3080_v8, 7  ;;  %v3555_v27 = vsel %vm3411_vm11, %v14073_v61, %v3421_v59  ;;  %9029 = vmatmul.mubr.bf16.vlgmr.msra.gmra.mrb[0].mxu1 %v6290_v33  ;;  %v14190_v63 = vrot.slane %v4053_v42, %v13554_v30 }
 0x1f7   : > { %9165 = vmatmul.mubr.bf16.vlgmr.msra.gmra.mrb[52].mxu0 %v6291_v10  ;;  %v2402_v35 = vpop.f32.mrb[18].mxu0  ;;  %v14193_v1 = vrot.slane %v4054_v52, %v13554_v30  ;;  %v3096_v40 = vrot.slane %v3082_v13, %v14000_v43  ;;  %v4264_v50 = vcombine.low %v14106_v44, %v14159_v17  ;;  %12497 = vmatpush3.bf16.msra.mxu1 %v13055_v6 }
 0x1f8   : > { %v2477_v21 = vmax.f32 %v2400_v29, 0.0  ;;  %v2403_v14 = vadd.f32 %v13996_v0, %v2402_v35  ;;  %v12730_v46 = vpop.f32.mrb[19].mxu0  ;;  %v3423_v61 = vsel %vm3411_vm11, %v3421_v59, %v3422_v34  ;;  %v4101_v41 = vcombine.low %v14136_v4, %v14190_v63 }
 0x1f9   : > { %v4102_v42 = vcombine.high %v14136_v4, %v14190_v63  ;;  %v4103_v22 = vcombine.low %v14139_v31, %v14193_v1  ;;  %v3570_v2 = vsel %vm3566_vm12, %v3423_v61, %v3497_v39  ;;  %v3097_v52 = vcombine.low %v3089_v16, %v3096_v40 }
 0x1fa   : > { %v2655_v53 = vcombine.high %v2477_v21, %v2477_v21  ;;  %v2662_v55 = vrot.slane %v2477_v21, %v14000_v43  ;;  %v14208_v47 = vpack.c.bf16 %v3570_v2, %v3555_v27  ;;  %v2478_v58 = vmax.f32 %v2403_v14, 0.0 }
 0x1fb   : > { %v14211_v28 = vrot.slane %v4101_v41, %v13554_v30  ;;  %v14214_v5 = vrot.slane %v4103_v22, %v13554_v30  ;;  %v14221_v39 = vrot.slane %v4100_v54, %v13554_v30  ;;  %v14224_v3 = vrot.slane %v4102_v42, %v13554_v30 }
 0x1fc   : > { %v2669_v4 = vrot.slane %v2655_v53, %v14000_v43  ;;  %v2670_v38 = vcombine.high %v2662_v55, %v2662_v55  ;;  %v2672_v6 = vcombine.high %v2478_v58, %v2478_v58  ;;  %v2679_v8 = vrot.slane %v2478_v58, %v14000_v43 }
 0x1fd   : > { %v4162_v59 = vcombine.high %v14100_v36, %v14211_v28  ;;  %v14233_v9 = vrot.slane %v4217_v19, %v13554_v30  ;;  %v3424_v33 = vrot.slane %v3097_v52, 7  ;;  %v4164_v51 = vcombine.high %v14156_v15, %v14214_v5 }
 0x1fe   : > { %v3098_v10 = vcombine.low %v2662_v55, %v2670_v38  ;;  %v3112_v11 = vrot.slane %v2669_v4, %v14000_v43  ;;  %v2671_v54 = vcombine.high %v2669_v4, %v2669_v4  ;;  %v14243_v13 = vrot.slane %v2672_v6, %v14000_v43  ;;  %v13056_v6 = vld [vmem:[#allocation2 + $0x148] sm:$0xff]  }
 0x1ff   : > { %v2687_v16 = vcombine.high %v2679_v8, %v2679_v8  ;;  %v4166_v29 = vcombine.high %v14144_v7, %v14224_v3  ;;  %v4265_v32 = vcombine.high %v14106_v44, %v14159_v17  ;;  %v14253_v34 = vrot.slane %v4264_v50, %v13554_v30  ;;  %12498 = vmatprep.subr.bf16.mxu1 %v13056_v6 }
 0x200   : > { %v3105_v19 = vrot.slane %v3098_v10, %v14000_v43  ;;  %v3114_v24 = vcombine.low %v2671_v54, %v2679_v8  ;;  %v12092_v35 = vcombine.low %v14144_v7, %v4162_v59  ;;  %v12096_v40 = vcombine.low %v14221_v39, %v4164_v51  ;;  %v13057_v8 = vld [vmem:[#allocation2 + $0x108] sm:$0xff]  }
 0x201   : > { %v3115_v27 = vcombine.low %v2687_v16, %v14243_v13  ;;  %v3556_v21 = vsel %vm3411_vm11, %v14165_v37, %v3424_v33  ;;  %v14261_v46 = vrot.slane %v4265_v32, %v13554_v30  ;;  %v12094_v61 = vcombine.low %v4166_v29, %v14156_v15  ;;  %12499 = vmatpush3.bf16.msra.mxu1 %v13057_v8 }
 0x202   : > { %v3113_v14 = vcombine.low %v3105_v19, %v3112_v11  ;;  %v3501_v17 = vrot.slane %v2669_v4, %v14008_v18  ;;  %v3122_v50 = vrot.slane %v3114_v24, %v14000_v43  ;;  %v6361_v42 = vrot.slane %v12092_v35, %v13554_v30 }
 0x203   : > { %v3129_v41 = vrot.slane %v3115_v27, %v14000_v43  ;;  %v12098_v2 = vcombine.low %v14253_v34, %v14261_v46  ;;  %v6375_v37 = vrot.slane %v12094_v61, %v13554_v30  ;;  %v6389_v52 = vrot.slane %v12096_v40, %v13554_v30 }
 0x204   : > { %v3425_v22 = vrot.slane %v3113_v14, 7  ;;  %v2688_v58 = vcombine.high %v14243_v13, %v14243_v13  ;;  %v3764_v4 = vshll.u32 %v14208_v47, 16  ;;  %v4266_v38 = vcombine.low %v14095_v48, %v14233_v9 }
 0x205   : > { %v14272_v53 = vcombine.low %v3122_v50, %v3129_v41  ;;  %v2407_v55 = vpop.f32.mrb[20].mxu0  ;;  %v6403_v10 = vrot.slane %v12098_v2, %v13554_v30  ;;  %v6412_v11 = vcombine.high %v6361_v42, %v6375_v37  ;;  %v6411_v13 = vcombine.low %v6361_v42, %v6375_v37 }
 0x206   : > { %v3426_v59 = vsel %vm3411_vm11, %v3424_v33, %v3425_v22  ;;  %v2408_v16 = vadd.f32 %v13996_v0, %v2407_v55  ;;  %v12733_v51 = vpop.f32.mrb[21].mxu0  ;;  %v3766_v24 = vrot.slane %v3764_v4, 1  ;;  %v3762_v22 = vshrl.u32 %v14208_v47, 16 }
 0x207   : > { %v3571_v19 = vsel %vm3566_vm12, %v3426_v59, %v3501_v17  ;;  %v3427_v29 = vrot.slane %v14272_v53, 7  ;;  %v2410_v32 = vpop.f32.mrb[22].mxu0  ;;  %v6416_v35 = vcombine.high %v6389_v52, %v6403_v10  ;;  %v6439_v40 = vrot.slane %v6412_v11, %v13554_v30 }
 0x208   : > { %v14284_v27 = vpack.c.bf16 %v3571_v19, %v3556_v21  ;;  %v2479_v33 = vmax.f32 %v2408_v16, 0.0  ;;  %v12734_v14 = vpop.f32.mrb[23].mxu0  ;;  %v6415_v50 = vcombine.low %v6389_v52, %v6403_v10  ;;  %v6425_v17 = vrot.slane %v6411_v13, %v13554_v30 }
 0x209   : > { %v3557_v61 = vsel %vm3411_vm11, %v2671_v54, %v3427_v29  ;;  %v2411_v41 = vadd.f32 %v13996_v0, %v2410_v32  ;;  %v6467_v21 = vrot.slane %v6416_v35, %v13554_v30  ;;  %v4219_v2 = vcombine.high %v14153_v25, %v14183_v26 }
 0x20a   : > { %v3771_v42 = vshll.u32 %v14284_v27, 16  ;;  %v2689_v37 = vcombine.high %v2479_v33, %v2479_v33  ;;  %v2696_v55 = vrot.slane %v2479_v33, %v14000_v43  ;;  %v6453_v4 = vrot.slane %v6415_v50, %v13554_v30 }
 0x20b   : > { %v2480_v54 = vmax.f32 %v2411_v41, 0.0  ;;  %v6479_v6 = vcombine.low %v6439_v40, %v6467_v21  ;;  %v6480_v8 = vcombine.high %v6439_v40, %v6467_v21  ;;  %v14299_v59 = vor.u32 %v3766_v24, %v3762_v22 }
 0x20c   : > { %v3773_v52 = vrot.slane %v3771_v42, 1  ;;  %v14302_v10 = vrot.slane %v2689_v37, %v14000_v43  ;;  %v2704_v11 = vcombine.high %v2696_v55, %v2696_v55  ;;  %v3131_v16 = vcombine.low %v2688_v58, %v2696_v55 }
 0x20d   : > { %v6475_v51 = vcombine.low %v6425_v17, %v6453_v4  ;;  %v14305_v19 = vrot.slane %v14208_v47, 1  ;;  %9036 = vmatprep.mubr.bf16.mxu1 %v6479_v6  ;;  %9172 = vmatprep.mubr.bf16.mxu0 %v6480_v8  ;;  %v6476_v13 = vcombine.high %v6425_v17, %v6453_v4  ;;  %v2706_v32 = vcombine.high %v2480_v54, %v2480_v54 }
 0x20e   : > { %v2713_v35 = vrot.slane %v2480_v54, %v14000_v43  ;;  %v3769_v33 = vshrl.u32 %v14284_v27, 16  ;;  %v2705_v24 = vcombine.high %v14302_v10, %v14302_v10  ;;  %v3138_v40 = vrot.slane %v3131_v16, %v14000_v43 }
 0x20f   : > { %17006 = vst [vmem:[#allocation15_spill] sm:$0xff] %v14305_v19  ;;  %v3145_v14 = vrot.slane %v2704_v11, %v14000_v43  ;;  %9037 = vmatmul.mubr.bf16.gmra.mrb[4].mxu1 %v6475_v51  ;;  %v3505_v58 = vrot.slane %v2704_v11, %v14008_v18  ;;  %9173 = vmatmul.mubr.bf16.gmra.mrb[56].mxu0 %v6476_v13 }
 0x210   : > { %v2720_v50 = vrot.slane %v2706_v32, %v14000_v43  ;;  %v2721_v41 = vcombine.high %v2713_v35, %v2713_v35  ;;  %v4221_v17 = vcombine.high %v14208_v47, %v14299_v59  ;;  %v3147_v21 = vcombine.low %v14302_v10, %v2705_v24 }
 0x211   : > { %v3146_v42 = vcombine.low %v3138_v40, %v3145_v14  ;;  %v14318_v22 = vor.u32 %v3773_v52, %v3769_v33  ;;  %v4267_v37 = vcombine.high %v14095_v48, %v14233_v9  ;;  %v14323_v54 = vrot.slane %v4219_v2, %v13554_v30 }
 0x212   : > { %v2722_v55 = vcombine.high %v2720_v50, %v2720_v50  ;;  %v3148_v4 = vcombine.low %v2713_v35, %v2721_v41  ;;  %v14326_v6 = vrot.slane %v4221_v17, %v13554_v30  ;;  %v3155_v11 = vrot.slane %v3147_v21, %v14000_v43 }
 0x213   : > { %17007 = vst [vmem:[#allocation16_spill] sm:$0xff] %v14318_v22  ;;  %17008 = vst [vmem:[#allocation17_spill] sm:$0xff] %v14323_v54  ;;  %v3428_v8 = vrot.slane %v3146_v42, 7  ;;  %v4285_v52 = vrot.slane %v4266_v38, %v13554_v30  ;;  %v4383_v16 = vcombine.low %v14183_v26, %v14208_v47  ;;  %v4385_v32 = vcombine.low %v14299_v59, %v14305_v19 }
 0x214   : > { %17009 = vst [vmem:[#allocation18_spill] sm:$0xff] %v14326_v6  ;;  %v3162_v51 = vrot.slane %v3148_v4, %v14000_v43  ;;  %v3164_v13 = vcombine.low %v2720_v50, %v2722_v55  ;;  %v4270_v2 = vcombine.low %v14323_v54, %v14326_v6  ;;  %v4387_v9 = vcombine.low %v14284_v27, %v14318_v22  ;;  %v13070_v54 = vld [vmem:[#allocation2 + $0x188] sm:$0xff]  }
 0x215   : > { %v3429_v35 = vsel %vm3411_vm11, %v3427_v29, %v3428_v8  ;;  %v2415_v33 = vpop.f32.mrb[24].mxu0  ;;  %v4395_v38 = vrot.slane %v4383_v16, %v13554_v30  ;;  %v12100_v24 = vcombine.high %v14253_v34, %v14261_v46  ;;  %v4299_v17 = vrot.slane %v4267_v37, %v13554_v30 }
 0x216   : > { %v3572_v40 = vsel %vm3566_vm12, %v3429_v35, %v3505_v58  ;;  %v3163_v14 = vcombine.low %v3155_v11, %v3162_v51  ;;  %v2416_v50 = vadd.f32 %v13996_v0, %v2415_v33  ;;  %v12737_v41 = vpop.f32.mrb[25].mxu0  ;;  %v14354_v42 = vrot.slane %v4270_v2, %v13554_v30 }
 0x217   : > { %v14351_v53 = vpack.c.bf16 %v3572_v40, %v3557_v61  ;;  %v2418_v29 = vpop.f32.mrb[26].mxu0  ;;  %v14357_v21 = vrot.slane %v4385_v32, %v13554_v30  ;;  %v14360_v55 = vrot.slane %v4387_v9, %v13554_v30  ;;  %v4431_v8 = vcombine.low %v14190_v63, %v4395_v38 }
 0x218   : > { %17010 = vst [vmem:[#allocation19_spill] sm:$0xff] %v14354_v42  ;;  %v3430_v34 = vrot.slane %v3163_v14, 7  ;;  %v2481_v46 = vmax.f32 %v2416_v50, 0.0  ;;  %v2419_v58 = vadd.f32 %v13996_v0, %v2418_v29  ;;  %v12738_v4 = vpop.f32.mrb[27].mxu0  ;;  %v3171_v61 = vrot.slane %v3164_v13, %v14000_v43 }
 0x219   : > { %v4331_v37 = vcombine.high %v4285_v52, %v14354_v42  ;;  %v4432_v11 = vcombine.high %v14190_v63, %v4395_v38  ;;  %v4435_v16 = vcombine.low %v14357_v21, %v14360_v55  ;;  %v14373_v0 = vrot.slane %v4431_v8, %v13554_v30  ;;  %v13060_v4 = vld [vmem:[#allocation2 + $0x158] sm:$0xff]  }
 0x21a   : > { %v2723_v51 = vcombine.high %v2481_v46, %v2481_v46  ;;  %v2730_v2 = vrot.slane %v2481_v46, %v14000_v43  ;;  %v3558_v32 = vsel %vm3411_vm11, %v14302_v10, %v3430_v34  ;;  %v2482_v35 = vmax.f32 %v2419_v58, 0.0  ;;  %v13058_v46 = vld [vmem:[#allocation2 + $0x150] sm:$0xff]  }
 0x21b   : > { %17011 = vst [vmem:[#allocation20_spill] sm:$0xff] %v14373_v0  ;;  %v14376_v33 = vrot.slane %v4432_v11, %v13554_v30  ;;  %v14379_v13 = vrot.slane %v4435_v16, %v13554_v30  ;;  %v12102_v63 = vcombine.low %v4285_v52, %v4299_v17  ;;  %v12104_v29 = vcombine.low %v4331_v37, %v14373_v0  ;;  %v13059_v58 = vld [vmem:[#allocation2 + $0x110] sm:$0xff]  }
 0x21c   : > { %v2737_v9 = vrot.slane %v2723_v51, %v14000_v43  ;;  %v2738_v38 = vcombine.high %v2730_v2, %v2730_v2  ;;  %v3178_v40 = vrot.slane %v2730_v2, %v14000_v43  ;;  %v3509_v14 = vrot.slane %v2730_v2, %v14008_v18  ;;  %12500 = vmatprep.subr.bf16.mxu1 %v13058_v46 }
 0x21d   : > { %17012 = vst [vmem:[#allocation21_spill] sm:$0xff] %v14376_v33  ;;  %17013 = vst [vmem:[#allocation22_spill] sm:$0xff] %v14379_v13  ;;  %v2740_v50 = vcombine.high %v2482_v35, %v2482_v35  ;;  %v2747_v10 = vrot.slane %v2482_v35, %v14000_v43  ;;  %v4496_v41 = vcombine.high %v14373_v0, %v14379_v13  ;;  %12501 = vmatpush3.bf16.msra.mxu1 %v13059_v58  ;;  %v13071_v0 = vld [vmem:[#allocation2 + $0x130] sm:$0xff]  }
 0x21e   : > { %v3179_v8 = vcombine.low %v3171_v61, %v3178_v40  ;;  %v3180_v52 = vcombine.low %v2738_v38, %v2737_v9  ;;  %v2739_v17 = vcombine.high %v2737_v9, %v2737_v9  ;;  %v6546_v11 = vrot.slane %v12100_v24, %v13554_v30  ;;  %12502 = vmatprep.subr.bf16.mxu1 %v13060_v4 }
 0x21f   : > { %v2754_v16 = vrot.slane %v2740_v50, %v14000_v43  ;;  %v2755_v51 = vcombine.high %v2747_v10, %v2747_v10  ;;  %v12106_v2 = vcombine.low %v14376_v33, %v4496_v41  ;;  %v6560_v35 = vrot.slane %v12102_v63, %v13554_v30 }
 0x220   : > { %v3188_v57 = vrot.slane %v3180_v52, %v14000_v43  ;;  %v3431_v60 = vrot.slane %v3179_v8, 7  ;;  %v3181_v37 = vcombine.low %v2739_v17, %v2747_v10  ;;  %v6574_v23 = vrot.slane %v12104_v29, %v13554_v30 }
 0x221   : > { %v2756_v61 = vcombine.high %v2754_v16, %v2754_v16  ;;  %v3197_v40 = vcombine.low %v2755_v51, %v2754_v16  ;;  %v6588_v9 = vrot.slane %v12106_v2, %v13554_v30  ;;  %v6597_v24 = vcombine.high %v6546_v11, %v6560_v35 }
 0x222   : > { %v3432_v50 = vsel %vm3411_vm11, %v3430_v34, %v3431_v60  ;;  %v3195_v41 = vrot.slane %v3181_v37, %v14000_v43  ;;  %v6596_v20 = vcombine.low %v6546_v11, %v6560_v35  ;;  %v4220_v63 = vcombine.low %v14208_v47, %v14299_v59 }
 0x223   : > { %v14400_v46 = vrot.slane %v14284_v27, 1  ;;  %v3573_v10 = vsel %vm3566_vm12, %v3432_v50, %v3509_v14  ;;  %v3204_v29 = vrot.slane %v3197_v40, %v14000_v43  ;;  %v3211_v58 = vrot.slane %v2756_v61, %v14000_v43 }
 0x224   : > { %v14406_v8 = vrot.slane %v14351_v53, 1  ;;  %v14408_v4 = vpack.c.bf16 %v3573_v10, %v3558_v32  ;;  %v3196_v60 = vcombine.low %v3188_v57, %v3195_v41  ;;  %v6601_v34 = vcombine.high %v6574_v23, %v6588_v9 }
 0x225   : > { %17014 = vst [vmem:[#allocation23_spill] sm:$0xff] %v14400_v46  ;;  %v3212_v52 = vcombine.low %v3204_v29, %v3211_v58  ;;  %v3513_v17 = vrot.slane %v2756_v61, %v14008_v18  ;;  %v6624_v11 = vrot.slane %v6597_v24, %v13554_v30  ;;  %v6600_v16 = vcombine.low %v6574_v23, %v6588_v9 }
 0x226   : > { %17015 = vst [vmem:[#allocation24_spill] sm:$0xff] %v14406_v8  ;;  %v3785_v51 = vshll.u32 %v14408_v4, 16  ;;  %v3433_v14 = vrot.slane %v3196_v60, 7  ;;  %v6610_v2 = vrot.slane %v6596_v20, %v13554_v30  ;;  %v14415_v35 = vrot.slane %v4220_v63, %v13554_v30 }
 0x227   : > { %v3434_v37 = vrot.slane %v3212_v52, 7  ;;  %v6652_v32 = vrot.slane %v6601_v34, %v13554_v30  ;;  %v6638_v57 = vrot.slane %v6600_v16, %v13554_v30  ;;  %v4384_v40 = vcombine.high %v14183_v26, %v14208_v47 }
 0x228   : > { %17016 = vst [vmem:[#allocation25_spill] sm:$0xff] %v14415_v35  ;;  %v3787_v61 = vrot.slane %v3785_v51, 1  ;;  %v3559_v24 = vsel %vm3411_vm11, %v2738_v38, %v3433_v14  ;;  %v4386_v23 = vcombine.high %v14299_v59, %v14305_v19  ;;  %v4388_v20 = vcombine.high %v14284_v27, %v14318_v22 }
 0x229   : > { %v3435_v9 = vsel %vm3411_vm11, %v3433_v14, %v3434_v37  ;;  %v6664_v50 = vcombine.low %v6624_v11, %v6652_v32  ;;  %v6665_v41 = vcombine.high %v6624_v11, %v6652_v32  ;;  %v6660_v63 = vcombine.low %v6610_v2, %v6638_v57 }
 0x22a   : > { %v3574_v10 = vsel %vm3566_vm12, %v3435_v9, %v3513_v17  ;;  %v6661_v29 = vcombine.high %v6610_v2, %v6638_v57  ;;  %v4402_v58 = vrot.slane %v4384_v40, %v13554_v30  ;;  %v14430_v47 = vrot.slane %v4386_v23, %v13554_v30 }
 0x22b   : > { %v3783_v38 = vshrl.u32 %v14408_v4, 16  ;;  %v14433_v60 = vpack.c.bf16 %v3574_v10, %v3559_v24  ;;  %9044 = vmatprep.mubr.bf16.mxu1 %v6664_v50  ;;  %9180 = vmatprep.mubr.bf16.mxu0 %v6665_v41  ;;  %v14436_v59 = vrot.slane %v4388_v20, %v13554_v30  ;;  %v4436_v34 = vcombine.high %v14357_v21, %v14360_v55  ;;  %v13061_v10 = vld [vmem:[#allocation2 + $0x118] sm:$0xff]  }
 0x22c   : > { %17017 = vst [vmem:[#allocation26_spill] sm:$0xff] %v14430_v47  ;;  %9045 = vmatmul.mubr.bf16.gmra.mrb[8].mxu1 %v6660_v63  ;;  %9181 = vmatmul.mubr.bf16.gmra.mrb[60].mxu0 %v6661_v29  ;;  %v4433_v52 = vcombine.low %v14193_v1, %v4402_v58  ;;  %v4434_v17 = vcombine.high %v14193_v1, %v4402_v58  ;;  %v3778_v16 = vshll.u32 %v14351_v53, 16  ;;  %v3776_v2 = vshrl.u32 %v14351_v53, 16 }
 0x22d   : > { %17018 = vst [vmem:[#allocation27_spill] sm:$0xff] %v14436_v59  ;;  %v4550_v11 = vcombine.low %v14305_v19, %v14284_v27  ;;  %v4437_v51 = vcombine.low %v14430_v47, %v14436_v59  ;;  %v14448_v14 = vrot.slane %v4436_v34, %v13554_v30  ;;  %v14451_v21 = vor.u32 %v3787_v61, %v3783_v38  ;;  %v13062_v34 = vld [vmem:[#allocation2 + $0x160] sm:$0xff]  }
 0x22e   : > { %v14454_v37 = vrot.slane %v4433_v52, %v13554_v30  ;;  %v14457_v32 = vrot.slane %v4434_v17, %v13554_v30  ;;  %v3780_v40 = vrot.slane %v3778_v16, 1  ;;  %v4551_v20 = vcombine.high %v14305_v19, %v14284_v27  ;;  %12503 = vmatpush3.bf16.msra.mxu1 %v13061_v10  ;;  %v13066_v47 = vld [vmem:[#allocation2 + $0x1c0] sm:$0xff]  }
 0x22f   : > { %17019 = vst [vmem:[#allocation28_spill] sm:$0xff] %v14448_v14  ;;  %17020 = vst [vmem:[#allocation29_spill] sm:$0xff] %v14451_v21  ;;  %v4562_v57 = vrot.slane %v4550_v11, %v13554_v30  ;;  %v14461_v24 = vrot.slane %v4437_v51, %v13554_v30  ;;  %v4500_v23 = vcombine.high %v14376_v33, %v14448_v14  ;;  %v13063_v51 = vld [vmem:[#allocation2 + $0x120] sm:$0xff]   ;;  %12504 = vmatprep.subr.bf16.mxu1 %v13062_v34 }
 0x230   : > { %17021 = vst [vmem:[#allocation30_spill] sm:$0xff] %v14454_v37  ;;  %17022 = vst [vmem:[#allocation31_spill] sm:$0xff] %v14457_v32  ;;  %v4553_v61 = vcombine.high %v14318_v22, %v14400_v46  ;;  %v14471_v41 = vor.u32 %v3780_v40, %v3776_v2  ;;  %v4717_v63 = vcombine.low %v14400_v46, %v14351_v53  ;;  %12590 = vmatprep.subr.bf16.mxu0 %v13066_v47 }
 0x231   : > { %17023 = vst [vmem:[#allocation32_spill] sm:$0xff] %v14461_v24  ;;  %v4598_v9 = vcombine.low %v14415_v35, %v4562_v57  ;;  %v4599_v50 = vcombine.high %v14415_v35, %v4562_v57  ;;  %v4498_v29 = vcombine.high %v14454_v37, %v14461_v24  ;;  %v12109_v58 = vcombine.low %v4500_v23, %v14454_v37 }
 0x232   : > { %v4569_v27 = vrot.slane %v4551_v20, %v13554_v30  ;;  %v14480_v38 = vrot.slane %v4553_v61, %v13554_v30  ;;  %v4555_v11 = vcombine.high %v14351_v53, %v14471_v41  ;;  %v4718_v16 = vcombine.high %v14400_v46, %v14351_v53  ;;  %v13064_v20 = vld [vmem:[#allocation2 + $0x168] sm:$0xff]   ;;  %12505 = vmatpush3.bf16.msra.mxu1 %v13063_v51 }
 0x233   : > { %v4612_v52 = vrot.slane %v4598_v9, %v13554_v30  ;;  %v4626_v17 = vrot.slane %v4599_v50, %v13554_v30  ;;  %v12111_v2 = vcombine.low %v14457_v32, %v4498_v29  ;;  %v6731_v57 = vrot.slane %v12109_v58, %v13554_v30  ;;  %12506 = vmatprep.subr.bf16.mxu1 %v13064_v20 }
 0x234   : > { %17024 = vst [vmem:[#allocation33_spill] sm:$0xff] %v14480_v38  ;;  %v4600_v40 = vcombine.low %v14326_v6, %v4569_v27  ;;  %v4601_v23 = vcombine.high %v14326_v6, %v4569_v27  ;;  %v14493_v50 = vrot.slane %v4555_v11, %v13554_v30  ;;  %v4719_v19 = vcombine.low %v14471_v41, %v14406_v8 }
 0x235   : > { %v12113_v61 = vcombine.low %v4612_v52, %v4626_v17  ;;  %v12115_v9 = vcombine.high %v4612_v52, %v4626_v17  ;;  %v6745_v10 = vrot.slane %v12111_v2, %v13554_v30  ;;  %v4721_v27 = vcombine.low %v14408_v4, %v14451_v21  ;;  %v2423_v17 = vpop.f32.mrb[28].mxu0  ;;  %v13065_v2 = vld [vmem:[#allocation2 + $0x128] sm:$0xff]  }
 0x236   : > { %17025 = vst [vmem:[#allocation34_spill] sm:$0xff] %v14493_v50  ;;  %v14499_v29 = vrot.slane %v4600_v40, %v13554_v30  ;;  %v14502_v58 = vrot.slane %v4601_v23, %v13554_v30  ;;  %v4604_v11 = vcombine.low %v14480_v38, %v14493_v50  ;;  %v4729_v12 = vrot.slane %v4717_v63, %v13554_v30  ;;  %v14514_v23 = vld [vmem:[%s16869_s2] ss:$0 sm:$0xff] }
 0x237   : > { %v6759_v34 = vrot.slane %v12113_v61, %v13554_v30  ;;  %v6773_v52 = vrot.slane %v12115_v9, %v13554_v30  ;;  %v6782_v40 = vcombine.high %v6731_v57, %v6745_v10  ;;  %v6781_v32 = vcombine.low %v6731_v57, %v6745_v10  ;;  %v12741_v61 = vpop.f32.mrb[29].mxu0  ;;  %12507 = vmatpush3.bf16.msra.mxu1 %v13065_v2 }
 0x238   : > { %v2424_v22 = vadd.f32 %v14514_v23, %v2423_v17  ;;  %v14518_v9 = vrot.slane %v4718_v16, %v13554_v30  ;;  %v2426_v37 = vpop.f32.mrb[30].mxu0  ;;  %v14521_v63 = vrot.slane %v4604_v11, %v13554_v30  ;;  %v4743_v51 = vrot.slane %v4719_v19, %v13554_v30 }
 0x239   : > { %v6786_v46 = vcombine.high %v6759_v34, %v6773_v52  ;;  %v6785_v38 = vcombine.low %v6759_v34, %v6773_v52  ;;  %v6809_v57 = vrot.slane %v6782_v40, %v13554_v30  ;;  %v6795_v10 = vrot.slane %v6781_v32, %v13554_v30  ;;  %v12742_v61 = vpop.f32.mrb[31].mxu0 }
 0x23a   : > { %17026 = vst [vmem:[#allocation35_spill] sm:$0xff] %v14521_v63  ;;  %v2483_v24 = vmax.f32 %v2424_v22, 0.0  ;;  %v2427_v17 = vadd.f32 %v14514_v23, %v2426_v37  ;;  %v4665_v34 = vcombine.high %v14499_v29, %v14521_v63  ;;  %v14532_v52 = vrot.slane %v4721_v27, %v13554_v30 }
 0x23b   : > { %v6837_v16 = vrot.slane %v6786_v46, %v13554_v30  ;;  %v6823_v20 = vrot.slane %v6785_v38, %v13554_v30  ;;  %v4765_v22 = vcombine.low %v14360_v55, %v4729_v12 }
 0x23c   : > { %v2757_v19 = vcombine.high %v2483_v24, %v2483_v24  ;;  %v14535_v11 = vrot.slane %v2483_v24, %v14000_v43  ;;  %v2484_v32 = vmax.f32 %v2427_v17, 0.0  ;;  %v4766_v24 = vcombine.high %v14360_v55, %v4729_v12 }
 0x23d   : > { %v6849_v37 = vcombine.low %v6809_v57, %v6837_v16  ;;  %v6850_v40 = vcombine.high %v6809_v57, %v6837_v16  ;;  %v6845_v61 = vcombine.low %v6795_v10, %v6823_v20  ;;  %v6846_v46 = vcombine.high %v6795_v10, %v6823_v20 }
 0x23e   : > { %v2771_v38 = vrot.slane %v2757_v19, %v14000_v43  ;;  %v2772_v63 = vcombine.high %v14535_v11, %v14535_v11  ;;  %v2774_v27 = vcombine.high %v2484_v32, %v2484_v32  ;;  %v2781_v2 = vrot.slane %v2484_v32, %v14000_v43 }
 0x23f   : > { %9052 = vmatprep.mubr.bf16.mxu1 %v6849_v37  ;;  %9188 = vmatprep.mubr.bf16.mxu0 %v6850_v40  ;;  %v4767_v17 = vcombine.low %v14436_v59, %v14518_v9  ;;  %v4769_v57 = vcombine.low %v4743_v51, %v14532_v52  ;;  %v14547_v10 = vrot.slane %v14408_v4, 1  ;;  %v14554_v32 = vrot.slane %v14433_v60, 1  ;;  %v13069_v37 = vld [vmem:[#allocation2 + $0x170] sm:$0xff]  }
 0x240   : > { %9053 = vmatmul.mubr.bf16.gmra.mrb[12].mxu1 %v6845_v61  ;;  %9189 = vmatmul.mubr.bf16.gmra.mrb[64].mxu0 %v6846_v46  ;;  %v2773_v16 = vcombine.high %v2771_v38, %v2771_v38  ;;  %v3213_v20 = vcombine.low %v14535_v11, %v2772_v63  ;;  %v14551_v19 = vrot.slane %v2774_v27, %v14000_v43 }
 0x241   : > { %17027 = vst [vmem:[#allocation36_spill] sm:$0xff] %v14547_v10  ;;  %17028 = vst [vmem:[#allocation37_spill] sm:$0xff] %v14554_v32  ;;  %v2789_v12 = vcombine.high %v2781_v2, %v2781_v2  ;;  %v4770_v55 = vcombine.high %v4743_v51, %v14532_v52  ;;  %v14560_v61 = vrot.slane %v4765_v22, %v13554_v30  ;;  %12508 = vmatprep.subr.bf16.mxu1 %v13069_v37 }
 0x242   : > { %v3214_v40 = vcombine.low %v2771_v38, %v2773_v16  ;;  %v3221_v42 = vrot.slane %v3213_v20, %v14000_v43  ;;  %v14563_v63 = vrot.slane %v4767_v17, %v13554_v30  ;;  %v14566_v27 = vrot.slane %v4766_v24, %v13554_v30  ;;  %12509 = vmatpush3.bf16.msra.mxu1 %v13071_v0 }
 0x243   : > { %17029 = vst [vmem:[#allocation38_spill] sm:$0xff] %v14560_v61  ;;  %v3230_v46 = vcombine.low %v2781_v2, %v2789_v12  ;;  %v14569_v33 = vrot.slane %v4769_v57, %v13554_v30  ;;  %v14572_v51 = vrot.slane %v4770_v55, %v13554_v30  ;;  %v3244_v38 = vrot.slane %v14551_v19, %v14000_v43  ;;  %v2431_v2 = vpop.f32.mrb[32].mxu0  ;;  %v13067_v55 = vld [vmem:[#allocation2 + $0x180] sm:$0xff]  }
 0x244   : > { %17030 = vst [vmem:[#allocation39_spill] sm:$0xff] %v14563_v63  ;;  %17031 = vst [vmem:[#allocation40_spill] sm:$0xff] %v14566_v27  ;;  %v3228_v47 = vrot.slane %v3214_v40, %v14000_v43  ;;  %v12118_v22 = vcombine.low %v14499_v29, %v14502_v58  ;;  %v12120_v17 = vcombine.low %v4665_v34, %v14560_v61  ;;  %v12745_v12 = vpop.f32.mrb[33].mxu0  ;;  %v13068_v40 = vld [vmem:[#allocation2 + $0x1c8] sm:$0xff]   ;;  %12591 = vmatpush3.bf16.msra.mxu0 %v13067_v55 }
 0x245   : > { %17032 = vst [vmem:[#allocation41_spill] sm:$0xff] %v14569_v33  ;;  %17033 = vst [vmem:[#allocation42_spill] sm:$0xff] %v14572_v51  ;;  %v3237_v24 = vrot.slane %v3230_v46, %v14000_v43  ;;  %v4830_v57 = vcombine.high %v14560_v61, %v14569_v33  ;;  %v4834_v16 = vcombine.high %v14566_v27, %v14572_v51  ;;  %v2434_v34 = vpop.f32.mrb[34].mxu0  ;;  %12592 = vmatprep.subr.bf16.mxu0 %v13068_v40 }
 0x246   : > { %v4720_v20 = vcombine.high %v14471_v41, %v14406_v8  ;;  %v3229_v14 = vcombine.low %v3221_v42, %v3228_v47  ;;  %v6916_v29 = vrot.slane %v12118_v22, %v13554_v30  ;;  %v6930_v58 = vrot.slane %v12120_v17, %v13554_v30  ;;  %v12746_v13 = vpop.f32.mrb[35].mxu0 }
 0x247   : > { %v3245_v61 = vcombine.low %v3237_v24, %v3244_v38  ;;  %v12122_v33 = vcombine.low %v14566_v27, %v4830_v57  ;;  %v12124_v51 = vcombine.low %v4834_v16, %v14563_v63  ;;  %v4722_v12 = vcombine.high %v14408_v4, %v14451_v21  ;;  %v13072_v38 = vld [vmem:[#allocation2 + $0x1d0] sm:$0xff]  }
 0x248   : > { %v3436_v42 = vrot.slane %v3229_v14, 7  ;;  %v3517_v47 = vrot.slane %v14551_v19, %v14008_v18  ;;  %v6967_v22 = vcombine.high %v6916_v29, %v6930_v58  ;;  %v14597_v17 = vrot.slane %v4720_v20, %v13554_v30  ;;  %12593 = vmatpush3.bf16.msra.mxu0 %v13070_v54 }
 0x249   : > { %v3437_v24 = vrot.slane %v3245_v61, 7  ;;  %v6944_v57 = vrot.slane %v12122_v33, %v13554_v30  ;;  %v6958_v16 = vrot.slane %v12124_v51, %v13554_v30  ;;  %v14602_v13 = vrot.slane %v4722_v12, %v13554_v30  ;;  %12594 = vmatprep.subr.bf16.mxu0 %v13072_v38 }
 0x24a   : > { %17034 = vst [vmem:[#allocation43_spill] sm:$0xff] %v14597_v17  ;;  %v3560_v14 = vsel %vm3411_vm11, %v14535_v11, %v3436_v42  ;;  %v6966_v55 = vcombine.low %v6916_v29, %v6930_v58  ;;  %v4554_v20 = vcombine.low %v14351_v53, %v14471_v41  ;;  %v4768_v37 = vcombine.high %v14436_v59, %v14518_v9 }
 0x24b   : > { %17035 = vst [vmem:[#allocation44_spill] sm:$0xff] %v14602_v13  ;;  %v3438_v61 = vsel %vm3411_vm11, %v3436_v42, %v3437_v24  ;;  %v6971_v40 = vcombine.high %v6944_v57, %v6958_v16  ;;  %v6970_v33 = vcombine.low %v6944_v57, %v6958_v16  ;;  %v4771_v51 = vcombine.low %v14597_v17, %v14602_v13 }
 0x24c   : > { %v3575_v0 = vsel %vm3566_vm12, %v3438_v61, %v3517_v47  ;;  %v6994_v12 = vrot.slane %v6967_v22, %v13554_v30  ;;  %v4884_v11 = vcombine.low %v14406_v8, %v14408_v4  ;;  %v4885_v53 = vcombine.high %v14406_v8, %v14408_v4 }
 0x24d   : > { %v14619_v41 = vpack.c.bf16 %v3575_v0, %v3560_v14  ;;  %v7022_v9 = vrot.slane %v6971_v40, %v13554_v30  ;;  %v7008_v29 = vrot.slane %v6970_v33, %v13554_v30  ;;  %v14624_v58 = vrot.slane %v4771_v51, %v13554_v30 }
 0x24e   : > { %v6980_v54 = vrot.slane %v6966_v55, %v13554_v30  ;;  %v4896_v42 = vrot.slane %v4884_v11, %v13554_v30  ;;  %v4903_v47 = vrot.slane %v4885_v53, %v13554_v30  ;;  %v2432_v22 = vadd.f32 %v14514_v23, %v2431_v2 }
 0x24f   : > { %17036 = vst [vmem:[#allocation45_spill] sm:$0xff] %v14624_v58  ;;  %v7034_v24 = vcombine.low %v6994_v12, %v7022_v9  ;;  %v14631_v4 = vrot.slane %v4554_v20, %v13554_v30  ;;  %v14634_v38 = vrot.slane %v4768_v37, %v13554_v30  ;;  %v14638_v57 = vcombine.high %v14551_v19, %v14551_v19 }
 0x250   : > { %v7035_v16 = vcombine.high %v6994_v12, %v7022_v9  ;;  %v7030_v14 = vcombine.low %v6980_v54, %v7008_v29  ;;  %v7031_v55 = vcombine.high %v6980_v54, %v7008_v29  ;;  %v4832_v61 = vcombine.high %v14563_v63, %v14624_v58 }
 0x251   : > { %17037 = vst [vmem:[#allocation46_spill] sm:$0xff] %v14631_v4  ;;  %17038 = vst [vmem:[#allocation47_spill] sm:$0xff] %v14634_v38  ;;  %9060 = vmatprep.mubr.bf16.mxu1 %v7034_v24  ;;  %v4932_v2 = vcombine.low %v14631_v4, %v4896_v42  ;;  %v4933_v20 = vcombine.high %v14631_v4, %v4896_v42  ;;  %v4934_v37 = vcombine.low %v14493_v50, %v4903_v47 }
 0x252   : > { %9196 = vmatprep.mubr.bf16.mxu0 %v7035_v16  ;;  %9061 = vmatmul.mubr.bf16.gmra.mrb[16].mxu1 %v7030_v14  ;;  %v4935_v19 = vcombine.high %v14493_v50, %v4903_v47  ;;  %v12126_v33 = vcombine.low %v14634_v38, %v4832_v61  ;;  %v2485_v51 = vmax.f32 %v2432_v22, 0.0  ;;  %v2435_v0 = vadd.f32 %v14514_v23, %v2434_v34 }
 0x253   : > { %9197 = vmatmul.mubr.bf16.gmra.mrb[68].mxu0 %v7031_v55  ;;  %v4946_v11 = vrot.slane %v4932_v2, %v13554_v30  ;;  %v14652_v53 = vrot.slane %v4934_v37, %v13554_v30  ;;  %v4960_v9 = vrot.slane %v4933_v20, %v13554_v30  ;;  %v2439_v22 = vpop.f32.mrb[36].mxu0 }
 0x254   : > { %v4967_v29 = vrot.slane %v4935_v19, %v13554_v30  ;;  %v7101_v54 = vrot.slane %v12126_v33, %v13554_v30  ;;  %v2791_v42 = vcombine.high %v2485_v51, %v2485_v51  ;;  %v2798_v47 = vrot.slane %v2485_v51, %v14000_v43  ;;  %v12749_v55 = vpop.f32.mrb[37].mxu0 }
 0x255   : > { %v12128_v24 = vcombine.low %v4946_v11, %v4960_v9  ;;  %v12130_v34 = vcombine.high %v4946_v11, %v4960_v9  ;;  %v2486_v16 = vmax.f32 %v2435_v0, 0.0  ;;  %v2440_v14 = vadd.f32 %v14514_v23, %v2439_v22  ;;  %v2442_v19 = vpop.f32.mrb[38].mxu0  ;;  %v13073_v55 = vld [vmem:[#allocation2 + $0x190] sm:$0xff]  }
 0x256   : > { %v12132_v61 = vcombine.low %v14652_v53, %v4967_v29  ;;  %v2805_v2 = vrot.slane %v2791_v42, %v14000_v43  ;;  %v2806_v37 = vcombine.high %v2798_v47, %v2798_v47  ;;  %v3246_v20 = vcombine.low %v14638_v57, %v2798_v47  ;;  %v12750_v11 = vpop.f32.mrb[39].mxu0  ;;  %v13074_v42 = vld [vmem:[#allocation2 + $0x1d8] sm:$0xff]   ;;  %12595 = vmatpush3.bf16.msra.mxu0 %v13073_v55 }
 0x257   : > { %v7115_v33 = vrot.slane %v12128_v24, %v13554_v30  ;;  %v7129_v40 = vrot.slane %v12130_v34, %v13554_v30  ;;  %v2808_v51 = vcombine.high %v2486_v16, %v2486_v16  ;;  %v2815_v12 = vrot.slane %v2486_v16, %v14000_v43  ;;  %v13075_v11 = vld [vmem:[#allocation2 + $0x198] sm:$0xff]   ;;  %12596 = vmatprep.subr.bf16.mxu0 %v13074_v42 }
 0x258   : > { %v7143_v0 = vrot.slane %v12132_v61, %v13554_v30  ;;  %v3247_v9 = vcombine.low %v2806_v37, %v2805_v2  ;;  %v3254_v22 = vrot.slane %v3246_v20, %v14000_v43  ;;  %v2807_v29 = vcombine.high %v2805_v2, %v2805_v2  ;;  %v13078_v61 = vld [vmem:[#allocation2 + $0x178] sm:$0xff]  }
 0x259   : > { %v7152_v46 = vcombine.high %v7101_v54, %v7115_v33  ;;  %v14668_v47 = vrot.slane %v2808_v51, %v14000_v43  ;;  %v2823_v8 = vcombine.high %v2815_v12, %v2815_v12  ;;  %v7151_v24 = vcombine.low %v7101_v54, %v7115_v33  ;;  %v13079_v37 = vld [vmem:[#allocation2 + $0x138] sm:$0xff]   ;;  %v13076_v54 = vld [vmem:[#allocation2 + $0x1e0] sm:$0xff]   ;;  %12510 = vmatprep.subr.bf16.mxu1 %v13078_v61 }
 0x25a   : > { %v7156_v38 = vcombine.high %v7129_v40, %v7143_v0  ;;  %v3261_v34 = vrot.slane %v3247_v9, %v14000_v43  ;;  %v3263_v17 = vcombine.low %v2807_v29, %v2815_v12  ;;  %v7155_v16 = vcombine.low %v7129_v40, %v7143_v0  ;;  %12511 = vmatpush3.bf16.msra.mxu1 %v13079_v37 }
 0x25b   : > { %v7179_v20 = vrot.slane %v7152_v46, %v13554_v30  ;;  %v2824_v2 = vcombine.high %v14668_v47, %v14668_v47  ;;  %v3277_v27 = vrot.slane %v2823_v8, %v14000_v43  ;;  %v17039_v51 = vshll.u32 %v14433_v60, 16  ;;  %12597 = vmatpush3.bf16.msra.mxu0 %v13075_v11 }
 0x25c   : > { %v7207_v33 = vrot.slane %v7156_v38, %v13554_v30  ;;  %v3262_v12 = vcombine.low %v3254_v22, %v3261_v34  ;;  %v3270_v40 = vrot.slane %v3263_v17, %v14000_v43  ;;  %v7165_v0 = vrot.slane %v7151_v24, %v13554_v30  ;;  %v13077_v38 = vld [vmem:[#allocation2 + $0x1a0] sm:$0xff]   ;;  %12598 = vmatprep.subr.bf16.mxu0 %v13076_v54 }
 0x25d   : > { %v3794_v63 = vrot.slane %v17039_v51, 1  ;;  %v3521_v46 = vrot.slane %v2823_v8, %v14008_v18  ;;  %v7193_v9 = vrot.slane %v7155_v16, %v13554_v30  ;;  %v2487_v29 = vmax.f32 %v2440_v14, 0.0  ;;  %v13080_v8 = vld [vmem:[#allocation2 + $0x1e8] sm:$0xff]  }
 0x25e   : > { %v2443_v55 = vadd.f32 %v14514_v23, %v2442_v19  ;;  %v7219_v58 = vcombine.low %v7179_v20, %v7207_v33  ;;  %v7220_v51 = vcombine.high %v7179_v20, %v7207_v33  ;;  %v3439_v42 = vrot.slane %v3262_v12, 7 }
 0x25f   : > { %v3278_v50 = vcombine.low %v3270_v40, %v3277_v27  ;;  %v17040_v22 = vmov 0.0   ;;  %v7215_v17 = vcombine.low %v7165_v0, %v7193_v9  ;;  %v7216_v34 = vcombine.high %v7165_v0, %v7193_v9  ;;  %12599 = vmatpush3.bf16.msra.mxu0 %v13077_v38  ;;  %v13081_v40 = vld [vmem:[#allocation2 + $0x1a8] sm:$0xff]  }
 0x260   : > { %12831 = vmatprep.subr.bf16.mxu1 %v17040_v22  ;;  %v2825_v24 = vcombine.high %v2487_v29, %v2487_v29  ;;  %v2832_v61 = vrot.slane %v2487_v29, %v14000_v43  ;;  %9068 = vmatprep.mubr.bf16.mxu1 %v7219_v58  ;;  %v3561_v14 = vsel %vm3411_vm11, %v14638_v57, %v3439_v42  ;;  %v2488_v27 = vmax.f32 %v2443_v55, 0.0 }
 0x261   : > { %9204 = vmatprep.mubr.bf16.mxu0 %v7220_v51  ;;  %v3279_v19 = vcombine.low %v14668_v47, %v2824_v2  ;;  %v3440_v16 = vrot.slane %v3278_v50, 7  ;;  %v17041_v11 = vshll.u32 %v14619_v41, 16  ;;  %9069 = vmatmul.mubr.bf16.gmra.mrb[20].mxu1 %v7215_v17  ;;  %v17042_v54 = vshrl.u32 %v14433_v60, 16 }
 0x262   : > { %9205 = vmatmul.mubr.bf16.gmra.mrb[72].mxu0 %v7216_v34  ;;  %v2839_v20 = vrot.slane %v2825_v24, %v14000_v43  ;;  %v2840_v33 = vcombine.high %v2832_v61, %v2832_v61  ;;  %v14696_v58 = vrot.slane %v14619_v41, 1  ;;  %v2842_v2 = vcombine.high %v2488_v27, %v2488_v27  ;;  %12600 = vmatprep.subr.bf16.mxu0 %v13080_v8 }
 0x263   : > { %v3801_v37 = vrot.slane %v17041_v11, 1  ;;  %v14693_v12 = vor.u32 %v3794_v63, %v17042_v54  ;;  %v3441_v57 = vsel %vm3411_vm11, %v3439_v42, %v3440_v16  ;;  %v2849_v50 = vrot.slane %v2488_v27, %v14000_v43  ;;  %v13082_v63 = vld [vmem:[#allocation2 + $0x1f0] sm:$0xff]   ;;  %12601 = vmatpush3.bf16.msra.mxu0 %v13081_v40 }
 0x264   : > { %17043 = vst [vmem:[#allocation48_spill] sm:$0xff] %v14696_v58  ;;  %v3576_v0 = vsel %vm3566_vm12, %v3441_v57, %v3521_v46  ;;  %v2841_v9 = vcombine.high %v2839_v20, %v2839_v20  ;;  %v3280_v29 = vcombine.low %v2832_v61, %v2840_v33  ;;  %v4887_v55 = vcombine.high %v14451_v21, %v14547_v10  ;;  %v13083_v11 = vld [vmem:[#allocation2 + $0x1b0] sm:$0xff]   ;;  %v13084_v57 = vld [vmem:[#allocation2 + $0x1f8] sm:$0xff]  }
 0x265   : > { %v14703_v51 = vpack.c.bf16 %v3576_v0, %v3561_v14  ;;  %v3287_v17 = vrot.slane %v3279_v19, %v14000_v43  ;;  %v14707_v42 = vrot.slane %v2842_v2, %v14000_v43  ;;  %v14709_v34 = vcombine.high %v2849_v50, %v2849_v50  ;;  %12602 = vmatprep.subr.bf16.mxu0 %v13082_v63 }
 0x266   : > { %v3294_v38 = vrot.slane %v3280_v29, %v14000_v43  ;;  %v3296_v24 = vcombine.low %v2839_v20, %v2841_v9  ;;  %v17044_v46 = vshrl.u32 %v14619_v41, 16  ;;  %v4889_v8 = vcombine.high %v14433_v60, %v14693_v12  ;;  %v2447_v9 = vpop.f32.mrb[40].mxu0 }
 0x267   : > { %v3806_v16 = vshll.u32 %v14703_v51, 16  ;;  %v3310_v19 = vrot.slane %v2849_v50, %v14000_v43  ;;  %v3525_v27 = vrot.slane %v2849_v50, %v14008_v18  ;;  %v14724_v54 = vrot.slane %v4887_v55, %v13554_v30  ;;  %12603 = vmatpush3.bf16.msra.mxu0 %v13083_v11 }
 0x268   : > { %v14714_v61 = vor.u32 %v3801_v37, %v17044_v46  ;;  %v3295_v33 = vcombine.low %v3287_v17, %v3294_v38  ;;  %v3303_v20 = vrot.slane %v3296_v24, %v14000_v43  ;;  %v14727_v37 = vrot.slane %v4889_v8, %v13554_v30  ;;  %v12753_v38 = vpop.f32.mrb[41].mxu0  ;;  %12604 = vmatprep.subr.bf16.mxu0 %v13084_v57 }
 0x269   : > { %17046 = vst [vmem:[#allocation50_spill] sm:$0xff] %v14724_v54  ;;  %v14730_v2 = vrot.slane %v14703_v51, 1  ;;  %v3312_v0 = vcombine.low %v14709_v34, %v14707_v42  ;;  %v5051_v50 = vcombine.low %v14547_v10, %v14433_v60  ;;  %v5052_v40 = vcombine.high %v14547_v10, %v14433_v60 }
 0x26a   : > { %17045 = vst [vmem:[#allocation49_spill] sm:$0xff] %v14714_v61  ;;  %v3442_v29 = vrot.slane %v3295_v33, 7  ;;  %v3311_v55 = vcombine.low %v3303_v20, %v3310_v19  ;;  %v4938_v17 = vcombine.low %v14724_v54, %v14727_v37  ;;  %v5053_v63 = vcombine.low %v14693_v12, %v14554_v32  ;;  %v2450_v33 = vpop.f32.mrb[42].mxu0  ;;  %v13085_v19 = vld [vmem:[#allocation2 + $0x1b8] sm:$0xff]  }
 0x26b   : > { %17047 = vst [vmem:[#allocation51_spill] sm:$0xff] %v14730_v2  ;;  %v5054_v24 = vcombine.high %v14693_v12, %v14554_v32  ;;  %v5055_v46 = vcombine.low %v14619_v41, %v14714_v61  ;;  %v5056_v8 = vcombine.high %v14619_v41, %v14714_v61  ;;  %v5063_v14 = vrot.slane %v5051_v50, %v13554_v30  ;;  %v12754_v10 = vpop.f32.mrb[43].mxu0 }
 0x26c   : > { %v3443_v20 = vrot.slane %v3311_v55, 7  ;;  %v3562_v54 = vsel %vm3411_vm11, %v14668_v47, %v3442_v29  ;;  %v14752_v38 = vrot.slane %v4938_v17, %v13554_v30  ;;  %v5070_v21 = vrot.slane %v5052_v40, %v13554_v30  ;;  %12605 = vmatpush3.bf16.msra.mxu0 %v13085_v19 }
 0x26d   : > { %v5077_v4 = vrot.slane %v5053_v63, %v13554_v30  ;;  %v14757_v59 = vrot.slane %v5054_v24, %v13554_v30  ;;  %v14760_v50 = vrot.slane %v5055_v46, %v13554_v30  ;;  %v14763_v11 = vrot.slane %v5056_v8, %v13554_v30  ;;  %12763 = vmatprep.subr.bf16.mxu0 %v17040_v22 }
 0x26e   : > { %17048 = vst [vmem:[#allocation52_spill] sm:$0xff] %v14752_v38  ;;  %v3444_v47 = vsel %vm3411_vm11, %v3442_v29, %v3443_v20  ;;  %v4999_v55 = vcombine.high %v14652_v53, %v14752_v38  ;;  %v5099_v40 = vcombine.low %v14532_v52, %v5063_v14  ;;  %v5100_v10 = vcombine.high %v14532_v52, %v5063_v14 }
 0x26f   : > { %17049 = vst [vmem:[#allocation53_spill] sm:$0xff] %v14757_v59  ;;  %v3577_v57 = vsel %vm3566_vm12, %v3444_v47, %v3525_v27  ;;  %v5101_v17 = vcombine.low %v14602_v13, %v5070_v21  ;;  %v5102_v63 = vcombine.high %v14602_v13, %v5070_v21  ;;  %v5103_v24 = vcombine.low %v5077_v4, %v14760_v50 }
 0x270   : > { %v3808_v46 = vrot.slane %v3806_v16, 1  ;;  %v14774_v8 = vpack.c.bf16 %v3577_v57, %v3562_v54  ;;  %v5104_v29 = vcombine.high %v5077_v4, %v14760_v50  ;;  %v5105_v53 = vcombine.low %v14757_v59, %v14763_v11 }
 0x271   : > { %v3320_v52 = vrot.slane %v3312_v0, %v14000_v43  ;;  %v14782_v14 = vrot.slane %v5099_v40, %v13554_v30  ;;  %v14785_v21 = vrot.slane %v5101_v17, %v13554_v30  ;;  %v14788_v27 = vrot.slane %v5103_v24, %v13554_v30 }
 0x272   : > { %v14792_v4 = vrot.slane %v5100_v10, %v13554_v30  ;;  %v14795_v54 = vrot.slane %v5102_v63, %v13554_v30  ;;  %v14798_v19 = vrot.slane %v5105_v53, %v13554_v30  ;;  %v14801_v0 = vrot.slane %v5104_v29, %v13554_v30 }
 0x273   : > { %17050 = vst [vmem:[#allocation54_spill] sm:$0xff] %v14782_v14  ;;  %17051 = vst [vmem:[#allocation55_spill] sm:$0xff] %v14785_v21  ;;  %v5164_v20 = vcombine.high %v14782_v14, %v14788_v27  ;;  %v12135_v47 = vcombine.low %v4999_v55, %v14782_v14  ;;  %v2448_v40 = vadd.f32 %v14514_v23, %v2447_v9  ;;  %v17057_v57 = vshrl.u32 %v14703_v51, 16 }
 0x274   : > { %17052 = vst [vmem:[#allocation56_spill] sm:$0xff] %v14788_v27  ;;  %17053 = vst [vmem:[#allocation57_spill] sm:$0xff] %v14792_v4  ;;  %v5166_v10 = vcombine.high %v14785_v21, %v14798_v19  ;;  %v2858_v17 = vcombine.high %v14707_v42, %v14707_v42  ;;  %v2451_v63 = vadd.f32 %v14514_v23, %v2450_v33 }
 0x275   : > { %17054 = vst [vmem:[#allocation58_spill] sm:$0xff] %v14795_v54  ;;  %17055 = vst [vmem:[#allocation59_spill] sm:$0xff] %v14798_v19  ;;  %v5168_v24 = vcombine.high %v14792_v4, %v14801_v0  ;;  %v12137_v29 = vcombine.low %v14792_v4, %v5164_v20  ;;  %v7286_v53 = vrot.slane %v12135_v47, %v13554_v30  ;;  %v2489_v55 = vmax.f32 %v2448_v40, 0.0  ;;  %v14827_v4 = vpop.f32.mrb[44].mxu0 }
 0x276   : > { %17056 = vst [vmem:[#allocation60_spill] sm:$0xff] %v14801_v0  ;;  %v12141_v9 = vcombine.low %v14795_v54, %v5166_v10  ;;  %v2490_v16 = vmax.f32 %v2451_v63, 0.0  ;;  %v14820_v38 = vor.u32 %v3808_v46, %v17057_v57  ;;  %v4888_v42 = vcombine.low %v14433_v60, %v14693_v12  ;;  %v12757_v57 = vpop.f32.mrb[45].mxu0 }
 0x277   : > { %v12139_v33 = vcombine.low %v5168_v24, %v14785_v21  ;;  %v7300_v19 = vrot.slane %v12137_v29, %v13554_v30  ;;  %v2859_v0 = vcombine.high %v2489_v55, %v2489_v55  ;;  %v2866_v20 = vrot.slane %v2489_v55, %v14000_v43  ;;  %v14838_v29 = vpop.f32.mrb[46].mxu0 }
 0x278   : > { %v7328_v47 = vrot.slane %v12141_v9, %v13554_v30  ;;  %v2876_v40 = vcombine.high %v2490_v16, %v2490_v16  ;;  %v14831_v10 = vrot.slane %v2490_v16, %v14000_v43  ;;  %v14834_v46 = vrot.slane %v4888_v42, %v13554_v30  ;;  %v12758_v21 = vpop.f32.mrb[47].mxu0 }
 0x279   : > { %v7314_v60 = vrot.slane %v12139_v33, %v13554_v30  ;;  %v7337_v12 = vcombine.high %v7286_v53, %v7300_v19  ;;  %v2873_v63 = vrot.slane %v2859_v0, %v14000_v43  ;;  %v2874_v24 = vcombine.high %v2866_v20, %v2866_v20 }
 0x27a   : > { %v3313_v55 = vcombine.low %v2858_v17, %v2866_v20  ;;  %v7336_v54 = vcombine.low %v7286_v53, %v7300_v19  ;;  %v2890_v9 = vrot.slane %v2876_v40, %v14000_v43  ;;  %v2891_v16 = vcombine.high %v14831_v10, %v14831_v10 }
 0x27b   : > { %v7341_v14 = vcombine.high %v7314_v60, %v7328_v47  ;;  %v7364_v42 = vrot.slane %v7337_v12, %v13554_v30  ;;  %v2875_v57 = vcombine.high %v2873_v63, %v2873_v63  ;;  %v3329_v27 = vcombine.low %v2874_v24, %v2873_v63 }
 0x27c   : > { %v3327_v33 = vrot.slane %v3313_v55, %v14000_v43  ;;  %v7340_v59 = vcombine.low %v7314_v60, %v7328_v47  ;;  %v7350_v0 = vrot.slane %v7336_v54, %v13554_v30  ;;  %v2892_v13 = vcombine.high %v2890_v9, %v2890_v9 }
 0x27d   : > { %v7392_v17 = vrot.slane %v7341_v14, %v13554_v30  ;;  %v3336_v19 = vrot.slane %v3329_v27, %v14000_v43  ;;  %v3343_v53 = vrot.slane %v2875_v57, %v14000_v43  ;;  %v3529_v20 = vrot.slane %v2875_v57, %v14008_v18  ;;  %v2463_v60 = vpop.f32.mrb[48].mxu0 }
 0x27e   : > { %v3328_v21 = vcombine.low %v3320_v52, %v3327_v33  ;;  %v7378_v40 = vrot.slane %v7340_v59, %v13554_v30  ;;  %v3345_v12 = vcombine.low %v14831_v10, %v2891_v16  ;;  %v3346_v63 = vcombine.low %v2890_v9, %v2892_v13  ;;  %v12761_v35 = vpop.f32.mrb[49].mxu0 }
 0x27f   : > { %v7404_v24 = vcombine.low %v7364_v42, %v7392_v17  ;;  %v7405_v55 = vcombine.high %v7364_v42, %v7392_v17  ;;  %v3344_v47 = vcombine.low %v3336_v19, %v3343_v53  ;;  %v5218_v54 = vcombine.low %v14554_v32, %v14619_v41  ;;  %v2466_v16 = vpop.f32.mrb[50].mxu0 }
 0x280   : > { %v3445_v14 = vrot.slane %v3328_v21, 7  ;;  %v7400_v22 = vcombine.low %v7350_v0, %v7378_v40  ;;  %v7401_v27 = vcombine.high %v7350_v0, %v7378_v40  ;;  %v3353_v6 = vrot.slane %v3345_v12, %v14000_v43  ;;  %v12762_v0 = vpop.f32.mrb[51].mxu0 }
 0x281   : > { %9076 = vmatprep.mubr.bf16.mxu1 %v7404_v24  ;;  %9212 = vmatprep.mubr.bf16.mxu0 %v7405_v55  ;;  %v3446_v52 = vrot.slane %v3344_v47, 7  ;;  %v3360_v59 = vrot.slane %v3346_v63, %v14000_v43  ;;  %v5219_v13 = vcombine.high %v14554_v32, %v14619_v41  ;;  %v5221_v9 = vcombine.high %v14714_v61, %v14696_v58 }
 0x282   : > { %v14861_v42 = vrot.slane %v14774_v8, 1  ;;  %v3563_v57 = vsel %vm3411_vm11, %v14709_v34, %v3445_v14  ;;  %9077 = vmatmul.mubr.bf16.gmra.mrb[24].mxu1 %v7400_v22  ;;  %9213 = vmatmul.mubr.bf16.gmra.mrb[76].mxu0 %v7401_v27  ;;  %v5223_v35 = vcombine.high %v14703_v51, %v14820_v38  ;;  %v5230_v33 = vrot.slane %v5218_v54, %v13554_v30 }
 0x283   : > { %v3447_v41 = vsel %vm3411_vm11, %v3445_v14, %v3446_v52  ;;  %v14869_v17 = vcombine.low %v3353_v6, %v3360_v59  ;;  %v5237_v19 = vrot.slane %v5219_v13, %v13554_v30  ;;  %v14873_v53 = vrot.slane %v5221_v9, %v13554_v30 }
 0x284   : > { %v3578_v21 = vsel %vm3566_vm12, %v3447_v41, %v3529_v20  ;;  %v14877_v22 = vrot.slane %v5223_v35, %v13554_v30  ;;  %v5266_v34 = vcombine.low %v14834_v46, %v5230_v33  ;;  %v5267_v40 = vcombine.high %v14834_v46, %v5230_v33 }
 0x285   : > { %17058 = vst [vmem:[#allocation61_spill] sm:$0xff] %v14873_v53  ;;  %v14881_v12 = vpack.c.bf16 %v3578_v21, %v3563_v57  ;;  %v16943_v63 = vrot.slane %v14869_v17, 7  ;;  %v5268_v6 = vcombine.low %v14727_v37, %v5237_v19  ;;  %v5269_v24 = vcombine.high %v14727_v37, %v5237_v19 }
 0x286   : > { %v5272_v55 = vcombine.low %v14873_v53, %v14877_v22  ;;  %v5280_v20 = vrot.slane %v5266_v34, %v13554_v30  ;;  %v5294_v47 = vrot.slane %v5267_v40, %v13554_v30  ;;  %v5385_v54 = vcombine.low %v14696_v58, %v14703_v51 }
 0x287   : > { %v17059_v14 = vshll.u32 %v14774_v8, 16  ;;  %v14898_v52 = vsel %vm3411_vm11, %v14831_v10, %v16943_v63  ;;  %v5287_v59 = vrot.slane %v5268_v6, %v13554_v30  ;;  %v5301_v13 = vrot.slane %v5269_v24, %v13554_v30 }
 0x288   : > { %v14903_v9 = vrot.slane %v5272_v55, %v13554_v30  ;;  %v14906_v16 = vrot.slane %v5385_v54, %v13554_v30  ;;  %v12143_v57 = vcombine.low %v5280_v20, %v5294_v47  ;;  %v12145_v35 = vcombine.high %v5280_v20, %v5294_v47 }
 0x289   : > { %v3815_v27 = vrot.slane %v17059_v14, 1  ;;  %v12147_v33 = vcombine.low %v5287_v59, %v5301_v13  ;;  %v2456_v0 = vadd.f32 %v14514_v23, %v14827_v4  ;;  %v2459_v10 = vadd.f32 %v14514_v23, %v14838_v29 }
 0x28a   : > { %17060 = vst [vmem:[#allocation62_spill] sm:$0xff] %v14903_v9  ;;  %v2464_v41 = vadd.f32 %v14514_v23, %v2463_v60  ;;  %v5333_v19 = vcombine.high %v5287_v59, %v14903_v9  ;;  %v5433_v21 = vcombine.low %v14760_v50, %v14906_v16  ;;  %v7471_v34 = vrot.slane %v12143_v57, %v13554_v30 }
 0x28b   : > { %v7485_v40 = vrot.slane %v12145_v35, %v13554_v30  ;;  %v7499_v6 = vrot.slane %v12147_v33, %v13554_v30  ;;  %v2491_v24 = vmax.f32 %v2456_v0, 0.0  ;;  %v2492_v55 = vmax.f32 %v2459_v10, 0.0 }
 0x28c   : > { %v2493_v20 = vmax.f32 %v2464_v41, 0.0  ;;  %v14920_v4 = vrot.slane %v5433_v21, %v13554_v30  ;;  %v17061_v23 = vshrl.u32 %v14774_v8, 16 }
 0x28d   : > { %v7522_v29 = vcombine.high %v7471_v34, %v7485_v40  ;;  %v7521_v47 = vcombine.low %v7471_v34, %v7485_v40  ;;  %v2893_v54 = vcombine.high %v2491_v24, %v2491_v24  ;;  %v2900_v14 = vrot.slane %v2491_v24, %v14000_v43 }
 0x28e   : > { %v14924_v60 = vor.u32 %v3815_v27, %v17061_v23  ;;  %v2910_v59 = vcombine.high %v2492_v55, %v2492_v55  ;;  %v2917_v13 = vrot.slane %v2492_v55, %v14000_v43  ;;  %v12149_v57 = vcombine.low %v5333_v19, %v14920_v4 }
 0x28f   : > { %v7549_v35 = vrot.slane %v7522_v29, %v13554_v30  ;;  %v7535_v33 = vrot.slane %v7521_v47, %v13554_v30  ;;  %v2933_v0 = vrot.slane %v2493_v20, %v14000_v43  ;;  %v2907_v10 = vrot.slane %v2893_v54, %v14000_v43 }
 0x290   : > { %17062 = vst [vmem:[#allocation63_spill] sm:$0xff] %v14924_v60  ;;  %v2908_v41 = vcombine.high %v2900_v14, %v2900_v14  ;;  %v2924_v27 = vrot.slane %v2910_v59, %v14000_v43  ;;  %v2925_v21 = vcombine.high %v2917_v13, %v2917_v13  ;;  %v7513_v34 = vrot.slane %v12149_v57, %v13554_v30 }
 0x291   : > { %v2934_v40 = vcombine.high %v2933_v0, %v2933_v0  ;;  %v5222_v24 = vcombine.low %v14703_v51, %v14820_v38  ;;  %v5386_v19 = vcombine.high %v14696_v58, %v14703_v51  ;;  %v3376_v29 = vrot.slane %v2907_v10, %v14000_v43 }
 0x292   : > { %v3362_v55 = vcombine.low %v2900_v14, %v2908_v41  ;;  %v3533_v20 = vrot.slane %v2907_v10, %v14008_v18  ;;  %v2909_v47 = vcombine.high %v2907_v10, %v2907_v10  ;;  %v7526_v23 = vcombine.high %v7499_v6, %v7513_v34 }
 0x293   : > { %v7525_v54 = vcombine.low %v7499_v6, %v7513_v34  ;;  %v3379_v63 = vcombine.low %v2925_v21, %v2924_v27  ;;  %v2926_v59 = vcombine.high %v2924_v27, %v2924_v27  ;;  %v3409_v9 = vrot.slane %v2934_v40, %v14000_v43 }
 0x294   : > { %v3369_v32 = vrot.slane %v3362_v55, %v14000_v43  ;;  %v3378_v57 = vcombine.low %v2909_v47, %v2917_v13  ;;  %v3537_v53 = vrot.slane %v2934_v40, %v14008_v18  ;;  %v7577_v61 = vrot.slane %v7526_v23, %v13554_v30 }
 0x295   : > { %v7563_v51 = vrot.slane %v7525_v54, %v13554_v30  ;;  %v3393_v14 = vrot.slane %v3379_v63, %v14000_v43  ;;  %v3395_v41 = vcombine.low %v2926_v59, %v2933_v0  ;;  %v14949_v6 = vrot.slane %v5222_v24, %v13554_v30 }
 0x296   : > { %v3377_v58 = vcombine.low %v3369_v32, %v3376_v29  ;;  %v3386_v10 = vrot.slane %v3378_v57, %v14000_v43  ;;  %v5387_v13 = vcombine.low %v14820_v38, %v14730_v2  ;;  %v7589_v27 = vcombine.low %v7549_v35, %v7577_v61 }
 0x297   : > { %v7590_v21 = vcombine.high %v7549_v35, %v7577_v61  ;;  %v7585_v34 = vcombine.low %v7535_v33, %v7563_v51  ;;  %v7586_v40 = vcombine.high %v7535_v33, %v7563_v51  ;;  %v3402_v54 = vrot.slane %v3395_v41, %v14000_v43 }
 0x298   : > { %v3449_v55 = vrot.slane %v3377_v58, 7  ;;  %v3394_v23 = vcombine.low %v3386_v10, %v3393_v14  ;;  %v5388_v63 = vcombine.high %v14820_v38, %v14730_v2  ;;  %v14957_v32 = vrot.slane %v14881_v12, 1  ;;  %9084 = vmatprep.mubr.bf16.mxu1 %v7589_v27 }
 0x299   : > { %9220 = vmatprep.mubr.bf16.mxu0 %v7590_v21  ;;  %v5389_v0 = vcombine.low %v14774_v8, %v14924_v60  ;;  %v5390_v61 = vcombine.high %v14774_v8, %v14924_v60  ;;  %v5404_v35 = vrot.slane %v5386_v19, %v13554_v30  ;;  %v17064_v58 = vrot.slane %v14869_v17, 7  ;;  %9085 = vmatmul.mubr.bf16.gmra.mrb[28].mxu1 %v7585_v34 }
 0x29a   : > { %17063 = vst [vmem:[#allocation64_spill] sm:$0xff] %v14957_v32  ;;  %9221 = vmatmul.mubr.bf16.gmra.mrb[80].mxu0 %v7586_v40  ;;  %v3451_v38 = vrot.slane %v3394_v23, 7  ;;  %v3410_v24 = vcombine.low %v3402_v54, %v3409_v9  ;;  %v5411_v29 = vrot.slane %v5387_v13, %v13554_v30  ;;  %v14970_v57 = vrot.slane %v5388_v63, %v13554_v30 }
 0x29b   : > { %v3450_v33 = vsel %vm3411_vm11, %v17064_v58, %v3449_v55  ;;  %v14973_v51 = vrot.slane %v5389_v0, %v13554_v30  ;;  %v14976_v19 = vrot.slane %v5390_v61, %v13554_v30  ;;  %v5434_v9 = vcombine.high %v14760_v50, %v14906_v16 }
 0x29c   : > { %v3579_v59 = vsel %vm3566_vm12, %v3450_v33, %v3533_v20  ;;  %v3565_v14 = vsel %vm3411_vm11, %v2909_v47, %v3451_v38  ;;  %v3452_v41 = vrot.slane %v3410_v24, 7  ;;  %v5435_v20 = vcombine.low %v14763_v11, %v5404_v35 }
 0x29d   : > { %v14979_v17 = vpack.c.bf16 %v3579_v59, %v14898_v52  ;;  %v5436_v10 = vcombine.high %v14763_v11, %v5404_v35  ;;  %v5437_v13 = vcombine.low %v5411_v29, %v14973_v51  ;;  %v5438_v27 = vcombine.high %v5411_v29, %v14973_v51 }
 0x29e   : > { %v3453_v52 = vsel %vm3411_vm11, %v3451_v38, %v3452_v41  ;;  %v3818_v47 = vshrl.u32 %v14881_v12, 16  ;;  %v5439_v50 = vcombine.low %v14970_v57, %v14976_v19  ;;  %v14996_v16 = vrot.slane %v5435_v20, %v13554_v30 }
 0x29f   : > { %v3825_v21 = vshrl.u32 %v14979_v17, 16  ;;  %v3827_v34 = vshll.u32 %v14979_v17, 16  ;;  %v3580_v40 = vsel %vm3566_vm12, %v3453_v52, %v3537_v53  ;;  %v14999_v55 = vrot.slane %v5434_v9, %v13554_v30 }
 0x2a0   : > { %v15001_v54 = vpack.c.bf16 %v3580_v40, %v3565_v14  ;;  %v15004_v63 = vrot.slane %v5436_v10, %v13554_v30  ;;  %v15007_v0 = vrot.slane %v5437_v13, %v13554_v30  ;;  %v15010_v53 = vrot.slane %v5439_v50, %v13554_v30 }
 0x2a1   : > { %17065 = vst [vmem:[#allocation65_spill] sm:$0xff] %v14999_v55  ;;  %v3829_v23 = vrot.slane %v3827_v34, 1  ;;  %v15013_v61 = vrot.slane %v5438_v27, %v13554_v30  ;;  %v5552_v35 = vcombine.low %v14730_v2, %v14774_v8  ;;  %v3820_v58 = vshll.u32 %v14881_v12, 16 }
 0x2a2   : > { %17066 = vst [vmem:[#allocation66_spill] sm:$0xff] %v15004_v63  ;;  %v5498_v33 = vcombine.high %v14920_v4, %v15007_v0  ;;  %v5553_v24 = vcombine.high %v14730_v2, %v14774_v8  ;;  %v5555_v29 = vcombine.high %v14924_v60, %v14861_v42  ;;  %v5500_v59 = vcombine.high %v14996_v16, %v15010_v53 }
 0x2a3   : > { %v15020_v38 = vor.u32 %v3829_v23, %v3825_v21  ;;  %v5502_v14 = vcombine.high %v14999_v55, %v15013_v61  ;;  %v5564_v41 = vrot.slane %v5552_v35, %v13554_v30  ;;  %v3822_v9 = vrot.slane %v3820_v58, 1 }
 0x2a4   : > { %v12152_v20 = vcombine.low %v14999_v55, %v5498_v33  ;;  %v5571_v10 = vrot.slane %v5553_v24, %v13554_v30  ;;  %v15034_v13 = vrot.slane %v5555_v29, %v13554_v30  ;;  %v5719_v8 = vcombine.low %v14861_v42, %v14881_v12 }
 0x2a5   : > { %v5600_v27 = vcombine.low %v14949_v6, %v5564_v41  ;;  %v5601_v21 = vcombine.high %v14949_v6, %v5564_v41  ;;  %v12154_v34 = vcombine.low %v5502_v14, %v14996_v16  ;;  %v12156_v52 = vcombine.low %v15004_v63, %v5500_v59 }
 0x2a6   : > { %17067 = vst [vmem:[#allocation67_spill] sm:$0xff] %v15034_v13  ;;  %v7656_v40 = vrot.slane %v12152_v20, %v13554_v30  ;;  %v15043_v50 = vor.u32 %v3822_v9, %v3818_v47  ;;  %v5602_v23 = vcombine.low %v14877_v22, %v5571_v10  ;;  %v5603_v35 = vcombine.high %v14877_v22, %v5571_v10 }
 0x2a7   : > { %v5614_v58 = vrot.slane %v5600_v27, %v13554_v30  ;;  %v5628_v33 = vrot.slane %v5601_v21, %v13554_v30  ;;  %v7670_v24 = vrot.slane %v12154_v34, %v13554_v30  ;;  %v7684_v29 = vrot.slane %v12156_v52, %v13554_v30 }
 0x2a8   : > { %v5557_v14 = vcombine.high %v14881_v12, %v15043_v50  ;;  %v5621_v59 = vrot.slane %v5602_v23, %v13554_v30  ;;  %v5635_v47 = vrot.slane %v5603_v35, %v13554_v30  ;;  %v5721_v41 = vcombine.low %v15043_v50, %v14957_v32 }
 0x2a9   : > { %v12158_v9 = vcombine.low %v5614_v58, %v5628_v33  ;;  %v7707_v20 = vcombine.high %v7656_v40, %v7670_v24  ;;  %v7706_v10 = vcombine.low %v7656_v40, %v7670_v24  ;;  %v5723_v27 = vcombine.low %v14979_v17, %v15020_v38 }
 0x2aa   : > { %v15060_v21 = vrot.slane %v5557_v14, %v13554_v30  ;;  %v5731_v34 = vrot.slane %v5719_v8, %v13554_v30  ;;  %v5745_v52 = vrot.slane %v5721_v41, %v13554_v30  ;;  %v12160_v18 = vcombine.high %v5614_v58, %v5628_v33 }
 0x2ab   : > { %v7698_v23 = vrot.slane %v12158_v9, %v13554_v30  ;;  %v7734_v35 = vrot.slane %v7707_v20, %v13554_v30  ;;  %v7720_v43 = vrot.slane %v7706_v10, %v13554_v30  ;;  %v15068_v2 = vrot.slane %v5723_v27, %v13554_v30 }
 0x2ac   : > { %v5606_v40 = vcombine.low %v15034_v13, %v15060_v21  ;;  %v5767_v24 = vcombine.low %v14973_v51, %v5731_v34  ;;  %v5768_v14 = vcombine.high %v14973_v51, %v5731_v34  ;;  %v12162_v8 = vcombine.low %v5621_v59, %v5635_v47 }
 0x2ad   : > { %v7711_v60 = vcombine.high %v7684_v29, %v7698_v23  ;;  %v7710_v41 = vcombine.low %v7684_v29, %v7698_v23  ;;  %v5771_v58 = vcombine.low %v5745_v52, %v15068_v2  ;;  %v7841_v33 = vrot.slane %v12160_v18, %v13554_v30 }
 0x2ae   : > { %v15077_v9 = vrot.slane %v5606_v40, %v13554_v30  ;;  %v15080_v20 = vrot.slane %v5767_v24, %v13554_v30  ;;  %v15083_v10 = vrot.slane %v5768_v14, %v13554_v30  ;;  %v7855_v27 = vrot.slane %v12162_v8, %v13554_v30 }
 0x2af   : > { %v7762_v51 = vrot.slane %v7711_v60, %v13554_v30  ;;  %v7748_v47 = vrot.slane %v7710_v41, %v13554_v30  ;;  %v15089_v29 = vrot.slane %v5771_v58, %v13554_v30  ;;  %v5556_v18 = vcombine.low %v14881_v12, %v15043_v50 }
 0x2b0   : > { %17068 = vst [vmem:[#allocation68_spill] sm:$0xff] %v15077_v9  ;;  %17069 = vst [vmem:[#allocation69_spill] sm:$0xff] %v15080_v20  ;;  %v5667_v34 = vcombine.high %v5621_v59, %v15077_v9  ;;  %v7892_v23 = vcombine.high %v7841_v33, %v7855_v27  ;;  %v7891_v40 = vcombine.low %v7841_v33, %v7855_v27  ;;  %v15102_v59 = vrot.slane %v14979_v17, 1 }
 0x2b1   : > { %17070 = vst [vmem:[#allocation70_spill] sm:$0xff] %v15083_v10  ;;  %v5720_v24 = vcombine.high %v14861_v42, %v14881_v12  ;;  %v7774_v14 = vcombine.low %v7734_v35, %v7762_v51  ;;  %v7775_v13 = vcombine.high %v7734_v35, %v7762_v51  ;;  %v7770_v8 = vcombine.low %v7720_v43, %v7748_v47 }
 0x2b2   : > { %v7771_v63 = vcombine.high %v7720_v43, %v7748_v47  ;;  %v5832_v60 = vcombine.high %v15080_v20, %v15089_v29  ;;  %v12164_v41 = vcombine.low %v5667_v34, %v15080_v20  ;;  %v7919_v58 = vrot.slane %v7892_v23, %v13554_v30 }
 0x2b3   : > { %v7905_v55 = vrot.slane %v7891_v40, %v13554_v30  ;;  %9092 = vmatprep.mubr.bf16.mxu1 %v7774_v14  ;;  %9228 = vmatprep.mubr.bf16.mxu0 %v7775_v13  ;;  %v15105_v12 = vrot.slane %v5556_v18, %v13554_v30  ;;  %v5722_v43 = vcombine.high %v15043_v50, %v14957_v32  ;;  %v3860_v47 = vshll.u32 %v15001_v54, 16 }
 0x2b4   : > { %v5724_v35 = vcombine.high %v14979_v17, %v15020_v38  ;;  %9093 = vmatmul.mubr.bf16.gmra.mrb[32].mxu1 %v7770_v8  ;;  %9229 = vmatmul.mubr.bf16.gmra.mrb[84].mxu0 %v7771_v63  ;;  %v12166_v33 = vcombine.low %v15083_v10, %v5832_v60  ;;  %v7869_v27 = vrot.slane %v12164_v41, %v13554_v30 }
 0x2b5   : > { %17071 = vst [vmem:[#allocation71_spill] sm:$0xff] %v15105_v12  ;;  %v5738_v51 = vrot.slane %v5720_v24, %v13554_v30  ;;  %v15116_v13 = vrot.slane %v5722_v43, %v13554_v30  ;;  %v5772_v50 = vcombine.high %v5745_v52, %v15068_v2  ;;  %v5886_v34 = vcombine.low %v14957_v32, %v14979_v17 }
 0x2b6   : > { %v15119_v18 = vrot.slane %v5724_v35, %v13554_v30  ;;  %v7883_v63 = vrot.slane %v12166_v33, %v13554_v30  ;;  %v3862_v24 = vrot.slane %v3860_v47, 1  ;;  %v3858_v52 = vshrl.u32 %v15001_v54, 16 }
 0x2b7   : > { %17072 = vst [vmem:[#allocation72_spill] sm:$0xff] %v15116_v13  ;;  %v5769_v23 = vcombine.low %v14976_v19, %v5738_v51  ;;  %v5770_v40 = vcombine.high %v14976_v19, %v5738_v51  ;;  %v15130_v8 = vrot.slane %v5772_v50, %v13554_v30  ;;  %v5898_v60 = vrot.slane %v5886_v34, %v13554_v30 }
 0x2b8   : > { %v5773_v14 = vcombine.low %v15116_v13, %v15119_v18  ;;  %v7896_v41 = vcombine.high %v7869_v27, %v7883_v63  ;;  %v7895_v43 = vcombine.low %v7869_v27, %v7883_v63  ;;  %v15149_v63 = vor.u32 %v3862_v24, %v3858_v52 }
 0x2b9   : > { %17073 = vst [vmem:[#allocation73_spill] sm:$0xff] %v15130_v8  ;;  %v15135_v35 = vrot.slane %v5769_v23, %v13554_v30  ;;  %v15138_v33 = vrot.slane %v5770_v40, %v13554_v30  ;;  %v5836_v47 = vcombine.high %v15083_v10, %v15130_v8  ;;  %v5934_v50 = vcombine.low %v15105_v12, %v5898_v60 }
 0x2ba   : > { %v15141_v51 = vrot.slane %v5773_v14, %v13554_v30  ;;  %v5935_v34 = vcombine.high %v15105_v12, %v5898_v60  ;;  %v7947_v13 = vrot.slane %v7896_v41, %v13554_v30  ;;  %v7933_v27 = vrot.slane %v7895_v43, %v13554_v30 }
 0x2bb   : > { %v5887_v23 = vcombine.high %v14957_v32, %v14979_v17  ;;  %v5948_v14 = vrot.slane %v5934_v50, %v13554_v30  ;;  %v12169_v10 = vcombine.low %v5836_v47, %v15135_v35  ;;  %v5889_v17 = vcombine.high %v15020_v38, %v15102_v59 }
 0x2bc   : > { %v5834_v40 = vcombine.high %v15135_v35, %v15141_v51  ;;  %v5962_v9 = vrot.slane %v5935_v34, %v13554_v30  ;;  %v7959_v8 = vcombine.low %v7919_v58, %v7947_v13  ;;  %v7960_v60 = vcombine.high %v7919_v58, %v7947_v13 }
 0x2bd   : > { %v7955_v12 = vcombine.low %v7905_v55, %v7933_v27  ;;  %v7956_v41 = vcombine.high %v7905_v55, %v7933_v27  ;;  %v8026_v20 = vrot.slane %v12169_v10, %v13554_v30  ;;  %v5890_v50 = vcombine.low %v15001_v54, %v15149_v63 }
 0x2be   : > { %v12171_v43 = vcombine.low %v15138_v33, %v5834_v40  ;;  %v12173_v24 = vcombine.low %v5948_v14, %v5962_v9  ;;  %v12175_v52 = vcombine.high %v5948_v14, %v5962_v9  ;;  %9100 = vmatprep.mubr.bf16.mxu1 %v7959_v8  ;;  %9236 = vmatprep.mubr.bf16.mxu0 %v7960_v60  ;;  %v15170_v10 = vrot.slane %v15001_v54, 1 }
 0x2bf   : > { %v5891_v47 = vcombine.high %v15001_v54, %v15149_v63  ;;  %9101 = vmatmul.mubr.bf16.gmra.mrb[36].mxu1 %v7955_v12  ;;  %9237 = vmatmul.mubr.bf16.gmra.mrb[88].mxu0 %v7956_v41  ;;  %v5905_v13 = vrot.slane %v5887_v23, %v13554_v30  ;;  %v15174_v8 = vrot.slane %v5889_v17, %v13554_v30 }
 0x2c0   : > { %v8040_v55 = vrot.slane %v12171_v43, %v13554_v30  ;;  %v8054_v58 = vrot.slane %v12173_v24, %v13554_v30  ;;  %v8068_v9 = vrot.slane %v12175_v52, %v13554_v30  ;;  %17074 = vst [vmem:[#allocation74_spill] sm:$0xff] %v15170_v10  ;;  %v15177_v34 = vrot.slane %v5890_v50, %v13554_v30 }
 0x2c1   : > { %17075 = vst [vmem:[#allocation75_spill] sm:$0xff] %v15174_v8  ;;  %v15180_v12 = vrot.slane %v5891_v47, %v13554_v30  ;;  %v5936_v41 = vcombine.low %v15060_v21, %v5905_v13  ;;  %v5937_v43 = vcombine.high %v15060_v21, %v5905_v13  ;;  %v6053_v24 = vcombine.low %v15102_v59, %v15001_v54 }
 0x2c2   : > { %v8077_v27 = vcombine.high %v8026_v20, %v8040_v55  ;;  %v8081_v40 = vcombine.high %v8054_v58, %v8068_v9  ;;  %v8076_v14 = vcombine.low %v8026_v20, %v8040_v55  ;;  %v8080_v60 = vcombine.low %v8054_v58, %v8068_v9 }
 0x2c3   : > { %17076 = vst [vmem:[#allocation76_spill] sm:$0xff] %v15180_v12  ;;  %v5940_v23 = vcombine.low %v15174_v8, %v15180_v12  ;;  %v5955_v20 = vrot.slane %v5936_v41, %v13554_v30  ;;  %v5969_v55 = vrot.slane %v5937_v43, %v13554_v30  ;;  %v6054_v9 = vcombine.high %v15102_v59, %v15001_v54 }
 0x2c4   : > { %v8104_v52 = vrot.slane %v8077_v27, %v13554_v30  ;;  %v8132_v17 = vrot.slane %v8081_v40, %v13554_v30  ;;  %v8090_v50 = vrot.slane %v8076_v14, %v13554_v30  ;;  %v8118_v47 = vrot.slane %v8080_v60, %v13554_v30 }
 0x2c5   : > { %v15195_v58 = vrot.slane %v5940_v23, %v13554_v30  ;;  %v6055_v14 = vcombine.low %v15149_v63, %v15170_v10  ;;  %v6063_v60 = vrot.slane %v6053_v24, %v13554_v30  ;;  %v6070_v41 = vrot.slane %v6054_v9, %v13554_v30 }
 0x2c6   : > { %v8144_v13 = vcombine.low %v8104_v52, %v8132_v17  ;;  %v8145_v32 = vcombine.high %v8104_v52, %v8132_v17  ;;  %v8140_v8 = vcombine.low %v8090_v50, %v8118_v47  ;;  %v8141_v27 = vcombine.high %v8090_v50, %v8118_v47 }
 0x2c7   : > { %17077 = vst [vmem:[#allocation77_spill] sm:$0xff] %v15195_v58  ;;  %v6001_v40 = vcombine.high %v5955_v20, %v15195_v58  ;;  %v12178_v43 = vcombine.low %v5955_v20, %v5969_v55  ;;  %v6056_v23 = vcombine.high %v15149_v63, %v15170_v10  ;;  %v17078_v54 = vcombine.high %v14062_v49, %v14106_v44 }
 0x2c8   : > { %9108 = vmatprep.mubr.bf16.mxu1 %v8144_v13  ;;  %9244 = vmatprep.mubr.bf16.mxu0 %v8145_v32  ;;  %v6077_v17 = vrot.slane %v6055_v14, %v13554_v30  ;;  %v6085_v50 = vcombine.low %v15068_v2, %v6063_v60  ;;  %v6086_v24 = vcombine.high %v15068_v2, %v6063_v60 }
 0x2c9   : > { %v3986_v52 = vrot.slane %v17078_v54, %v13554_v30  ;;  %9109 = vmatmul.mubr.bf16.gmra.mrb[40].mxu1 %v8140_v8  ;;  %9245 = vmatmul.mubr.bf16.gmra.mrb[92].mxu0 %v8141_v27  ;;  %v6087_v47 = vcombine.low %v15119_v18, %v6070_v41  ;;  %v8211_v32 = vrot.slane %v12178_v43, %v13554_v30 }
 0x2ca   : > { %v15216_v20 = vrot.slane %v6056_v23, %v13554_v30  ;;  %v6088_v63 = vcombine.high %v15119_v18, %v6070_v41  ;;  %v6089_v49 = vcombine.low %v6077_v17, %v15177_v34  ;;  %v6090_v44 = vcombine.high %v6077_v17, %v15177_v34 }
 0x2cb   : > { %v15222_v8 = vrot.slane %v6085_v50, %v13554_v30  ;;  %v15225_v55 = vrot.slane %v6086_v24, %v13554_v30  ;;  %v15228_v2 = vrot.slane %v6087_v47, %v13554_v30  ;;  %v17083_v27 = vcombine.high %v14058_v45, %v14095_v48  ;;  %v15254_v48 = vpop.f32.mrb[0].mxu1  ;;  %v15256_v24 = vpop.f32.mrb[52].mxu0 }
 0x2cc   : > { %17079 = vst [vmem:[#allocation78_spill] sm:$0xff] %v15216_v20  ;;  %v6091_v9 = vcombine.low %v15216_v20, %v15180_v12  ;;  %v15233_v13 = vrot.slane %v6088_v63, %v13554_v30  ;;  %v15240_v60 = vrot.slane %v6089_v49, %v13554_v30  ;;  %v15243_v41 = vrot.slane %v6090_v44, %v13554_v30  ;;  %v12325_v49 = vpop.f32.mrb[1].mxu1  ;;  %v12419_v44 = vpop.f32.mrb[53].mxu0 }
 0x2cd   : > { %17080 = vst [vmem:[#allocation79_spill] sm:$0xff] %v15222_v8  ;;  %17081 = vst [vmem:[#allocation80_spill] sm:$0xff] %v15225_v55  ;;  %v3993_v14 = vrot.slane %v17083_v27, %v13554_v30  ;;  %v12180_v43 = vcombine.low %v6001_v40, %v15222_v8  ;;  %v4161_v23 = vcombine.low %v14100_v36, %v14211_v28  ;;  %v12421_v10 = vpop.f32.mrb[54].mxu0 }
 0x2ce   : > { %17082 = vst [vmem:[#allocation81_spill] sm:$0xff] %v15233_v13  ;;  %17084 = vst [vmem:[#allocation82_spill] sm:$0xff] %v15240_v60  ;;  %v15249_v54 = vrot.slane %v6091_v9, %v13554_v30  ;;  %v12084_v17 = vcombine.low %v14240_v56, %v3986_v52  ;;  %v12086_v50 = vcombine.high %v14240_v56, %v3986_v52 }
 0x2cf   : > { %17085 = vst [vmem:[#allocation83_spill] sm:$0xff] %v15243_v41  ;;  %v12088_v45 = vcombine.low %v14116_v62, %v3993_v14  ;;  %v6150_v47 = vcombine.high %v15222_v8, %v15240_v60  ;;  %v6154_v40 = vcombine.high %v15225_v55, %v15243_v41  ;;  %v8225_v36 = vrot.slane %v12180_v43, %v13554_v30  ;;  %v12327_v14 = vpop.f32.mrb[2].mxu1 }
 0x2d0   : > { %17086 = vst [vmem:[#allocation84_spill] sm:$0xff] %v15249_v54  ;;  %v12090_v63 = vcombine.high %v14116_v62, %v4161_v23  ;;  %v6152_v56 = vcombine.high %v15228_v2, %v15249_v54  ;;  %v6183_v52 = vrot.slane %v12084_v17, %v13554_v30  ;;  %v6197_v9 = vrot.slane %v12086_v50, %v13554_v30  ;;  %v12328_v62 = vpop.f32.mrb[3].mxu1  ;;  %v12422_v23 = vpop.f32.mrb[55].mxu0 }
 0x2d1   : > { %v6211_v27 = vrot.slane %v12088_v45, %v13554_v30  ;;  %v12182_v20 = vcombine.low %v15225_v55, %v6150_v47  ;;  %v12184_v58 = vcombine.low %v6154_v40, %v15228_v2  ;;  %v8262_v43 = vcombine.high %v8211_v32, %v8225_v36 }
 0x2d2   : > { %v8261_v41 = vcombine.low %v8211_v32, %v8225_v36  ;;  %v12186_v8 = vcombine.low %v15233_v13, %v6152_v56  ;;  %v6225_v54 = vrot.slane %v12090_v63, %v13554_v30  ;;  %v6228_v60 = vcombine.low %v6183_v52, %v6197_v9 }
 0x2d3   : > { %v6229_v17 = vcombine.high %v6183_v52, %v6197_v9  ;;  %v8239_v50 = vrot.slane %v12182_v20, %v13554_v30  ;;  %v8253_v45 = vrot.slane %v12184_v58, %v13554_v30  ;;  %v8289_v12 = vrot.slane %v8262_v43, %v13554_v30 }
 0x2d4   : > { %v8275_v47 = vrot.slane %v8261_v41, %v13554_v30  ;;  %v8390_v40 = vrot.slane %v12186_v8, %v13554_v30  ;;  %v6232_v55 = vcombine.low %v6211_v27, %v6225_v54  ;;  %v6233_v32 = vcombine.high %v6211_v27, %v6225_v54 }
 0x2d5   : > { %v15279_v36 = vrot.slane %v6229_v17, %v13554_v30  ;;  %v8266_v56 = vcombine.high %v8239_v50, %v8253_v45  ;;  %v8265_v13 = vcombine.low %v8239_v50, %v8253_v45  ;;  %v15282_v63 = vrot.slane %v6228_v60, %v13554_v30 }
 0x2d6   : > { %v4104_v20 = vcombine.high %v14139_v31, %v14193_v1  ;;  %v8398_v58 = vcombine.high %v8390_v40, %v8390_v40  ;;  %v8406_v52 = vrot.slane %v8390_v40, %v13554_v30  ;;  %v15288_v41 = vrot.slane %v6233_v32, %v13554_v30 }
 0x2d7   : > { %v15291_v8 = vrot.slane %v6232_v55, %v13554_v30  ;;  %v8317_v54 = vrot.slane %v8266_v56, %v13554_v30  ;;  %v8303_v9 = vrot.slane %v8265_v13, %v13554_v30  ;;  %v4163_v60 = vcombine.low %v14156_v15, %v14214_v5 }
 0x2d8   : > { %v4160_v27 = vrot.slane %v4104_v20, %v13554_v30  ;;  %v8420_v31 = vrot.slane %v8398_v58, %v13554_v30  ;;  %v8428_v1 = vcombine.high %v8406_v52, %v8406_v52  ;;  %v6296_v43 = vcombine.low %v15279_v36, %v15288_v41 }
 0x2d9   : > { %v6297_v17 = vcombine.high %v15279_v36, %v15288_v41  ;;  %v8329_v55 = vcombine.low %v8289_v12, %v8317_v54  ;;  %v8330_v50 = vcombine.high %v8289_v12, %v8317_v54  ;;  %v8325_v45 = vcombine.low %v8275_v47, %v8303_v9 }
 0x2da   : > { %v8326_v40 = vcombine.high %v8275_v47, %v8303_v9  ;;  %v8430_v32 = vcombine.high %v8420_v31, %v8420_v31  ;;  %v6292_v13 = vcombine.low %v15282_v63, %v15291_v8  ;;  %v4165_v56 = vcombine.low %v14144_v7, %v14224_v3  ;;  %v15316_v47 = vld [vmem:[%s16871_s4] ss:$0 sm:$0xff] }
 0x2db   : > { %9116 = vmatprep.mubr.bf16.mxu1 %v8329_v55  ;;  %9252 = vmatprep.mubr.bf16.mxu0 %v8330_v50  ;;  %v4167_v20 = vcombine.low %v14221_v39, %v4160_v27  ;;  %v4218_v36 = vcombine.low %v14153_v25, %v14183_v26  ;;  %v12095_v12 = vcombine.high %v14224_v3, %v4163_v60  ;;  %v17087_v55 = vld [vmem:[#allocation25_spill] sm:$0xff] }
 0x2dc   : > { %9117 = vmatmul.mubr.bf16.gmra.mrb[44].mxu1 %v8325_v45  ;;  %9253 = vmatmul.mubr.bf16.gmra.mrb[96].mxu0 %v8326_v40  ;;  %v12093_v58 = vcombine.high %v4165_v56, %v14211_v28  ;;  %v12326_v7 = vadd.f32 %v12325_v49, %v15254_v48  ;;  %v12420_v41 = vadd.f32 %v12419_v44, %v15256_v24  ;;  %v17088_v49 = vld [vmem:[#allocation18_spill] sm:$0xff]  ;;  %v17089_v44 = vld [vmem:[#allocation17_spill] sm:$0xff] }
 0x2dd   : > { %9124 = vmatprep.mubr.bf16.mxu1 %v8420_v31  ;;  %9260 = vmatprep.mubr.bf16.mxu0 %v8430_v32  ;;  %v4242_v39 = vrot.slane %v4218_v36, %v13554_v30  ;;  %v12097_v25 = vcombine.high %v4167_v20, %v14214_v5  ;;  %v6382_v3 = vrot.slane %v12095_v12, %v13554_v30 }
 0x2de   : > { %v6368_v54 = vrot.slane %v12093_v58, %v13554_v30  ;;  %v9031_v9 = vadd.f32 %v12326_v7, %v15316_v47  ;;  %v12329_v27 = vadd.f32 %v12328_v62, %v12327_v14  ;;  %v12423_v60 = vadd.f32 %v12422_v23, %v12421_v10  ;;  %v17090_v62 = vld [vmem:[#allocation22_spill] sm:$0xff]  ;;  %v17091_v23 = vld [vmem:[#allocation20_spill] sm:$0xff]  ;;  %v17093_v7 = vld [vmem:[#allocation21_spill] sm:$0xff] }
 0x2df   : > { %v4268_v28 = vcombine.low %v4242_v39, %v17087_v55  ;;  %v4269_v48 = vcombine.high %v4242_v39, %v17087_v55  ;;  %v6396_v24 = vrot.slane %v12097_v25, %v13554_v30  ;;  %v4271_v31 = vcombine.high %v17089_v44, %v17088_v49  ;;  %v17092_v58 = vld [vmem:[#allocation28_spill] sm:$0xff]  ;;  %v17095_v55 = vld [vmem:[#allocation27_spill] sm:$0xff]  ;;  %v17098_v49 = vld [vmem:[#allocation30_spill] sm:$0xff] }
 0x2e0   : > { %v6414_v50 = vcombine.high %v6368_v54, %v6382_v3  ;;  %v15331_v45 = vadd.f32 %v12420_v41, %v9031_v9  ;;  %v9034_v5 = vadd.f32 %v12329_v27, %v15316_v47  ;;  %v6413_v40 = vcombine.low %v6368_v54, %v6382_v3  ;;  %v17094_v3 = vld [vmem:[#allocation19_spill] sm:$0xff] }
 0x2e1   : > { %v4306_v32 = vrot.slane %v4268_v28, %v13554_v30  ;;  %v4320_v14 = vrot.slane %v4269_v48, %v13554_v30  ;;  %v4327_v10 = vrot.slane %v4271_v31, %v13554_v30  ;;  %v4495_v56 = vcombine.low %v17091_v23, %v17090_v62  ;;  %v17096_v28 = vld [vmem:[#allocation26_spill] sm:$0xff]  ;;  %v17097_v48 = vld [vmem:[#allocation32_spill] sm:$0xff] }
 0x2e2   : > { %v6446_v20 = vrot.slane %v6414_v50, %v13554_v30  ;;  %v15340_v36 = vadd.f32 %v12423_v60, %v9034_v5  ;;  %v15343_v12 = vrot.slane %v6413_v40, %v13554_v30  ;;  %v4499_v41 = vcombine.low %v17093_v7, %v17092_v58  ;;  %v12424_v7 = vpop.f32.mrb[56].mxu0 }
 0x2e3   : > { %v12099_v39 = vcombine.low %v4306_v32, %v4320_v14  ;;  %v12101_v25 = vcombine.high %v4306_v32, %v4320_v14  ;;  %v12103_v54 = vcombine.low %v17094_v3, %v4327_v10  ;;  %v12105_v9 = vcombine.high %v17094_v3, %v4495_v56  ;;  %v17099_v32 = vld [vmem:[#allocation23_spill] sm:$0xff]  ;;  %v17100_v14 = vld [vmem:[#allocation16_spill] sm:$0xff] }
 0x2e4   : > { %9125 = vmatmul.mubr.bf16.gmra.mrb[48].mxu1 %v8406_v52  ;;  %9261 = vmatmul.mubr.bf16.gmra.mrb[100].mxu0 %v8428_v1  ;;  %v12107_v27 = vcombine.high %v4499_v41, %v17090_v62  ;;  %v4438_v60 = vcombine.high %v17096_v28, %v17095_v55  ;;  %v4497_v44 = vcombine.low %v17098_v49, %v17097_v48  ;;  %v12330_v62 = vpop.f32.mrb[4].mxu1  ;;  %v17101_v3 = vld [vmem:[#allocation31_spill] sm:$0xff]  ;;  %v12425_v55 = vpop.f32.mrb[57].mxu0  ;;  %v13086_v28 = vld [vmem:[#allocation2 + $0x200] sm:$0xff]  }
 0x2e5   : > { %9300 = vmatprep.mubr.bf16.mxu1 %v6296_v43  ;;  %9436 = vmatprep.mubr.bf16.mxu0 %v6297_v17  ;;  %v6410_v31 = vrot.slane %v12099_v39, %v13554_v30  ;;  %v6553_v50 = vrot.slane %v12101_v25, %v13554_v30  ;;  %v6567_v5 = vrot.slane %v12103_v54, %v13554_v30  ;;  %v12331_v41 = vpop.f32.mrb[5].mxu1 }
 0x2e6   : > { %v6581_v40 = vrot.slane %v12105_v9, %v13554_v30  ;;  %v6595_v52 = vrot.slane %v12107_v27, %v13554_v30  ;;  %v4494_v1 = vrot.slane %v4438_v60, %v13554_v30  ;;  %v4552_v10 = vcombine.low %v17100_v14, %v17099_v32  ;;  %v12333_v27 = vpop.f32.mrb[6].mxu1 }
 0x2e7   : > { %v6418_v23 = vcombine.high %v6396_v24, %v6410_v31  ;;  %v6417_v56 = vcombine.low %v6396_v24, %v6410_v31  ;;  %v6599_v43 = vcombine.high %v6553_v50, %v6567_v5  ;;  %v6598_v17 = vcombine.low %v6553_v50, %v6567_v5  ;;  %v12427_v31 = vpop.f32.mrb[58].mxu0  ;;  %v12334_v50 = vpop.f32.mrb[7].mxu1 }
 0x2e8   : > { %v6603_v39 = vcombine.high %v6581_v40, %v6595_v52  ;;  %v6602_v25 = vcombine.low %v6581_v40, %v6595_v52  ;;  %v4501_v54 = vcombine.low %v17101_v3, %v4494_v1  ;;  %v4576_v9 = vrot.slane %v4552_v10, %v13554_v30  ;;  %v17102_v52 = vld [vmem:[#allocation46_spill] sm:$0xff]  ;;  %v12428_v3 = vpop.f32.mrb[59].mxu0 }
 0x2e9   : > { %v6474_v60 = vrot.slane %v6418_v23, %v13554_v30  ;;  %v6460_v49 = vrot.slane %v6417_v56, %v13554_v30  ;;  %v6631_v14 = vrot.slane %v6599_v43, %v13554_v30  ;;  %v15368_v24 = vrot.slane %v6598_v17, %v13554_v30 }
 0x2ea   : > { %v6659_v5 = vrot.slane %v6603_v39, %v13554_v30  ;;  %v15372_v40 = vrot.slane %v6602_v25, %v13554_v30  ;;  %v4602_v1 = vcombine.low %v4576_v9, %v17102_v52  ;;  %v4603_v10 = vcombine.high %v4576_v9, %v17102_v52 }
 0x2eb   : > { %v6481_v23 = vcombine.low %v6446_v20, %v6474_v60  ;;  %v6482_v15 = vcombine.high %v6446_v20, %v6474_v60  ;;  %v6477_v56 = vcombine.low %v15343_v12, %v6460_v49  ;;  %v6478_v43 = vcombine.high %v15343_v12, %v6460_v49  ;;  %v13087_v20 = vld [vmem:[#allocation2 + $0x208] sm:$0xff]  }
 0x2ec   : > { %9301 = vmatmul.mubr.bf16.vlgmr.msra.gmra.mrb[52].mxu1 %v6292_v13  ;;  %v17103_v17 = vcombine.high %v15282_v63, %v15291_v8  ;;  %v6666_v39 = vcombine.low %v6631_v14, %v6659_v5  ;;  %v6667_v25 = vcombine.high %v6631_v14, %v6659_v5  ;;  %v4640_v12 = vrot.slane %v4602_v1, %v13554_v30 }
 0x2ed   : > { %12839 = vmatpush3.bf16.msra.mxu1 %v13086_v28  ;;  %9308 = vmatprep.mubr.bf16.mxu1 %v6481_v23  ;;  %v4654_v49 = vrot.slane %v4603_v10, %v13554_v30  ;;  %v17104_v13 = vmov 0.0   ;;  %v12110_v63 = vcombine.high %v17092_v58, %v4497_v44  ;;  %v12112_v8 = vcombine.high %v4501_v54, %v17097_v48  ;;  %v17105_v44 = vld [vmem:[#allocation34_spill] sm:$0xff] }
 0x2ee   : > { %9437 = vmatmul.mubr.bf16.vlgmr.msra.gmra.mrb[104].mxu0 %v17103_v17  ;;  %12832 = vmatprep.subr.bf16.mxu1 %v17104_v13  ;;  %v12332_v14 = vadd.f32 %v12331_v41, %v12330_v62  ;;  %v12426_v17 = vadd.f32 %v12425_v55, %v12424_v7  ;;  %v12335_v23 = vadd.f32 %v12334_v50, %v12333_v27  ;;  %v17106_v62 = vld [vmem:[#allocation33_spill] sm:$0xff] }
 0x2ef   : > { %9444 = vmatprep.mubr.bf16.mxu0 %v6482_v15  ;;  %v12114_v5 = vcombine.low %v4640_v12, %v4654_v49  ;;  %v12116_v52 = vcombine.high %v4640_v12, %v4654_v49  ;;  %12764 = vmatpush3.bf16.msra.mxu0 %v13086_v28  ;;  %v6738_v9 = vrot.slane %v12110_v63, %v13554_v30  ;;  %v17108_v27 = vld [vmem:[#allocation41_spill] sm:$0xff]  ;;  %v17109_v28 = vld [vmem:[#allocation38_spill] sm:$0xff] }
 0x2f0   : > { %v6752_v60 = vrot.slane %v12112_v8, %v13554_v30  ;;  %v9039_v1 = vadd.f32 %v12332_v14, %v15316_v47  ;;  %v12429_v10 = vadd.f32 %v12428_v3, %v12427_v31  ;;  %12765 = vmatprep.subr.bf16.mxu0 %v17104_v13  ;;  %v9042_v48 = vadd.f32 %v12335_v23, %v15316_v47  ;;  %v13088_v31 = vld [vmem:[#allocation2 + $0x210] sm:$0xff]   ;;  %v17113_v23 = vld [vmem:[#allocation42_spill] sm:$0xff] }
 0x2f1   : > { %12840 = vmatpush3.bf16.msra.mxu1 %v13087_v20  ;;  %v6766_v15 = vrot.slane %v12114_v5, %v13554_v30  ;;  %v6780_v58 = vrot.slane %v12116_v52, %v13554_v30  ;;  %v4605_v7 = vcombine.high %v17106_v62, %v17105_v44  ;;  %v4829_v50 = vcombine.low %v17109_v28, %v17108_v27 }
 0x2f2   : > { %v6784_v41 = vcombine.high %v6738_v9, %v6752_v60  ;;  %v15402_v54 = vadd.f32 %v12426_v17, %v9039_v1  ;;  %v6783_v55 = vcombine.low %v6738_v9, %v6752_v60  ;;  %12833 = vmatprep.subr.bf16.mxu1 %v17104_v13  ;;  %v15407_v12 = vadd.f32 %v12429_v10, %v9042_v48  ;;  %v17111_v9 = vld [vmem:[#allocation45_spill] sm:$0xff]  ;;  %v17112_v60 = vld [vmem:[#allocation39_spill] sm:$0xff]  ;;  %v17114_v1 = vld [vmem:[#allocation40_spill] sm:$0xff] }
 0x2f3   : > { %v6788_v3 = vcombine.high %v6766_v15, %v6780_v58  ;;  %v6787_v49 = vcombine.low %v6766_v15, %v6780_v58  ;;  %v4661_v63 = vrot.slane %v4605_v7, %v13554_v30  ;;  %12766 = vmatpush3.bf16.msra.mxu0 %v13087_v20  ;;  %v4831_v5 = vcombine.low %v17112_v60, %v17111_v9  ;;  %v17116_v58 = vld [vmem:[#allocation44_spill] sm:$0xff]  ;;  %v17117_v48 = vld [vmem:[#allocation43_spill] sm:$0xff] }
 0x2f4   : > { %17107 = vst [vmem:[#allocation25_spill] sm:$0xff] %v15402_v54  ;;  %17110 = vst [vmem:[#allocation18_spill] sm:$0xff] %v15407_v12  ;;  %9309 = vmatmul.mubr.bf16.gmra.mrb[56].mxu1 %v6477_v56  ;;  %v6816_v8 = vrot.slane %v6784_v41, %v13554_v30  ;;  %v15412_v14 = vrot.slane %v6783_v55, %v13554_v30  ;;  %v4833_v20 = vcombine.low %v17114_v1, %v17113_v23  ;;  %v17115_v56 = vld [vmem:[#allocation35_spill] sm:$0xff] }
 0x2f5   : > { %9316 = vmatprep.mubr.bf16.mxu1 %v6666_v39  ;;  %v6844_v52 = vrot.slane %v6788_v3, %v13554_v30  ;;  %v15418_v17 = vrot.slane %v6787_v49, %v13554_v30  ;;  %v12121_v10 = vcombine.high %v17115_v56, %v4829_v50  ;;  %v12125_v15 = vcombine.high %v17113_v23, %v4831_v5  ;;  %v13089_v39 = vld [vmem:[#allocation2 + $0x218] sm:$0xff]   ;;  %v17120_v5 = vld [vmem:[#allocation50_spill] sm:$0xff]  ;;  %v17121_v23 = vld [vmem:[#allocation53_spill] sm:$0xff] }
 0x2f6   : > { %9445 = vmatmul.mubr.bf16.gmra.mrb[108].mxu0 %v6478_v43  ;;  %v12119_v43 = vcombine.low %v17115_v56, %v4661_v63  ;;  %12841 = vmatpush3.bf16.msra.mxu1 %v13088_v31  ;;  %v4772_v44 = vcombine.high %v17117_v48, %v17116_v58  ;;  %v12123_v55 = vcombine.high %v4833_v20, %v17108_v27  ;;  %v17118_v63 = vld [vmem:[#allocation36_spill] sm:$0xff]  ;;  %v15447_v58 = vld [vmem:[#allocation2 + $0x220] sm:$0xff]   ;;  %v17124_v48 = vld [vmem:[#allocation47_spill] sm:$0xff] }
 0x2f7   : > { %9452 = vmatprep.mubr.bf16.mxu0 %v6667_v25  ;;  %v6851_v25 = vcombine.low %v6816_v8, %v6844_v52  ;;  %v6852_v62 = vcombine.high %v6816_v8, %v6844_v52  ;;  %v6847_v7 = vcombine.low %v15412_v14, %v15418_v17  ;;  %v6848_v41 = vcombine.high %v15412_v14, %v15418_v17  ;;  %v17119_v8 = vld [vmem:[#allocation29_spill] sm:$0xff] }
 0x2f8   : > { %12834 = vmatprep.subr.bf16.mxu1 %v17104_v13  ;;  %v6923_v28 = vrot.slane %v12119_v43, %v13554_v30  ;;  %v6937_v50 = vrot.slane %v12121_v10, %v13554_v30  ;;  %v6965_v3 = vrot.slane %v12125_v15, %v13554_v30  ;;  %12767 = vmatprep.subr.bf16.mxu0 %v17104_v13  ;;  %v17122_v43 = vld [vmem:[#allocation56_spill] sm:$0xff]  ;;  %v17123_v10 = vld [vmem:[#allocation54_spill] sm:$0xff] }
 0x2f9   : > { %v4828_v49 = vrot.slane %v4772_v44, %v13554_v30  ;;  %v4886_v60 = vcombine.low %v17119_v8, %v17118_v63  ;;  %v4939_v52 = vcombine.high %v17120_v5, %v14727_v37  ;;  %v5106_v1 = vcombine.high %v17121_v23, %v14763_v11  ;;  %12768 = vmatpush3.bf16.msra.mxu0 %v13088_v31 }
 0x2fa   : > { %v6951_v27 = vrot.slane %v12123_v55, %v13554_v30  ;;  %v6969_v20 = vcombine.high %v6923_v28, %v6937_v50  ;;  %v6968_v56 = vcombine.low %v6923_v28, %v6937_v50  ;;  %12842 = vmatpush3.bf16.msra.mxu1 %v13089_v39  ;;  %v5163_v15 = vcombine.low %v17123_v10, %v17122_v43 }
 0x2fb   : > { %v4835_v44 = vcombine.low %v17124_v48, %v4828_v49  ;;  %v4910_v8 = vrot.slane %v4886_v60, %v13554_v30  ;;  %v4995_v37 = vrot.slane %v4939_v52, %v13554_v30  ;;  %v5162_v5 = vrot.slane %v5106_v1, %v13554_v30  ;;  %12835 = vmatprep.subr.bf16.mxu1 %v17104_v13  ;;  %v17131_v48 = vld [vmem:[#allocation57_spill] sm:$0xff] }
 0x2fc   : > { %v17125_v11 = vcombine.low %v15368_v24, %v15372_v40  ;;  %v17126_v31 = vcombine.high %v15368_v24, %v15372_v40  ;;  %v6973_v55 = vcombine.high %v6951_v27, %v6965_v3  ;;  %v7001_v28 = vrot.slane %v6969_v20, %v13554_v30  ;;  %v17127_v40 = vld [vmem:[#allocation52_spill] sm:$0xff]  ;;  %v17129_v20 = vld [vmem:[#allocation55_spill] sm:$0xff]  ;;  %12769 = vmatprep.subr.bf16.mxu0 %v17104_v13 }
 0x2fd   : > { %v6972_v50 = vcombine.low %v6951_v27, %v6965_v3  ;;  %v15462_v49 = vrot.slane %v6968_v56, %v13554_v30  ;;  %v4936_v60 = vcombine.low %v4910_v8, %v14834_v46  ;;  %v4937_v52 = vcombine.high %v4910_v8, %v14834_v46  ;;  %v17128_v27 = vld [vmem:[#allocation59_spill] sm:$0xff]  ;;  %v17130_v56 = vld [vmem:[#allocation60_spill] sm:$0xff]  ;;  %12770 = vmatpush3.bf16.msra.mxu0 %v13089_v39  ;;  %v17135_v39 = vld [vmem:[#allocation61_spill] sm:$0xff] }
 0x2fe   : > { %9317 = vmatmul.mubr.bf16.gmra.mrb[60].mxu1 %v17125_v11  ;;  %9453 = vmatmul.mubr.bf16.gmra.mrb[112].mxu0 %v17126_v31  ;;  %v7029_v23 = vrot.slane %v6973_v55, %v13554_v30  ;;  %v12127_v24 = vcombine.high %v4835_v44, %v17111_v9  ;;  %v12133_v10 = vcombine.low %v17127_v40, %v4995_v37  ;;  %v15494_v37 = vld [vmem:[#allocation2 + $0x230] sm:$0xff]  }
 0x2ff   : > { %9324 = vmatprep.mubr.bf16.mxu1 %v6851_v25  ;;  %9460 = vmatprep.mubr.bf16.mxu0 %v6852_v62  ;;  %v15468_v1 = vrot.slane %v6972_v50, %v13554_v30  ;;  %v15473_v25 = vld [vmem:[#allocation2 + $0x228] sm:$0xff]   ;;  %v4974_v62 = vrot.slane %v4936_v60, %v13554_v30  ;;  %v4988_v3 = vrot.slane %v4937_v52, %v13554_v30 }
 0x300   : > { %12843 = vmatpush3.bf16.msra.mxu1 %v15447_v58  ;;  %v5165_v46 = vcombine.low %v17129_v20, %v17128_v27  ;;  %v5167_v8 = vcombine.low %v17131_v48, %v17130_v56  ;;  %v7036_v11 = vcombine.low %v7001_v28, %v7029_v23  ;;  %v7037_v9 = vcombine.high %v7001_v28, %v7029_v23  ;;  %v17132_v52 = vld [vmem:[#allocation58_spill] sm:$0xff] }
 0x301   : > { %12836 = vmatprep.subr.bf16.mxu1 %v17104_v13  ;;  %v12129_v31 = vcombine.low %v4974_v62, %v4988_v3  ;;  %v12131_v55 = vcombine.high %v4974_v62, %v4988_v3  ;;  %v7108_v50 = vrot.slane %v12127_v24, %v13554_v30  ;;  %v7150_v60 = vrot.slane %v12133_v10, %v13554_v30  ;;  %v17133_v24 = vld [vmem:[#allocation48_spill] sm:$0xff]  ;;  %v17134_v3 = vld [vmem:[#allocation49_spill] sm:$0xff] }
 0x302   : > { %v5169_v20 = vcombine.low %v17132_v52, %v5162_v5  ;;  %v12136_v48 = vcombine.high %v17127_v40, %v5163_v15  ;;  %v12138_v28 = vcombine.high %v5167_v8, %v17122_v43  ;;  %v12140_v23 = vcombine.high %v17130_v56, %v5165_v46  ;;  %v12336_v52 = vpop.f32.mrb[8].mxu1  ;;  %v12430_v15 = vpop.f32.mrb[60].mxu0  ;;  %12771 = vmatprep.subr.bf16.mxu0 %v17104_v13 }
 0x303   : > { %v7122_v44 = vrot.slane %v12129_v31, %v13554_v30  ;;  %v7136_v62 = vrot.slane %v12131_v55, %v13554_v30  ;;  %v5220_v10 = vcombine.low %v17134_v3, %v17133_v24  ;;  %v5273_v5 = vcombine.high %v17135_v39, %v14877_v22  ;;  %v12337_v56 = vpop.f32.mrb[9].mxu1  ;;  %v12431_v22 = vpop.f32.mrb[61].mxu0  ;;  %12772 = vmatpush3.bf16.msra.mxu0 %v15447_v58 }
 0x304   : > { %12844 = vmatpush3.bf16.msra.mxu1 %v15473_v25  ;;  %v12142_v43 = vcombine.high %v5169_v20, %v17128_v27  ;;  %v7293_v40 = vrot.slane %v12136_v48, %v13554_v30  ;;  %v7307_v46 = vrot.slane %v12138_v28, %v13554_v30  ;;  %v12339_v3 = vpop.f32.mrb[10].mxu1  ;;  %v12433_v39 = vpop.f32.mrb[62].mxu0  ;;  %v7321_v12 = vrot.slane %v12140_v23, %v13554_v30  ;;  %v15515_v20 = vld [vmem:[#allocation2 + $0x238] sm:$0xff]  }
 0x305   : > { %12837 = vmatprep.subr.bf16.mxu1 %v17104_v13  ;;  %v7154_v8 = vcombine.high %v7108_v50, %v7122_v44  ;;  %v7158_v31 = vcombine.high %v7136_v62, %v7150_v60  ;;  %v7153_v55 = vcombine.low %v7108_v50, %v7122_v44  ;;  %v12434_v27 = vpop.f32.mrb[63].mxu0  ;;  %12773 = vmatprep.subr.bf16.mxu0 %v17104_v13 }
 0x306   : > { %9325 = vmatmul.mubr.bf16.gmra.mrb[64].mxu1 %v6847_v7  ;;  %9461 = vmatmul.mubr.bf16.gmra.mrb[116].mxu0 %v6848_v41  ;;  %v7157_v7 = vcombine.low %v7136_v62, %v7150_v60  ;;  %v7335_v14 = vrot.slane %v12142_v43, %v13554_v30  ;;  %v7339_v17 = vcombine.high %v7293_v40, %v7307_v46  ;;  %v12340_v41 = vpop.f32.mrb[11].mxu1 }
 0x307   : > { %9332 = vmatprep.mubr.bf16.mxu1 %v7036_v11  ;;  %9468 = vmatprep.mubr.bf16.mxu0 %v7037_v9  ;;  %v7186_v11 = vrot.slane %v7154_v8, %v13554_v30  ;;  %v7214_v9 = vrot.slane %v7158_v31, %v13554_v30  ;;  %v7172_v44 = vrot.slane %v7153_v55, %v13554_v30 }
 0x308   : > { %12845 = vmatpush3.bf16.msra.mxu1 %v15494_v37  ;;  %v7338_v50 = vcombine.low %v7293_v40, %v7307_v46  ;;  %v7200_v60 = vrot.slane %v7157_v7, %v13554_v30  ;;  %v7343_v48 = vcombine.high %v7321_v12, %v7335_v14  ;;  %v7371_v28 = vrot.slane %v7339_v17, %v13554_v30 }
 0x309   : > { %v7342_v23 = vcombine.low %v7321_v12, %v7335_v14  ;;  %v7221_v62 = vcombine.low %v7186_v11, %v7214_v9  ;;  %v7222_v43 = vcombine.high %v7186_v11, %v7214_v9  ;;  %v5244_v8 = vrot.slane %v5220_v10, %v13554_v30  ;;  %12838 = vmatprep.subr.bf16.mxu1 %v17104_v13 }
 0x30a   : > { %v15525_v54 = vrot.slane %v7338_v50, %v13554_v30  ;;  %v7217_v40 = vcombine.low %v7172_v44, %v7200_v60  ;;  %v7218_v46 = vcombine.high %v7172_v44, %v7200_v60  ;;  %v7399_v31 = vrot.slane %v7343_v48, %v13554_v30  ;;  %v17138_v50 = vld [vmem:[#allocation62_spill] sm:$0xff]  ;;  %12774 = vmatpush3.bf16.msra.mxu0 %v15473_v25 }
 0x30b   : > { %v15531_v55 = vrot.slane %v7342_v23, %v13554_v30  ;;  %v5270_v12 = vcombine.low %v5244_v8, %v14949_v6  ;;  %v5271_v58 = vcombine.high %v5244_v8, %v14949_v6  ;;  %v5329_v7 = vrot.slane %v5273_v5, %v13554_v30  ;;  %12775 = vmatprep.subr.bf16.mxu0 %v17104_v13 }
 0x30c   : > { %12846 = vmatpush3.bf16.msra.mxu1 %v15515_v20  ;;  %v5497_v10 = vcombine.low %v14920_v4, %v15007_v0  ;;  %v17136_v14 = vcombine.low %v15462_v49, %v15468_v1  ;;  %v17137_v17 = vcombine.high %v15462_v49, %v15468_v1  ;;  %v7406_v11 = vcombine.low %v7371_v28, %v7399_v31 }
 0x30d   : > { %v7407_v9 = vcombine.high %v7371_v28, %v7399_v31  ;;  %v7402_v6 = vcombine.low %v15525_v54, %v15531_v55  ;;  %v7403_v4 = vcombine.high %v15525_v54, %v15531_v55  ;;  %v5308_v5 = vrot.slane %v5270_v12, %v13554_v30 }
 0x30e   : > { %9333 = vmatmul.mubr.bf16.gmra.mrb[68].mxu1 %v17136_v14  ;;  %9469 = vmatmul.mubr.bf16.gmra.mrb[120].mxu0 %v17137_v17  ;;  %v5322_v44 = vrot.slane %v5271_v58, %v13554_v30  ;;  %v12148_v60 = vcombine.low %v17138_v50, %v5329_v7  ;;  %v12150_v48 = vcombine.high %v17138_v50, %v5497_v10  ;;  %v17140_v17 = vld [vmem:[#allocation66_spill] sm:$0xff]  ;;  %v17141_v50 = vld [vmem:[#allocation63_spill] sm:$0xff] }
 0x30f   : > { %9340 = vmatprep.mubr.bf16.mxu1 %v7221_v62  ;;  %9476 = vmatprep.mubr.bf16.mxu0 %v7222_v43  ;;  %v12338_v49 = vadd.f32 %v12337_v56, %v12336_v52  ;;  %v12432_v1 = vadd.f32 %v12431_v22, %v12430_v15  ;;  %v12341_v8 = vadd.f32 %v12340_v41, %v12339_v3 }
 0x310   : > { %v12144_v28 = vcombine.low %v5308_v5, %v5322_v44  ;;  %v12146_v23 = vcombine.high %v5308_v5, %v5322_v44  ;;  %v12435_v62 = vadd.f32 %v12434_v27, %v12433_v39  ;;  %v7506_v43 = vrot.slane %v12148_v60, %v13554_v30  ;;  %12776 = vmatpush3.bf16.msra.mxu0 %v15494_v37 }
 0x311   : > { %v7520_v31 = vrot.slane %v12150_v48, %v13554_v30  ;;  %v9047_v12 = vadd.f32 %v12338_v49, %v15316_v47  ;;  %v5440_v58 = vcombine.high %v14970_v57, %v14976_v19  ;;  %v9050_v25 = vadd.f32 %v12341_v8, %v15316_v47  ;;  %v17139_v19 = vld [vmem:[#allocation65_spill] sm:$0xff]  ;;  %12777 = vmatprep.subr.bf16.mxu0 %v17104_v13 }
 0x312   : > { %v7478_v52 = vrot.slane %v12144_v28, %v13554_v30  ;;  %v7492_v15 = vrot.slane %v12146_v23, %v13554_v30  ;;  %v5499_v56 = vcombine.low %v14996_v16, %v15010_v53  ;;  %v5501_v10 = vcombine.low %v17139_v19, %v15013_v61  ;;  %v17142_v28 = vld [vmem:[#allocation67_spill] sm:$0xff] }
 0x313   : > { %v7528_v22 = vcombine.high %v7506_v43, %v7520_v31  ;;  %v15566_v3 = vadd.f32 %v12432_v1, %v9047_v12  ;;  %v7527_v39 = vcombine.low %v7506_v43, %v7520_v31  ;;  %v5496_v41 = vrot.slane %v5440_v58, %v13554_v30  ;;  %v12342_v49 = vpop.f32.mrb[12].mxu1  ;;  %v12436_v1 = vpop.f32.mrb[64].mxu0 }
 0x314   : > { %v7524_v27 = vcombine.high %v7478_v52, %v7492_v15  ;;  %v15570_v7 = vadd.f32 %v12435_v62, %v9050_v25  ;;  %v7523_v57 = vcombine.low %v7478_v52, %v7492_v15  ;;  %v5554_v60 = vcombine.low %v17141_v50, %v14861_v42  ;;  %12778 = vmatpush3.bf16.msra.mxu0 %v15515_v20  ;;  %v12437_v43 = vpop.f32.mrb[65].mxu0 }
 0x315   : > { %v7584_v16 = vrot.slane %v7528_v22, %v13554_v30  ;;  %v15577_v14 = vrot.slane %v7527_v39, %v13554_v30  ;;  %v5503_v5 = vcombine.low %v17140_v17, %v5496_v41  ;;  %v12439_v20 = vpop.f32.mrb[66].mxu0  ;;  %v12438_v52 = vadd.f32 %v12437_v43, %v12436_v1  ;;  %v17143_v22 = vld [vmem:[#allocation69_spill] sm:$0xff]  ;;  %v17144_v41 = vld [vmem:[#allocation71_spill] sm:$0xff] }
 0x316   : > { %9341 = vmatmul.mubr.bf16.gmra.mrb[72].mxu1 %v7217_v40  ;;  %9477 = vmatmul.mubr.bf16.gmra.mrb[124].mxu0 %v7218_v46  ;;  %v7556_v37 = vrot.slane %v7524_v27, %v13554_v30  ;;  %v15582_v44 = vrot.slane %v7523_v57, %v13554_v30  ;;  %v12153_v40 = vcombine.high %v5501_v10, %v15007_v0  ;;  %v12343_v0 = vpop.f32.mrb[13].mxu1  ;;  %v12440_v25 = vpop.f32.mrb[67].mxu0 }
 0x317   : > { %9348 = vmatprep.mubr.bf16.mxu1 %v7406_v11  ;;  %9484 = vmatprep.mubr.bf16.mxu0 %v7407_v9  ;;  %v12155_v46 = vcombine.high %v15013_v61, %v5499_v56  ;;  %v12157_v48 = vcombine.high %v5503_v5, %v15010_v53  ;;  %v5607_v11 = vcombine.high %v17142_v28, %v15060_v21  ;;  %v12345_v12 = vpop.f32.mrb[14].mxu1  ;;  %v17145_v5 = vld [vmem:[#allocation73_spill] sm:$0xff]  ;;  %v17147_v28 = vld [vmem:[#allocation68_spill] sm:$0xff] }
 0x318   : > { %v7591_v9 = vcombine.low %v7556_v37, %v7584_v16  ;;  %v7592_v23 = vcombine.high %v7556_v37, %v7584_v16  ;;  %v7587_v8 = vcombine.low %v15582_v44, %v15577_v14  ;;  %v7588_v62 = vcombine.high %v15582_v44, %v15577_v14  ;;  %v12346_v15 = vpop.f32.mrb[15].mxu1  ;;  %v17146_v37 = vld [vmem:[#allocation70_spill] sm:$0xff] }
 0x319   : > { %v5578_v61 = vrot.slane %v5554_v60, %v13554_v30  ;;  %v7663_v53 = vrot.slane %v12153_v40, %v13554_v30  ;;  %v7677_v31 = vrot.slane %v12155_v46, %v13554_v30  ;;  %v7691_v21 = vrot.slane %v12157_v48, %v13554_v30 }
 0x31a   : > { %v12344_v58 = vadd.f32 %v12343_v0, %v12342_v49  ;;  %v5663_v56 = vrot.slane %v5607_v11, %v13554_v30  ;;  %v5831_v39 = vcombine.low %v17143_v22, %v15089_v29  ;;  %v12347_v10 = vadd.f32 %v12346_v15, %v12345_v12 }
 0x31b   : > { %v5604_v27 = vcombine.low %v5578_v61, %v17144_v41  ;;  %v5605_v57 = vcombine.high %v5578_v61, %v17144_v41  ;;  %v7709_v19 = vcombine.high %v7663_v53, %v7677_v31  ;;  %v12441_v14 = vadd.f32 %v12440_v25, %v12439_v20 }
 0x31c   : > { %v9055_v16 = vadd.f32 %v12344_v58, %v15316_v47  ;;  %v7708_v17 = vcombine.low %v7663_v53, %v7677_v31  ;;  %v5835_v44 = vcombine.low %v17146_v37, %v17145_v5  ;;  %v9058_v48 = vadd.f32 %v12347_v10, %v15316_v47 }
 0x31d   : > { %v5642_v50 = vrot.slane %v5604_v27, %v13554_v30  ;;  %v5656_v60 = vrot.slane %v5605_v57, %v13554_v30  ;;  %v7741_v40 = vrot.slane %v7709_v19, %v13554_v30  ;;  %v12163_v54 = vcombine.low %v17147_v28, %v5663_v56 }
 0x31e   : > { %9349 = vmatmul.mubr.bf16.gmra.mrb[76].mxu1 %v7402_v6  ;;  %9485 = vmatmul.mubr.bf16.gmra.mrb[128].mxu0 %v7403_v4  ;;  %v15617_v46 = vadd.f32 %v12438_v52, %v9055_v16  ;;  %v15621_v49 = vrot.slane %v7708_v17, %v13554_v30  ;;  %v12165_v55 = vcombine.high %v17147_v28, %v5831_v39  ;;  %v17150_v28 = vld [vmem:[#allocation75_spill] sm:$0xff] }
 0x31f   : > { %9356 = vmatprep.mubr.bf16.mxu1 %v7591_v9  ;;  %9492 = vmatprep.mubr.bf16.mxu0 %v7592_v23  ;;  %v12159_v6 = vcombine.low %v5642_v50, %v5656_v60  ;;  %v12161_v1 = vcombine.high %v5642_v50, %v5656_v60  ;;  %v15625_v4 = vadd.f32 %v12441_v14, %v9058_v48  ;;  %v17148_v9 = vld [vmem:[#allocation72_spill] sm:$0xff] }
 0x320   : > { %v12167_v11 = vcombine.high %v5835_v44, %v15089_v29  ;;  %v5774_v23 = vcombine.high %v17148_v9, %v15119_v18  ;;  %v5833_v0 = vcombine.low %v15135_v35, %v15141_v51  ;;  %v7862_v53 = vrot.slane %v12163_v54, %v13554_v30 }
 0x321   : > { %v7705_v43 = vrot.slane %v12159_v6, %v13554_v30  ;;  %v7848_v61 = vrot.slane %v12161_v1, %v13554_v30  ;;  %v7876_v31 = vrot.slane %v12165_v55, %v13554_v30  ;;  %v5888_v29 = vcombine.low %v15020_v38, %v15102_v59  ;;  %v17149_v1 = vld [vmem:[#allocation76_spill] sm:$0xff]  ;;  %v17151_v55 = vld [vmem:[#allocation82_spill] sm:$0xff] }
 0x322   : > { %v7890_v12 = vrot.slane %v12167_v11, %v13554_v30  ;;  %v5830_v20 = vrot.slane %v5774_v23, %v13554_v30  ;;  %v12170_v18 = vcombine.high %v17145_v5, %v5833_v0  ;;  %v5941_v54 = vcombine.high %v17150_v28, %v17149_v1  ;;  %v17152_v11 = vld [vmem:[#allocation79_spill] sm:$0xff]  ;;  %v17153_v23 = vld [vmem:[#allocation84_spill] sm:$0xff] }
 0x323   : > { %v7713_v58 = vcombine.high %v7691_v21, %v7705_v43  ;;  %v7712_v52 = vcombine.low %v7691_v21, %v7705_v43  ;;  %v7894_v35 = vcombine.high %v7848_v61, %v7862_v53  ;;  %v7893_v15 = vcombine.low %v7848_v61, %v7862_v53 }
 0x324   : > { %v7898_v25 = vcombine.high %v7876_v31, %v7890_v12  ;;  %v7897_v56 = vcombine.low %v7876_v31, %v7890_v12  ;;  %v5837_v22 = vcombine.low %v15138_v33, %v5830_v20  ;;  %v5912_v39 = vrot.slane %v5888_v29, %v13554_v30  ;;  %v17154_v31 = vld [vmem:[#allocation83_spill] sm:$0xff]  ;;  %v17155_v12 = vld [vmem:[#allocation80_spill] sm:$0xff] }
 0x325   : > { %v7769_v41 = vrot.slane %v7713_v58, %v13554_v30  ;;  %v7755_v27 = vrot.slane %v7712_v52, %v13554_v30  ;;  %v7926_v38 = vrot.slane %v7894_v35, %v13554_v30  ;;  %v15648_v21 = vrot.slane %v7893_v15, %v13554_v30  ;;  %v17156_v52 = vld [vmem:[#allocation77_spill] sm:$0xff] }
 0x326   : > { %9357 = vmatmul.mubr.bf16.gmra.mrb[80].mxu1 %v7587_v8  ;;  %9493 = vmatmul.mubr.bf16.gmra.mrb[132].mxu0 %v7588_v62  ;;  %v7954_v57 = vrot.slane %v7898_v25, %v13554_v30  ;;  %v15651_v19 = vrot.slane %v7897_v56, %v13554_v30  ;;  %v5938_v33 = vcombine.low %v5912_v39, %v15177_v34 }
 0x327   : > { %v7776_v10 = vcombine.low %v7741_v40, %v7769_v41  ;;  %v7777_v16 = vcombine.high %v7741_v40, %v7769_v41  ;;  %v7772_v8 = vcombine.low %v15621_v49, %v7755_v27  ;;  %v7773_v62 = vcombine.high %v15621_v49, %v7755_v27  ;;  %v12348_v40 = vpop.f32.mrb[16].mxu1  ;;  %v12442_v49 = vpop.f32.mrb[68].mxu0 }
 0x328   : > { %v7961_v14 = vcombine.low %v7926_v38, %v7954_v57  ;;  %v7962_v17 = vcombine.high %v7926_v38, %v7954_v57  ;;  %v7957_v5 = vcombine.low %v15648_v21, %v15651_v19  ;;  %v7958_v37 = vcombine.high %v15648_v21, %v15651_v19  ;;  %v12349_v6 = vpop.f32.mrb[17].mxu1 }
 0x329   : > { %9364 = vmatprep.mubr.bf16.mxu1 %v7776_v10  ;;  %9500 = vmatprep.mubr.bf16.mxu0 %v7777_v16  ;;  %v5939_v44 = vcombine.high %v5912_v39, %v15177_v34  ;;  %v5976_v50 = vrot.slane %v5938_v33, %v13554_v30  ;;  %v12172_v60 = vcombine.high %v5837_v22, %v15141_v51  ;;  %v12443_v51 = vpop.f32.mrb[69].mxu0  ;;  %v12351_v53 = vpop.f32.mrb[18].mxu1 }
 0x32a   : > { %v8033_v48 = vrot.slane %v12170_v18, %v13554_v30  ;;  %v6149_v9 = vcombine.low %v17152_v11, %v17151_v55  ;;  %v6151_v0 = vcombine.low %v15228_v2, %v17153_v23  ;;  %v12350_v61 = vadd.f32 %v12349_v6, %v12348_v40  ;;  %v12445_v18 = vpop.f32.mrb[70].mxu0  ;;  %v12352_v25 = vpop.f32.mrb[19].mxu1 }
 0x32b   : > { %v5990_v34 = vrot.slane %v5939_v44, %v13554_v30  ;;  %v8047_v43 = vrot.slane %v12172_v60, %v13554_v30  ;;  %v6153_v20 = vcombine.low %v17155_v12, %v17154_v31  ;;  %v12444_v29 = vadd.f32 %v12443_v51, %v12442_v49  ;;  %v12446_v39 = vpop.f32.mrb[71].mxu0 }
 0x32c   : > { %v5997_v58 = vrot.slane %v5941_v54, %v13554_v30  ;;  %v12181_v35 = vcombine.high %v17156_v52, %v6149_v9  ;;  %v12185_v15 = vcombine.high %v17154_v31, %v6151_v0  ;;  %v9063_v41 = vadd.f32 %v12350_v61, %v15316_v47 }
 0x32d   : > { %v12174_v2 = vcombine.low %v5976_v50, %v5990_v34  ;;  %v12176_v56 = vcombine.high %v5976_v50, %v5990_v34  ;;  %v8079_v22 = vcombine.high %v8033_v48, %v8047_v43  ;;  %v8078_v27 = vcombine.low %v8033_v48, %v8047_v43  ;;  %v17157_v34 = vld [vmem:[#allocation78_spill] sm:$0xff] }
 0x32e   : > { %9365 = vmatmul.mubr.bf16.gmra.mrb[84].mxu1 %v7772_v8  ;;  %9501 = vmatmul.mubr.bf16.gmra.mrb[136].mxu0 %v7773_v62  ;;  %v12179_v38 = vcombine.low %v17156_v52, %v5997_v58  ;;  %v12183_v33 = vcombine.high %v6153_v20, %v17151_v55  ;;  %v15683_v10 = vadd.f32 %v12444_v29, %v9063_v41  ;;  %v17158_v58 = vld [vmem:[#allocation14_spill] sm:$0xff] }
 0x32f   : > { %9372 = vmatprep.mubr.bf16.mxu1 %v7961_v14  ;;  %9508 = vmatprep.mubr.bf16.mxu0 %v7962_v17  ;;  %v8061_v57 = vrot.slane %v12174_v2, %v13554_v30  ;;  %v8075_v21 = vrot.slane %v12176_v56, %v13554_v30  ;;  %v8111_v19 = vrot.slane %v8079_v22, %v13554_v30 }
 0x330   : > { %v8097_v16 = vrot.slane %v8078_v27, %v13554_v30  ;;  %v8218_v8 = vrot.slane %v12179_v38, %v13554_v30  ;;  %v8232_v62 = vrot.slane %v12181_v35, %v13554_v30  ;;  %v8246_v44 = vrot.slane %v12183_v33, %v13554_v30 }
 0x331   : > { %v8083_v14 = vcombine.high %v8061_v57, %v8075_v21  ;;  %v8082_v17 = vcombine.low %v8061_v57, %v8075_v21  ;;  %v8260_v50 = vrot.slane %v12185_v15, %v13554_v30  ;;  %v12353_v40 = vadd.f32 %v12352_v25, %v12351_v53 }
 0x332   : > { %v8264_v60 = vcombine.high %v8218_v8, %v8232_v62  ;;  %v12447_v48 = vadd.f32 %v12446_v39, %v12445_v18  ;;  %v8263_v49 = vcombine.low %v8218_v8, %v8232_v62  ;;  %v6092_v43 = vcombine.high %v17157_v34, %v17149_v1  ;;  %v17159_v39 = vld [vmem:[#allocation81_spill] sm:$0xff] }
 0x333   : > { %v8139_v6 = vrot.slane %v8083_v14, %v13554_v30  ;;  %v8125_v28 = vrot.slane %v8082_v17, %v13554_v30  ;;  %v8268_v54 = vcombine.high %v8246_v44, %v8260_v50  ;;  %v8267_v55 = vcombine.low %v8246_v44, %v8260_v50 }
 0x334   : > { %v8296_v11 = vrot.slane %v8264_v60, %v13554_v30  ;;  %v9066_v9 = vadd.f32 %v12353_v40, %v15316_v47  ;;  %v15695_v0 = vrot.slane %v8263_v49, %v13554_v30  ;;  %v6148_v18 = vrot.slane %v6092_v43, %v13554_v30  ;;  %v12354_v35 = vpop.f32.mrb[20].mxu1 }
 0x335   : > { %v8146_v61 = vcombine.low %v8111_v19, %v8139_v6  ;;  %v8147_v51 = vcombine.high %v8111_v19, %v8139_v6  ;;  %v8142_v53 = vcombine.low %v8097_v16, %v8125_v28  ;;  %v8143_v31 = vcombine.high %v8097_v16, %v8125_v28  ;;  %v12448_v15 = vpop.f32.mrb[72].mxu0  ;;  %v12355_v56 = vpop.f32.mrb[21].mxu1 }
 0x336   : > { %9373 = vmatmul.mubr.bf16.gmra.mrb[88].mxu1 %v7957_v5  ;;  %9509 = vmatmul.mubr.bf16.gmra.mrb[140].mxu0 %v7958_v37  ;;  %v8324_v12 = vrot.slane %v8268_v54, %v13554_v30  ;;  %v15700_v20 = vadd.f32 %v12447_v48, %v9066_v9  ;;  %v15703_v29 = vrot.slane %v8267_v55, %v13554_v30  ;;  %v12449_v22 = vpop.f32.mrb[73].mxu0  ;;  %v12357_v33 = vpop.f32.mrb[22].mxu1 }
 0x337   : > { %9380 = vmatprep.mubr.bf16.mxu1 %v8146_v61  ;;  %9516 = vmatprep.mubr.bf16.mxu0 %v8147_v51  ;;  %v4001_v1 = vcombine.high %v17158_v58, %v17158_v58  ;;  %v4008_v5 = vrot.slane %v17158_v58, %v13554_v30  ;;  %v6155_v41 = vcombine.low %v17159_v39, %v6148_v18  ;;  %v12451_v16 = vpop.f32.mrb[74].mxu0  ;;  %v12358_v17 = vpop.f32.mrb[23].mxu1 }
 0x338   : > { %v8331_v37 = vcombine.low %v8296_v11, %v8324_v12  ;;  %v8332_v52 = vcombine.high %v8296_v11, %v8324_v12  ;;  %v8327_v25 = vcombine.low %v15695_v0, %v15703_v29  ;;  %v8328_v2 = vcombine.high %v15695_v0, %v15703_v29  ;;  %v12452_v44 = vpop.f32.mrb[75].mxu0 }
 0x339   : > { %v4015_v27 = vrot.slane %v4001_v1, %v13554_v30  ;;  %v4016_v38 = vcombine.high %v4008_v5, %v4008_v5  ;;  %v4024_v57 = vrot.slane %v4008_v5, %v13554_v30  ;;  %v12356_v21 = vadd.f32 %v12355_v56, %v12354_v35 }
 0x33a   : > { %v12450_v19 = vadd.f32 %v12449_v22, %v12448_v15  ;;  %v4175_v8 = vrot.slane %v14183_v26, %v13554_v30  ;;  %v4168_v62 = vcombine.high %v14183_v26, %v14183_v26  ;;  %v12187_v14 = vcombine.high %v6155_v41, %v17153_v23  ;;  %v17160_v22 = vld [vmem:[#allocation15_spill] sm:$0xff] }
 0x33b   : > { %v4017_v50 = vcombine.high %v4015_v27, %v4015_v27  ;;  %v4031_v60 = vrot.slane %v4015_v27, %v13554_v30  ;;  %v4038_v40 = vrot.slane %v4016_v38, %v13554_v30  ;;  %v9071_v48 = vadd.f32 %v12356_v21, %v15316_v47 }
 0x33c   : > { %v12359_v49 = vadd.f32 %v12358_v17, %v12357_v33  ;;  %v12453_v6 = vadd.f32 %v12452_v44, %v12451_v16  ;;  %v4191_v28 = vrot.slane %v4175_v8, %v13554_v30  ;;  %v8397_v54 = vrot.slane %v12187_v14, %v13554_v30 }
 0x33d   : > { %v4045_v26 = vrot.slane %v4017_v50, %v13554_v30  ;;  %v4047_v23 = vcombine.high %v4031_v60, %v4031_v60  ;;  %v15728_v55 = vadd.f32 %v12450_v19, %v9071_v48  ;;  %v6298_v9 = vcombine.low %v4024_v57, %v4038_v40 }
 0x33e   : > { %9381 = vmatmul.mubr.bf16.gmra.mrb[92].mxu1 %v8142_v53  ;;  %9517 = vmatmul.mubr.bf16.gmra.mrb[144].mxu0 %v8143_v31  ;;  %v9074_v11 = vadd.f32 %v12359_v49, %v15316_v47  ;;  %v8399_v0 = vcombine.high %v8397_v54, %v8397_v54  ;;  %v8413_v34 = vrot.slane %v8397_v54, %v13554_v30 }
 0x33f   : > { %9388 = vmatprep.mubr.bf16.mxu1 %v8331_v37  ;;  %9524 = vmatprep.mubr.bf16.mxu0 %v8332_v52  ;;  %v12091_v43 = vcombine.high %v4024_v57, %v4038_v40  ;;  %v6300_v61 = vcombine.low %v4031_v60, %v4045_v26  ;;  %v6301_v53 = vcombine.low %v4047_v23, %v4191_v28 }
 0x340   : > { %v15732_v51 = vadd.f32 %v12453_v6, %v9074_v11  ;;  %v6308_v31 = vrot.slane %v6298_v9, %v13554_v30  ;;  %v4182_v12 = vrot.slane %v4168_v62, %v13554_v30  ;;  %v8427_v29 = vrot.slane %v8399_v0, %v13554_v30 }
 0x341   : > { %v8429_v18 = vcombine.high %v8413_v34, %v8413_v34  ;;  %v6315_v58 = vrot.slane %v12091_v43, %v13554_v30  ;;  %v6322_v47 = vrot.slane %v6300_v61, %v13554_v30  ;;  %v6329_v1 = vrot.slane %v6301_v53, %v13554_v30 }
 0x342   : > { %v4183_v5 = vcombine.high %v4175_v8, %v4175_v8  ;;  %v4184_v37 = vcombine.high %v4182_v12, %v4182_v12  ;;  %v4198_v52 = vrot.slane %v4182_v12, %v13554_v30  ;;  %v8431_v35 = vcombine.high %v8427_v29, %v8427_v29 }
 0x343   : > { %v6330_v15 = vcombine.low %v6308_v31, %v6315_v58  ;;  %v4213_v56 = vcombine.high %v4191_v28, %v4191_v28  ;;  %v4342_v39 = vrot.slane %v17160_v22, %v13554_v30  ;;  %v6331_v41 = vcombine.low %v6322_v47, %v6329_v1 }
 0x344   : > { %v4205_v27 = vrot.slane %v4183_v5, %v13554_v30  ;;  %v4212_v38 = vrot.slane %v4184_v37, %v13554_v30  ;;  %v4214_v57 = vcombine.high %v4198_v52, %v4198_v52  ;;  %v4335_v44 = vcombine.high %v17160_v22, %v17160_v22 }
 0x345   : > { %v6338_v21 = vrot.slane %v6330_v15, %v13554_v30  ;;  %v4350_v19 = vcombine.high %v4342_v39, %v4342_v39  ;;  %v4358_v33 = vrot.slane %v4342_v39, %v13554_v30  ;;  %v6345_v16 = vrot.slane %v6331_v41, %v13554_v30  ;;  %v17161_v39 = vld [vmem:[#allocation24_spill] sm:$0xff] }
 0x346   : > { %9389 = vmatmul.mubr.bf16.gmra.mrb[96].mxu1 %v8327_v25  ;;  %9525 = vmatmul.mubr.bf16.gmra.mrb[148].mxu0 %v8328_v2  ;;  %v4215_v8 = vcombine.high %v4205_v27, %v4205_v27  ;;  %v6483_v62 = vcombine.low %v4205_v27, %v4213_v56  ;;  %v6485_v17 = vcombine.low %v4212_v38, %v4214_v57 }
 0x347   : > { %9396 = vmatprep.mubr.bf16.mxu1 %v8427_v29  ;;  %9532 = vmatprep.mubr.bf16.mxu0 %v8431_v35  ;;  %v4372_v14 = vrot.slane %v4350_v19, %v13554_v30  ;;  %v4509_v25 = vrot.slane %v17099_v32, %v13554_v30  ;;  %v6346_v2 = vcombine.low %v6338_v21, %v6345_v16 }
 0x348   : > { %v6484_v50 = vcombine.low %v4215_v8, %v4198_v52  ;;  %v6493_v60 = vrot.slane %v6483_v62, %v13554_v30  ;;  %v4502_v40 = vcombine.high %v17099_v32, %v17099_v32  ;;  %v6507_v49 = vrot.slane %v6485_v17, %v13554_v30 }
 0x349   : > { %v6486_v48 = vcombine.low %v4358_v33, %v4372_v14  ;;  %v4349_v6 = vrot.slane %v4335_v44, %v13554_v30  ;;  %v4517_v28 = vcombine.high %v4509_v25, %v4509_v25  ;;  %v4525_v26 = vrot.slane %v4509_v25, %v13554_v30 }
 0x34a   : > { %v6500_v54 = vrot.slane %v6484_v50, %v13554_v30  ;;  %v12108_v23 = vcombine.high %v4358_v33, %v4372_v14  ;;  %v4516_v11 = vrot.slane %v4502_v40, %v13554_v30  ;;  %v4676_v41 = vrot.slane %v17161_v39, %v13554_v30 }
 0x34b   : > { %v6514_v9 = vrot.slane %v6486_v48, %v13554_v30  ;;  %v4351_v0 = vcombine.high %v4349_v6, %v4349_v6  ;;  %v4365_v43 = vrot.slane %v4349_v6, %v13554_v30  ;;  %v4539_v32 = vrot.slane %v4517_v28, %v13554_v30 }
 0x34c   : > { %v6515_v61 = vcombine.low %v6493_v60, %v6500_v54  ;;  %v4547_v53 = vcombine.high %v4525_v26, %v4525_v26  ;;  %v6678_v31 = vrot.slane %v12108_v23, %v13554_v30  ;;  %v4518_v12 = vcombine.high %v4516_v11, %v4516_v11 }
 0x34d   : > { %v6516_v29 = vcombine.low %v6507_v49, %v6514_v9  ;;  %v4379_v58 = vrot.slane %v4351_v0, %v13554_v30  ;;  %v4381_v47 = vcombine.high %v4365_v43, %v4365_v43  ;;  %v4532_v37 = vrot.slane %v4516_v11, %v13554_v30 }
 0x34e   : > { %9397 = vmatmul.mubr.bf16.gmra.mrb[100].mxu1 %v8413_v34  ;;  %9533 = vmatmul.mubr.bf16.gmra.mrb[152].mxu0 %v8429_v18  ;;  %v6523_v1 = vrot.slane %v6515_v61, %v13554_v30  ;;  %v6671_v5 = vcombine.low %v4539_v32, %v4547_v53  ;;  %v4546_v18 = vrot.slane %v4518_v12, %v13554_v30 }
 0x34f   : > { %12779 = vmatprep.mubr.msk.bf16.mxu0 %vm13237_vm1, %v17104_v13  ;;  %12783 = vmatprep.mubr.msk.bf16.mxu1 %vm13237_vm1, %v17104_v13  ;;  %v6530_v52 = vrot.slane %v6516_v29, %v13554_v30  ;;  %v6669_v35 = vcombine.low %v4365_v43, %v4379_v58  ;;  %v6670_v34 = vcombine.low %v4381_v47, %v4525_v26 }
 0x350   : > { %v6699_v15 = vrot.slane %v6671_v5, %v13554_v30  ;;  %v4548_v56 = vcombine.high %v4532_v37, %v4532_v37  ;;  %v4549_v22 = vcombine.high %v4539_v32, %v4539_v32  ;;  %v4669_v21 = vcombine.high %v17161_v39, %v17161_v39 }
 0x351   : > { %v6531_v27 = vcombine.low %v6523_v1, %v6530_v52  ;;  %v6685_v38 = vrot.slane %v6669_v35, %v13554_v30  ;;  %v6692_v57 = vrot.slane %v6670_v34, %v13554_v30  ;;  %v4684_v19 = vcombine.high %v4676_v41, %v4676_v41 }
 0x352   : > { %v4692_v33 = vrot.slane %v4676_v41, %v13554_v30  ;;  %v6853_v16 = vcombine.low %v4549_v22, %v4532_v37  ;;  %v6854_v8 = vcombine.low %v4546_v18, %v4548_v56  ;;  %v4683_v17 = vrot.slane %v4669_v21, %v13554_v30 }
 0x353   : > { %v6700_v62 = vcombine.low %v6678_v31, %v6685_v38  ;;  %v6701_v14 = vcombine.low %v6692_v57, %v6699_v15  ;;  %v4836_v44 = vcombine.high %v17118_v63, %v17118_v63  ;;  %v4706_v25 = vrot.slane %v4684_v19, %v13554_v30 }
 0x354   : > { %v6863_v50 = vrot.slane %v6853_v16, %v13554_v30  ;;  %v6870_v60 = vrot.slane %v6854_v8, %v13554_v30  ;;  %v4843_v40 = vrot.slane %v17118_v63, %v13554_v30  ;;  %v4685_v49 = vcombine.high %v4683_v17, %v4683_v17 }
 0x355   : > { %v6715_v48 = vrot.slane %v6701_v14, %v13554_v30  ;;  %v6708_v6 = vrot.slane %v6700_v62, %v13554_v30  ;;  %v6855_v28 = vcombine.low %v4692_v33, %v4706_v25  ;;  %v12117_v54 = vcombine.high %v4692_v33, %v4706_v25  ;;  %v12454_v0 = vpop.f32.mrb[76].mxu0 }
 0x356   : > { %12780 = vmatmul.mubr.bf16.vlgmr.msra.gmra.mrb[156].mxu0 %v6346_v2  ;;  %12784 = vmatmul.mubr.bf16.vlgmr.msra.gmra.mrb[104].mxu1 %v6531_v27  ;;  %v4699_v26 = vrot.slane %v4683_v17, %v13554_v30  ;;  %v4713_v23 = vrot.slane %v4685_v49, %v13554_v30  ;;  %v4850_v11 = vrot.slane %v4836_v44, %v13554_v30  ;;  %v12360_v2 = vpop.f32.mrb[24].mxu1  ;;  %v12455_v31 = vpop.f32.mrb[77].mxu0  ;;  %v15805_v27 = vld [vmem:[%s16871_s4] ss:$0 sm:$0xff] }
 0x357   : > { %12787 = vmatprep.mubr.msk.bf16.mxu1 %vm13237_vm1, %v17104_v13  ;;  %v4851_v9 = vcombine.high %v4843_v40, %v4843_v40  ;;  %v6716_v63 = vcombine.low %v6708_v6, %v6715_v48  ;;  %v6877_v43 = vrot.slane %v6855_v28, %v13554_v30  ;;  %v6884_v32 = vrot.slane %v12117_v54, %v13554_v30  ;;  %v12361_v53 = vpop.f32.mrb[25].mxu1  ;;  %v12457_v52 = vpop.f32.mrb[78].mxu0 }
 0x358   : > { %v6885_v61 = vcombine.low %v6863_v50, %v6870_v60  ;;  %v4715_v12 = vcombine.high %v4699_v26, %v4699_v26  ;;  %v4859_v29 = vrot.slane %v4843_v40, %v13554_v30  ;;  %v4866_v58 = vrot.slane %v4850_v11, %v13554_v30  ;;  %v12363_v37 = vpop.f32.mrb[26].mxu1  ;;  %v12458_v15 = vpop.f32.mrb[79].mxu0  ;;  %v17162_v60 = vld [vmem:[#allocation37_spill] sm:$0xff] }
 0x359   : > { %v4873_v47 = vrot.slane %v4851_v9, %v13554_v30  ;;  %v12362_v1 = vadd.f32 %v12361_v53, %v12360_v2  ;;  %v12456_v5 = vadd.f32 %v12455_v31, %v12454_v0  ;;  %v6886_v35 = vcombine.low %v6877_v43, %v6884_v32  ;;  %v12364_v18 = vpop.f32.mrb[27].mxu1 }
 0x35a   : > { %v7038_v34 = vcombine.low %v4699_v26, %v4713_v23  ;;  %v4881_v56 = vcombine.high %v4859_v29, %v4859_v29  ;;  %v7039_v39 = vcombine.low %v4715_v12, %v4859_v29  ;;  %v4852_v41 = vcombine.high %v4850_v11, %v4850_v11 }
 0x35b   : > { %v4883_v22 = vcombine.high %v4873_v47, %v4873_v47  ;;  %v9079_v38 = vadd.f32 %v15805_v27, %v12362_v1  ;;  %v12365_v57 = vadd.f32 %v12364_v18, %v12363_v37  ;;  %v12459_v21 = vadd.f32 %v12458_v15, %v12457_v52 }
 0x35c   : > { %v7040_v19 = vcombine.low %v4873_v47, %v4881_v56  ;;  %v7055_v16 = vrot.slane %v7039_v39, %v13554_v30  ;;  %v6893_v14 = vrot.slane %v6885_v61, %v13554_v30  ;;  %v6900_v17 = vrot.slane %v6886_v35, %v13554_v30 }
 0x35d   : > { %v7041_v33 = vcombine.low %v4883_v22, %v4866_v58  ;;  %v15809_v8 = vadd.f32 %v12456_v5, %v9079_v38  ;;  %v9082_v62 = vadd.f32 %v15805_v27, %v12365_v57  ;;  %v7048_v44 = vrot.slane %v7038_v34, %v13554_v30  ;;  %v17163_v57 = vld [vmem:[#allocation51_spill] sm:$0xff] }
 0x35e   : > { %12788 = vmatmul.mubr.bf16.gmra.mrb[108].mxu1 %v6716_v63  ;;  %v4880_v50 = vrot.slane %v4852_v41, %v13554_v30  ;;  %v5003_v40 = vcombine.high %v17162_v60, %v17162_v60  ;;  %v7062_v49 = vrot.slane %v7040_v19, %v13554_v30  ;;  %v5010_v6 = vrot.slane %v17162_v60, %v13554_v30 }
 0x35f   : > { %12791 = vmatprep.mubr.msk.bf16.mxu1 %vm13237_vm1, %v17104_v13  ;;  %v7069_v25 = vrot.slane %v7041_v33, %v13554_v30  ;;  %v15821_v48 = vadd.f32 %v12459_v21, %v9082_v62  ;;  %v5170_v28 = vcombine.high %v17133_v24, %v17133_v24  ;;  %v7070_v54 = vcombine.low %v7048_v44, %v7055_v16 }
 0x360   : > { %v4882_v26 = vcombine.high %v4866_v58, %v4866_v58  ;;  %v5017_v23 = vrot.slane %v5003_v40, %v13554_v30  ;;  %v5177_v11 = vrot.slane %v17133_v24, %v13554_v30  ;;  %v6901_v9 = vcombine.low %v6893_v14, %v6900_v17 }
 0x361   : > { %v7071_v63 = vcombine.low %v7062_v49, %v7069_v25  ;;  %v5018_v2 = vcombine.high %v5010_v6, %v5010_v6  ;;  %v5184_v0 = vrot.slane %v5170_v28, %v13554_v30  ;;  %v5026_v32 = vrot.slane %v5010_v6, %v13554_v30 }
 0x362   : > { %v5019_v43 = vcombine.high %v5017_v23, %v5017_v23  ;;  %v5033_v61 = vrot.slane %v5017_v23, %v13554_v30  ;;  %v5185_v53 = vcombine.high %v5177_v11, %v5177_v11  ;;  %v5193_v29 = vrot.slane %v5177_v11, %v13554_v30 }
 0x363   : > { %v5040_v31 = vrot.slane %v5018_v2, %v13554_v30  ;;  %v5186_v12 = vcombine.high %v5184_v0, %v5184_v0  ;;  %v5200_v58 = vrot.slane %v5184_v0, %v13554_v30  ;;  %v7078_v24 = vrot.slane %v7070_v54, %v13554_v30 }
 0x364   : > { %v5047_v47 = vrot.slane %v5019_v43, %v13554_v30  ;;  %v7223_v1 = vcombine.low %v4880_v50, %v4882_v26  ;;  %v5207_v5 = vrot.slane %v5185_v53, %v13554_v30  ;;  %v5215_v34 = vcombine.high %v5193_v29, %v5193_v29 }
 0x365   : > { %v7224_v37 = vcombine.low %v5026_v32, %v5040_v31  ;;  %v12134_v52 = vcombine.high %v5026_v32, %v5040_v31  ;;  %v5214_v35 = vrot.slane %v5186_v12, %v13554_v30  ;;  %v7085_v18 = vrot.slane %v7071_v63, %v13554_v30 }
 0x366   : > { %12792 = vmatmul.mubr.bf16.gmra.mrb[112].mxu1 %v6901_v9  ;;  %v7226_v15 = vcombine.low %v5033_v61, %v5047_v47  ;;  %v5216_v56 = vcombine.high %v5200_v58, %v5200_v58  ;;  %v5217_v22 = vcombine.high %v5207_v5, %v5207_v5  ;;  %v5049_v41 = vcombine.high %v5033_v61, %v5033_v61 }
 0x367   : > { %12795 = vmatprep.mubr.msk.bf16.mxu1 %vm13237_vm1, %v17104_v13  ;;  %v7240_v39 = vrot.slane %v7224_v37, %v13554_v30  ;;  %v7409_v38 = vcombine.low %v5207_v5, %v5215_v34  ;;  %v5337_v21 = vcombine.high %v17163_v57, %v17163_v57  ;;  %v7247_v19 = vrot.slane %v12134_v52, %v13554_v30 }
 0x368   : > { %v7254_v33 = vrot.slane %v7226_v15, %v13554_v30  ;;  %v7410_v16 = vcombine.low %v5217_v22, %v5200_v58  ;;  %v7411_v62 = vcombine.low %v5214_v35, %v5216_v56  ;;  %v7233_v14 = vrot.slane %v7223_v1, %v13554_v30 }
 0x369   : > { %v7408_v17 = vcombine.low %v5049_v41, %v5193_v29  ;;  %v5344_v44 = vrot.slane %v17163_v57, %v13554_v30  ;;  %v5351_v25 = vrot.slane %v5337_v21, %v13554_v30  ;;  %v7086_v50 = vcombine.low %v7078_v24, %v7085_v18 }
 0x36a   : > { %v7256_v60 = vcombine.low %v7247_v19, %v7254_v33  ;;  %v5511_v40 = vrot.slane %v14861_v42, %v13554_v30  ;;  %v7255_v49 = vcombine.low %v7233_v14, %v7240_v39  ;;  %v7425_v6 = vrot.slane %v7409_v38, %v13554_v30 }
 0x36b   : > { %v5353_v28 = vcombine.high %v5351_v25, %v5351_v25  ;;  %v7432_v54 = vrot.slane %v7410_v16, %v13554_v30  ;;  %v7439_v26 = vrot.slane %v7411_v62, %v13554_v30  ;;  %v5352_v23 = vcombine.high %v5344_v44, %v5344_v44 }
 0x36c   : > { %v5367_v11 = vrot.slane %v5351_v25, %v13554_v30  ;;  %v7270_v9 = vrot.slane %v7256_v60, %v13554_v30  ;;  %v7418_v63 = vrot.slane %v7408_v17, %v13554_v30  ;;  %v15864_v2 = vrot.slane %v5511_v40, %v13554_v30  ;;  %v12366_v0 = vpop.f32.mrb[28].mxu1 }
 0x36d   : > { %v12460_v43 = vpop.f32.mrb[80].mxu0  ;;  %v5381_v32 = vrot.slane %v5353_v28, %v13554_v30  ;;  %v5504_v61 = vcombine.high %v14861_v42, %v14861_v42  ;;  %v12367_v53 = vpop.f32.mrb[29].mxu1  ;;  %v7263_v12 = vrot.slane %v7255_v49, %v13554_v30  ;;  %v5519_v24 = vcombine.high %v5511_v40, %v5511_v40 }
 0x36e   : > { %12796 = vmatmul.mubr.bf16.gmra.mrb[116].mxu1 %v7086_v50  ;;  %v12461_v31 = vpop.f32.mrb[81].mxu0  ;;  %v7440_v29 = vcombine.low %v7418_v63, %v7425_v6  ;;  %v5383_v58 = vcombine.high %v5367_v11, %v5367_v11  ;;  %v12368_v47 = vadd.f32 %v12367_v53, %v12366_v0  ;;  %v12369_v5 = vpop.f32.mrb[30].mxu1  ;;  %v7441_v52 = vcombine.low %v7432_v54, %v7439_v26  ;;  %v17164_v6 = vld [vmem:[#allocation64_spill] sm:$0xff] }
 0x36f   : > { %12799 = vmatprep.mubr.msk.bf16.mxu1 %vm13237_vm1, %v17104_v13  ;;  %v12462_v1 = vadd.f32 %v12461_v31, %v12460_v43  ;;  %v12463_v37 = vpop.f32.mrb[82].mxu0  ;;  %v5374_v35 = vrot.slane %v5352_v23, %v13554_v30  ;;  %v12370_v34 = vpop.f32.mrb[31].mxu1  ;;  %v7271_v15 = vcombine.low %v7263_v12, %v7270_v9  ;;  %v5360_v56 = vrot.slane %v5344_v44, %v13554_v30 }
 0x370   : > { %v12464_v18 = vpop.f32.mrb[83].mxu0  ;;  %v7596_v42 = vcombine.low %v5383_v58, %v15864_v2  ;;  %v5518_v22 = vrot.slane %v5504_v61, %v13554_v30  ;;  %v9087_v39 = vadd.f32 %v15805_v27, %v12368_v47  ;;  %v12371_v41 = vadd.f32 %v12370_v34, %v12369_v5 }
 0x371   : > { %v12465_v38 = vadd.f32 %v12464_v18, %v12463_v37  ;;  %v7595_v57 = vcombine.low %v5367_v11, %v5381_v32  ;;  %v5541_v33 = vrot.slane %v5519_v24, %v13554_v30  ;;  %v7593_v14 = vcombine.low %v5360_v56, %v5374_v35 }
 0x372   : > { %v5520_v21 = vcombine.high %v5518_v22, %v5518_v22  ;;  %v5534_v19 = vrot.slane %v5518_v22, %v13554_v30  ;;  %v15877_v16 = vadd.f32 %v12462_v1, %v9087_v39  ;;  %v9090_v62 = vadd.f32 %v15805_v27, %v12371_v41 }
 0x373   : > { %v12151_v17 = vcombine.high %v5360_v56, %v5374_v35  ;;  %v7448_v44 = vrot.slane %v7440_v29, %v13554_v30  ;;  %v7455_v25 = vrot.slane %v7441_v52, %v13554_v30  ;;  %v7624_v50 = vrot.slane %v7596_v42, %v13554_v30 }
 0x374   : > { %v15885_v60 = vadd.f32 %v12465_v38, %v9090_v62  ;;  %v7617_v40 = vrot.slane %v7595_v57, %v13554_v30  ;;  %v5551_v49 = vcombine.high %v5541_v33, %v5541_v33  ;;  %v5678_v28 = vrot.slane %v17164_v6, %v13554_v30 }
 0x375   : > { %v5548_v54 = vrot.slane %v5520_v21, %v13554_v30  ;;  %v5550_v26 = vcombine.high %v5534_v19, %v5534_v19  ;;  %v5671_v23 = vcombine.high %v17164_v6, %v17164_v6  ;;  %v5845_v11 = vrot.slane %v15102_v59, %v13554_v30 }
 0x376   : > { %12800 = vmatmul.mubr.bf16.gmra.mrb[120].mxu1 %v7271_v15  ;;  %v7603_v9 = vrot.slane %v7593_v14, %v13554_v30  ;;  %v7610_v63 = vrot.slane %v12151_v17, %v13554_v30  ;;  %v5549_v0 = vcombine.high %v15864_v2, %v15864_v2  ;;  %v5686_v43 = vcombine.high %v5678_v28, %v5678_v28  ;;  %v17165_v15 = vld [vmem:[#allocation74_spill] sm:$0xff] }
 0x377   : > { %12803 = vmatprep.mubr.msk.bf16.mxu1 %vm13237_vm1, %v17104_v13  ;;  %v7456_v32 = vcombine.low %v7448_v44, %v7455_v25  ;;  %v7626_v61 = vcombine.low %v7617_v40, %v7624_v50  ;;  %v5685_v53 = vrot.slane %v5671_v23, %v13554_v30  ;;  %v5853_v31 = vcombine.high %v5845_v11, %v5845_v11 }
 0x378   : > { %v5694_v12 = vrot.slane %v5678_v28, %v13554_v30  ;;  %v5708_v29 = vrot.slane %v5686_v43, %v13554_v30  ;;  %v7779_v58 = vcombine.low %v5551_v49, %v5534_v19  ;;  %v5861_v24 = vrot.slane %v5845_v11, %v13554_v30 }
 0x379   : > { %v7780_v47 = vcombine.low %v5548_v54, %v5550_v26  ;;  %v5687_v1 = vcombine.high %v5685_v53, %v5685_v53  ;;  %v7625_v5 = vcombine.low %v7603_v9, %v7610_v63  ;;  %v7778_v37 = vcombine.low %v5541_v33, %v5549_v0 }
 0x37a   : > { %v7781_v52 = vcombine.low %v5694_v12, %v5708_v29  ;;  %v5838_v2 = vcombine.high %v15102_v59, %v15102_v59  ;;  %v5701_v35 = vrot.slane %v5685_v53, %v13554_v30  ;;  %v5875_v34 = vrot.slane %v5853_v31, %v13554_v30 }
 0x37b   : > { %v5883_v18 = vcombine.high %v5861_v24, %v5861_v24  ;;  %v6012_v56 = vrot.slane %v17165_v15, %v13554_v30  ;;  %v7640_v42 = vrot.slane %v7626_v61, %v13554_v30  ;;  %v7795_v22 = vrot.slane %v7779_v58, %v13554_v30 }
 0x37c   : > { %v7809_v39 = vrot.slane %v7781_v52, %v13554_v30  ;;  %v7802_v41 = vrot.slane %v7780_v47, %v13554_v30  ;;  %v5715_v59 = vrot.slane %v5687_v1, %v13554_v30  ;;  %v7633_v38 = vrot.slane %v7625_v5, %v13554_v30 }
 0x37d   : > { %v7788_v57 = vrot.slane %v7778_v37, %v13554_v30  ;;  %v5852_v21 = vrot.slane %v5838_v2, %v13554_v30  ;;  %v5717_v33 = vcombine.high %v5701_v35, %v5701_v35  ;;  %v7966_v62 = vcombine.low %v5875_v34, %v5883_v18 }
 0x37e   : > { %12804 = vmatmul.mubr.bf16.gmra.mrb[124].mxu1 %v7456_v32  ;;  %v7811_v19 = vcombine.low %v7802_v41, %v7809_v39  ;;  %v6020_v14 = vcombine.high %v6012_v56, %v6012_v56  ;;  %v7641_v17 = vcombine.low %v7633_v38, %v7640_v42  ;;  %v6005_v25 = vcombine.high %v17165_v15, %v17165_v15 }
 0x37f   : > { %12807 = vmatprep.mubr.msk.bf16.mxu1 %vm13237_vm1, %v17104_v13  ;;  %v7810_v44 = vcombine.low %v7788_v57, %v7795_v22  ;;  %v7964_v50 = vcombine.low %v5701_v35, %v5715_v59  ;;  %v7965_v40 = vcombine.low %v5717_v33, %v5861_v24  ;;  %v12168_v49 = vcombine.high %v5694_v12, %v5708_v29 }
 0x380   : > { %v5854_v6 = vcombine.high %v5852_v21, %v5852_v21  ;;  %v5868_v28 = vrot.slane %v5852_v21, %v13554_v30  ;;  %v7825_v54 = vrot.slane %v7811_v19, %v13554_v30  ;;  %v7994_v26 = vrot.slane %v7966_v62, %v13554_v30 }
 0x381   : > { %v6042_v23 = vrot.slane %v6020_v14, %v13554_v30  ;;  %v7818_v11 = vrot.slane %v7810_v44, %v13554_v30  ;;  %v6019_v9 = vrot.slane %v6005_v25, %v13554_v30  ;;  %v7980_v63 = vrot.slane %v7964_v50, %v13554_v30 }
 0x382   : > { %v7987_v0 = vrot.slane %v7965_v40, %v13554_v30  ;;  %v5885_v43 = vcombine.high %v5875_v34, %v5875_v34  ;;  %v15932_v32 = vrot.slane %v6012_v56, %v13554_v30  ;;  %v7973_v31 = vrot.slane %v12168_v49, %v13554_v30 }
 0x383   : > { %v5882_v12 = vrot.slane %v5854_v6, %v13554_v30  ;;  %v5884_v29 = vcombine.high %v5868_v28, %v5868_v28  ;;  %v7826_v47 = vcombine.low %v7818_v11, %v7825_v54  ;;  %v6021_v18 = vcombine.high %v6019_v9, %v6019_v9 }
 0x384   : > { %v7996_v1 = vcombine.low %v7987_v0, %v7994_v26  ;;  %v8150_v5 = vcombine.low %v15932_v32, %v6042_v23  ;;  %v12177_v37 = vcombine.high %v15932_v32, %v6042_v23  ;;  %v6035_v15 = vrot.slane %v6019_v9, %v13554_v30 }
 0x385   : > { %v7995_v22 = vcombine.low %v7973_v31, %v7980_v63  ;;  %v8148_v39 = vcombine.low %v5885_v43, %v5868_v28  ;;  %v8149_v57 = vcombine.low %v5882_v12, %v5884_v29  ;;  %v6052_v62 = vcombine.high %v6042_v23, %v6042_v23 }
 0x386   : > { %12808 = vmatmul.mubr.bf16.gmra.mrb[128].mxu1 %v7641_v17  ;;  %v8010_v21 = vrot.slane %v7996_v1, %v13554_v30  ;;  %v8172_v19 = vrot.slane %v8150_v5, %v13554_v30  ;;  %v8179_v33 = vrot.slane %v12177_v37, %v13554_v30  ;;  %v15949_v44 = vrot.slane %v6021_v18, %v13554_v30 }
 0x387   : > { %12811 = vmatprep.mubr.msk.bf16.mxu1 %vm13237_vm1, %v17104_v13  ;;  %v12372_v61 = vpop.f32.mrb[32].mxu1  ;;  %v12466_v53 = vpop.f32.mrb[84].mxu0  ;;  %v15951_v25 = vcombine.high %v6035_v15, %v6035_v15  ;;  %v8003_v50 = vrot.slane %v7995_v22, %v13554_v30  ;;  %v8158_v49 = vrot.slane %v8148_v39, %v13554_v30  ;;  %v8165_v6 = vrot.slane %v8149_v57, %v13554_v30 }
 0x388   : > { %v12373_v58 = vpop.f32.mrb[33].mxu1  ;;  %v12467_v24 = vpop.f32.mrb[85].mxu0  ;;  %v6050_v28 = vcombine.high %v15932_v32, %v15932_v32  ;;  %v8181_v26 = vcombine.low %v8172_v19, %v8179_v33  ;;  %v8333_v11 = vcombine.low %v6035_v15, %v15949_v44  ;;  %v8336_v63 = vcombine.low %v6052_v62, %v6035_v15 }
 0x389   : > { %v12374_v52 = vadd.f32 %v12373_v58, %v12372_v61  ;;  %v12468_v2 = vadd.f32 %v12467_v24, %v12466_v53  ;;  %v12375_v35 = vpop.f32.mrb[34].mxu1  ;;  %v12469_v34 = vpop.f32.mrb[86].mxu0  ;;  %v8011_v54 = vcombine.low %v8003_v50, %v8010_v21  ;;  %v8334_v9 = vcombine.low %v15951_v25, %v15932_v32 }
 0x38a   : > { %v12376_v56 = vpop.f32.mrb[35].mxu1  ;;  %v12470_v42 = vpop.f32.mrb[87].mxu0  ;;  %v8180_v61 = vcombine.low %v8158_v49, %v8165_v6  ;;  %v8335_v12 = vcombine.low %v6042_v23, %v6050_v28  ;;  %v8195_v1 = vrot.slane %v8181_v26, %v13554_v30  ;;  %v8343_v32 = vrot.slane %v8333_v11, %v13554_v30 }
 0x38b   : > { %v9095_v41 = vadd.f32 %v15805_v27, %v12374_v52  ;;  %v12377_v59 = vadd.f32 %v12376_v56, %v12375_v35  ;;  %v12471_v38 = vadd.f32 %v12470_v42, %v12469_v34  ;;  %v8350_v52 = vrot.slane %v8334_v9, %v13554_v30 }
 0x38c   : > { %v8188_v18 = vrot.slane %v8180_v61, %v13554_v30  ;;  %v8357_v15 = vrot.slane %v8335_v12, %v13554_v30  ;;  %v8432_v61 = vcombine.low %v15949_v44, %v15951_v25 }
 0x38d   : > { %v15945_v14 = vadd.f32 %v12468_v2, %v9095_v41  ;;  %v9098_v17 = vadd.f32 %v15805_v27, %v12377_v59  ;;  %v8364_v2 = vrot.slane %v8336_v63, %v13554_v30  ;;  %v8365_v39 = vcombine.low %v8343_v32, %v8350_v52 }
 0x38e   : > { %12812 = vmatmul.mubr.bf16.gmra.mrb[132].mxu1 %v7826_v47  ;;  %v8196_v22 = vcombine.low %v8188_v18, %v8195_v1 }
 0x38f   : > { %12815 = vmatprep.mubr.msk.bf16.mxu1 %vm13237_vm1, %v17104_v13  ;;  %v15954_v40 = vadd.f32 %v12471_v38, %v9098_v17  ;;  %v8366_v41 = vcombine.low %v8357_v15, %v8364_v2  ;;  %v8373_v33 = vrot.slane %v8365_v39, %v13554_v30 }
 0x391   : > { %v8380_v62 = vrot.slane %v8366_v41, %v13554_v30 }
 0x392   : > { %v12378_v0 = vpop.f32.mrb[36].mxu1  ;;  %v12472_v43 = vpop.f32.mrb[88].mxu0 }
 0x393   : > { %v12379_v53 = vpop.f32.mrb[37].mxu1  ;;  %v12473_v31 = vpop.f32.mrb[89].mxu0  ;;  %v8381_v63 = vcombine.low %v8373_v33, %v8380_v62 }
 0x394   : > { %v12380_v29 = vadd.f32 %v12379_v53, %v12378_v0  ;;  %v12474_v58 = vadd.f32 %v12473_v31, %v12472_v43  ;;  %v12381_v24 = vpop.f32.mrb[38].mxu1  ;;  %v12475_v47 = vpop.f32.mrb[90].mxu0  ;;  %v8439_v31 = vrot.slane %v8432_v61, %v13554_v30 }
 0x395   : > { %v12382_v5 = vpop.f32.mrb[39].mxu1  ;;  %v12476_v37 = vpop.f32.mrb[91].mxu0 }
 0x396   : > { %12816 = vmatmul.mubr.bf16.gmra.mrb[136].mxu1 %v8011_v54  ;;  %v9103_v35 = vadd.f32 %v15805_v27, %v12380_v29  ;;  %v12383_v23 = vadd.f32 %v12382_v5, %v12381_v24  ;;  %v12477_v34 = vadd.f32 %v12476_v37, %v12475_v47  ;;  %v8446_v12 = vrot.slane %v8439_v31, %v13554_v30 }
 0x397   : > { %12819 = vmatprep.mubr.msk.bf16.mxu1 %vm13237_vm1, %v17104_v13 }
 0x398   : > { %v15972_v56 = vadd.f32 %v12474_v58, %v9103_v35  ;;  %v9106_v42 = vadd.f32 %v15805_v27, %v12383_v23 }
 0x39a   : > { %v15975_v59 = vadd.f32 %v12477_v34, %v9106_v42 }
 0x39c   : > { %v12384_v38 = vpop.f32.mrb[40].mxu1  ;;  %v12478_v57 = vpop.f32.mrb[92].mxu0 }
 0x39d   : > { %v12385_v21 = vpop.f32.mrb[41].mxu1  ;;  %v12479_v19 = vpop.f32.mrb[93].mxu0 }
 0x39e   : > { %12820 = vmatmul.mubr.bf16.gmra.mrb[140].mxu1 %v8196_v22  ;;  %v12386_v17 = vadd.f32 %v12385_v21, %v12384_v38  ;;  %v12480_v50 = vadd.f32 %v12479_v19, %v12478_v57  ;;  %v12387_v49 = vpop.f32.mrb[42].mxu1  ;;  %v12481_v6 = vpop.f32.mrb[94].mxu0 }
 0x39f   : > { %12823 = vmatprep.mubr.msk.bf16.mxu1 %vm13237_vm1, %v17104_v13  ;;  %v12388_v28 = vpop.f32.mrb[43].mxu1  ;;  %v12482_v54 = vpop.f32.mrb[95].mxu0 }
 0x3a0   : > { %v9111_v26 = vadd.f32 %v15805_v27, %v12386_v17  ;;  %v12389_v11 = vadd.f32 %v12388_v28, %v12387_v49  ;;  %v12483_v9 = vadd.f32 %v12482_v54, %v12481_v6 }
 0x3a2   : > { %v15982_v0 = vadd.f32 %v12480_v50, %v9111_v26  ;;  %v9114_v43 = vadd.f32 %v15805_v27, %v12389_v11 }
 0x3a4   : > { %v15987_v53 = vadd.f32 %v12483_v9, %v9114_v43 }
 0x3a6   : > { %12824 = vmatmul.mubr.bf16.gmra.mrb[144].mxu1 %v8381_v63 }
 0x3a7   : > { %12827 = vmatprep.mubr.msk.bf16.mxu1 %vm13237_vm1, %v17104_v13 }
 0x3ae   : > { %12828 = vmatmul.mubr.bf16.gmra.mrb[148].mxu1 %v8446_v12 }
 0x3af   : > { %v12390_v29 = vpop.f32.mrb[44].mxu1  ;;  %v12484_v58 = vpop.f32.mrb[96].mxu0 }
 0x3b0   : > { %v12391_v24 = vpop.f32.mrb[45].mxu1  ;;  %v12485_v47 = vpop.f32.mrb[97].mxu0 }
 0x3b1   : > { %v12392_v1 = vadd.f32 %v12391_v24, %v12390_v29  ;;  %v12486_v5 = vadd.f32 %v12485_v47, %v12484_v58  ;;  %v12393_v37 = vpop.f32.mrb[46].mxu1  ;;  %v12487_v32 = vpop.f32.mrb[98].mxu0 }
 0x3b2   : > { %v12394_v44 = vpop.f32.mrb[47].mxu1  ;;  %v12488_v25 = vpop.f32.mrb[99].mxu0 }
 0x3b3   : > { %v9119_v52 = vadd.f32 %v15805_v27, %v12392_v1  ;;  %v12395_v2 = vadd.f32 %v12394_v44, %v12393_v37  ;;  %v12489_v35 = vadd.f32 %v12488_v25, %v12487_v32 }
 0x3b5   : > { %v15994_v13 = vadd.f32 %v12486_v5, %v9119_v52  ;;  %v9122_v23 = vadd.f32 %v15805_v27, %v12395_v2  ;;  %v17166_v2 = vld [vmem:[#allocation25_spill] sm:$0xff] }
 0x3b7   : > { %v15997_v34 = vadd.f32 %v12489_v35, %v9122_v23  ;;  %v12396_v18 = vpop.f32.mrb[48].mxu1  ;;  %v12490_v15 = vpop.f32.mrb[100].mxu0 }
 0x3b8   : > { %v12397_v42 = vpop.f32.mrb[49].mxu1  ;;  %v12491_v22 = vpop.f32.mrb[101].mxu0 }
 0x3b9   : > { %v12398_v39 = vadd.f32 %v12397_v42, %v12396_v18  ;;  %v12492_v41 = vadd.f32 %v12491_v22, %v12490_v15  ;;  %v12399_v38 = vpop.f32.mrb[50].mxu1  ;;  %v12493_v57 = vpop.f32.mrb[102].mxu0  ;;  %v17167_v18 = vld [vmem:[#allocation18_spill] sm:$0xff] }
 0x3ba   : > { %v12400_v21 = vpop.f32.mrb[51].mxu1  ;;  %v12494_v19 = vpop.f32.mrb[103].mxu0 }
 0x3bb   : > { %v9127_v33 = vadd.f32 %v15805_v27, %v12398_v39 }
 0x3bd   : > { %v16000_v62 = vadd.f32 %v12492_v41, %v9127_v33 }
 0x3bf   : > { %v12512_v17 = vpop.f32.mrb[52].mxu1 }
 0x3c0   : > { %v12513_v49 = vpop.f32.mrb[53].mxu1 }
 0x3c1   : > { %v12606_v50 = vpop.f32.mrb[104].mxu0  ;;  %v12514_v28 = vadd.f32 %v12513_v49, %v12512_v17  ;;  %v12515_v26 = vpop.f32.mrb[54].mxu1 }
 0x3c2   : > { %v12607_v6 = vpop.f32.mrb[105].mxu0  ;;  %v12516_v9 = vpop.f32.mrb[55].mxu1 }
 0x3c3   : > { %v12608_v54 = vadd.f32 %v12607_v6, %v12606_v50  ;;  %v12609_v11 = vpop.f32.mrb[106].mxu0  ;;  %v9303_v43 = vadd.f32 %v12514_v28, %v15331_v45  ;;  %v12517_v61 = vadd.f32 %v12516_v9, %v12515_v26 }
 0x3c4   : > { %v12610_v63 = vpop.f32.mrb[107].mxu0 }
 0x3c5   : > { %v12611_v31 = vadd.f32 %v12610_v63, %v12609_v11  ;;  %v9306_v12 = vadd.f32 %v12517_v61, %v15340_v36  ;;  %v16004_v29 = vadd.f32 %v12608_v54, %v9303_v43 }
 0x3c7   : > { %v12518_v27 = vpop.f32.mrb[56].mxu1  ;;  %v16006_v24 = vadd.f32 %v12611_v31, %v9306_v12 }
 0x3c8   : > { %v12519_v47 = vpop.f32.mrb[57].mxu1 }
 0x3c9   : > { %v12612_v58 = vpop.f32.mrb[108].mxu0  ;;  %v12520_v5 = vadd.f32 %v12519_v47, %v12518_v27  ;;  %v12521_v32 = vpop.f32.mrb[58].mxu1 }
 0x3ca   : > { %v12613_v1 = vpop.f32.mrb[109].mxu0  ;;  %v12522_v25 = vpop.f32.mrb[59].mxu1 }
 0x3cb   : > { %v12614_v37 = vadd.f32 %v12613_v1, %v12612_v58  ;;  %v12615_v44 = vpop.f32.mrb[110].mxu0  ;;  %v9311_v45 = vadd.f32 %v12520_v5, %v17166_v2  ;;  %v12523_v35 = vadd.f32 %v12522_v25, %v12521_v32 }
 0x3cc   : > { %v12616_v52 = vpop.f32.mrb[111].mxu0 }
 0x3cd   : > { %v12617_v23 = vadd.f32 %v12616_v52, %v12615_v44  ;;  %v9314_v36 = vadd.f32 %v12523_v35, %v17167_v18  ;;  %v16010_v15 = vadd.f32 %v12614_v37, %v9311_v45 }
 0x3cf   : > { %v16012_v39 = vadd.f32 %v12617_v23, %v9314_v36 }
 0x3d1   : > { %v12524_v42 = vpop.f32.mrb[60].mxu1  ;;  %v12618_v22 = vpop.f32.mrb[112].mxu0 }
 0x3d2   : > { %v12525_v41 = vpop.f32.mrb[61].mxu1  ;;  %v12619_v38 = vpop.f32.mrb[113].mxu0 }
 0x3d3   : > { %v12526_v57 = vadd.f32 %v12525_v41, %v12524_v42  ;;  %v12620_v21 = vadd.f32 %v12619_v38, %v12618_v22  ;;  %v12527_v19 = vpop.f32.mrb[62].mxu1  ;;  %v12621_v33 = vpop.f32.mrb[114].mxu0 }
 0x3d4   : > { %v12528_v17 = vpop.f32.mrb[63].mxu1  ;;  %v12622_v50 = vpop.f32.mrb[115].mxu0 }
 0x3d5   : > { %v9319_v49 = vadd.f32 %v12526_v57, %v15566_v3  ;;  %v12529_v6 = vadd.f32 %v12528_v17, %v12527_v19  ;;  %v12623_v28 = vadd.f32 %v12622_v50, %v12621_v33 }
 0x3d7   : > { %v9322_v54 = vadd.f32 %v12529_v6, %v15570_v7  ;;  %v16016_v26 = vadd.f32 %v12620_v21, %v9319_v49 }
 0x3d9   : > { %v12530_v11 = vpop.f32.mrb[64].mxu1  ;;  %v12624_v9 = vpop.f32.mrb[116].mxu0  ;;  %v16018_v63 = vadd.f32 %v12623_v28, %v9322_v54 }
 0x3da   : > { %v12531_v43 = vpop.f32.mrb[65].mxu1  ;;  %v12625_v61 = vpop.f32.mrb[117].mxu0 }
 0x3db   : > { %v12532_v31 = vadd.f32 %v12531_v43, %v12530_v11  ;;  %v12626_v12 = vadd.f32 %v12625_v61, %v12624_v9  ;;  %v12533_v27 = vpop.f32.mrb[66].mxu1  ;;  %v12627_v58 = vpop.f32.mrb[118].mxu0 }
 0x3dc   : > { %v12534_v47 = vpop.f32.mrb[67].mxu1  ;;  %v12628_v1 = vpop.f32.mrb[119].mxu0 }
 0x3dd   : > { %v9327_v3 = vadd.f32 %v12532_v31, %v15617_v46  ;;  %v12535_v5 = vadd.f32 %v12534_v47, %v12533_v27  ;;  %v12629_v37 = vadd.f32 %v12628_v1, %v12627_v58 }
 0x3df   : > { %v9330_v7 = vadd.f32 %v12535_v5, %v15625_v4  ;;  %v16022_v32 = vadd.f32 %v12626_v12, %v9327_v3 }
 0x3e1   : > { %v12536_v44 = vpop.f32.mrb[68].mxu1  ;;  %v12630_v25 = vpop.f32.mrb[120].mxu0  ;;  %v16024_v52 = vadd.f32 %v12629_v37, %v9330_v7 }
 0x3e2   : > { %v12537_v2 = vpop.f32.mrb[69].mxu1  ;;  %v12631_v45 = vpop.f32.mrb[121].mxu0 }
 0x3e3   : > { %v12538_v35 = vadd.f32 %v12537_v2, %v12536_v44  ;;  %v12632_v23 = vadd.f32 %v12631_v45, %v12630_v25  ;;  %v12539_v18 = vpop.f32.mrb[70].mxu1  ;;  %v12633_v36 = vpop.f32.mrb[122].mxu0 }
 0x3e4   : > { %v12540_v42 = vpop.f32.mrb[71].mxu1  ;;  %v12634_v22 = vpop.f32.mrb[123].mxu0 }
 0x3e5   : > { %v9335_v46 = vadd.f32 %v12538_v35, %v15683_v10  ;;  %v12541_v41 = vadd.f32 %v12540_v42, %v12539_v18  ;;  %v12635_v38 = vadd.f32 %v12634_v22, %v12633_v36 }
 0x3e7   : > { %v9338_v4 = vadd.f32 %v12541_v41, %v15700_v20  ;;  %v16028_v57 = vadd.f32 %v12632_v23, %v9335_v46 }
 0x3e9   : > { %v12542_v21 = vpop.f32.mrb[72].mxu1  ;;  %v12636_v19 = vpop.f32.mrb[124].mxu0  ;;  %v16030_v33 = vadd.f32 %v12635_v38, %v9338_v4 }
 0x3ea   : > { %v12543_v17 = vpop.f32.mrb[73].mxu1  ;;  %v12637_v50 = vpop.f32.mrb[125].mxu0 }
 0x3eb   : > { %v12544_v49 = vadd.f32 %v12543_v17, %v12542_v21  ;;  %v12638_v6 = vadd.f32 %v12637_v50, %v12636_v19  ;;  %v12545_v28 = vpop.f32.mrb[74].mxu1  ;;  %v12639_v54 = vpop.f32.mrb[126].mxu0 }
 0x3ec   : > { %v12546_v11 = vpop.f32.mrb[75].mxu1  ;;  %v12640_v9 = vpop.f32.mrb[127].mxu0 }
 0x3ed   : > { %v9343_v10 = vadd.f32 %v12544_v49, %v15728_v55  ;;  %v12547_v43 = vadd.f32 %v12546_v11, %v12545_v28  ;;  %v12641_v61 = vadd.f32 %v12640_v9, %v12639_v54 }
 0x3ef   : > { %v9346_v20 = vadd.f32 %v12547_v43, %v15732_v51  ;;  %v16034_v31 = vadd.f32 %v12638_v6, %v9343_v10 }
 0x3f1   : > { %v12548_v12 = vpop.f32.mrb[76].mxu1  ;;  %v12642_v27 = vpop.f32.mrb[128].mxu0  ;;  %v16036_v58 = vadd.f32 %v12641_v61, %v9346_v20 }
 0x3f2   : > { %v12549_v47 = vpop.f32.mrb[77].mxu1  ;;  %v12643_v1 = vpop.f32.mrb[129].mxu0 }
 0x3f3   : > { %v12550_v3 = vadd.f32 %v12549_v47, %v12548_v12  ;;  %v12644_v5 = vadd.f32 %v12643_v1, %v12642_v27  ;;  %v12551_v37 = vpop.f32.mrb[78].mxu1  ;;  %v12645_v7 = vpop.f32.mrb[130].mxu0 }
 0x3f4   : > { %v12552_v44 = vpop.f32.mrb[79].mxu1  ;;  %v12646_v25 = vpop.f32.mrb[131].mxu0 }
 0x3f5   : > { %v9351_v55 = vadd.f32 %v12550_v3, %v15809_v8  ;;  %v12553_v2 = vadd.f32 %v12552_v44, %v12551_v37  ;;  %v12647_v45 = vadd.f32 %v12646_v25, %v12645_v7 }
 0x3f7   : > { %v9354_v51 = vadd.f32 %v12553_v2, %v15821_v48  ;;  %v16040_v35 = vadd.f32 %v12644_v5, %v9351_v55 }
 0x3f9   : > { %v12554_v23 = vpop.f32.mrb[80].mxu1  ;;  %v12648_v18 = vpop.f32.mrb[132].mxu0  ;;  %v16042_v22 = vadd.f32 %v12647_v45, %v9354_v51 }
 0x3fa   : > { %v12555_v36 = vpop.f32.mrb[81].mxu1  ;;  %v12649_v42 = vpop.f32.mrb[133].mxu0 }
 0x3fb   : > { %v12556_v46 = vadd.f32 %v12555_v36, %v12554_v23  ;;  %v12650_v41 = vadd.f32 %v12649_v42, %v12648_v18  ;;  %v12557_v38 = vpop.f32.mrb[82].mxu1  ;;  %v12651_v4 = vpop.f32.mrb[134].mxu0 }
 0x3fc   : > { %v12558_v21 = vpop.f32.mrb[83].mxu1  ;;  %v12652_v19 = vpop.f32.mrb[135].mxu0 }
 0x3fd   : > { %v9359_v8 = vadd.f32 %v12556_v46, %v15877_v16  ;;  %v12559_v17 = vadd.f32 %v12558_v21, %v12557_v38  ;;  %v12653_v50 = vadd.f32 %v12652_v19, %v12651_v4 }
 0x3ff   : > { %v9362_v48 = vadd.f32 %v12559_v17, %v15885_v60  ;;  %v16046_v49 = vadd.f32 %v12650_v41, %v9359_v8 }
 0x401   : > { %v12560_v6 = vpop.f32.mrb[84].mxu1  ;;  %v12654_v28 = vpop.f32.mrb[136].mxu0  ;;  %v16048_v54 = vadd.f32 %v12653_v50, %v9362_v48 }
 0x402   : > { %v12561_v11 = vpop.f32.mrb[85].mxu1  ;;  %v12655_v9 = vpop.f32.mrb[137].mxu0 }
 0x403   : > { %v12562_v10 = vadd.f32 %v12561_v11, %v12560_v6  ;;  %v12656_v43 = vadd.f32 %v12655_v9, %v12654_v28  ;;  %v12563_v61 = vpop.f32.mrb[86].mxu1  ;;  %v12657_v20 = vpop.f32.mrb[138].mxu0 }
 0x404   : > { %v12564_v12 = vpop.f32.mrb[87].mxu1  ;;  %v12658_v27 = vpop.f32.mrb[139].mxu0 }
 0x405   : > { %v9367_v16 = vadd.f32 %v12562_v10, %v15945_v14  ;;  %v12565_v47 = vadd.f32 %v12564_v12, %v12563_v61  ;;  %v12659_v1 = vadd.f32 %v12658_v27, %v12657_v20 }
 0x407   : > { %v9370_v60 = vadd.f32 %v12565_v47, %v15954_v40  ;;  %v16052_v3 = vadd.f32 %v12656_v43, %v9367_v16 }
 0x409   : > { %v12566_v5 = vpop.f32.mrb[88].mxu1  ;;  %v12660_v37 = vpop.f32.mrb[140].mxu0  ;;  %v16054_v7 = vadd.f32 %v12659_v1, %v9370_v60 }
 0x40a   : > { %v12567_v44 = vpop.f32.mrb[89].mxu1  ;;  %v12661_v25 = vpop.f32.mrb[141].mxu0 }
 0x40b   : > { %v12568_v55 = vadd.f32 %v12567_v44, %v12566_v5  ;;  %v12662_v2 = vadd.f32 %v12661_v25, %v12660_v37  ;;  %v12569_v45 = vpop.f32.mrb[90].mxu1  ;;  %v12663_v51 = vpop.f32.mrb[142].mxu0 }
 0x40c   : > { %v12570_v23 = vpop.f32.mrb[91].mxu1  ;;  %v12664_v18 = vpop.f32.mrb[143].mxu0 }
 0x40d   : > { %v9375_v14 = vadd.f32 %v12568_v55, %v15972_v56  ;;  %v12571_v36 = vadd.f32 %v12570_v23, %v12569_v45  ;;  %v12665_v42 = vadd.f32 %v12664_v18, %v12663_v51 }
 0x40f   : > { %v9378_v40 = vadd.f32 %v12571_v36, %v15975_v59  ;;  %v16058_v46 = vadd.f32 %v12662_v2, %v9375_v14 }
 0x411   : > { %v12572_v41 = vpop.f32.mrb[92].mxu1  ;;  %v12666_v38 = vpop.f32.mrb[144].mxu0  ;;  %v16061_v9 = vadd.f32 %v12665_v42, %v9378_v40 }
 0x412   : > { %v12573_v4 = vpop.f32.mrb[93].mxu1  ;;  %v12667_v21 = vpop.f32.mrb[145].mxu0 }
 0x413   : > { %v12574_v19 = vadd.f32 %v12573_v4, %v12572_v41  ;;  %v12668_v8 = vadd.f32 %v12667_v21, %v12666_v38  ;;  %v12575_v17 = vpop.f32.mrb[94].mxu1  ;;  %v12669_v50 = vpop.f32.mrb[146].mxu0 }
 0x414   : > { %v12576_v48 = vpop.f32.mrb[95].mxu1  ;;  %v12670_v6 = vpop.f32.mrb[147].mxu0 }
 0x415   : > { %v9383_v28 = vadd.f32 %v12574_v19, %v15982_v0  ;;  %v12577_v11 = vadd.f32 %v12576_v48, %v12575_v17  ;;  %v12671_v56 = vadd.f32 %v12670_v6, %v12669_v50 }
 0x417   : > { %v9386_v59 = vadd.f32 %v12577_v11, %v15987_v53  ;;  %v16064_v10 = vadd.f32 %v12668_v8, %v9383_v28 }
 0x419   : > { %v12578_v43 = vpop.f32.mrb[96].mxu1  ;;  %v12672_v61 = vpop.f32.mrb[148].mxu0  ;;  %v16066_v20 = vadd.f32 %v12671_v56, %v9386_v59 }
 0x41a   : > { %v12579_v12 = vpop.f32.mrb[97].mxu1  ;;  %v12673_v27 = vpop.f32.mrb[149].mxu0 }
 0x41b   : > { %v12580_v16 = vadd.f32 %v12579_v12, %v12578_v43  ;;  %v12674_v47 = vadd.f32 %v12673_v27, %v12672_v61  ;;  %v12581_v1 = vpop.f32.mrb[98].mxu1  ;;  %v12675_v60 = vpop.f32.mrb[150].mxu0  ;;  %v17168_v61 = vld [vmem:[#allocation12_spill] sm:$0xff] }
 0x41c   : > { %v12582_v5 = vpop.f32.mrb[99].mxu1  ;;  %v12676_v0 = vpop.f32.mrb[151].mxu0 }
 0x41d   : > { %v9391_v37 = vadd.f32 %v12580_v16, %v15994_v13  ;;  %v12583_v44 = vadd.f32 %v12582_v5, %v12581_v1  ;;  %v12677_v25 = vadd.f32 %v12676_v0, %v12675_v60 }
 0x41f   : > { %v9394_v53 = vadd.f32 %v12583_v44, %v15997_v34  ;;  %v16071_v21 = vadd.f32 %v12674_v47, %v9391_v37 }
 0x421   : > { %v12584_v55 = vpop.f32.mrb[100].mxu1  ;;  %v12678_v2 = vpop.f32.mrb[152].mxu0  ;;  %v16077_v59 = vadd.f32 %v12677_v25, %v9394_v53 }
 0x422   : > { %v12585_v45 = vpop.f32.mrb[101].mxu1  ;;  %v12679_v51 = vpop.f32.mrb[153].mxu0 }
 0x423   : > { %v12586_v23 = vadd.f32 %v12585_v45, %v12584_v55  ;;  %v12680_v18 = vadd.f32 %v12679_v51, %v12678_v2  ;;  %v12587_v14 = vpop.f32.mrb[102].mxu1  ;;  %v12681_v36 = vpop.f32.mrb[154].mxu0 }
 0x424   : > { %v12588_v42 = vpop.f32.mrb[103].mxu1  ;;  %v12682_v40 = vpop.f32.mrb[155].mxu0 }
 0x425   : > { %v9399_v41 = vadd.f32 %v12586_v23, %v16000_v62 }
 0x427   : > { %v16081_v47 = vadd.f32 %v12680_v18, %v9399_v41 }
 0x429   : > { %v9574_v38 = vpop.f32.mrb[156].mxu0  ;;  %v9582_v4 = vpop.f32.mrb[104].mxu1 }
 0x42a   : > { %v9575_v13 = vadd.f32 %v9574_v38, %v16004_v29  ;;  %v9583_v34 = vadd.f32 %v9582_v4, %v16010_v15  ;;  %v12781_v19 = vpop.f32.mrb[157].mxu0  ;;  %v12785_v8 = vpop.f32.mrb[105].mxu1 }
 0x42b   : > { %v9577_v17 = vpop.f32.mrb[158].mxu0  ;;  %v9585_v50 = vpop.f32.mrb[106].mxu1 }
 0x42c   : > { %v9676_v48 = vmax.f32 %v9575_v13, 0.0  ;;  %v9678_v6 = vmax.f32 %v9583_v34, 0.0  ;;  %v9578_v28 = vadd.f32 %v9577_v17, %v16006_v24  ;;  %v9586_v11 = vadd.f32 %v9585_v50, %v16012_v39  ;;  %v12782_v56 = vpop.f32.mrb[159].mxu0  ;;  %v12786_v62 = vpop.f32.mrb[107].mxu1 }
 0x42e   : > { %v9726_v43 = vcombine.high %v9676_v48, %v9676_v48  ;;  %v9733_v12 = vrot.slane %v9676_v48, %v17168_v61  ;;  %v9760_v29 = vcombine.high %v9678_v6, %v9678_v6  ;;  %v9767_v15 = vrot.slane %v9678_v6, %v17168_v61 }
 0x42f   : > { %v9677_v27 = vmax.f32 %v9578_v28, 0.0  ;;  %v9679_v16 = vmax.f32 %v9586_v11, 0.0 }
 0x430   : > { %v9740_v1 = vrot.slane %v9726_v43, %v17168_v61  ;;  %v9741_v60 = vcombine.high %v9733_v12, %v9733_v12  ;;  %v9774_v24 = vrot.slane %v9760_v29, %v17168_v61  ;;  %v9775_v39 = vcombine.high %v9767_v15, %v9767_v15  ;;  %v17169_v43 = vld [vmem:[#allocation13_spill] sm:$0xff] }
 0x431   : > { %v9743_v5 = vcombine.high %v9677_v27, %v9677_v27  ;;  %v9750_v0 = vrot.slane %v9677_v27, %v17168_v61  ;;  %v9777_v37 = vcombine.high %v9679_v16, %v9679_v16  ;;  %v9784_v44 = vrot.slane %v9679_v16, %v17168_v61  ;;  %v9590_v25 = vpop.f32.mrb[108].mxu1 }
 0x432   : > { %v9742_v53 = vcombine.high %v9740_v1, %v9740_v1  ;;  %v10156_v55 = vcombine.low %v9733_v12, %v9741_v60  ;;  %v10190_v2 = vcombine.low %v9775_v39, %v9774_v24  ;;  %v9776_v45 = vcombine.high %v9774_v24, %v9774_v24  ;;  %v12789_v51 = vpop.f32.mrb[109].mxu1 }
 0x433   : > { %v9757_v23 = vrot.slane %v9743_v5, %v17168_v61  ;;  %v9758_v18 = vcombine.high %v9750_v0, %v9750_v0  ;;  %v16089_v14 = vrot.slane %v9777_v37, %v17168_v61  ;;  %v9792_v36 = vcombine.high %v9784_v44, %v9784_v44  ;;  %v9593_v42 = vpop.f32.mrb[110].mxu1 }
 0x434   : > { %v10157_v40 = vcombine.low %v9740_v1, %v9742_v53  ;;  %v10206_v41 = vcombine.low %v9776_v45, %v9784_v44  ;;  %v12790_v38 = vpop.f32.mrb[111].mxu1  ;;  %v10164_v4 = vrot.slane %v10156_v55, %v17168_v61  ;;  %v10204_v13 = vrot.slane %v10190_v2, %v17168_v61 }
 0x435   : > { %v9759_v34 = vcombine.high %v9757_v23, %v9757_v23  ;;  %v10173_v19 = vcombine.low %v9750_v0, %v9758_v18  ;;  %v9793_v17 = vcombine.high %v16089_v14, %v16089_v14  ;;  %v10220_v48 = vrot.slane %v9792_v36, %v17168_v61 }
 0x436   : > { %v10171_v8 = vrot.slane %v10157_v40, %v17168_v61  ;;  %v10213_v50 = vrot.slane %v10206_v41, %v17168_v61  ;;  %v10187_v28 = vrot.slane %v9757_v23, %v17168_v61  ;;  %v9591_v56 = vadd.f32 %v9590_v25, %v16016_v26 }
 0x437   : > { %v10180_v6 = vrot.slane %v10173_v19, %v17168_v61  ;;  %v10189_v11 = vcombine.low %v9759_v34, %v9767_v15  ;;  %v10691_v29 = vrot.slane %v9757_v23, %v17169_v43  ;;  %v9594_v16 = vadd.f32 %v9593_v42, %v16018_v63 }
 0x438   : > { %v10172_v62 = vcombine.low %v10164_v4, %v10171_v8  ;;  %v10221_v27 = vcombine.low %v10213_v50, %v10220_v48  ;;  %v10695_v24 = vrot.slane %v9792_v36, %v17169_v43  ;;  %v9680_v39 = vmax.f32 %v9591_v56, 0.0 }
 0x439   : > { %v10188_v1 = vcombine.low %v10180_v6, %v10187_v28  ;;  %v10197_v60 = vrot.slane %v10189_v11, %v17168_v61  ;;  %v9598_v5 = vpop.f32.mrb[112].mxu1  ;;  %v10222_v37 = vcombine.low %v16089_v14, %v9793_v17  ;;  %v9681_v15 = vmax.f32 %v9594_v16, 0.0 }
 0x43a   : > { %v10618_v0 = vrot.slane %v10172_v62, 7  ;;  %v10622_v44 = vrot.slane %v10221_v27, 7  ;;  %v12793_v53 = vpop.f32.mrb[113].mxu1  ;;  %v9794_v55 = vcombine.high %v9680_v39, %v9680_v39  ;;  %v9801_v2 = vrot.slane %v9680_v39, %v17168_v61 }
 0x43b   : > { %v10205_v26 = vcombine.low %v10197_v60, %v10204_v13  ;;  %v10619_v25 = vrot.slane %v10188_v1, 7  ;;  %v9601_v45 = vpop.f32.mrb[114].mxu1  ;;  %v9811_v51 = vcombine.high %v9681_v15, %v9681_v15  ;;  %v16111_v23 = vrot.slane %v9681_v15, %v17168_v61 }
 0x43c   : > { %v16108_v63 = vsel %vm3411_vm11, %v9733_v12, %v10618_v0  ;;  %v9599_v18 = vadd.f32 %v9598_v5, %v16022_v32  ;;  %v12794_v36 = vpop.f32.mrb[115].mxu1  ;;  %v9808_v38 = vrot.slane %v9794_v55, %v17168_v61  ;;  %v9809_v12 = vcombine.high %v9801_v2, %v9801_v2 }
 0x43d   : > { %v10804_v42 = vrot.slane %v16108_v63, %v13554_v30  ;;  %v10620_v40 = vsel %vm3411_vm11, %v10618_v0, %v10619_v25  ;;  %v10621_v41 = vrot.slane %v10205_v26, 7  ;;  %v9825_v13 = vrot.slane %v9811_v51, %v17168_v61 }
 0x43e   : > { %v16119_v4 = vsel %vm3566_vm12, %v10620_v40, %v10691_v29  ;;  %v16124_v19 = vcombine.high %v16111_v23, %v16111_v23  ;;  %v9810_v11 = vcombine.high %v9808_v38, %v9808_v38  ;;  %v10230_v62 = vrot.slane %v10222_v37, %v17168_v61 }
 0x43f   : > { %v10926_v32 = vrot.slane %v10804_v42, 4  ;;  %v16127_v8 = vsel %vm3411_vm11, %v9759_v34, %v10621_v41  ;;  %v10811_v17 = vrot.slane %v16119_v4, %v13554_v30  ;;  %v10623_v50 = vsel %vm3411_vm11, %v10621_v41, %v10622_v44 }
 0x440   : > { %v16137_v28 = vsel %vm3566_vm12, %v10623_v50, %v10695_v24  ;;  %v10223_v16 = vcombine.low %v9801_v2, %v9809_v12  ;;  %v10239_v1 = vcombine.low %v9808_v38, %v9810_v11  ;;  %v10255_v60 = vcombine.low %v16124_v19, %v9825_v13 }
 0x441   : > { %v9606_v29 = vpop.f32.mrb[116].mxu1  ;;  %v16144_v27 = vmax.f32 %v10804_v42, %v10926_v32  ;;  %v10927_v5 = vrot.slane %v10811_v17, 4  ;;  %v10253_v24 = vrot.slane %v16111_v23, %v17168_v61  ;;  %v10699_v0 = vrot.slane %v16111_v23, %v17169_v43 }
 0x442   : > { %v12797_v39 = vpop.f32.mrb[117].mxu1  ;;  %v9682_v44 = vmax.f32 %v9599_v18, 0.0  ;;  %v10237_v53 = vrot.slane %v10223_v16, %v17168_v61  ;;  %v10246_v37 = vrot.slane %v10239_v1, %v17168_v61  ;;  %v9827_v26 = vcombine.high %v9825_v13, %v9825_v13 }
 0x443   : > { %v9609_v15 = vpop.f32.mrb[118].mxu1  ;;  %v9602_v25 = vadd.f32 %v9601_v45, %v16024_v52  ;;  %v9607_v36 = vadd.f32 %v9606_v29, %v16028_v57  ;;  %v10263_v23 = vrot.slane %v10255_v60, %v17168_v61 }
 0x444   : > { %v12798_v55 = vpop.f32.mrb[119].mxu1  ;;  %v9828_v2 = vcombine.high %v9682_v44, %v9682_v44  ;;  %v9835_v51 = vrot.slane %v9682_v44, %v17168_v61  ;;  %v9610_v42 = vadd.f32 %v9609_v15, %v16030_v33  ;;  %v10238_v40 = vcombine.low %v10230_v62, %v10237_v53 }
 0x445   : > { %v10254_v41 = vcombine.low %v10246_v37, %v10253_v24  ;;  %v9683_v18 = vmax.f32 %v9602_v25, 0.0  ;;  %v9684_v13 = vmax.f32 %v9607_v36, 0.0 }
 0x446   : > { %v9842_v38 = vrot.slane %v9828_v2, %v17168_v61  ;;  %v9843_v12 = vcombine.high %v9835_v51, %v9835_v51  ;;  %v10256_v32 = vcombine.low %v9827_v26, %v9835_v51  ;;  %v10624_v50 = vrot.slane %v10238_v40, 7 }
 0x447   : > { %v10625_v52 = vrot.slane %v10254_v41, 7  ;;  %v9845_v45 = vcombine.high %v9683_v18, %v9683_v18  ;;  %v16160_v11 = vrot.slane %v9683_v18, %v17168_v61  ;;  %v9862_v62 = vcombine.high %v9684_v13, %v9684_v13 }
 0x448   : > { %v9844_v16 = vcombine.high %v9842_v38, %v9842_v38  ;;  %v10270_v57 = vrot.slane %v10256_v32, %v17168_v61  ;;  %v10272_v33 = vcombine.low %v9843_v12, %v9842_v38  ;;  %v16165_v1 = vsel %vm3411_vm11, %v16089_v14, %v10624_v50 }
 0x449   : > { %v9614_v29 = vpop.f32.mrb[120].mxu1  ;;  %v10626_v60 = vsel %vm3411_vm11, %v10624_v50, %v10625_v52  ;;  %v9859_v39 = vrot.slane %v9845_v45, %v17168_v61  ;;  %v9860_v24 = vcombine.high %v16160_v11, %v16160_v11  ;;  %v10786_v15 = vmax.f32 %v16127_v8, %v16165_v1 }
 0x44a   : > { %v12801_v44 = vpop.f32.mrb[121].mxu1  ;;  %v16178_v14 = vsel %vm3566_vm12, %v10626_v60, %v10699_v0  ;;  %v10271_v51 = vcombine.low %v10263_v23, %v10270_v57  ;;  %v16186_v40 = vmax.f32 %v10811_v17, %v10927_v5  ;;  %v10279_v0 = vrot.slane %v10272_v33, %v17168_v61 }
 0x44b   : > { %v9617_v26 = vpop.f32.mrb[122].mxu1  ;;  %v10787_v25 = vmax.f32 %v16137_v28, %v16178_v14  ;;  %v16189_v41 = vrot.slane %v10786_v15, %v13554_v30  ;;  %v10286_v18 = vrot.slane %v9844_v16, %v17168_v61  ;;  %v9861_v32 = vcombine.high %v9859_v39, %v9859_v39 }
 0x44c   : > { %v12802_v36 = vpop.f32.mrb[123].mxu1  ;;  %v10627_v12 = vrot.slane %v10271_v51, 7  ;;  %v10288_v50 = vcombine.low %v16160_v11, %v9860_v24  ;;  %v9869_v23 = vrot.slane %v9684_v13, %v17168_v61  ;;  %v9876_v17 = vrot.slane %v9862_v62, %v17168_v61 }
 0x44d   : > { %v16194_v38 = vrot.slane %v10787_v25, %v13554_v30  ;;  %v10287_v52 = vcombine.low %v10279_v0, %v10286_v18  ;;  %v13240_v5 = vmov 1934713408   ;;  %v10928_v57 = vrot.slane %v16189_v41, 4 }
 0x44e   : > { %v16199_v45 = vunpack.c.l.s4 %v13240_v5  ;;  %v10703_v33 = vrot.slane %v9844_v16, %v17169_v43  ;;  %v10289_v60 = vcombine.low %v9859_v39, %v9861_v32  ;;  %v16205_v44 = vsel %vm3411_vm11, %v16124_v19, %v10627_v12 }
 0x44f   : > { %v10929_v15 = vrot.slane %v16194_v38, 4  ;;  %v10628_v24 = vrot.slane %v10287_v52, 7  ;;  %v10296_v25 = vrot.slane %v10288_v50, %v17168_v61  ;;  %v9877_v13 = vcombine.high %v9869_v23, %v9869_v23 }
 0x450   : > { %v10303_v62 = vrot.slane %v10289_v60, %v17168_v61  ;;  %v10319_v36 = vrot.slane %v9876_v17, %v17168_v61  ;;  %v10707_v0 = vrot.slane %v9876_v17, %v17169_v43  ;;  %v9685_v18 = vmax.f32 %v9610_v42, 0.0 }
 0x451   : > { %v9622_v51 = vpop.f32.mrb[124].mxu1  ;;  %v10629_v39 = vsel %vm3411_vm11, %v10627_v12, %v10628_v24  ;;  %v10305_v32 = vcombine.low %v9869_v23, %v9877_v13  ;;  %v9878_v19 = vcombine.high %v9876_v17, %v9876_v17  ;;  %v9615_v5 = vadd.f32 %v9614_v29, %v16034_v31 }
 0x452   : > { %v12805_v16 = vpop.f32.mrb[125].mxu1  ;;  %v16217_v50 = vsel %vm3566_vm12, %v10629_v39, %v10703_v33  ;;  %v10304_v52 = vcombine.low %v10296_v25, %v10303_v62  ;;  %v9879_v34 = vcombine.high %v9685_v18, %v9685_v18  ;;  %v9886_v60 = vrot.slane %v9685_v18, %v17168_v61 }
 0x453   : > { %v16214_v2 = vpop.f32.mrb[126].mxu1  ;;  %v10312_v56 = vrot.slane %v10305_v32, %v17168_v61  ;;  %v9686_v42 = vmax.f32 %v9615_v5, 0.0  ;;  %v9618_v16 = vadd.f32 %v9617_v26, %v16036_v58  ;;  %v9623_v12 = vadd.f32 %v9622_v51, %v16040_v35 }
 0x454   : > { %v12806_v55 = vpop.f32.mrb[127].mxu1  ;;  %v10630_v23 = vrot.slane %v10304_v52, 7  ;;  %v9893_v31 = vrot.slane %v9879_v34, %v17168_v61  ;;  %v9894_v29 = vcombine.high %v9886_v60, %v9886_v60  ;;  %v10321_v17 = vcombine.low %v9878_v19, %v9886_v60 }
 0x455   : > { %v10320_v24 = vcombine.low %v10312_v56, %v10319_v36  ;;  %v9896_v33 = vcombine.high %v9686_v42, %v9686_v42  ;;  %v9903_v25 = vrot.slane %v9686_v42, %v17168_v61  ;;  %v9687_v13 = vmax.f32 %v9618_v16, 0.0 }
 0x456   : > { %v16227_v55 = vsel %vm3411_vm11, %v16160_v11, %v10630_v23  ;;  %v10322_v62 = vcombine.low %v9894_v29, %v9893_v31  ;;  %v10329_v18 = vrot.slane %v10321_v17, %v17168_v61  ;;  %v9895_v58 = vcombine.high %v9893_v31, %v9893_v31 }
 0x457   : > { %v10788_v35 = vmax.f32 %v16205_v44, %v16227_v55  ;;  %v10631_v26 = vrot.slane %v10320_v24, 7  ;;  %v16233_v34 = vrot.slane %v9896_v33, %v17168_v61  ;;  %v9911_v56 = vcombine.high %v9903_v25, %v9903_v25 }
 0x458   : > { %v10336_v36 = vrot.slane %v10322_v62, %v17168_v61  ;;  %v10338_v39 = vcombine.low %v9895_v58, %v9903_v25  ;;  %v9913_v32 = vcombine.high %v9687_v13, %v9687_v13  ;;  %v9920_v11 = vrot.slane %v9687_v13, %v17168_v61 }
 0x459   : > { %v9630_v51 = vpop.f32.mrb[128].mxu1  ;;  %v10832_v52 = vrot.slane %v10788_v35, %v13554_v30  ;;  %v10632_v60 = vsel %vm3411_vm11, %v10630_v23, %v10631_v26  ;;  %v9912_v42 = vcombine.high %v16233_v34, %v16233_v34  ;;  %v10352_v16 = vrot.slane %v9911_v56, %v17168_v61 }
 0x45a   : > { %v12809_v5 = vpop.f32.mrb[129].mxu1  ;;  %v16243_v29 = vsel %vm3566_vm12, %v10632_v60, %v10707_v0  ;;  %v10337_v17 = vcombine.low %v10329_v18, %v10336_v36  ;;  %v10345_v24 = vrot.slane %v10338_v39, %v17168_v61  ;;  %v10711_v33 = vrot.slane %v9911_v56, %v17169_v43 }
 0x45b   : > { %v9633_v31 = vpop.f32.mrb[130].mxu1  ;;  %v10930_v13 = vrot.slane %v10832_v52, 4  ;;  %v10789_v62 = vmax.f32 %v16217_v50, %v16243_v29  ;;  %v10354_v23 = vcombine.low %v16233_v34, %v9912_v42  ;;  %v9927_v58 = vrot.slane %v9913_v32, %v17168_v61 }
 0x45c   : > { %v12810_v25 = vpop.f32.mrb[131].mxu1  ;;  %v10633_v35 = vrot.slane %v10337_v17, 7  ;;  %v10353_v26 = vcombine.low %v10345_v24, %v10352_v16  ;;  %v9928_v5 = vcombine.high %v9920_v11, %v9920_v11  ;;  %v9688_v37 = vmax.f32 %v9623_v12, 0.0 }
 0x45d   : > { %v16251_v0 = vmax.f32 %v10832_v52, %v10930_v13  ;;  %v10839_v18 = vrot.slane %v10789_v62, %v13554_v30  ;;  %v9929_v36 = vcombine.high %v9927_v58, %v9927_v58  ;;  %v10362_v56 = vrot.slane %v10354_v23, %v17168_v61 }
 0x45e   : > { %v16256_v39 = vsel %vm3411_vm11, %v9878_v19, %v10633_v35  ;;  %v10634_v60 = vrot.slane %v10353_v26, 7  ;;  %v10355_v25 = vcombine.low %v9920_v11, %v9928_v5  ;;  %v9930_v6 = vcombine.high %v9688_v37, %v9688_v37 }
 0x45f   : > { %17170 = vst [vmem:[#allocation17_spill] sm:$0xff] %v16251_v0  ;;  %v10931_v42 = vrot.slane %v10839_v18, 4  ;;  %v10371_v19 = vcombine.low %v9927_v58, %v9929_v36  ;;  %v9937_v13 = vrot.slane %v9688_v37, %v17168_v61  ;;  %v16270_v62 = vmax.f32 %v16189_v41, %v10928_v57 }
 0x460   : > { %v10635_v17 = vsel %vm3411_vm11, %v10633_v35, %v10634_v60  ;;  %v10369_v24 = vrot.slane %v10355_v25, %v17168_v61  ;;  %v9944_v5 = vrot.slane %v9930_v6, %v17168_v61  ;;  %v16286_v41 = vmax.f32 %v16194_v38, %v10929_v15 }
 0x461   : > { %v9638_v16 = vpop.f32.mrb[132].mxu1  ;;  %v10963_v23 = vmax.f32 %v10839_v18, %v10931_v42  ;;  %v16273_v26 = vsel %vm3566_vm12, %v10635_v17, %v10711_v33  ;;  %v10378_v36 = vrot.slane %v10371_v19, %v17168_v61  ;;  %v16289_v6 = vcombine.high %v9937_v13, %v9937_v13 }
 0x462   : > { %v12813_v11 = vpop.f32.mrb[133].mxu1  ;;  %v10370_v58 = vcombine.low %v10362_v56, %v10369_v24  ;;  %v10385_v33 = vrot.slane %v9937_v13, %v17168_v61  ;;  %v10715_v25 = vrot.slane %v9937_v13, %v17169_v43  ;;  %v9626_v56 = vadd.f32 %v16214_v2, %v16042_v22 }
 0x463   : > { %v16276_v32 = vpop.f32.mrb[134].mxu1  ;;  %v11042_v57 = vcombine.low %v16186_v40, %v10963_v23  ;;  %v9631_v42 = vadd.f32 %v9630_v51, %v16046_v49  ;;  %v10387_v24 = vcombine.low %v16289_v6, %v9944_v5  ;;  %v9946_v19 = vcombine.high %v9944_v5, %v9944_v5 }
 0x464   : > { %v12814_v60 = vpop.f32.mrb[135].mxu1  ;;  %v10636_v18 = vrot.slane %v10370_v58, 7  ;;  %v10386_v17 = vcombine.low %v10378_v36, %v10385_v33  ;;  %v9634_v38 = vadd.f32 %v9633_v31, %v16048_v54  ;;  %v9689_v15 = vmax.f32 %v9626_v56, 0.0 }
 0x465   : > { %v9690_v11 = vmax.f32 %v9631_v42, 0.0  ;;  %v9639_v23 = vadd.f32 %v9638_v16, %v16052_v3  ;;  %v16304_v13 = vrot.slane %v11042_v57, %v17168_v61  ;;  %v10395_v58 = vrot.slane %v10387_v24, %v17168_v61 }
 0x466   : > { %v16300_v40 = vsel %vm3411_vm11, %v16233_v34, %v10636_v18  ;;  %v10637_v34 = vrot.slane %v10386_v17, 7  ;;  %v9947_v51 = vcombine.high %v9689_v15, %v9689_v15  ;;  %v9954_v31 = vrot.slane %v9689_v15, %v17168_v61 }
 0x467   : > { %17171 = vst [vmem:[#allocation22_spill] sm:$0xff] %v16304_v13  ;;  %v10790_v22 = vmax.f32 %v16256_v39, %v16300_v40  ;;  %v9964_v5 = vcombine.high %v9690_v11, %v9690_v11  ;;  %v9971_v36 = vrot.slane %v9690_v11, %v17168_v61  ;;  %v9691_v60 = vmax.f32 %v9634_v38, 0.0 }
 0x468   : > { %v10638_v33 = vsel %vm3411_vm11, %v10636_v18, %v10637_v34  ;;  %v9961_v56 = vrot.slane %v9947_v51, %v17168_v61  ;;  %v9962_v42 = vcombine.high %v9954_v31, %v9954_v31  ;;  %v10388_v17 = vcombine.low %v9946_v19, %v9954_v31 }
 0x469   : > { %v16312_v2 = vpop.f32.mrb[136].mxu1  ;;  %v10846_v16 = vrot.slane %v10790_v22, %v13554_v30  ;;  %v16323_v15 = vsel %vm3566_vm12, %v10638_v33, %v10715_v25  ;;  %v9978_v22 = vrot.slane %v9964_v5, %v17168_v61  ;;  %v9692_v33 = vmax.f32 %v9639_v23, 0.0 }
 0x46a   : > { %v12817_v3 = vpop.f32.mrb[137].mxu1  ;;  %v10791_v24 = vmax.f32 %v16273_v26, %v16323_v15  ;;  %v9963_v11 = vcombine.high %v9961_v56, %v9961_v56  ;;  %v10404_v19 = vcombine.low %v9962_v42, %v9961_v56  ;;  %v9988_v56 = vrot.slane %v9691_v60, %v17168_v61 }
 0x46b   : > { %v16318_v57 = vpop.f32.mrb[138].mxu1  ;;  %v10932_v35 = vrot.slane %v10846_v16, 4  ;;  %v9979_v3 = vcombine.high %v9971_v36, %v9971_v36  ;;  %v9980_v25 = vcombine.high %v9978_v22, %v9978_v22 }
 0x46c   : > { %v12818_v37 = vpop.f32.mrb[139].mxu1  ;;  %v10853_v51 = vrot.slane %v10791_v24, %v13554_v30  ;;  %v10418_v31 = vrot.slane %v9963_v11, %v17168_v61  ;;  %v10411_v52 = vrot.slane %v10404_v19, %v17168_v61  ;;  %v9998_v19 = vcombine.high %v9692_v33, %v9692_v33 }
 0x46d   : > { %v16332_v34 = vmax.f32 %v10846_v16, %v10932_v35  ;;  %v10402_v37 = vrot.slane %v10388_v17, %v17168_v61  ;;  %v10420_v5 = vcombine.low %v9971_v36, %v9979_v3  ;;  %v10421_v18 = vcombine.low %v9978_v22, %v9980_v25 }
 0x46e   : > { %v10933_v35 = vrot.slane %v10853_v51, 4  ;;  %v10719_v16 = vrot.slane %v9963_v11, %v17169_v43  ;;  %v9981_v17 = vcombine.high %v9691_v60, %v9691_v60  ;;  %v10419_v24 = vcombine.low %v10411_v52, %v10418_v31 }
 0x46f   : > { %v10403_v38 = vcombine.low %v10395_v58, %v10402_v37  ;;  %v10428_v3 = vrot.slane %v10420_v5, %v17168_v61  ;;  %v10435_v23 = vrot.slane %v10421_v18, %v17168_v61  ;;  %v9996_v22 = vcombine.high %v9988_v56, %v9988_v56 }
 0x470   : > { %v10965_v58 = vmax.f32 %v10853_v51, %v10933_v35  ;;  %v9995_v37 = vrot.slane %v9981_v17, %v17168_v61  ;;  %v10640_v54 = vrot.slane %v10419_v24, 7  ;;  %v10005_v52 = vrot.slane %v9692_v33, %v17168_v61 }
 0x471   : > { %v9654_v49 = vpop.f32.mrb[140].mxu1  ;;  %v10639_v12 = vrot.slane %v10403_v38, 7  ;;  %v10436_v11 = vcombine.low %v10428_v3, %v10435_v23  ;;  %v10437_v31 = vcombine.low %v9988_v56, %v9996_v22 }
 0x472   : > { %v12821_v42 = vpop.f32.mrb[141].mxu1  ;;  %v11050_v38 = vcombine.low %v16286_v41, %v10965_v58  ;;  %v10451_v18 = vrot.slane %v9995_v37, %v17168_v61  ;;  %v10723_v51 = vrot.slane %v9995_v37, %v17169_v43  ;;  %v9997_v17 = vcombine.high %v9995_v37, %v9995_v37 }
 0x473   : > { %v16344_v53 = vpop.f32.mrb[142].mxu1  ;;  %v16349_v60 = vsel %vm3411_vm11, %v16289_v6, %v10639_v12  ;;  %v10641_v5 = vsel %vm3411_vm11, %v10639_v12, %v10640_v54  ;;  %v10642_v35 = vrot.slane %v10436_v11, 7  ;;  %v10012_v42 = vrot.slane %v9998_v19, %v17168_v61 }
 0x474   : > { %v12822_v25 = vpop.f32.mrb[143].mxu1  ;;  %v16358_v24 = vrot.slane %v11050_v38, %v17168_v61  ;;  %v16361_v6 = vsel %vm3566_vm12, %v10641_v5, %v10719_v16  ;;  %v10444_v33 = vrot.slane %v10437_v31, %v17168_v61  ;;  %v10013_v41 = vcombine.high %v10005_v52, %v10005_v52 }
 0x475   : > { %v16365_v56 = vsel %vm3411_vm11, %v9971_v36, %v10642_v35  ;;  %v10453_v3 = vcombine.low %v9997_v17, %v10005_v52  ;;  %v9642_v12 = vadd.f32 %v16276_v32, %v16054_v7  ;;  %v10014_v54 = vcombine.high %v10012_v42, %v10012_v42 }
 0x476   : > { %17172 = vst [vmem:[#allocation20_spill] sm:$0xff] %v16358_v24  ;;  %v10792_v37 = vmax.f32 %v16349_v60, %v16365_v56  ;;  %v10452_v22 = vcombine.low %v10444_v33, %v10451_v18  ;;  %v10454_v36 = vcombine.low %v10013_v41, %v10012_v42  ;;  %v9647_v7 = vadd.f32 %v16312_v2, %v16058_v46 }
 0x477   : > { %v10461_v25 = vrot.slane %v10453_v3, %v17168_v61  ;;  %v9693_v11 = vmax.f32 %v9642_v12, 0.0  ;;  %v9650_v31 = vadd.f32 %v16318_v57, %v16061_v9  ;;  %v9655_v5 = vadd.f32 %v9654_v49, %v16064_v10 }
 0x478   : > { %v10860_v52 = vrot.slane %v10792_v37, %v13554_v30  ;;  %v10643_v38 = vrot.slane %v10452_v22, 7  ;;  %v10468_v18 = vrot.slane %v10454_v36, %v17168_v61  ;;  %v9694_v41 = vmax.f32 %v9647_v7, 0.0 }
 0x479   : > { %v16369_v23 = vpop.f32.mrb[144].mxu1  ;;  %v10015_v42 = vcombine.high %v9693_v11, %v9693_v11  ;;  %v10022_v33 = vrot.slane %v9693_v11, %v17168_v61  ;;  %v9695_v2 = vmax.f32 %v9650_v31, 0.0  ;;  %v9696_v12 = vmax.f32 %v9655_v5, 0.0 }
 0x47a   : > { %v12825_v19 = vpop.f32.mrb[145].mxu1  ;;  %v10934_v3 = vrot.slane %v10860_v52, 4  ;;  %v10644_v46 = vsel %vm3411_vm11, %v10642_v35, %v10643_v38  ;;  %v10469_v22 = vcombine.low %v10461_v25, %v10468_v18  ;;  %v10039_v38 = vrot.slane %v9694_v41, %v17168_v61 }
 0x47b   : > { %v16380_v32 = vpop.f32.mrb[146].mxu1  ;;  %v16390_v37 = vsel %vm3566_vm12, %v10644_v46, %v10723_v51  ;;  %v16393_v9 = vrot.slane %v10015_v42, %v17168_v61  ;;  %v10030_v10 = vcombine.high %v10022_v33, %v10022_v33  ;;  %v10032_v19 = vcombine.high %v9694_v41, %v9694_v41 }
 0x47c   : > { %v12826_v16 = vpop.f32.mrb[147].mxu1  ;;  %v16395_v49 = vmax.f32 %v10860_v52, %v10934_v3  ;;  %v10793_v57 = vmax.f32 %v16361_v6, %v16390_v37  ;;  %v10645_v36 = vrot.slane %v10469_v22, 7  ;;  %v10049_v42 = vcombine.high %v9695_v2, %v9695_v2 }
 0x47d   : > { %v10470_v16 = vcombine.low %v10014_v54, %v10022_v33  ;;  %v10031_v35 = vcombine.high %v16393_v9, %v16393_v9  ;;  %v10484_v11 = vrot.slane %v10030_v10, %v17168_v61  ;;  %v10727_v51 = vrot.slane %v10030_v10, %v17169_v43 }
 0x47e   : > { %v10867_v7 = vrot.slane %v10793_v57, %v13554_v30  ;;  %v10046_v31 = vrot.slane %v10032_v19, %v17168_v61  ;;  %v16410_v5 = vsel %vm3411_vm11, %v9997_v17, %v10645_v36  ;;  %v10056_v33 = vrot.slane %v9695_v2, %v17168_v61 }
 0x47f   : > { %v10477_v52 = vrot.slane %v10470_v16, %v17168_v61  ;;  %v10486_v18 = vcombine.low %v16393_v9, %v10031_v35  ;;  %v10047_v16 = vcombine.high %v10039_v38, %v10039_v38  ;;  %v10073_v10 = vrot.slane %v9696_v12, %v17168_v61 }
 0x480   : > { %v10935_v46 = vrot.slane %v10867_v7, 4  ;;  %v10048_v19 = vcombine.high %v10046_v31, %v10046_v31  ;;  %v10064_v2 = vcombine.high %v10056_v33, %v10056_v33  ;;  %v10731_v22 = vrot.slane %v10056_v33, %v17169_v43 }
 0x481   : > { %v16403_v25 = vpop.f32.mrb[148].mxu1  ;;  %v10485_v41 = vcombine.low %v10477_v52, %v10484_v11  ;;  %v10494_v17 = vrot.slane %v10486_v18, %v17168_v61  ;;  %v10487_v48 = vcombine.low %v10039_v38, %v10047_v16  ;;  %v9658_v38 = vadd.f32 %v16344_v53, %v16066_v20 }
 0x482   : > { %v12829_v54 = vpop.f32.mrb[149].mxu1  ;;  %v16420_v35 = vmax.f32 %v10867_v7, %v10935_v46  ;;  %v10503_v24 = vcombine.low %v10046_v31, %v10048_v19  ;;  %v10081_v46 = vcombine.high %v10073_v10, %v10073_v10  ;;  %v9666_v20 = vadd.f32 %v16380_v32, %v16077_v59 }
 0x483   : > { %v9673_v3 = vpop.f32.mrb[150].mxu1  ;;  %v10063_v54 = vrot.slane %v10049_v42, %v17168_v61  ;;  %v10646_v58 = vrot.slane %v10485_v41, 7  ;;  %v10501_v7 = vrot.slane %v10487_v48, %v17168_v61  ;;  %v9697_v16 = vmax.f32 %v9658_v38, 0.0 }
 0x484   : > { %v12830_v57 = vpop.f32.mrb[151].mxu1  ;;  %v10517_v3 = vrot.slane %v10056_v33, %v17168_v61  ;;  %v10510_v42 = vrot.slane %v10503_v24, %v17168_v61  ;;  %v9663_v24 = vadd.f32 %v16369_v23, %v16071_v21 }
 0x485   : > { %v10065_v13 = vcombine.high %v10063_v54, %v10063_v54  ;;  %v10647_v11 = vsel %vm3411_vm11, %v10645_v36, %v10646_v58  ;;  %v10519_v52 = vcombine.low %v10064_v2, %v10063_v54  ;;  %v10066_v57 = vcombine.high %v9696_v12, %v9696_v12 }
 0x486   : > { %v16427_v18 = vsel %vm3566_vm12, %v10647_v11, %v10727_v51  ;;  %v10502_v33 = vcombine.low %v10494_v17, %v10501_v7  ;;  %v10518_v51 = vcombine.low %v10510_v42, %v10517_v3  ;;  %v10083_v3 = vcombine.high %v9697_v16, %v9697_v16 }
 0x487   : > { %v10527_v36 = vrot.slane %v10519_v52, %v17168_v61  ;;  %v10080_v12 = vrot.slane %v10066_v57, %v17168_v61  ;;  %v10520_v41 = vcombine.low %v10065_v13, %v10073_v10  ;;  %v10090_v13 = vrot.slane %v9697_v16, %v17168_v61 }
 0x488   : > { %v10648_v53 = vrot.slane %v10502_v33, 7  ;;  %v10649_v19 = vrot.slane %v10518_v51, 7  ;;  %v9698_v16 = vmax.f32 %v9663_v24, 0.0 }
 0x489   : > { %v10082_v48 = vcombine.high %v10080_v12, %v10080_v12  ;;  %v10534_v54 = vrot.slane %v10520_v41, %v17168_v61  ;;  %v10536_v11 = vcombine.low %v10081_v46, %v10080_v12  ;;  %v10097_v46 = vrot.slane %v10083_v3, %v17168_v61 }
 0x48a   : > { %v16449_v10 = vsel %vm3411_vm11, %v16393_v9, %v10648_v53  ;;  %v10650_v21 = vsel %vm3411_vm11, %v10648_v53, %v10649_v19  ;;  %v10098_v41 = vcombine.high %v10090_v13, %v10090_v13  ;;  %v9699_v53 = vmax.f32 %v9666_v20, 0.0 }
 0x48b   : > { %v10550_v52 = vrot.slane %v10082_v48, %v17168_v61  ;;  %v10735_v17 = vrot.slane %v10082_v48, %v17169_v43  ;;  %v10535_v23 = vcombine.low %v10527_v36, %v10534_v54  ;;  %v10543_v59 = vrot.slane %v10536_v11, %v17168_v61 }
 0x48c   : > { %v10794_v32 = vmax.f32 %v16410_v5, %v16449_v10  ;;  %v11330_v57 = vcombine.low %v16365_v56, %v16449_v10  ;;  %v16460_v42 = vsel %vm3566_vm12, %v10650_v21, %v10731_v22  ;;  %v10099_v54 = vcombine.high %v10097_v46, %v10097_v46 }
 0x48d   : > { %v10795_v9 = vmax.f32 %v16427_v18, %v16460_v42  ;;  %v10551_v12 = vcombine.low %v10543_v59, %v10550_v52  ;;  %v10651_v51 = vrot.slane %v10535_v23, 7  ;;  %v10552_v11 = vcombine.low %v10090_v13, %v10098_v41 }
 0x48e   : > { %v10874_v33 = vrot.slane %v10794_v32, %v13554_v30  ;;  %v10100_v59 = vcombine.high %v9698_v16, %v9698_v16  ;;  %v10107_v23 = vrot.slane %v9698_v16, %v17168_v61  ;;  %v10117_v41 = vcombine.high %v9699_v53, %v9699_v53 }
 0x48f   : > { %v10881_v48 = vrot.slane %v10795_v9, %v13554_v30  ;;  %v10652_v22 = vrot.slane %v10551_v12, 7  ;;  %v16472_v21 = vsel %vm3411_vm11, %v10064_v2, %v10651_v51  ;;  %v10553_v9 = vcombine.low %v10097_v46, %v10099_v54 }
 0x490   : > { %v10936_v19 = vrot.slane %v10874_v33, 4  ;;  %v10560_v24 = vrot.slane %v10552_v11, %v17168_v61  ;;  %v10114_v12 = vrot.slane %v10100_v59, %v17168_v61  ;;  %v10115_v2 = vcombine.high %v10107_v23, %v10107_v23 }
 0x491   : > { %v10937_v58 = vrot.slane %v10881_v48, 4  ;;  %v10653_v52 = vsel %vm3411_vm11, %v10651_v51, %v10652_v22  ;;  %v10567_v36 = vrot.slane %v10553_v9, %v17168_v61  ;;  %v10124_v51 = vrot.slane %v9699_v53, %v17168_v61  ;;  %v17173_v53 = vld [vmem:[#allocation11_spill] sm:$0xff] }
 0x492   : > { %v16476_v32 = vmax.f32 %v10874_v33, %v10936_v19  ;;  %v16479_v3 = vsel %vm3566_vm12, %v10653_v52, %v10735_v17  ;;  %v9671_v33 = vadd.f32 %v16403_v25, %v16081_v47  ;;  %v10994_v22 = vunpack.c.0.s8 %v16199_v45 }
 0x493   : > { %v16482_v20 = vmax.f32 %v10881_v48, %v10937_v58  ;;  %v10569_v17 = vcombine.low %v10107_v23, %v10115_v2  ;;  %v10583_v46 = vrot.slane %v10114_v12, %v17168_v61  ;;  %v10739_v16 = vrot.slane %v10114_v12, %v17169_v43 }
 0x494   : > { %v10116_v58 = vcombine.high %v10114_v12, %v10114_v12  ;;  %v10568_v48 = vcombine.low %v10560_v24, %v10567_v36  ;;  %v10131_v19 = vrot.slane %v10117_v41, %v17168_v61  ;;  %v10132_v54 = vcombine.high %v10124_v51, %v10124_v51 }
 0x495   : > { %v9700_v11 = vmax.f32 %v9671_v33, 0.0  ;;  %v10576_v52 = vrot.slane %v10569_v17, %v17168_v61  ;;  %v16495_v9 = vsub.s32 %v10994_v22, %v17173_v53  ;;  %v17174_v47 = vcombine.low %v16108_v63, %v16127_v8 }
 0x496   : > { %v10585_v59 = vcombine.low %v10116_v58, %v10124_v51  ;;  %v10654_v25 = vrot.slane %v10568_v48, 7  ;;  %v10586_v23 = vcombine.low %v10132_v54, %v10131_v19  ;;  %v10133_v2 = vcombine.high %v10131_v19, %v10131_v19 }
 0x497   : > { %v11186_v45 = vrot.slane %v17174_v47, %v17168_v61  ;;  %v10140_v36 = vrot.slane %v9700_v11, %v17168_v61  ;;  %v10584_v24 = vcombine.low %v10576_v52, %v10583_v46  ;;  %v17175_v41 = vcombine.low %v16108_v63, %v16165_v1 }
 0x498   : > { %v10593_v12 = vrot.slane %v10585_v59, %v17168_v61  ;;  %v17176_v33 = vcombine.low %v16205_v44, %v16256_v39  ;;  %v16512_v17 = vsel %vm3411_vm11, %v10090_v13, %v10654_v25  ;;  %v10600_v48 = vrot.slane %v10586_v23, %v17168_v61 }
 0x499   : > { %v11202_v51 = vrot.slane %v17175_v41, %v17168_v61  ;;  %v10141_v19 = vcombine.high %v10140_v36, %v10140_v36  ;;  %v10602_v54 = vcombine.low %v10133_v2, %v10140_v36  ;;  %v10796_v46 = vmax.f32 %v16472_v21, %v16512_v17 }
 0x49a   : > { %v11218_v22 = vrot.slane %v17176_v33, %v17168_v61  ;;  %v10655_v11 = vrot.slane %v10584_v24, 7  ;;  %v17177_v52 = vcombine.low %v16227_v55, %v16300_v40  ;;  %v10601_v47 = vcombine.low %v10593_v12, %v10600_v48 }
 0x49b   : > { %v11243_v53 = vcombine.high %v11186_v45, %v11202_v51  ;;  %v10609_v41 = vrot.slane %v10602_v54, %v17168_v61  ;;  %v10616_v13 = vrot.slane %v10141_v19, %v17168_v61  ;;  %v10743_v33 = vrot.slane %v10141_v19, %v17169_v43 }
 0x49c   : > { %v11234_v59 = vrot.slane %v17177_v52, %v17168_v61  ;;  %v10888_v23 = vrot.slane %v10796_v46, %v13554_v30  ;;  %v10656_v2 = vsel %vm3411_vm11, %v10654_v25, %v10655_v11  ;;  %v10657_v52 = vrot.slane %v10601_v47, 7 }
 0x49d   : > { %v16527_v36 = vrot.slane %v11243_v53, %v16495_v9  ;;  %v16530_v38 = vsel %vm3566_vm12, %v10656_v2, %v10739_v16  ;;  %v10617_v31 = vcombine.low %v10609_v41, %v10616_v13  ;;  %v17178_v12 = vcombine.low %v16349_v60, %v16410_v5 }
 0x49e   : > { %v11275_v24 = vcombine.high %v11218_v22, %v11234_v59  ;;  %v10938_v54 = vrot.slane %v10888_v23, 4  ;;  %v10797_v43 = vmax.f32 %v16479_v3, %v16530_v38  ;;  %v11338_v16 = vrot.slane %v11330_v57, %v17168_v61 }
 0x49f   : > { %v11322_v48 = vrot.slane %v17178_v12, %v17168_v61  ;;  %v16546_v19 = vsel %vm3411_vm11, %v10116_v58, %v10657_v52  ;;  %v10658_v46 = vrot.slane %v10617_v31, 7  ;;  %v11242_v11 = vcombine.low %v11186_v45, %v11202_v51 }
 0x4a0   : > { %v16539_v25 = vrot.slane %v11275_v24, %v16495_v9  ;;  %v11274_v53 = vcombine.low %v11218_v22, %v11234_v59  ;;  %v10970_v47 = vmax.f32 %v10888_v23, %v10938_v54  ;;  %v10895_v41 = vrot.slane %v10797_v43, %v13554_v30 }
 0x4a1   : > { %v10902_v13 = vrot.slane %v16546_v19, %v13554_v30  ;;  %v10659_v24 = vsel %vm3411_vm11, %v10657_v52, %v10658_v46  ;;  %v11346_v57 = vcombine.low %v16472_v21, %v16546_v19  ;;  %v11362_v58 = vcombine.low %v16512_v17, %v16546_v19 }
 0x4a2   : > { %v11308_v2 = vcombine.low %v16527_v36, %v16539_v25  ;;  %v11379_v31 = vcombine.high %v11322_v48, %v11338_v16  ;;  %v11008_v45 = vcombine.low %v16395_v49, %v10970_v47  ;;  %v10939_v51 = vrot.slane %v10895_v41, 4 }
 0x4a3   : > { %v10940_v22 = vrot.slane %v10902_v13, 4  ;;  %v16560_v59 = vsel %vm3566_vm12, %v10659_v24, %v10743_v33  ;;  %v11354_v12 = vrot.slane %v11346_v57, %v17168_v61  ;;  %v11370_v52 = vrot.slane %v11362_v58, %v17168_v61 }
 0x4a4   : > { %v10909_v23 = vrot.slane %v16560_v59, %v13554_v30  ;;  %v11393_v54 = vrot.slane %v11379_v31, %v16495_v9  ;;  %v16568_v43 = vrot.slane %v11008_v45, %v17168_v61  ;;  %v10971_v46 = vmax.f32 %v10895_v41, %v10939_v51 }
 0x4a5   : > { %v10972_v7 = vmax.f32 %v10902_v13, %v10940_v22  ;;  %v16571_v49 = vrot.slane %v11242_v11, %v16495_v9  ;;  %v11411_v33 = vcombine.high %v11354_v12, %v11370_v52  ;;  %v16574_v24 = vrot.slane %v11274_v53, %v16495_v9 }
 0x4a6   : > { %v10941_v47 = vrot.slane %v10909_v23, 4  ;;  %v11378_v30 = vcombine.low %v11322_v48, %v11338_v16  ;;  %v11076_v57 = vcombine.low %v16420_v35, %v10971_v46  ;;  %v11410_v0 = vcombine.low %v11354_v12, %v11370_v52 }
 0x4a7   : > { %v11016_v58 = vcombine.low %v16476_v32, %v10972_v7  ;;  %v17179_v31 = vcombine.high %v16108_v63, %v16127_v8  ;;  %v11425_v11 = vrot.slane %v11411_v33, %v16495_v9  ;;  %v11307_v45 = vcombine.high %v16571_v49, %v16574_v24 }
 0x4a8   : > { %v10973_v13 = vmax.f32 %v10909_v23, %v10941_v47  ;;  %v16586_v53 = vrot.slane %v11378_v30, %v16495_v9  ;;  %v16589_v48 = vrot.slane %v11076_v57, %v17168_v61  ;;  %v16595_v7 = vrot.slane %v11410_v0, %v16495_v9 }
 0x4a9   : > { %v11193_v41 = vrot.slane %v17179_v31, %v17168_v61  ;;  %v16592_v35 = vrot.slane %v11016_v58, %v17168_v61  ;;  %v17180_v8 = vcombine.high %v16108_v63, %v16165_v1  ;;  %v11444_v51 = vcombine.low %v11393_v54, %v11425_v11 }
 0x4aa   : > { %v11084_v16 = vcombine.low %v16482_v20, %v10973_v13  ;;  %v17181_v22 = vcombine.high %v16205_v44, %v16256_v39  ;;  %v17182_v12 = vcombine.high %v16227_v55, %v16300_v40  ;;  %v11443_v1 = vcombine.high %v16586_v53, %v16595_v7 }
 0x4ab   : > { %v11209_v32 = vrot.slane %v17180_v8, %v17168_v61  ;;  %v11024_v0 = vcombine.low %v16568_v43, %v16592_v35  ;;  %v11025_v63 = vcombine.high %v16568_v43, %v16592_v35  ;;  %v12933_v44 = vpack.i.bf16 %v11444_v51, %v11308_v2 }
 0x4ac   : > { %v11225_v23 = vrot.slane %v17181_v22, %v17168_v61  ;;  %v11241_v52 = vrot.slane %v17182_v12, %v17168_v61  ;;  %v16617_v46 = vrot.slane %v11084_v16, %v17168_v61  ;;  %v17183_v55 = vcombine.high %v16349_v60, %v16410_v5 }
 0x4ad   : > { %v11258_v20 = vcombine.low %v11193_v41, %v11209_v32  ;;  %v12928_v47 = vpack.i.bf16 %v11443_v1, %v11307_v45  ;;  %v17184_v30 = vcombine.high %v16365_v56, %v16449_v10  ;;  %v11347_v58 = vcombine.high %v16472_v21, %v16546_v19  ;;  %12934 = vrot.lane.b32.xlu1 %v12933_v44, %s13233_s20  ;;  %s13243_s20 = smov 56  }
 0x4ae   : > { %v11290_v39 = vcombine.low %v11225_v23, %v11241_v52  ;;  %v11329_v40 = vrot.slane %v17183_v55, %v17168_v61  ;;  %v11092_v2 = vcombine.low %v16589_v48, %v16617_v46  ;;  %v11093_v31 = vcombine.high %v16589_v48, %v16617_v46 }
 0x4af   : > { %v11266_v33 = vrot.slane %v11258_v20, %v16495_v9  ;;  %v11345_v57 = vrot.slane %v17184_v30, %v17168_v61  ;;  %v11363_v5 = vcombine.high %v16512_v17, %v16546_v19  ;;  %12929 = vrot.lane.b32.xlu0 %v12928_v47, %s13229_s11  ;;  %v11361_v56 = vrot.slane %v11347_v58, %v17168_v61  ;;  %s13241_s11 = smov 40  }
 0x4b0   : > { %v11298_v60 = vrot.slane %v11290_v39, %v16495_v9  ;;  %v11309_v21 = vcombine.high %v16527_v36, %v16539_v25  ;;  %v11445_v13 = vcombine.high %v11393_v54, %v11425_v11  ;;  %v11259_v16 = vcombine.high %v11193_v41, %v11209_v32 }
 0x4b1   : > { %v11394_v10 = vcombine.low %v11329_v40, %v11345_v57  ;;  %v11377_v8 = vrot.slane %v11363_v5, %v17168_v61  ;;  %v11291_v51 = vcombine.high %v11225_v23, %v11241_v52  ;;  %v11395_v1 = vcombine.high %v11329_v40, %v11345_v57 }
 0x4b2   : > { %v11310_v45 = vcombine.low %v11266_v33, %v11298_v60  ;;  %v12938_v12 = vpack.i.bf16 %v11445_v13, %v11309_v21  ;;  %v11311_v20 = vcombine.high %v11266_v33, %v11298_v60  ;;  %v11273_v19 = vrot.slane %v11259_v16, %v16495_v9 }
 0x4b3   : > { %v11402_v22 = vrot.slane %v11394_v10, %v16495_v9  ;;  %v11426_v17 = vcombine.low %v11361_v56, %v11377_v8  ;;  %v11305_v44 = vrot.slane %v11291_v51, %v16495_v9  ;;  %v11427_v39 = vcombine.high %v11361_v56, %v11377_v8 }
 0x4b4   : > { %12939 = vrot.lane.b32.xlu0 %v12938_v12, %s13230_s17  ;;  %v11409_v36 = vrot.slane %v11395_v1, %v16495_v9  ;;  %v17185_v25 = vcombine.low %v16119_v4, %v16137_v28  ;;  %v17186_v41 = vcombine.low %v16119_v4, %v16178_v14  ;;  %v17187_v32 = vcombine.low %v16217_v50, %v16273_v26  ;;  %s13242_s17 = smov 48  }
 0x4b5   : > { %v11434_v52 = vrot.slane %v11426_v17, %v16495_v9  ;;  %v11312_v55 = vcombine.low %v11273_v19, %v11305_v44  ;;  %v11441_v40 = vrot.slane %v11427_v39, %v16495_v9  ;;  %v11313_v47 = vcombine.high %v11273_v19, %v11305_v44 }
 0x4b6   : > { %v11458_v54 = vrot.slane %v17185_v25, %v17168_v61  ;;  %v11474_v11 = vrot.slane %v17186_v41, %v17168_v61  ;;  %v11490_v23 = vrot.slane %v17187_v32, %v17168_v61  ;;  %v17188_v33 = vcombine.low %v16243_v29, %v16323_v15 }
 0x4b7   : > { %v17189_v58 = vcombine.low %v16361_v6, %v16427_v18  ;;  %v17190_v5 = vcombine.low %v16390_v37, %v16460_v42  ;;  %v11446_v10 = vcombine.low %v11402_v22, %v11434_v52  ;;  %v11448_v21 = vcombine.low %v11409_v36, %v11441_v40 }
 0x4b8   : > { %v11506_v30 = vrot.slane %v17188_v33, %v17168_v61  ;;  %v11514_v57 = vcombine.low %v11458_v54, %v11474_v11  ;;  %v11447_v13 = vcombine.high %v11402_v22, %v11434_v52  ;;  %v11449_v8 = vcombine.high %v11409_v36, %v11441_v40 }
 0x4b9   : > { %v11594_v60 = vrot.slane %v17189_v58, %v17168_v61  ;;  %v11610_v56 = vrot.slane %v17190_v5, %v17168_v61  ;;  %v11618_v12 = vcombine.low %v16479_v3, %v16560_v59  ;;  %v11634_v1 = vcombine.low %v16530_v38, %v16560_v59 }
 0x4ba   : > { %v11522_v16 = vrot.slane %v11514_v57, %v16495_v9  ;;  %v11546_v51 = vcombine.low %v11490_v23, %v11506_v30  ;;  %v12943_v17 = vpack.i.bf16 %v11446_v10, %v11310_v45  ;;  %v12953_v19 = vpack.i.bf16 %v11448_v21, %v11312_v55 }
 0x4bb   : > { %v12948_v44 = vpack.i.bf16 %v11447_v13, %v11311_v20  ;;  %v12958_v39 = vpack.i.bf16 %v11449_v8, %v11313_v47  ;;  %v11626_v41 = vrot.slane %v11618_v12, %v17168_v61  ;;  %v11642_v22 = vrot.slane %v11634_v1, %v17168_v61 }
 0x4bc   : > { %v11554_v25 = vrot.slane %v11546_v51, %v16495_v9  ;;  %v11650_v36 = vcombine.low %v11594_v60, %v11610_v56  ;;  %12944 = vrot.lane.b32.xlu1 %v12943_v17, %s13235_s28  ;;  %v11515_v32 = vcombine.high %v11458_v54, %v11474_v11  ;;  %v11547_v52 = vcombine.high %v11490_v23, %v11506_v30  ;;  %s13244_s28 = smov 64  }
 0x4bd   : > { %12949 = vrot.lane.b32.xlu0 %v12948_v44, %s13241_s11  ;;  %v11651_v40 = vcombine.high %v11594_v60, %v11610_v56  ;;  %v11682_v55 = vcombine.low %v11626_v41, %v11642_v22  ;;  %v11683_v5 = vcombine.high %v11626_v41, %v11642_v22  ;;  %v17191_v54 = vcombine.high %v16119_v4, %v16137_v28  ;;  %s13250_s11 = smov 112  }
 0x4be   : > { %v11578_v33 = vcombine.low %v11522_v16, %v11554_v25  ;;  %v11658_v45 = vrot.slane %v11650_v36, %v16495_v9  ;;  %v11579_v20 = vcombine.high %v11522_v16, %v11554_v25  ;;  %v11529_v47 = vrot.slane %v11515_v32, %v16495_v9 }
 0x4bf   : > { %v11561_v57 = vrot.slane %v11547_v52, %v16495_v9  ;;  %v11665_v58 = vrot.slane %v11651_v40, %v16495_v9  ;;  %v11690_v10 = vrot.slane %v11682_v55, %v16495_v9  ;;  %v11465_v11 = vrot.slane %v17191_v54, %v17168_v61 }
 0x4c0   : > { %v17192_v23 = vcombine.high %v16119_v4, %v16178_v14  ;;  %v17193_v60 = vcombine.high %v16217_v50, %v16273_v26  ;;  %12954 = vrot.lane.b32.xlu1 %v12953_v19, %s13242_s17  ;;  %v11697_v13 = vrot.slane %v11683_v5, %v16495_v9  ;;  %v17194_v4 = vcombine.high %v16243_v29, %v16323_v15  ;;  %s13251_s17 = smov 120  }
 0x4c1   : > { %12959 = vrot.lane.b32.xlu0 %v12958_v39, %s13243_s20  ;;  %v11580_v21 = vcombine.low %v11529_v47, %v11561_v57  ;;  %v11581_v8 = vcombine.high %v11529_v47, %v11561_v57  ;;  %v11714_v28 = vcombine.low %v11658_v45, %v11690_v10  ;;  %v11715_v16 = vcombine.high %v11658_v45, %v11690_v10 }
 0x4c2   : > { %v11481_v30 = vrot.slane %v17192_v23, %v17168_v61  ;;  %v11497_v56 = vrot.slane %v17193_v60, %v17168_v61  ;;  %v11513_v14 = vrot.slane %v17194_v4, %v17168_v61  ;;  %v11716_v12 = vcombine.low %v11665_v58, %v11697_v13  ;;  %v17198_v23 = vld [vmem:[#allocation17_spill] sm:$0xff] }
 0x4c3   : > { %v11717_v1 = vcombine.high %v11665_v58, %v11697_v13  ;;  %v17195_v50 = vcombine.high %v16361_v6, %v16427_v18  ;;  %v17196_v17 = vcombine.high %v16390_v37, %v16460_v42  ;;  %v12963_v44 = vpack.i.bf16 %v11714_v28, %v11578_v33 }
 0x4c4   : > { %v11530_v51 = vcombine.low %v11465_v11, %v11481_v30  ;;  %v12968_v39 = vpack.i.bf16 %v11715_v16, %v11579_v20  ;;  %v11562_v41 = vcombine.low %v11497_v56, %v11513_v14  ;;  %v12973_v29 = vpack.i.bf16 %v11716_v12, %v11580_v21 }
 0x4c5   : > { %v11601_v26 = vrot.slane %v17195_v50, %v17168_v61  ;;  %v11617_v19 = vrot.slane %v17196_v17, %v17168_v61  ;;  %v12978_v15 = vpack.i.bf16 %v11717_v1, %v11581_v8  ;;  %v11619_v22 = vcombine.high %v16479_v3, %v16560_v59  ;;  %12964 = vrot.lane.b32.xlu1 %v12963_v44, %s13244_s28  ;;  %v17201_v17 = vld [vmem:[#allocation20_spill] sm:$0xff] }
 0x4c6   : > { %v11538_v25 = vrot.slane %v11530_v51, %v16495_v9  ;;  %v11635_v36 = vcombine.high %v16530_v38, %v16560_v59  ;;  %12969 = vrot.lane.b32.xlu0 %v12968_v39, %s13245_s15  ;;  %v11570_v6 = vrot.slane %v11562_v41, %v16495_v9  ;;  %v11531_v18 = vcombine.high %v11465_v11, %v11481_v30 }
 0x4c7   : > { %v11666_v37 = vcombine.low %v11601_v26, %v11617_v19  ;;  %v11633_v42 = vrot.slane %v11619_v22, %v17168_v61  ;;  %v11563_v52 = vcombine.high %v11497_v56, %v11513_v14  ;;  %v11667_v40 = vcombine.high %v11601_v26, %v11617_v19  ;;  %v17200_v26 = vld [vmem:[#allocation22_spill] sm:$0xff] }
 0x4c8   : > { %v11649_v32 = vrot.slane %v11635_v36, %v17168_v61  ;;  %v17197_v3 = vcombine.low %v16270_v62, %v16332_v34  ;;  %v11582_v59 = vcombine.low %v11538_v25, %v11570_v6  ;;  %v11583_v45 = vcombine.high %v11538_v25, %v11570_v6 }
 0x4c9   : > { %v11674_v33 = vrot.slane %v11666_v37, %v16495_v9  ;;  %v11545_v20 = vrot.slane %v11531_v18, %v16495_v9  ;;  %v11577_v47 = vrot.slane %v11563_v52, %v16495_v9  ;;  %12974 = vrot.lane.b32.xlu1 %v12973_v29, %s13246_s12  ;;  %v11681_v58 = vrot.slane %v11667_v40, %v16495_v9  ;;  %s16774_s12 = scalar_lea.hbm %s16872_s5, %s12285_s10 }
 0x4ca   : > { %v10989_v38 = vrot.slane %v17197_v3, %v17168_v61  ;;  %v11698_v55 = vcombine.low %v11633_v42, %v11649_v32  ;;  %v11699_v57 = vcombine.high %v11633_v42, %v11649_v32  ;;  %12979 = vrot.lane.b32.xlu0 %v12978_v15, %s13247_s16  ;;  %v11442_v62 = vcombine.low %v16586_v53, %v16595_v7  ;;  %s11894_s16 = scalar_lea.sflag [#allocation4], %s16741_s9 }
 0x4cb   : > { %v11306_v34 = vcombine.low %v16571_v49, %v16574_v24  ;;  %v11584_v10 = vcombine.low %v11545_v20, %v11577_v47  ;;  %v11585_v11 = vcombine.high %v11545_v20, %v11577_v47  ;;  %v17199_v30 = vcombine.low %v16144_v27, %v17198_v23 }
 0x4cc   : > { %v11706_v5 = vrot.slane %v11698_v55, %v16495_v9  ;;  %v11713_v54 = vrot.slane %v11699_v57, %v16495_v9  ;;  %v11039_v27 = vrot.slane %v11025_v63, %v16495_v9  ;;  %v17202_v19 = vcombine.low %v17200_v26, %v17201_v17 }
 0x4cd   : > { %v10981_v60 = vrot.slane %v17199_v30, %v17168_v61  ;;  %v11032_v61 = vrot.slane %v11024_v0, %v16495_v9  ;;  %v17203_v39 = vcombine.high %v17200_v26, %v17201_v17  ;;  %v11100_v43 = vrot.slane %v11092_v2, %v16495_v9 }
 0x4ce   : > { %v11718_v56 = vcombine.low %v11674_v33, %v11706_v5  ;;  %v11719_v21 = vcombine.high %v11674_v33, %v11706_v5  ;;  %v11720_v13 = vcombine.low %v11681_v58, %v11713_v54  ;;  %v11721_v8 = vcombine.high %v11681_v58, %v11713_v54 }
 0x4cf   : > { %v10990_v28 = vcombine.low %v10981_v60, %v10989_v38  ;;  %v10991_v16 = vcombine.high %v10981_v60, %v10989_v38  ;;  %v11066_v44 = vrot.slane %v17202_v19, %v16495_v9  ;;  %v11073_v0 = vrot.slane %v17203_v39, %v16495_v9 }
 0x4d0   : > { %v12983_v4 = vpack.i.bf16 %v11718_v56, %v11582_v59  ;;  %v12988_v14 = vpack.i.bf16 %v11719_v21, %v11583_v45  ;;  %v12993_v51 = vpack.i.bf16 %v11720_v13, %v11584_v10  ;;  %v12998_v12 = vpack.i.bf16 %v11721_v8, %v11585_v11 }
 0x4d1   : > { %v10998_v1 = vrot.slane %v10990_v28, %v16495_v9  ;;  %v11005_v50 = vrot.slane %v10991_v16, %v16495_v9  ;;  %v11107_v35 = vrot.slane %v11093_v31, %v16495_v9  ;;  %v11128_v15 = vcombine.low %v11066_v44, %v11100_v43 }
 0x4d2   : > { %12984 = vrot.lane.b32.xlu1 %v12983_v4, %s13248_s26  ;;  %12989 = vrot.lane.b32.xlu0 %v12988_v14, %s13249_s29  ;;  %v12262_v22 = vcombine.high %v11066_v44, %v11100_v43  ;;  %s13252_s26 = smov [#allocation5]  }
 0x4d3   : > { %v11112_v63 = vcombine.low %v10998_v1, %v11032_v61  ;;  %v12260_v25 = vcombine.high %v10998_v1, %v11032_v61  ;;  %v11120_v41 = vcombine.low %v11005_v50, %v11039_v27  ;;  %v12261_v29 = vcombine.high %v11005_v50, %v11039_v27  ;;  %s13129_s29 = sshll.u32 %s13252_s26, 4  ;;  %s13130_s29 = int_to_ptr.vmem [resolvable:$false] %s13129_s29 }
 0x4d4   : > { %v11136_v36 = vcombine.low %v11073_v0, %v11107_v35  ;;  %v12263_v6 = vcombine.high %v11073_v0, %v11107_v35  ;;  %v12281_v9 = vpack.c.bf16 %v12262_v22, %v11128_v15  ;;  %p13132_p2 = scmp.lt.s32.totalorder %s16776_s14, %s13130_s29 }
 0x4d5   : > { %v12279_v37 = vpack.c.bf16 %v12260_v25, %v11112_v63  ;;  %v12280_v48 = vpack.c.bf16 %v12261_v29, %v11120_v41 }
 0x4d6   : > { %12994 = vrot.lane.b32.xlu1 %v12993_v51, %s13250_s11  ;;  %12999 = vrot.lane.b32.xlu0 %v12998_v12, %s13251_s17  ;;  %v12282_v46 = vpack.c.bf16 %v12263_v6, %v11136_v36  ;;  %11176 = vst [vmem:[%s263_s13 + $0x10] sm:$0xff] %v12281_v9  ;;  %s13131_s11 = scalar_lea.vmem %s13130_s29, 1024 }
 0x4d7   : > { %11174 = vst [vmem:[%s263_s13] sm:$0xff] %v12279_v37  ;;  %11175 = vst [vmem:[%s263_s13 + $0x8] sm:$0xff] %v12280_v48  ;;  %p13133_p3 = scmp.lt.s32.totalorder %s13131_s11, %s13125_s18 }
 0x4d8   : > { %11177 = vst [vmem:[%s263_s13 + $0x18] sm:$0xff] %v12282_v46 }
 0x4d9   : > { %p13134_p4 = por %p13133_p3, %p13132_p2 }
 0x4db   : > { %p13135_p7 = pnand %p13134_p4, %p13128_p12 }
 0x4dd   : > { %13138 = shalt.err (!%p13135_p7)
}
 0x4de   : > { %s13139_s10 = scalar_lea.hbm %s16774_s12, 512  ;;  %s13143_s20 = scalar_lea.hbm %s16872_s5, 1024 }
 0x4df   : > { %p13140_p8 = scmp.ne.s32.totalorder %s16774_s12, %s13139_s10  ;;  %p13144_p1 = scmp.lt.u32.totalorder %s16774_s12, %s16872_s5 }
 0x4e0   : > { %p13145_p0 = scmp.lt.u32.totalorder %s13143_s20, %s13139_s10  ;;  %p13147_p6 = scmp.lt.u32.totalorder %s13139_s10, %s16774_s12 }
 0x4e1   : > { %p13141_p11 = pnand %p13140_p8, %p17204_p9 }
 0x4e2   : > { %p13146_p5 = por %p13145_p0, %p13144_p1 }
 0x4e3   : > { %p13142_p13 = pneg %p13141_p11 }
 0x4e4   : > { %p13148_p10 = por %p13147_p6, %p13146_p5 }
 0x4e6   : > { %p13149_p12 = pnand %p13148_p10, %p13142_p13 }
 0x4e8   : > { %13152 = shalt.err (!%p13149_p12)
}
 0x4e9   : > { %12851 = dma.vmem_to_hbm [thread:$0]  (%p17204_p9), %s16776_s14, 512, %s16774_s12, %s11894_s16   ;;  %vm11850_vm13 = vcmask 326656   ;;  %vm11853_vm14 = vcmask 392192   ;;  %vm11856_vm15 = vcmask 457728   ;;  %vm11859_vm0 = vcmask 523264  }
 0x4ea   : > { %vm11862_vm1 = vcmask 588800   ;;  %vm11865_vm2 = vcmask 654336   ;;  %vm11871_vm4 = vcmask 785408   ;;  %s12039_s14 = sshll.u32 %s16741_s9, 3  ;;  %vm11877_vm6 = vcmask 916480   ;;  %s12286_s12 = sshll.u32 %s13310_s25, 7 }
 0x4eb   : > { %s270_s16 = scalar_lea.vmem [#allocation6], %s12039_s14  ;;  %s16819_s10 = scalar_lea.hbm %s16873_s6, %s12286_s12 }
 0x4ec   : > { %s11926_s18 = sshll.u32 %s270_s16, 4  ;;  %s11899_s13 = scalar_lea.sflag [#allocation7], %s16741_s9  ;;  %s16821_s18 = int_to_ptr.vmem [resolvable:$true] %s11926_s18 }
 0x4ed   : > { %s13153_s25 = scalar_lea.vmem %s16821_s18, 128  ;;  %s13253_s17 = smov [#allocation6]  }
 0x4ee   : > { %p13154_p2 = scmp.ne.s32.totalorder %s16821_s18, %s13153_s25  ;;  %s13157_s20 = sshll.u32 %s13253_s17, 4  ;;  %s13158_s20 = int_to_ptr.vmem [resolvable:$false] %s13157_s20 }
 0x4ef   : > { %s13159_s15 = scalar_lea.vmem %s13158_s20, 256  ;;  %p13160_p7 = scmp.lt.s32.totalorder %s16821_s18, %s13158_s20 }
 0x4f0   : > { %p13155_p3 = pnand %p13154_p2, %p17204_p9  ;;  %p13161_p8 = scmp.lt.s32.totalorder %s13159_s15, %s13153_s25 }
 0x4f2   : > { %p13156_p4 = pneg %p13155_p3  ;;  %p13162_p11 = por %p13161_p8, %p13160_p7 }
 0x4f4   : > { %p13163_p13 = pnand %p13162_p11, %p13156_p4 }
 0x51f   : > { %v12935_v31 = vpop.permute.xlu1 %12934 }
 0x520   : > { %v12937_v52 = vunpack.i.h.bf16 %v12935_v31  ;;  %v12936_v40 = vunpack.i.l.bf16 %v12935_v31 }
 0x521   : > { %v12930_v2 = vpop.permute.xlu0 %12929 }
 0x522   : > { %v12932_v42 = vunpack.i.h.bf16 %v12930_v2  ;;  %v12931_v32 = vunpack.i.l.bf16 %v12930_v2 }
 0x524   : > { %v11843_v3 = vsel %vm776_vm3, %v11442_v62, %v12932_v42  ;;  %v11842_v38 = vsel %vm776_vm3, %v11306_v34, %v12931_v32  ;;  %vm11868_vm3 = vcmask 719872  }
 0x525   : > { %v11844_v57 = vsel %vm834_vm5, %v11842_v38, %v12936_v40  ;;  %v11845_v58 = vsel %vm834_vm5, %v11843_v3, %v12937_v52  ;;  %vm11874_vm5 = vcmask 850944  }
 0x526   : > { %v12940_v18 = vpop.permute.xlu0 %12939 }
 0x527   : > { %v12942_v33 = vunpack.i.h.bf16 %v12940_v18  ;;  %v12941_v45 = vunpack.i.l.bf16 %v12940_v18 }
 0x529   : > { %v11846_v5 = vsel %vm892_vm7, %v11844_v57, %v12941_v45  ;;  %v11847_v53 = vsel %vm892_vm7, %v11845_v58, %v12942_v33  ;;  %vm11880_vm7 = vcmask 982016  }
 0x52e   : > { %v12945_v59 = vpop.permute.xlu1 %12944 }
 0x52f   : > { %v12950_v55 = vpop.permute.xlu0 %12949  ;;  %v12947_v20 = vunpack.i.h.bf16 %v12945_v59  ;;  %v12946_v47 = vunpack.i.l.bf16 %v12945_v59 }
 0x530   : > { %v12952_v62 = vunpack.i.h.bf16 %v12950_v55  ;;  %v12951_v10 = vunpack.i.l.bf16 %v12950_v55 }
 0x531   : > { %v11848_v54 = vsel %vm950_vm9, %v11846_v5, %v12946_v47  ;;  %v11849_v11 = vsel %vm950_vm9, %v11847_v53, %v12947_v20 }
 0x532   : > { %v12955_v7 = vpop.permute.xlu1 %12954  ;;  %v11851_v23 = vsel %vm11850_vm13, %v11848_v54, %v12951_v10  ;;  %v11852_v30 = vsel %vm11850_vm13, %v11849_v11, %v12952_v62 }
 0x533   : > { %v12960_v49 = vpop.permute.xlu0 %12959  ;;  %v12957_v24 = vunpack.i.h.bf16 %v12955_v7  ;;  %v12956_v34 = vunpack.i.l.bf16 %v12955_v7 }
 0x534   : > { %v12962_v60 = vunpack.i.h.bf16 %v12960_v49  ;;  %v12961_v56 = vunpack.i.l.bf16 %v12960_v49 }
 0x535   : > { %v11854_v8 = vsel %vm11853_vm14, %v11851_v23, %v12956_v34  ;;  %v11855_v28 = vsel %vm11853_vm14, %v11852_v30, %v12957_v24 }
 0x536   : > { %v11857_v14 = vsel %vm11856_vm15, %v11854_v8, %v12961_v56  ;;  %v11858_v51 = vsel %vm11856_vm15, %v11855_v28, %v12962_v60 }
 0x537   : > { %v12965_v21 = vpop.permute.xlu1 %12964 }
 0x538   : > { %v12970_v13 = vpop.permute.xlu0 %12969  ;;  %v12967_v16 = vunpack.i.h.bf16 %v12965_v21  ;;  %v12966_v4 = vunpack.i.l.bf16 %v12965_v21 }
 0x539   : > { %v12972_v12 = vunpack.i.h.bf16 %v12970_v13  ;;  %v12971_v1 = vunpack.i.l.bf16 %v12970_v13 }
 0x53a   : > { %v11861_v27 = vsel %vm11859_vm0, %v11858_v51, %v12967_v16  ;;  %v11860_v26 = vsel %vm11859_vm0, %v11857_v14, %v12966_v4 }
 0x53b   : > { %v12975_v50 = vpop.permute.xlu1 %12974  ;;  %v11863_v44 = vsel %vm11862_vm1, %v11860_v26, %v12971_v1  ;;  %v11864_v39 = vsel %vm11862_vm1, %v11861_v27, %v12972_v12 }
 0x53c   : > { %v12980_v61 = vpop.permute.xlu0 %12979  ;;  %v12977_v17 = vunpack.i.h.bf16 %v12975_v50  ;;  %v12976_v19 = vunpack.i.l.bf16 %v12975_v50 }
 0x53d   : > { %v12982_v0 = vunpack.i.h.bf16 %v12980_v61  ;;  %v12981_v43 = vunpack.i.l.bf16 %v12980_v61 }
 0x53e   : > { %v11866_v35 = vsel %vm11865_vm2, %v11863_v44, %v12976_v19  ;;  %v11867_v63 = vsel %vm11865_vm2, %v11864_v39, %v12977_v17 }
 0x53f   : > { %v11869_v25 = vsel %vm11868_vm3, %v11866_v35, %v12981_v43  ;;  %v11870_v41 = vsel %vm11868_vm3, %v11867_v63, %v12982_v0 }
 0x544   : > { %v12985_v29 = vpop.permute.xlu1 %12984  ;;  %v12990_v15 = vpop.permute.xlu0 %12989 }
 0x545   : > { %v12987_v22 = vunpack.i.h.bf16 %v12985_v29  ;;  %v12986_v36 = vunpack.i.l.bf16 %v12985_v29  ;;  %v12992_v6 = vunpack.i.h.bf16 %v12990_v15  ;;  %v12991_v37 = vunpack.i.l.bf16 %v12990_v15 }
 0x547   : > { %v11872_v48 = vsel %vm11871_vm4, %v11869_v25, %v12986_v36  ;;  %v11873_v9 = vsel %vm11871_vm4, %v11870_v41, %v12987_v22 }
 0x548   : > { %v11875_v46 = vsel %vm11874_vm5, %v11872_v48, %v12991_v37  ;;  %v11876_v2 = vsel %vm11874_vm5, %v11873_v9, %v12992_v6  ;;  %v12995_v31 = vpop.permute.xlu1 %12994  ;;  %v13000_v18 = vpop.permute.xlu0 %12999 }
 0x549   : > { %v12997_v42 = vunpack.i.h.bf16 %v12995_v31  ;;  %v12996_v32 = vunpack.i.l.bf16 %v12995_v31  ;;  %v13002_v52 = vunpack.i.h.bf16 %v13000_v18  ;;  %v13001_v40 = vunpack.i.l.bf16 %v13000_v18 }
 0x54b   : > { %v11878_v3 = vsel %vm11877_vm6, %v11875_v46, %v12996_v32  ;;  %v11879_v38 = vsel %vm11877_vm6, %v11876_v2, %v12997_v42 }
 0x54c   : > { %v11881_v59 = vsel %vm11880_vm7, %v11878_v3, %v13001_v40  ;;  %v11882_v33 = vsel %vm11880_vm7, %v11879_v38, %v13002_v52 }
 0x54d   : > { %v12290_v45 = vpack.c.bf16 %v11882_v33, %v11881_v59 }
 0x54f   : > { %12291 = vst [vmem:[%s270_s16] sm:$0xff] %v12290_v45  }
 0x550   : > { %13166 = shalt.err (!%p13163_p13)
}
 0x551   : > { %s13167_s26 = scalar_lea.hbm %s16819_s10, 128  ;;  %s13171_s16 = scalar_lea.hbm %s16873_s6, 256 }
 0x552   : > { %p13168_p1 = scmp.ne.s32.totalorder %s16819_s10, %s13167_s26  ;;  %p13172_p6 = scmp.lt.u32.totalorder %s16819_s10, %s16873_s6 }
 0x553   : > { %p13173_p10 = scmp.lt.u32.totalorder %s13171_s16, %s13167_s26  ;;  %p13175_p2 = scmp.lt.u32.totalorder %s13167_s26, %s16819_s10 }
 0x554   : > { %p13169_p0 = pnand %p13168_p1, %p17204_p9 }
 0x555   : > { %p13174_p12 = por %p13173_p10, %p13172_p6 }
 0x556   : > { %p13170_p5 = pneg %p13169_p0 }
 0x557   : > { %p13176_p3 = por %p13175_p2, %p13174_p12 }
 0x559   : > { %p13177_p4 = pnand %p13176_p3, %p13170_p5 }
 0x55b   : > { %13180 = shalt.err (!%p13177_p4)
}
 0x55c   : > { %12852 = dma.vmem_to_hbm [thread:$0]  (%p17204_p9), %s16821_s18, 128, %s16819_s10, %s11899_s13, %s13244_s28, %s13244_s28, %s13232_s19  }
 0x55d PF: > { %p12868_p7 = scmp.ge.s32.totalorder %s13223_s24, 2  ;;  %s11941_s25 = sand.u32 1, %s13211_s21  }
 0x55e   : > { %p17205_p8 = scmp.ne.s32.totalorder %s16996_s8, 0  ;;  %s11942_s17 = scalar_lea.sflag [#allocation4], %s11941_s25 }
 0x560   : > { %p12860_p11 = pnand %p12868_p7, %p17205_p8 }
 0x562   : > { %13202 = dma.done.wait (!%p12860_p11), %s11942_s17, 512  }
 0x563   : > { %13204 = vsyncadd (!%p12860_p11), %s11942_s17, 4294966784  ;;  %s11951_s7 = scalar_lea.sflag [#allocation7], %s11941_s25 }
 0x564   : > { %13206 = dma.done.wait (!%p12860_p11), %s11951_s7, 128  }
 0x565   : > { %13208 = vsyncadd (!%p12860_p11), %s11951_s7, 4294967168  ;;  %p21_p9 = scmp.ge.s32.totalorder %s13314_s27, 4   ;;  %s17206_s21 = smov %s13215_s22 }
 0x566   : > { %s17207_s22 = smov %s13219_s23  ;;  %s17208_s23 = smov %s13325_s30 }
 0x567   : > { %s17209_s24 = smov %s13314_s27  ;;  %23 = sbr.rel (!%p21_p9) target bundleno = 6 (0x6), region = 97 }
 0x56e   :  { %11956 = vsyncpa [#allocation3], 1 }
 0x56f   :  { %11958 = vsyncpa [#allocation3 + $0x1], 1 }
 0x570   :  { %11959 = vsyncpa [#allocation4], 1 }
 0x571   :  { %11961 = vsyncpa [#allocation4 + $0x1], 1 }
 0x572   :  { %11962 = vsyncpa [#allocation7], 1 }
 0x573   :  { %11964 = vsyncpa [#allocation7 + $0x1], 1 }

</bundles_post_ra>
